<compile_context>
chip_gen: v7x
topology: tpu7x:2x2x1
jax: 0.10.0
libtpu: 0.0.40
codegen_flags: <defaults>
</compile_context>

<pallas_src>
import jax
import jax.numpy as jnp
from jax.experimental import pallas as pl
from jax.experimental.pallas import tpu as pltpu

_LANES = 128


def _round_up(x, m):
    return (x + m - 1) // m * m


def _upconv_phase1_kernel(up_ref, skip_ref,
                          w2x2_ref, b2x2_ref,
                          w1_ref, b1_ref,
                          w2_ref, b2_ref,
                          r2_ref, stats_ref,
                          upp, skp, c1p, r1p):
    """Fused conv2x2 -> (concat) conv3x3+ReLU -> conv3x3+ReLU for one batch image.

    Emits r2 (pre-BatchNorm activations) and per-tile BatchNorm partial sums.
    All channel dims are already padded to multiples of 128 (lane-dense).
    """
    Hu, Wu, Cop = r2_ref.shape
    Cip = up_ref.shape[-1]
    Csp = skip_ref.shape[-1]
    rows = Hu * Wu
    f32 = jnp.float32
    bf16 = jnp.bfloat16

    # ---- stage `up` into a bottom/right zero-padded buffer (in-kernel halo) ----
    upp[:Hu, :Wu, :] = up_ref[...].astype(f32)
    upp[Hu:Hu + 1, :, :] = jnp.zeros((1, Wu + 1, Cip), f32)
    upp[:Hu, Wu:Wu + 1, :] = jnp.zeros((Hu, 1, Cip), f32)

    # ---- stage `skip` into an all-side zero-padded buffer (halo-only zeroing) ----
    skp[1:Hu + 1, 1:Wu + 1, :] = skip_ref[...].astype(f32)
    skp[0:1, :, :] = jnp.zeros((1, Wu + 2, Csp), f32)
    skp[Hu + 1:Hu + 2, :, :] = jnp.zeros((1, Wu + 2, Csp), f32)
    skp[1:Hu + 1, 0:1, :] = jnp.zeros((Hu, 1, Csp), f32)
    skp[1:Hu + 1, Wu + 1:Wu + 2, :] = jnp.zeros((Hu, 1, Csp), f32)

    # ---- conv2x2 on the upsampled input: ONE im2col matmul, K = 4*Cip ----
    taps = []
    for dy in range(2):
        for dx in range(2):
            taps.append(
                upp[dy:dy + Hu, dx:dx + Wu, :].reshape(rows, Cip).astype(bf16))
    patch0 = jnp.concatenate(taps, axis=-1)                      # (rows, 4*Cip) bf16
    c1 = jnp.dot(patch0, w2x2_ref[...],
                 preferred_element_type=f32) + b2x2_ref[...]     # (rows, Cop) f32

    # ---- write c1 into a zero-haloed scratch (halo-only zeroing, full-lane stores) ----
    c1p[0:1, :, :] = jnp.zeros((1, Wu + 2, Cop), f32)
    c1p[Hu + 1:Hu + 2, :, :] = jnp.zeros((1, Wu + 2, Cop), f32)
    c1p[1:Hu + 1, 0:1, :] = jnp.zeros((Hu, 1, Cop), f32)
    c1p[1:Hu + 1, Wu + 1:Wu + 2, :] = jnp.zeros((Hu, 1, Cop), f32)
    c1p[1:Hu + 1, 1:Wu + 1, :] = c1.reshape(Hu, Wu, Cop)

    # ---- conv1 (3x3 over concat([c1, skip])): ONE im2col matmul, concat folded into K ----
    taps_a, taps_b = [], []
    for ky in range(3):
        for kx in range(3):
            taps_a.append(
                c1p[ky:ky + Hu, kx:kx + Wu, :].reshape(rows, Cop).astype(bf16))
            taps_b.append(
                skp[ky:ky + Hu, kx:kx + Wu, :].reshape(rows, Csp).astype(bf16))
    patch1 = jnp.concatenate(taps_a + taps_b, axis=-1)           # (rows, 9*(Cop+Csp)) bf16
    r1 = jnp.maximum(
        jnp.dot(patch1, w1_ref[...], preferred_element_type=f32) + b1_ref[...],
        0.0)

    r1p[0:1, :, :] = jnp.zeros((1, Wu + 2, Cop), f32)
    r1p[Hu + 1:Hu + 2, :, :] = jnp.zeros((1, Wu + 2, Cop), f32)
    r1p[1:Hu + 1, 0:1, :] = jnp.zeros((Hu, 1, Cop), f32)
    r1p[1:Hu + 1, Wu + 1:Wu + 2, :] = jnp.zeros((Hu, 1, Cop), f32)
    r1p[1:Hu + 1, 1:Wu + 1, :] = r1.reshape(Hu, Wu, Cop)

    # ---- conv2 (3x3) + ReLU: ONE im2col matmul ----
    taps2 = []
    for ky in range(3):
        for kx in range(3):
            taps2.append(
                r1p[ky:ky + Hu, kx:kx + Wu, :].reshape(rows, Cop).astype(bf16))
    patch2 = jnp.concatenate(taps2, axis=-1)                     # (rows, 9*Cop) bf16
    r2 = jnp.maximum(
        jnp.dot(patch2, w2_ref[...], preferred_element_type=f32) + b2_ref[...],
        0.0)

    r2_ref[...] = r2.reshape(Hu, Wu, Cop)

    # ---- BatchNorm partial statistics for this tile (f32); cross-tile reduce in wrapper ----
    stats_ref[0:1, :] = jnp.sum(r2, axis=0, keepdims=True)
    stats_ref[1:2, :] = jnp.sum(r2 * r2, axis=0, keepdims=True)


def _bn_apply_kernel(r2_ref, scale_ref, shift_ref, out_ref):
    """Phase 2: apply precomputed per-channel scale/shift (BatchNorm normalization)."""
    out_ref[...] = r2_ref[...] * scale_ref[...] + shift_ref[...]


def init_upconv_params(key, input_channels, output_channels):
    """Deterministic synthetic init matching UpConv.__init__ shapes (OIHW weights)."""
    Ci, Co = input_channels, output_channels
    ks = jax.random.split(key, 6)

    def uni(k, shape, fan_in):
        bound = 1.0 / float(fan_in) ** 0.5
        return jax.random.uniform(k, shape, jnp.float32, -bound, bound)

    return dict(
        w2x2=uni(ks[0], (Co, Ci, 2, 2), Ci * 4),
        b2x2=uni(ks[1], (Co,), Ci * 4),
        w1=uni(ks[2], (Co, Ci, 3, 3), Ci * 9),
        b1=uni(ks[3], (Co,), Ci * 9),
        w2=uni(ks[4], (Co, Co, 3, 3), Co * 9),
        b2=uni(ks[5], (Co,), Co * 9),
        gamma=jnp.ones((Co,), jnp.float32),   # BatchNorm2d default init
        beta=jnp.zeros((Co,), jnp.float32),
    )


@jax.jit
def upconv_forward(params, input_tensor, contracting_path_tensor):
    """input_tensor: (N, Ci, H, W); contracting_path_tensor: (N, Ci-Co, 2H, 2W). NCHW in/out."""
    N, Ci, H, W = input_tensor.shape
    Co = params['w2x2'].shape[0]
    Cs = contracting_path_tensor.shape[1]
    assert Cs == Ci - Co, "channels after concat must equal conv1 in_channels"
    Hu, Wu = 2 * H, 2 * W

    # Lane-dense channel padding (no-op at realistic UNet widths that are already 128-multiples).
    Cip = _round_up(Ci, _LANES)
    Csp = _round_up(Cs, _LANES)
    Cop = _round_up(Co, _LANES)

    def pad_last(a, target):
        p = target - a.shape[-1]
        if p == 0:
            return a
        return jnp.pad(a, [(0, 0)] * (a.ndim - 1) + [(0, p)])

    # ---- activations: NCHW -> NHWC, bf16 matmul operands, nearest 2x upsample ----
    x_nhwc = jnp.transpose(input_tensor, (0, 2, 3, 1)).astype(jnp.bfloat16)
    up = jnp.repeat(jnp.repeat(x_nhwc, 2, axis=1), 2, axis=2)     # (N, Hu, Wu, Ci)
    up = pad_last(up, Cip)
    skip = pad_last(
        jnp.transpose(contracting_path_tensor, (0, 2, 3, 1)).astype(jnp.bfloat16), Csp)

    # ---- weights: OIHW -> HWIO -> channel-padded -> flattened im2col form (bf16) ----
    w2x2 = jnp.transpose(params['w2x2'], (2, 3, 1, 0))            # (2,2,Ci,Co)
    w2x2 = jnp.pad(w2x2, ((0, 0), (0, 0), (0, Cip - Ci), (0, Cop - Co)))
    w2x2_cat = w2x2.reshape(4 * Cip, Cop).astype(jnp.bfloat16)

    w1 = jnp.transpose(params['w1'], (2, 3, 1, 0))                # (3,3,Ci,Co)
    w1a = jnp.pad(w1[:, :, :Co, :],
                  ((0, 0), (0, 0), (0, Cop - Co), (0, Cop - Co))).reshape(9 * Cop, Cop)
    w1b = jnp.pad(w1[:, :, Co:, :],
                  ((0, 0), (0, 0), (0, Csp - Cs), (0, Cop - Co))).reshape(9 * Csp, Cop)
    w1_cat = jnp.concatenate([w1a, w1b], axis=0).astype(jnp.bfloat16)   # (9*(Cop+Csp), Cop)

    w2e = jnp.transpose(params['w2'], (2, 3, 1, 0))               # (3,3,Co,Co)
    w2_cat = jnp.pad(w2e, ((0, 0), (0, 0), (0, Cop - Co), (0, Cop - Co))
                     ).reshape(9 * Cop, Cop).astype(jnp.bfloat16)

    b2x2 = jnp.pad(params['b2x2'], (0, Cop - Co)).reshape(1, Cop).astype(jnp.float32)
    b1 = jnp.pad(params['b1'], (0, Cop - Co)).reshape(1, Cop).astype(jnp.float32)
    b2e = jnp.pad(params['b2'], (0, Cop - Co)).reshape(1, Cop).astype(jnp.float32)

    # ---- phase 1: fused convs + BN partial stats, gridded over batch ("parallel") ----
    phase1 = pl.pallas_call(
        _upconv_phase1_kernel,
        grid=(N,),
        in_specs=[
            pl.BlockSpec((None, Hu, Wu, Cip), lambda n: (n, 0, 0, 0)),   # up
            pl.BlockSpec((None, Hu, Wu, Csp), lambda n: (n, 0, 0, 0)),   # skip
            pl.BlockSpec((4 * Cip, Cop), lambda n: (0, 0)),              # w2x2 (resident)
            pl.BlockSpec((1, Cop), lambda n: (0, 0)),                    # b2x2
            pl.BlockSpec((9 * (Cop + Csp), Cop), lambda n: (0, 0)),      # w1 (concat folded)
            pl.BlockSpec((1, Cop), lambda n: (0, 0)),                    # b1
            pl.BlockSpec((9 * Cop, Cop), lambda n: (0, 0)),              # w2
            pl.BlockSpec((1, Cop), lambda n: (0, 0)),                    # b2
        ],
        out_specs=[
            pl.BlockSpec((None, Hu, Wu, Cop), lambda n: (n, 0, 0, 0)),   # r2 (pre-BN)
            pl.BlockSpec((None, 2, Cop), lambda n: (n, 0, 0)),           # per-tile sum/sumsq
        ],
        out_shape=[
            jax.ShapeDtypeStruct((N, Hu, Wu, Cop), jnp.float32),
            jax.ShapeDtypeStruct((N, 2, Cop), jnp.float32),
        ],
        scratch_shapes=[
            pltpu.VMEM((Hu + 1, Wu + 1, Cip), jnp.float32),   # up, padded bottom/right
            pltpu.VMEM((Hu + 2, Wu + 2, Csp), jnp.float32),   # skip, padded all sides
            pltpu.VMEM((Hu + 2, Wu + 2, Cop), jnp.float32),   # conv2x2 output, padded
            pltpu.VMEM((Hu + 2, Wu + 2, Cop), jnp.float32),   # relu(conv1) output, padded
        ],
        compiler_params=pltpu.CompilerParams(
            dimension_semantics=("parallel",)),
    )
    r2, stats = phase1(up, skip, w2x2_cat, b2x2, w1_cat, b1, w2_cat, b2e)

    # ---- cross-tile BatchNorm reduction (tiny, f32) ----
    cnt = jnp.float32(N * Hu * Wu)
    mean = jnp.sum(stats[:, 0, :], axis=0) / cnt
    var = jnp.maximum(jnp.sum(stats[:, 1, :], axis=0) / cnt - mean * mean, 0.0)
    inv = jax.lax.rsqrt(var + 1e-5)
    gamma_p = jnp.pad(params['gamma'], (0, Cop - Co))
    beta_p = jnp.pad(params['beta'], (0, Cop - Co))
    scale = (gamma_p * inv).reshape(1, Cop).astype(jnp.float32)
    shift = (beta_p - mean * gamma_p * inv).reshape(1, Cop).astype(jnp.float32)

    # ---- phase 2: apply normalization (tiny second pallas_call, gridded + parallel) ----
    bn_apply = pl.pallas_call(
        _bn_apply_kernel,
        grid=(N,),
        in_specs=[
            pl.BlockSpec((None, Hu, Wu, Cop), lambda n: (n, 0, 0, 0)),
            pl.BlockSpec((1, Cop), lambda n: (0, 0)),
            pl.BlockSpec((1, Cop), lambda n: (0, 0)),
        ],
        out_specs=pl.BlockSpec((None, Hu, Wu, Cop), lambda n: (n, 0, 0, 0)),
        out_shape=jax.ShapeDtypeStruct((N, Hu, Wu, Cop), jnp.float32),
        compiler_params=pltpu.CompilerParams(
            dimension_semantics=("parallel",)),
    )
    y = bn_apply(r2, scale, shift)

    # strip channel padding, back to NCHW
    return jnp.transpose(y[:, :, :, :Co], (0, 3, 1, 2))


if __name__ == "__main__":
    key = jax.random.PRNGKey(0)
    k_param, k_x, k_skip = jax.random.split(key, 3)

    input_channels, output_channels = 8, 4          # UNet-style: skip has Ci - Co channels
    N, H, W = 2, 8, 8                               # low-res map, upsampled to 16x16

    params = init_upconv_params(k_param, input_channels, output_channels)
    x = jax.random.normal(k_x, (N, input_channels, H, W), jnp.float32)
    skip = jax.random.normal(
        k_skip, (N, input_channels - output_channels, 2 * H, 2 * W), jnp.float32)

    out = upconv_forward(params, x, skip)
    out = jax.block_until_ready(out)
    assert out.shape == (N, output_channels, 2 * H, 2 * W), out.shape
    assert bool(jnp.all(jnp.isfinite(out)))
    print("KERNEL_OK")
</pallas_src>

<mosaic_0001>
module attributes {stable_mosaic.version = 11 : i64} {
  func.func @_bn_apply_kernel(%arg0: i32, %arg1: memref<1x16x16x128xf32, #tpu.memory_space<vmem>>, %arg2: memref<1x128xf32, #tpu.memory_space<vmem>>, %arg3: memref<1x128xf32, #tpu.memory_space<vmem>>, %arg4: memref<1x16x16x128xf32, #tpu.memory_space<vmem>>) attributes {dimension_semantics = [#tpu.dimension_semantics<parallel>], iteration_bounds = array<i64: 2>, scalar_prefetch = 0 : i64, scratch_operands = 0 : i64, tpu.core_type = #tpu.core_type<tc>, window_params = [{transform_indices = @transform_0, window_bounds = array<i64: 1, 16, 16, 128>}, {pipeline_mode = #tpu.pipeline_mode<synchronous>, transform_indices = @transform_1, window_bounds = array<i64: 1, 128>}, {pipeline_mode = #tpu.pipeline_mode<synchronous>, transform_indices = @transform_2, window_bounds = array<i64: 1, 128>}, {transform_indices = @transform_3, window_bounds = array<i64: 1, 16, 16, 128>}]} {
    %c0 = arith.constant 0 : index
    %c0_0 = arith.constant 0 : index
    %c0_1 = arith.constant 0 : index
    %c0_2 = arith.constant 0 : index
    %0 = vector.load %arg1[%c0, %c0_0, %c0_1, %c0_2] : memref<1x16x16x128xf32, #tpu.memory_space<vmem>>, vector<1x16x16x128xf32>
    %1 = vector.shape_cast %0 : vector<1x16x16x128xf32> to vector<16x16x128xf32>
    %c0_3 = arith.constant 0 : index
    %c0_4 = arith.constant 0 : index
    %2 = vector.load %arg2[%c0_3, %c0_4] : memref<1x128xf32, #tpu.memory_space<vmem>>, vector<1x128xf32>
    %3 = vector.shape_cast %2 : vector<1x128xf32> to vector<1x1x128xf32>
    %4 = vector.broadcast %3 : vector<1x1x128xf32> to vector<16x16x128xf32>
    %5 = arith.mulf %1, %4 : vector<16x16x128xf32>
    %c0_5 = arith.constant 0 : index
    %c0_6 = arith.constant 0 : index
    %6 = vector.load %arg3[%c0_5, %c0_6] : memref<1x128xf32, #tpu.memory_space<vmem>>, vector<1x128xf32>
    %7 = vector.shape_cast %6 : vector<1x128xf32> to vector<1x1x128xf32>
    %8 = vector.broadcast %7 : vector<1x1x128xf32> to vector<16x16x128xf32>
    %9 = arith.addf %5, %8 : vector<16x16x128xf32>
    %c0_7 = arith.constant 0 : index
    %c0_8 = arith.constant 0 : index
    %c0_9 = arith.constant 0 : index
    %c0_10 = arith.constant 0 : index
    %10 = vector.load %arg4[%c0_7, %c0_8, %c0_9, %c0_10] : memref<1x16x16x128xf32, #tpu.memory_space<vmem>>, vector<1x16x16x128xf32>
    %11 = vector.shape_cast %10 : vector<1x16x16x128xf32> to vector<16x16x128xf32>
    %12 = vector.shape_cast %9 : vector<16x16x128xf32> to vector<1x16x16x128xf32>
    tpu.vector_store %arg4[%c0_7, %c0_8, %c0_9, %c0_10], %12 {strides = array<i32>} : memref<1x16x16x128xf32, #tpu.memory_space<vmem>>, vector<1x16x16x128xf32>,
    return
  }
  func.func @transform_0(%arg0: i32) -> (i32, i32, i32, i32) {
    %c0_i32 = arith.constant 0 : i32
    %c0_i32_0 = arith.constant 0 : i32
    %c0_i32_1 = arith.constant 0 : i32
    %c0_i32_2 = arith.constant 0 : i32
    return %arg0, %c0_i32, %c0_i32_0, %c0_i32_1 : i32, i32, i32, i32
  }
  func.func @transform_1(%arg0: i32) -> (i32, i32) {
    %c0_i32 = arith.constant 0 : i32
    %c0_i32_0 = arith.constant 0 : i32
    %c0_i32_1 = arith.constant 0 : i32
    return %c0_i32, %c0_i32_0 : i32, i32
  }
  func.func @transform_2(%arg0: i32) -> (i32, i32) {
    %c0_i32 = arith.constant 0 : i32
    %c0_i32_0 = arith.constant 0 : i32
    %c0_i32_1 = arith.constant 0 : i32
    return %c0_i32, %c0_i32_0 : i32, i32
  }
  func.func @transform_3(%arg0: i32) -> (i32, i32, i32, i32) {
    %c0_i32 = arith.constant 0 : i32
    %c0_i32_0 = arith.constant 0 : i32
    %c0_i32_1 = arith.constant 0 : i32
    %c0_i32_2 = arith.constant 0 : i32
    return %arg0, %c0_i32, %c0_i32_0, %c0_i32_1 : i32, i32, i32, i32
  }
}

module attributes {stable_mosaic.version = 11 : i64} {
  func.func @_upconv_phase1_kernel(%arg0: i32, %arg1: memref<1x16x16x128xbf16, #tpu.memory_space<vmem>>, %arg2: memref<1x16x16x128xbf16, #tpu.memory_space<vmem>>, %arg3: memref<512x128xbf16, #tpu.memory_space<vmem>>, %arg4: memref<1x128xf32, #tpu.memory_space<vmem>>, %arg5: memref<2304x128xbf16, #tpu.memory_space<vmem>>, %arg6: memref<1x128xf32, #tpu.memory_space<vmem>>, %arg7: memref<1152x128xbf16, #tpu.memory_space<vmem>>, %arg8: memref<1x128xf32, #tpu.memory_space<vmem>>, %arg9: memref<1x16x16x128xf32, #tpu.memory_space<vmem>>, %arg10: memref<1x2x128xf32, #tpu.memory_space<vmem>>, %arg11: memref<17x17x128xf32, #tpu.memory_space<vmem>>, %arg12: memref<18x18x128xf32, #tpu.memory_space<vmem>>, %arg13: memref<18x18x128xf32, #tpu.memory_space<vmem>>, %arg14: memref<18x18x128xf32, #tpu.memory_space<vmem>>) attributes {dimension_semantics = [#tpu.dimension_semantics<parallel>], iteration_bounds = array<i64: 2>, scalar_prefetch = 0 : i64, scratch_operands = 4 : i64, tpu.core_type = #tpu.core_type<tc>, window_params = [{transform_indices = @transform_0, window_bounds = array<i64: 1, 16, 16, 128>}, {transform_indices = @transform_1, window_bounds = array<i64: 1, 16, 16, 128>}, {pipeline_mode = #tpu.pipeline_mode<synchronous>, transform_indices = @transform_2, window_bounds = array<i64: 512, 128>}, {pipeline_mode = #tpu.pipeline_mode<synchronous>, transform_indices = @transform_3, window_bounds = array<i64: 1, 128>}, {pipeline_mode = #tpu.pipeline_mode<synchronous>, transform_indices = @transform_4, window_bounds = array<i64: 2304, 128>}, {pipeline_mode = #tpu.pipeline_mode<synchronous>, transform_indices = @transform_5, window_bounds = array<i64: 1, 128>}, {pipeline_mode = #tpu.pipeline_mode<synchronous>, transform_indices = @transform_6, window_bounds = array<i64: 1152, 128>}, {pipeline_mode = #tpu.pipeline_mode<synchronous>, transform_indices = @transform_7, window_bounds = array<i64: 1, 128>}, {transform_indices = @transform_8, window_bounds = array<i64: 1, 16, 16, 128>}, {transform_indices = @transform_9, window_bounds = array<i64: 1, 2, 128>}]} {
    %c0 = arith.constant 0 : index
    %c0_0 = arith.constant 0 : index
    %c0_1 = arith.constant 0 : index
    %c0_2 = arith.constant 0 : index
    %0 = vector.load %arg1[%c0, %c0_0, %c0_1, %c0_2] : memref<1x16x16x128xbf16, #tpu.memory_space<vmem>>, vector<1x16x16x128xbf16>
    %1 = vector.shape_cast %0 : vector<1x16x16x128xbf16> to vector<16x16x128xbf16>
    %2 = arith.extf %1 : vector<16x16x128xbf16> to vector<16x16x128xf32>
    %c0_3 = arith.constant 0 : index
    %c0_4 = arith.constant 0 : index
    %c0_5 = arith.constant 0 : index
    %3 = vector.load %arg11[%c0_3, %c0_4, %c0_5] : memref<17x17x128xf32, #tpu.memory_space<vmem>>, vector<16x16x128xf32>
    tpu.vector_store %arg11[%c0_3, %c0_4, %c0_5], %2 {strides = array<i32>} : memref<17x17x128xf32, #tpu.memory_space<vmem>>, vector<16x16x128xf32>,
    %cst = arith.constant 0.000000e+00 : f32
    %4 = vector.broadcast %cst : f32 to vector<1x17x128xf32>
    %c16 = arith.constant 16 : index
    %c0_6 = arith.constant 0 : index
    %c0_7 = arith.constant 0 : index
    %5 = vector.load %arg11[%c16, %c0_6, %c0_7] : memref<17x17x128xf32, #tpu.memory_space<vmem>>, vector<1x17x128xf32>
    tpu.vector_store %arg11[%c16, %c0_6, %c0_7], %4 {strides = array<i32>} : memref<17x17x128xf32, #tpu.memory_space<vmem>>, vector<1x17x128xf32>,
    %cst_8 = arith.constant 0.000000e+00 : f32
    %6 = vector.broadcast %cst_8 : f32 to vector<16x1x128xf32>
    %c0_9 = arith.constant 0 : index
    %c16_10 = arith.constant 16 : index
    %c0_11 = arith.constant 0 : index
    %7 = vector.load %arg11[%c0_9, %c16_10, %c0_11] : memref<17x17x128xf32, #tpu.memory_space<vmem>>, vector<16x1x128xf32>
    tpu.vector_store %arg11[%c0_9, %c16_10, %c0_11], %6 {strides = array<i32>} : memref<17x17x128xf32, #tpu.memory_space<vmem>>, vector<16x1x128xf32>,
    %c0_12 = arith.constant 0 : index
    %c0_13 = arith.constant 0 : index
    %c0_14 = arith.constant 0 : index
    %c0_15 = arith.constant 0 : index
    %8 = vector.load %arg2[%c0_12, %c0_13, %c0_14, %c0_15] : memref<1x16x16x128xbf16, #tpu.memory_space<vmem>>, vector<1x16x16x128xbf16>
    %9 = vector.shape_cast %8 : vector<1x16x16x128xbf16> to vector<16x16x128xbf16>
    %10 = arith.extf %9 : vector<16x16x128xbf16> to vector<16x16x128xf32>
    %c1 = arith.constant 1 : index
    %c1_16 = arith.constant 1 : index
    %c0_17 = arith.constant 0 : index
    %11 = vector.load %arg12[%c1, %c1_16, %c0_17] : memref<18x18x128xf32, #tpu.memory_space<vmem>>, vector<16x16x128xf32>
    tpu.vector_store %arg12[%c1, %c1_16, %c0_17], %10 {strides = array<i32>} : memref<18x18x128xf32, #tpu.memory_space<vmem>>, vector<16x16x128xf32>,
    %cst_18 = arith.constant 0.000000e+00 : f32
    %12 = vector.broadcast %cst_18 : f32 to vector<1x18x128xf32>
    %c0_19 = arith.constant 0 : index
    %c0_20 = arith.constant 0 : index
    %c0_21 = arith.constant 0 : index
    %13 = vector.load %arg12[%c0_19, %c0_20, %c0_21] : memref<18x18x128xf32, #tpu.memory_space<vmem>>, vector<1x18x128xf32>
    tpu.vector_store %arg12[%c0_19, %c0_20, %c0_21], %12 {strides = array<i32>} : memref<18x18x128xf32, #tpu.memory_space<vmem>>, vector<1x18x128xf32>,
    %cst_22 = arith.constant 0.000000e+00 : f32
    %14 = vector.broadcast %cst_22 : f32 to vector<1x18x128xf32>
    %c17 = arith.constant 17 : index
    %c0_23 = arith.constant 0 : index
    %c0_24 = arith.constant 0 : index
    %15 = vector.load %arg12[%c17, %c0_23, %c0_24] : memref<18x18x128xf32, #tpu.memory_space<vmem>>, vector<1x18x128xf32>
    tpu.vector_store %arg12[%c17, %c0_23, %c0_24], %14 {strides = array<i32>} : memref<18x18x128xf32, #tpu.memory_space<vmem>>, vector<1x18x128xf32>,
    %cst_25 = arith.constant 0.000000e+00 : f32
    %16 = vector.broadcast %cst_25 : f32 to vector<16x1x128xf32>
    %c1_26 = arith.constant 1 : index
    %c0_27 = arith.constant 0 : index
    %c0_28 = arith.constant 0 : index
    %17 = vector.load %arg12[%c1_26, %c0_27, %c0_28] : memref<18x18x128xf32, #tpu.memory_space<vmem>>, vector<16x1x128xf32>
    tpu.vector_store %arg12[%c1_26, %c0_27, %c0_28], %16 {strides = array<i32>} : memref<18x18x128xf32, #tpu.memory_space<vmem>>, vector<16x1x128xf32>,
    %cst_29 = arith.constant 0.000000e+00 : f32
    %18 = vector.broadcast %cst_29 : f32 to vector<16x1x128xf32>
    %c1_30 = arith.constant 1 : index
    %c17_31 = arith.constant 17 : index
    %c0_32 = arith.constant 0 : index
    %19 = vector.load %arg12[%c1_30, %c17_31, %c0_32] : memref<18x18x128xf32, #tpu.memory_space<vmem>>, vector<16x1x128xf32>
    tpu.vector_store %arg12[%c1_30, %c17_31, %c0_32], %18 {strides = array<i32>} : memref<18x18x128xf32, #tpu.memory_space<vmem>>, vector<16x1x128xf32>,
    %c0_33 = arith.constant 0 : index
    %c0_34 = arith.constant 0 : index
    %c0_35 = arith.constant 0 : index
    %20 = vector.load %arg11[%c0_33, %c0_34, %c0_35] : memref<17x17x128xf32, #tpu.memory_space<vmem>>, vector<16x16x128xf32>
    %21 = vector.shape_cast %20 : vector<16x16x128xf32> to vector<256x128xf32>
    %22 = arith.truncf %21 : vector<256x128xf32> to vector<256x128xbf16>
    %c0_36 = arith.constant 0 : index
    %c1_37 = arith.constant 1 : index
    %c0_38 = arith.constant 0 : index
    %23 = vector.load %arg11[%c0_36, %c1_37, %c0_38] : memref<17x17x128xf32, #tpu.memory_space<vmem>>, vector<16x16x128xf32>
    %24 = vector.shape_cast %23 : vector<16x16x128xf32> to vector<256x128xf32>
    %25 = arith.truncf %24 : vector<256x128xf32> to vector<256x128xbf16>
    %c1_39 = arith.constant 1 : index
    %c0_40 = arith.constant 0 : index
    %c0_41 = arith.constant 0 : index
    %26 = vector.load %arg11[%c1_39, %c0_40, %c0_41] : memref<17x17x128xf32, #tpu.memory_space<vmem>>, vector<16x16x128xf32>
    %27 = vector.shape_cast %26 : vector<16x16x128xf32> to vector<256x128xf32>
    %28 = arith.truncf %27 : vector<256x128xf32> to vector<256x128xbf16>
    %c1_42 = arith.constant 1 : index
    %c1_43 = arith.constant 1 : index
    %c0_44 = arith.constant 0 : index
    %29 = vector.load %arg11[%c1_42, %c1_43, %c0_44] : memref<17x17x128xf32, #tpu.memory_space<vmem>>, vector<16x16x128xf32>
    %30 = vector.shape_cast %29 : vector<16x16x128xf32> to vector<256x128xf32>
    %31 = arith.truncf %30 : vector<256x128xf32> to vector<256x128xbf16>
    %32 = tpu.concatenate %22, %25, %28, %31 in 1 : vector<256x128xbf16>, vector<256x128xbf16>, vector<256x128xbf16>, vector<256x128xbf16> -> vector<256x512xbf16>
    %c0_45 = arith.constant 0 : index
    %c0_46 = arith.constant 0 : index
    %33 = vector.load %arg3[%c0_45, %c0_46] : memref<512x128xbf16, #tpu.memory_space<vmem>>, vector<512x128xbf16>
    %cst_47 = arith.constant dense<0.000000e+00> : vector<256x128xf32>
    %34 = tpu.matmul %32, %33, %cst_47 {dimension_numbers = #tpu.dot_dimension_numbers<[1], [0], [0], [1], [0, 0, 1, 1], [], []>} : vector<256x512xbf16>, vector<512x128xbf16>, vector<256x128xf32> -> vector<256x128xf32>
    %c0_48 = arith.constant 0 : index
    %c0_49 = arith.constant 0 : index
    %35 = vector.load %arg4[%c0_48, %c0_49] : memref<1x128xf32, #tpu.memory_space<vmem>>, vector<1x128xf32>
    %36 = vector.broadcast %35 : vector<1x128xf32> to vector<256x128xf32>
    %37 = arith.addf %34, %36 : vector<256x128xf32>
    %cst_50 = arith.constant 0.000000e+00 : f32
    %38 = vector.broadcast %cst_50 : f32 to vector<1x18x128xf32>
    %c0_51 = arith.constant 0 : index
    %c0_52 = arith.constant 0 : index
    %c0_53 = arith.constant 0 : index
    %39 = vector.load %arg13[%c0_51, %c0_52, %c0_53] : memref<18x18x128xf32, #tpu.memory_space<vmem>>, vector<1x18x128xf32>
    tpu.vector_store %arg13[%c0_51, %c0_52, %c0_53], %38 {strides = array<i32>} : memref<18x18x128xf32, #tpu.memory_space<vmem>>, vector<1x18x128xf32>,
    %cst_54 = arith.constant 0.000000e+00 : f32
    %40 = vector.broadcast %cst_54 : f32 to vector<1x18x128xf32>
    %c17_55 = arith.constant 17 : index
    %c0_56 = arith.constant 0 : index
    %c0_57 = arith.constant 0 : index
    %41 = vector.load %arg13[%c17_55, %c0_56, %c0_57] : memref<18x18x128xf32, #tpu.memory_space<vmem>>, vector<1x18x128xf32>
    tpu.vector_store %arg13[%c17_55, %c0_56, %c0_57], %40 {strides = array<i32>} : memref<18x18x128xf32, #tpu.memory_space<vmem>>, vector<1x18x128xf32>,
    %cst_58 = arith.constant 0.000000e+00 : f32
    %42 = vector.broadcast %cst_58 : f32 to vector<16x1x128xf32>
    %c1_59 = arith.constant 1 : index
    %c0_60 = arith.constant 0 : index
    %c0_61 = arith.constant 0 : index
    %43 = vector.load %arg13[%c1_59, %c0_60, %c0_61] : memref<18x18x128xf32, #tpu.memory_space<vmem>>, vector<16x1x128xf32>
    tpu.vector_store %arg13[%c1_59, %c0_60, %c0_61], %42 {strides = array<i32>} : memref<18x18x128xf32, #tpu.memory_space<vmem>>, vector<16x1x128xf32>,
    %cst_62 = arith.constant 0.000000e+00 : f32
    %44 = vector.broadcast %cst_62 : f32 to vector<16x1x128xf32>
    %c1_63 = arith.constant 1 : index
    %c17_64 = arith.constant 17 : index
    %c0_65 = arith.constant 0 : index
    %45 = vector.load %arg13[%c1_63, %c17_64, %c0_65] : memref<18x18x128xf32, #tpu.memory_space<vmem>>, vector<16x1x128xf32>
    tpu.vector_store %arg13[%c1_63, %c17_64, %c0_65], %44 {strides = array<i32>} : memref<18x18x128xf32, #tpu.memory_space<vmem>>, vector<16x1x128xf32>,
    %46 = vector.shape_cast %37 : vector<256x128xf32> to vector<16x16x128xf32>
    %c1_66 = arith.constant 1 : index
    %c1_67 = arith.constant 1 : index
    %c0_68 = arith.constant 0 : index
    %47 = vector.load %arg13[%c1_66, %c1_67, %c0_68] : memref<18x18x128xf32, #tpu.memory_space<vmem>>, vector<16x16x128xf32>
    tpu.vector_store %arg13[%c1_66, %c1_67, %c0_68], %46 {strides = array<i32>} : memref<18x18x128xf32, #tpu.memory_space<vmem>>, vector<16x16x128xf32>,
    %c0_69 = arith.constant 0 : index
    %c0_70 = arith.constant 0 : index
    %c0_71 = arith.constant 0 : index
    %48 = vector.load %arg13[%c0_69, %c0_70, %c0_71] : memref<18x18x128xf32, #tpu.memory_space<vmem>>, vector<16x16x128xf32>
    %49 = vector.shape_cast %48 : vector<16x16x128xf32> to vector<256x128xf32>
    %50 = arith.truncf %49 : vector<256x128xf32> to vector<256x128xbf16>
    %c0_72 = arith.constant 0 : index
    %c0_73 = arith.constant 0 : index
    %c0_74 = arith.constant 0 : index
    %51 = vector.load %arg12[%c0_72, %c0_73, %c0_74] : memref<18x18x128xf32, #tpu.memory_space<vmem>>, vector<16x16x128xf32>
    %52 = vector.shape_cast %51 : vector<16x16x128xf32> to vector<256x128xf32>
    %53 = arith.truncf %52 : vector<256x128xf32> to vector<256x128xbf16>
    %c0_75 = arith.constant 0 : index
    %c1_76 = arith.constant 1 : index
    %c0_77 = arith.constant 0 : index
    %54 = vector.load %arg13[%c0_75, %c1_76, %c0_77] : memref<18x18x128xf32, #tpu.memory_space<vmem>>, vector<16x16x128xf32>
    %55 = vector.shape_cast %54 : vector<16x16x128xf32> to vector<256x128xf32>
    %56 = arith.truncf %55 : vector<256x128xf32> to vector<256x128xbf16>
    %c0_78 = arith.constant 0 : index
    %c1_79 = arith.constant 1 : index
    %c0_80 = arith.constant 0 : index
    %57 = vector.load %arg12[%c0_78, %c1_79, %c0_80] : memref<18x18x128xf32, #tpu.memory_space<vmem>>, vector<16x16x128xf32>
    %58 = vector.shape_cast %57 : vector<16x16x128xf32> to vector<256x128xf32>
    %59 = arith.truncf %58 : vector<256x128xf32> to vector<256x128xbf16>
    %c0_81 = arith.constant 0 : index
    %c2 = arith.constant 2 : index
    %c0_82 = arith.constant 0 : index
    %60 = vector.load %arg13[%c0_81, %c2, %c0_82] : memref<18x18x128xf32, #tpu.memory_space<vmem>>, vector<16x16x128xf32>
    %61 = vector.shape_cast %60 : vector<16x16x128xf32> to vector<256x128xf32>
    %62 = arith.truncf %61 : vector<256x128xf32> to vector<256x128xbf16>
    %c0_83 = arith.constant 0 : index
    %c2_84 = arith.constant 2 : index
    %c0_85 = arith.constant 0 : index
    %63 = vector.load %arg12[%c0_83, %c2_84, %c0_85] : memref<18x18x128xf32, #tpu.memory_space<vmem>>, vector<16x16x128xf32>
    %64 = vector.shape_cast %63 : vector<16x16x128xf32> to vector<256x128xf32>
    %65 = arith.truncf %64 : vector<256x128xf32> to vector<256x128xbf16>
    %c1_86 = arith.constant 1 : index
    %c0_87 = arith.constant 0 : index
    %c0_88 = arith.constant 0 : index
    %66 = vector.load %arg13[%c1_86, %c0_87, %c0_88] : memref<18x18x128xf32, #tpu.memory_space<vmem>>, vector<16x16x128xf32>
    %67 = vector.shape_cast %66 : vector<16x16x128xf32> to vector<256x128xf32>
    %68 = arith.truncf %67 : vector<256x128xf32> to vector<256x128xbf16>
    %c1_89 = arith.constant 1 : index
    %c0_90 = arith.constant 0 : index
    %c0_91 = arith.constant 0 : index
    %69 = vector.load %arg12[%c1_89, %c0_90, %c0_91] : memref<18x18x128xf32, #tpu.memory_space<vmem>>, vector<16x16x128xf32>
    %70 = vector.shape_cast %69 : vector<16x16x128xf32> to vector<256x128xf32>
    %71 = arith.truncf %70 : vector<256x128xf32> to vector<256x128xbf16>
    %c1_92 = arith.constant 1 : index
    %c1_93 = arith.constant 1 : index
    %c0_94 = arith.constant 0 : index
    %72 = vector.load %arg13[%c1_92, %c1_93, %c0_94] : memref<18x18x128xf32, #tpu.memory_space<vmem>>, vector<16x16x128xf32>
    %73 = vector.shape_cast %72 : vector<16x16x128xf32> to vector<256x128xf32>
    %74 = arith.truncf %73 : vector<256x128xf32> to vector<256x128xbf16>
    %c1_95 = arith.constant 1 : index
    %c1_96 = arith.constant 1 : index
    %c0_97 = arith.constant 0 : index
    %75 = vector.load %arg12[%c1_95, %c1_96, %c0_97] : memref<18x18x128xf32, #tpu.memory_space<vmem>>, vector<16x16x128xf32>
    %76 = vector.shape_cast %75 : vector<16x16x128xf32> to vector<256x128xf32>
    %77 = arith.truncf %76 : vector<256x128xf32> to vector<256x128xbf16>
    %c1_98 = arith.constant 1 : index
    %c2_99 = arith.constant 2 : index
    %c0_100 = arith.constant 0 : index
    %78 = vector.load %arg13[%c1_98, %c2_99, %c0_100] : memref<18x18x128xf32, #tpu.memory_space<vmem>>, vector<16x16x128xf32>
    %79 = vector.shape_cast %78 : vector<16x16x128xf32> to vector<256x128xf32>
    %80 = arith.truncf %79 : vector<256x128xf32> to vector<256x128xbf16>
    %c1_101 = arith.constant 1 : index
    %c2_102 = arith.constant 2 : index
    %c0_103 = arith.constant 0 : index
    %81 = vector.load %arg12[%c1_101, %c2_102, %c0_103] : memref<18x18x128xf32, #tpu.memory_space<vmem>>, vector<16x16x128xf32>
    %82 = vector.shape_cast %81 : vector<16x16x128xf32> to vector<256x128xf32>
    %83 = arith.truncf %82 : vector<256x128xf32> to vector<256x128xbf16>
    %c2_104 = arith.constant 2 : index
    %c0_105 = arith.constant 0 : index
    %c0_106 = arith.constant 0 : index
    %84 = vector.load %arg13[%c2_104, %c0_105, %c0_106] : memref<18x18x128xf32, #tpu.memory_space<vmem>>, vector<16x16x128xf32>
    %85 = vector.shape_cast %84 : vector<16x16x128xf32> to vector<256x128xf32>
    %86 = arith.truncf %85 : vector<256x128xf32> to vector<256x128xbf16>
    %c2_107 = arith.constant 2 : index
    %c0_108 = arith.constant 0 : index
    %c0_109 = arith.constant 0 : index
    %87 = vector.load %arg12[%c2_107, %c0_108, %c0_109] : memref<18x18x128xf32, #tpu.memory_space<vmem>>, vector<16x16x128xf32>
    %88 = vector.shape_cast %87 : vector<16x16x128xf32> to vector<256x128xf32>
    %89 = arith.truncf %88 : vector<256x128xf32> to vector<256x128xbf16>
    %c2_110 = arith.constant 2 : index
    %c1_111 = arith.constant 1 : index
    %c0_112 = arith.constant 0 : index
    %90 = vector.load %arg13[%c2_110, %c1_111, %c0_112] : memref<18x18x128xf32, #tpu.memory_space<vmem>>, vector<16x16x128xf32>
    %91 = vector.shape_cast %90 : vector<16x16x128xf32> to vector<256x128xf32>
    %92 = arith.truncf %91 : vector<256x128xf32> to vector<256x128xbf16>
    %c2_113 = arith.constant 2 : index
    %c1_114 = arith.constant 1 : index
    %c0_115 = arith.constant 0 : index
    %93 = vector.load %arg12[%c2_113, %c1_114, %c0_115] : memref<18x18x128xf32, #tpu.memory_space<vmem>>, vector<16x16x128xf32>
    %94 = vector.shape_cast %93 : vector<16x16x128xf32> to vector<256x128xf32>
    %95 = arith.truncf %94 : vector<256x128xf32> to vector<256x128xbf16>
    %c2_116 = arith.constant 2 : index
    %c2_117 = arith.constant 2 : index
    %c0_118 = arith.constant 0 : index
    %96 = vector.load %arg13[%c2_116, %c2_117, %c0_118] : memref<18x18x128xf32, #tpu.memory_space<vmem>>, vector<16x16x128xf32>
    %97 = vector.shape_cast %96 : vector<16x16x128xf32> to vector<256x128xf32>
    %98 = arith.truncf %97 : vector<256x128xf32> to vector<256x128xbf16>
    %c2_119 = arith.constant 2 : index
    %c2_120 = arith.constant 2 : index
    %c0_121 = arith.constant 0 : index
    %99 = vector.load %arg12[%c2_119, %c2_120, %c0_121] : memref<18x18x128xf32, #tpu.memory_space<vmem>>, vector<16x16x128xf32>
    %100 = vector.shape_cast %99 : vector<16x16x128xf32> to vector<256x128xf32>
    %101 = arith.truncf %100 : vector<256x128xf32> to vector<256x128xbf16>
    %102 = tpu.concatenate %50, %56, %62, %68, %74, %80, %86, %92, %98, %53, %59, %65, %71, %77, %83, %89 in 1 : vector<256x128xbf16>, vector<256x128xbf16>, vector<256x128xbf16>, vector<256x128xbf16>, vector<256x128xbf16>, vector<256x128xbf16>, vector<256x128xbf16>, vector<256x128xbf16>, vector<256x128xbf16>, vector<256x128xbf16>, vector<256x128xbf16>, vector<256x128xbf16>, vector<256x128xbf16>, vector<256x128xbf16>, vector<256x128xbf16>, vector<256x128xbf16> -> vector<256x2048xbf16>
    %103 = tpu.concatenate %95, %101 in 1 : vector<256x128xbf16>, vector<256x128xbf16> -> vector<256x256xbf16>
    %104 = tpu.concatenate %102, %103 in 1 : vector<256x2048xbf16>, vector<256x256xbf16> -> vector<256x2304xbf16>
    %c0_122 = arith.constant 0 : index
    %c0_123 = arith.constant 0 : index
    %105 = vector.load %arg5[%c0_122, %c0_123] : memref<2304x128xbf16, #tpu.memory_space<vmem>>, vector<2304x128xbf16>
    %cst_124 = arith.constant dense<0.000000e+00> : vector<256x128xf32>
    %106 = tpu.matmul %104, %105, %cst_124 {dimension_numbers = #tpu.dot_dimension_numbers<[1], [0], [0], [1], [0, 0, 1, 1], [], []>} : vector<256x2304xbf16>, vector<2304x128xbf16>, vector<256x128xf32> -> vector<256x128xf32>
    %c0_125 = arith.constant 0 : index
    %c0_126 = arith.constant 0 : index
    %107 = vector.load %arg6[%c0_125, %c0_126] : memref<1x128xf32, #tpu.memory_space<vmem>>, vector<1x128xf32>
    %108 = vector.broadcast %107 : vector<1x128xf32> to vector<256x128xf32>
    %109 = arith.addf %106, %108 : vector<256x128xf32>
    %cst_127 = arith.constant 0.000000e+00 : f32
    %110 = vector.broadcast %cst_127 : f32 to vector<256x128xf32>
    %111 = arith.maximumf %109, %110 : vector<256x128xf32>
    %cst_128 = arith.constant 0.000000e+00 : f32
    %112 = vector.broadcast %cst_128 : f32 to vector<1x18x128xf32>
    %c0_129 = arith.constant 0 : index
    %c0_130 = arith.constant 0 : index
    %c0_131 = arith.constant 0 : index
    %113 = vector.load %arg14[%c0_129, %c0_130, %c0_131] : memref<18x18x128xf32, #tpu.memory_space<vmem>>, vector<1x18x128xf32>
    tpu.vector_store %arg14[%c0_129, %c0_130, %c0_131], %112 {strides = array<i32>} : memref<18x18x128xf32, #tpu.memory_space<vmem>>, vector<1x18x128xf32>,
    %cst_132 = arith.constant 0.000000e+00 : f32
    %114 = vector.broadcast %cst_132 : f32 to vector<1x18x128xf32>
    %c17_133 = arith.constant 17 : index
    %c0_134 = arith.constant 0 : index
    %c0_135 = arith.constant 0 : index
    %115 = vector.load %arg14[%c17_133, %c0_134, %c0_135] : memref<18x18x128xf32, #tpu.memory_space<vmem>>, vector<1x18x128xf32>
    tpu.vector_store %arg14[%c17_133, %c0_134, %c0_135], %114 {strides = array<i32>} : memref<18x18x128xf32, #tpu.memory_space<vmem>>, vector<1x18x128xf32>,
    %cst_136 = arith.constant 0.000000e+00 : f32
    %116 = vector.broadcast %cst_136 : f32 to vector<16x1x128xf32>
    %c1_137 = arith.constant 1 : index
    %c0_138 = arith.constant 0 : index
    %c0_139 = arith.constant 0 : index
    %117 = vector.load %arg14[%c1_137, %c0_138, %c0_139] : memref<18x18x128xf32, #tpu.memory_space<vmem>>, vector<16x1x128xf32>
    tpu.vector_store %arg14[%c1_137, %c0_138, %c0_139], %116 {strides = array<i32>} : memref<18x18x128xf32, #tpu.memory_space<vmem>>, vector<16x1x128xf32>,
    %cst_140 = arith.constant 0.000000e+00 : f32
    %118 = vector.broadcast %cst_140 : f32 to vector<16x1x128xf32>
    %c1_141 = arith.constant 1 : index
    %c17_142 = arith.constant 17 : index
    %c0_143 = arith.constant 0 : index
    %119 = vector.load %arg14[%c1_141, %c17_142, %c0_143] : memref<18x18x128xf32, #tpu.memory_space<vmem>>, vector<16x1x128xf32>
    tpu.vector_store %arg14[%c1_141, %c17_142, %c0_143], %118 {strides = array<i32>} : memref<18x18x128xf32, #tpu.memory_space<vmem>>, vector<16x1x128xf32>,
    %120 = vector.shape_cast %111 : vector<256x128xf32> to vector<16x16x128xf32>
    %c1_144 = arith.constant 1 : index
    %c1_145 = arith.constant 1 : index
    %c0_146 = arith.constant 0 : index
    %121 = vector.load %arg14[%c1_144, %c1_145, %c0_146] : memref<18x18x128xf32, #tpu.memory_space<vmem>>, vector<16x16x128xf32>
    tpu.vector_store %arg14[%c1_144, %c1_145, %c0_146], %120 {strides = array<i32>} : memref<18x18x128xf32, #tpu.memory_space<vmem>>, vector<16x16x128xf32>,
    %c0_147 = arith.constant 0 : index
    %c0_148 = arith.constant 0 : index
    %c0_149 = arith.constant 0 : index
    %122 = vector.load %arg14[%c0_147, %c0_148, %c0_149] : memref<18x18x128xf32, #tpu.memory_space<vmem>>, vector<16x16x128xf32>
    %123 = vector.shape_cast %122 : vector<16x16x128xf32> to vector<256x128xf32>
    %124 = arith.truncf %123 : vector<256x128xf32> to vector<256x128xbf16>
    %c0_150 = arith.constant 0 : index
    %c1_151 = arith.constant 1 : index
    %c0_152 = arith.constant 0 : index
    %125 = vector.load %arg14[%c0_150, %c1_151, %c0_152] : memref<18x18x128xf32, #tpu.memory_space<vmem>>, vector<16x16x128xf32>
    %126 = vector.shape_cast %125 : vector<16x16x128xf32> to vector<256x128xf32>
    %127 = arith.truncf %126 : vector<256x128xf32> to vector<256x128xbf16>
    %c0_153 = arith.constant 0 : index
    %c2_154 = arith.constant 2 : index
    %c0_155 = arith.constant 0 : index
    %128 = vector.load %arg14[%c0_153, %c2_154, %c0_155] : memref<18x18x128xf32, #tpu.memory_space<vmem>>, vector<16x16x128xf32>
    %129 = vector.shape_cast %128 : vector<16x16x128xf32> to vector<256x128xf32>
    %130 = arith.truncf %129 : vector<256x128xf32> to vector<256x128xbf16>
    %c1_156 = arith.constant 1 : index
    %c0_157 = arith.constant 0 : index
    %c0_158 = arith.constant 0 : index
    %131 = vector.load %arg14[%c1_156, %c0_157, %c0_158] : memref<18x18x128xf32, #tpu.memory_space<vmem>>, vector<16x16x128xf32>
    %132 = vector.shape_cast %131 : vector<16x16x128xf32> to vector<256x128xf32>
    %133 = arith.truncf %132 : vector<256x128xf32> to vector<256x128xbf16>
    %c1_159 = arith.constant 1 : index
    %c1_160 = arith.constant 1 : index
    %c0_161 = arith.constant 0 : index
    %134 = vector.load %arg14[%c1_159, %c1_160, %c0_161] : memref<18x18x128xf32, #tpu.memory_space<vmem>>, vector<16x16x128xf32>
    %135 = vector.shape_cast %134 : vector<16x16x128xf32> to vector<256x128xf32>
    %136 = arith.truncf %135 : vector<256x128xf32> to vector<256x128xbf16>
    %c1_162 = arith.constant 1 : index
    %c2_163 = arith.constant 2 : index
    %c0_164 = arith.constant 0 : index
    %137 = vector.load %arg14[%c1_162, %c2_163, %c0_164] : memref<18x18x128xf32, #tpu.memory_space<vmem>>, vector<16x16x128xf32>
    %138 = vector.shape_cast %137 : vector<16x16x128xf32> to vector<256x128xf32>
    %139 = arith.truncf %138 : vector<256x128xf32> to vector<256x128xbf16>
    %c2_165 = arith.constant 2 : index
    %c0_166 = arith.constant 0 : index
    %c0_167 = arith.constant 0 : index
    %140 = vector.load %arg14[%c2_165, %c0_166, %c0_167] : memref<18x18x128xf32, #tpu.memory_space<vmem>>, vector<16x16x128xf32>
    %141 = vector.shape_cast %140 : vector<16x16x128xf32> to vector<256x128xf32>
    %142 = arith.truncf %141 : vector<256x128xf32> to vector<256x128xbf16>
    %c2_168 = arith.constant 2 : index
    %c1_169 = arith.constant 1 : index
    %c0_170 = arith.constant 0 : index
    %143 = vector.load %arg14[%c2_168, %c1_169, %c0_170] : memref<18x18x128xf32, #tpu.memory_space<vmem>>, vector<16x16x128xf32>
    %144 = vector.shape_cast %143 : vector<16x16x128xf32> to vector<256x128xf32>
    %145 = arith.truncf %144 : vector<256x128xf32> to vector<256x128xbf16>
    %c2_171 = arith.constant 2 : index
    %c2_172 = arith.constant 2 : index
    %c0_173 = arith.constant 0 : index
    %146 = vector.load %arg14[%c2_171, %c2_172, %c0_173] : memref<18x18x128xf32, #tpu.memory_space<vmem>>, vector<16x16x128xf32>
    %147 = vector.shape_cast %146 : vector<16x16x128xf32> to vector<256x128xf32>
    %148 = arith.truncf %147 : vector<256x128xf32> to vector<256x128xbf16>
    %149 = tpu.concatenate %124, %127, %130, %133, %136, %139, %142, %145, %148 in 1 : vector<256x128xbf16>, vector<256x128xbf16>, vector<256x128xbf16>, vector<256x128xbf16>, vector<256x128xbf16>, vector<256x128xbf16>, vector<256x128xbf16>, vector<256x128xbf16>, vector<256x128xbf16> -> vector<256x1152xbf16>
    %c0_174 = arith.constant 0 : index
    %c0_175 = arith.constant 0 : index
    %150 = vector.load %arg7[%c0_174, %c0_175] : memref<1152x128xbf16, #tpu.memory_space<vmem>>, vector<1152x128xbf16>
    %cst_176 = arith.constant dense<0.000000e+00> : vector<256x128xf32>
    %151 = tpu.matmul %149, %150, %cst_176 {dimension_numbers = #tpu.dot_dimension_numbers<[1], [0], [0], [1], [0, 0, 1, 1], [], []>} : vector<256x1152xbf16>, vector<1152x128xbf16>, vector<256x128xf32> -> vector<256x128xf32>
    %c0_177 = arith.constant 0 : index
    %c0_178 = arith.constant 0 : index
    %152 = vector.load %arg8[%c0_177, %c0_178] : memref<1x128xf32, #tpu.memory_space<vmem>>, vector<1x128xf32>
    %153 = vector.broadcast %152 : vector<1x128xf32> to vector<256x128xf32>
    %154 = arith.addf %151, %153 : vector<256x128xf32>
    %cst_179 = arith.constant 0.000000e+00 : f32
    %155 = vector.broadcast %cst_179 : f32 to vector<256x128xf32>
    %156 = arith.maximumf %154, %155 : vector<256x128xf32>
    %157 = vector.shape_cast %156 : vector<256x128xf32> to vector<16x16x128xf32>
    %c0_180 = arith.constant 0 : index
    %c0_181 = arith.constant 0 : index
    %c0_182 = arith.constant 0 : index
    %c0_183 = arith.constant 0 : index
    %158 = vector.load %arg9[%c0_180, %c0_181, %c0_182, %c0_183] : memref<1x16x16x128xf32, #tpu.memory_space<vmem>>, vector<1x16x16x128xf32>
    %159 = vector.shape_cast %158 : vector<1x16x16x128xf32> to vector<16x16x128xf32>
    %160 = vector.shape_cast %157 : vector<16x16x128xf32> to vector<1x16x16x128xf32>
    tpu.vector_store %arg9[%c0_180, %c0_181, %c0_182, %c0_183], %160 {strides = array<i32>} : memref<1x16x16x128xf32, #tpu.memory_space<vmem>>, vector<1x16x16x128xf32>,
    %cst_184 = arith.constant dense<0.000000e+00> : vector<128xf32>
    %161 = vector.multi_reduction <add>, %156, %cst_184 [0] : vector<256x128xf32> to vector<128xf32>
    %162 = vector.shape_cast %161 : vector<128xf32> to vector<1x128xf32>
    %c0_185 = arith.constant 0 : index
    %c0_186 = arith.constant 0 : index
    %c0_187 = arith.constant 0 : index
    %163 = vector.load %arg10[%c0_185, %c0_186, %c0_187] : memref<1x2x128xf32, #tpu.memory_space<vmem>>, vector<1x1x128xf32>
    %164 = vector.shape_cast %163 : vector<1x1x128xf32> to vector<1x128xf32>
    %165 = vector.shape_cast %162 : vector<1x128xf32> to vector<1x1x128xf32>
    tpu.vector_store %arg10[%c0_185, %c0_186, %c0_187], %165 {strides = array<i32>} : memref<1x2x128xf32, #tpu.memory_space<vmem>>, vector<1x1x128xf32>,
    %166 = arith.mulf %156, %156 : vector<256x128xf32>
    %cst_188 = arith.constant dense<0.000000e+00> : vector<128xf32>
    %167 = vector.multi_reduction <add>, %166, %cst_188 [0] : vector<256x128xf32> to vector<128xf32>
    %168 = vector.shape_cast %167 : vector<128xf32> to vector<1x128xf32>
    %c0_189 = arith.constant 0 : index
    %c1_190 = arith.constant 1 : index
    %c0_191 = arith.constant 0 : index
    %169 = vector.load %arg10[%c0_189, %c1_190, %c0_191] : memref<1x2x128xf32, #tpu.memory_space<vmem>>, vector<1x1x128xf32>
    %170 = vector.shape_cast %169 : vector<1x1x128xf32> to vector<1x128xf32>
    %171 = vector.shape_cast %168 : vector<1x128xf32> to vector<1x1x128xf32>
    tpu.vector_store %arg10[%c0_189, %c1_190, %c0_191], %171 {strides = array<i32>} : memref<1x2x128xf32, #tpu.memory_space<vmem>>, vector<1x1x128xf32>,
    return
  }
  func.func @transform_0(%arg0: i32) -> (i32, i32, i32, i32) {
    %c0_i32 = arith.constant 0 : i32
    %c0_i32_0 = arith.constant 0 : i32
    %c0_i32_1 = arith.constant 0 : i32
    %c0_i32_2 = arith.constant 0 : i32
    return %arg0, %c0_i32, %c0_i32_0, %c0_i32_1 : i32, i32, i32, i32
  }
  func.func @transform_1(%arg0: i32) -> (i32, i32, i32, i32) {
    %c0_i32 = arith.constant 0 : i32
    %c0_i32_0 = arith.constant 0 : i32
    %c0_i32_1 = arith.constant 0 : i32
    %c0_i32_2 = arith.constant 0 : i32
    return %arg0, %c0_i32, %c0_i32_0, %c0_i32_1 : i32, i32, i32, i32
  }
  func.func @transform_2(%arg0: i32) -> (i32, i32) {
    %c0_i32 = arith.constant 0 : i32
    %c0_i32_0 = arith.constant 0 : i32
    %c0_i32_1 = arith.constant 0 : i32
    return %c0_i32, %c0_i32_0 : i32, i32
  }
  func.func @transform_3(%arg0: i32) -> (i32, i32) {
    %c0_i32 = arith.constant 0 : i32
    %c0_i32_0 = arith.constant 0 : i32
    %c0_i32_1 = arith.constant 0 : i32
    return %c0_i32, %c0_i32_0 : i32, i32
  }
  func.func @transform_4(%arg0: i32) -> (i32, i32) {
    %c0_i32 = arith.constant 0 : i32
    %c0_i32_0 = arith.constant 0 : i32
    %c0_i32_1 = arith.constant 0 : i32
    return %c0_i32, %c0_i32_0 : i32, i32
  }
  func.func @transform_5(%arg0: i32) -> (i32, i32) {
    %c0_i32 = arith.constant 0 : i32
    %c0_i32_0 = arith.constant 0 : i32
    %c0_i32_1 = arith.constant 0 : i32
    return %c0_i32, %c0_i32_0 : i32, i32
  }
  func.func @transform_6(%arg0: i32) -> (i32, i32) {
    %c0_i32 = arith.constant 0 : i32
    %c0_i32_0 = arith.constant 0 : i32
    %c0_i32_1 = arith.constant 0 : i32
    return %c0_i32, %c0_i32_0 : i32, i32
  }
  func.func @transform_7(%arg0: i32) -> (i32, i32) {
    %c0_i32 = arith.constant 0 : i32
    %c0_i32_0 = arith.constant 0 : i32
    %c0_i32_1 = arith.constant 0 : i32
    return %c0_i32, %c0_i32_0 : i32, i32
  }
  func.func @transform_8(%arg0: i32) -> (i32, i32, i32, i32) {
    %c0_i32 = arith.constant 0 : i32
    %c0_i32_0 = arith.constant 0 : i32
    %c0_i32_1 = arith.constant 0 : i32
    %c0_i32_2 = arith.constant 0 : i32
    return %arg0, %c0_i32, %c0_i32_0, %c0_i32_1 : i32, i32, i32, i32
  }
  func.func @transform_9(%arg0: i32) -> (i32, i32, i32) {
    %c0_i32 = arith.constant 0 : i32
    %c0_i32_0 = arith.constant 0 : i32
    %c0_i32_1 = arith.constant 0 : i32
    return %arg0, %c0_i32, %c0_i32_0 : i32, i32, i32
  }
}

</mosaic_0001>

<bundles_post_ra>
// kernel: upconv_forward.3
= control target key start
LH: loop header
LB: loop body
LE: loop exit
PB: predicated region body
PF: predicated region fallthrough
CT: control target
= control target key end

     0   :  { %s419_s12 = smov 0   ;;  %s578_s0 = inlined_call_operand.vmem [shape: f32[2,16,16,128], index: 0, kind: input, shape index: {}]   ;;  %s579_s1 = inlined_call_operand.vmem [shape: f32[1,128], index: 1, kind: input, shape index: {}]   ;;  %s580_s2 = inlined_call_operand.vmem [shape: f32[1,128], index: 2, kind: input, shape index: {}]   ;;  %s581_s3 = inlined_call_operand.vmem [shape: f32[2,16,16,128], index: 3, kind: output, shape index: {}]  }
   0x1 LB: > { %s368_s13 = sadd.s32 4294967295, %s397_s12   ;;  %p372_p0 = scmp.ge.s32.totalorder %s397_s12, 1  ;;  %s397_s12 = sphi %s419_s12, %s13_s12  }
   0x2   : > { %p137_p1 = scmp.lt.s32.totalorder %s397_s12, 3 }
   0x4   : > { %p138_p2 = pnand %p372_p0, %p137_p1 }
   0x5   : > { %p161_p3 = scmp.lt.s32.totalorder (!%p138_p2), %s368_s13, 1  ;;  %v430_v0 = vld [vmem:[%s579_s1] ss:$0 sm:$0xff] (!%p138_p2) }
   0x6   : > { %141 = sbr.rel (%p138_p2) target bundleno = 40 (0x28), region = 32  ;;  %v440_v1 = vld [vmem:[%s580_s2] ss:$0 sm:$0xff] (!%p138_p2) }
   0xd   : > { %s583_s13 = smov (!%p161_p3, %s368_s13), 1 }
   0xe   : > { %s381_s14 = sshll.u32 %s583_s13, 8 }
   0xf   : > { %s435_s19 = scalar_lea.vmem %s578_s0, %s381_s14  ;;  %s454_s24 = scalar_lea.vmem %s581_s3, %s381_s14 }
  0x10   : > { %v171_v2 = vld [vmem:[%s435_s19] sm:$0xff]  ;;  %v172_v3 = vld [vmem:[%s435_s19 + $0x8] sm:$0xff]  ;;  %v173_v4 = vld [vmem:[%s435_s19 + $0x10] sm:$0xff] }
  0x11   : > { %v210_v5 = vmul.f32 %v430_v0, %v171_v2  ;;  %v211_v6 = vmul.f32 %v430_v0, %v172_v3  ;;  %v212_v7 = vmul.f32 %v430_v0, %v173_v4  ;;  %v174_v8 = vld [vmem:[%s435_s19 + $0x18] sm:$0xff]  ;;  %v175_v9 = vld [vmem:[%s435_s19 + $0x20] sm:$0xff]  ;;  %v176_v10 = vld [vmem:[%s435_s19 + $0x28] sm:$0xff] }
  0x12   : > { %v213_v11 = vmul.f32 %v430_v0, %v174_v8  ;;  %v214_v12 = vmul.f32 %v430_v0, %v175_v9  ;;  %v215_v13 = vmul.f32 %v430_v0, %v176_v10  ;;  %v177_v14 = vld [vmem:[%s435_s19 + $0x30] sm:$0xff]  ;;  %v178_v15 = vld [vmem:[%s435_s19 + $0x38] sm:$0xff]  ;;  %v179_v16 = vld [vmem:[%s435_s19 + $0x40] sm:$0xff] }
  0x13   : > { %v249_v17 = vadd.f32 %v440_v1, %v210_v5  ;;  %v250_v18 = vadd.f32 %v440_v1, %v211_v6  ;;  %v251_v19 = vadd.f32 %v440_v1, %v212_v7  ;;  %v216_v20 = vmul.f32 %v430_v0, %v177_v14  ;;  %v180_v21 = vld [vmem:[%s435_s19 + $0x48] sm:$0xff]  ;;  %v181_v22 = vld [vmem:[%s435_s19 + $0x50] sm:$0xff]  ;;  %v182_v23 = vld [vmem:[%s435_s19 + $0x58] sm:$0xff] }
  0x14   : > { %v252_v24 = vadd.f32 %v440_v1, %v213_v11  ;;  %v253_v25 = vadd.f32 %v440_v1, %v214_v12  ;;  %v254_v26 = vadd.f32 %v440_v1, %v215_v13  ;;  %v217_v27 = vmul.f32 %v430_v0, %v178_v15  ;;  %v183_v28 = vld [vmem:[%s435_s19 + $0x60] sm:$0xff]  ;;  %v184_v29 = vld [vmem:[%s435_s19 + $0x68] sm:$0xff]  ;;  %v185_v30 = vld [vmem:[%s435_s19 + $0x70] sm:$0xff] }
  0x15   : > { %281 = vst [vmem:[%s454_s24] sm:$0xff] %v249_v17  ;;  %282 = vst [vmem:[%s454_s24 + $0x8] sm:$0xff] %v250_v18  ;;  %v255_v31 = vadd.f32 %v440_v1, %v216_v20  ;;  %v218_v32 = vmul.f32 %v430_v0, %v179_v16  ;;  %v219_v33 = vmul.f32 %v430_v0, %v180_v21  ;;  %v186_v35 = vld [vmem:[%s435_s19 + $0x78] sm:$0xff]  ;;  %v187_v40 = vld [vmem:[%s435_s19 + $0x80] sm:$0xff] }
  0x16   : > { %283 = vst [vmem:[%s454_s24 + $0x10] sm:$0xff] %v251_v19  ;;  %v220_v34 = vmul.f32 %v430_v0, %v181_v22  ;;  %284 = vst [vmem:[%s454_s24 + $0x18] sm:$0xff] %v252_v24  ;;  %v256_v36 = vadd.f32 %v440_v1, %v217_v27  ;;  %v221_v37 = vmul.f32 %v430_v0, %v182_v23  ;;  %v188_v41 = vld [vmem:[%s435_s19 + $0x88] sm:$0xff]  ;;  %v189_v42 = vld [vmem:[%s435_s19 + $0x90] sm:$0xff] }
  0x17   : > { %285 = vst [vmem:[%s454_s24 + $0x20] sm:$0xff] %v253_v25  ;;  %286 = vst [vmem:[%s454_s24 + $0x28] sm:$0xff] %v254_v26  ;;  %v222_v38 = vmul.f32 %v430_v0, %v183_v28  ;;  %v223_v39 = vmul.f32 %v430_v0, %v184_v29  ;;  %v257_v43 = vadd.f32 %v440_v1, %v218_v32  ;;  %v190_v47 = vld [vmem:[%s435_s19 + $0x98] sm:$0xff]  ;;  %v191_v48 = vld [vmem:[%s435_s19 + $0xa0] sm:$0xff] }
  0x18   : > { %287 = vst [vmem:[%s454_s24 + $0x30] sm:$0xff] %v255_v31  ;;  %v258_v44 = vadd.f32 %v440_v1, %v219_v33  ;;  %v259_v45 = vadd.f32 %v440_v1, %v220_v34  ;;  %v224_v46 = vmul.f32 %v430_v0, %v185_v30  ;;  %v192_v49 = vld [vmem:[%s435_s19 + $0xa8] sm:$0xff]  ;;  %288 = vst [vmem:[%s454_s24 + $0x38] sm:$0xff] %v256_v36  ;;  %v193_v54 = vld [vmem:[%s435_s19 + $0xb0] sm:$0xff] }
  0x19   : > { %v260_v50 = vadd.f32 %v440_v1, %v221_v37  ;;  %v261_v51 = vadd.f32 %v440_v1, %v222_v38  ;;  %v262_v52 = vadd.f32 %v440_v1, %v223_v39  ;;  %v225_v53 = vmul.f32 %v430_v0, %v186_v35  ;;  %289 = vst [vmem:[%s454_s24 + $0x40] sm:$0xff] %v257_v43  ;;  %v194_v59 = vld [vmem:[%s435_s19 + $0xb8] sm:$0xff]  ;;  %v195_v2 = vld [vmem:[%s435_s19 + $0xc0] sm:$0xff]  ;;  %v196_v3 = vld [vmem:[%s435_s19 + $0xc8] sm:$0xff] }
  0x1a   : > { %290 = vst [vmem:[%s454_s24 + $0x48] sm:$0xff] %v258_v44  ;;  %291 = vst [vmem:[%s454_s24 + $0x50] sm:$0xff] %v259_v45  ;;  %v263_v55 = vadd.f32 %v440_v1, %v224_v46  ;;  %v226_v56 = vmul.f32 %v430_v0, %v187_v40  ;;  %v227_v57 = vmul.f32 %v430_v0, %v188_v41  ;;  %v197_v4 = vld [vmem:[%s435_s19 + $0xd0] sm:$0xff]  ;;  %v198_v9 = vld [vmem:[%s435_s19 + $0xd8] sm:$0xff] }
  0x1b   : > { %v228_v58 = vmul.f32 %v430_v0, %v189_v42  ;;  %292 = vst [vmem:[%s454_s24 + $0x58] sm:$0xff] %v260_v50  ;;  %293 = vst [vmem:[%s454_s24 + $0x60] sm:$0xff] %v261_v51  ;;  %v264_v60 = vadd.f32 %v440_v1, %v225_v53  ;;  %v229_v61 = vmul.f32 %v430_v0, %v190_v47  ;;  %v199_v10 = vld [vmem:[%s435_s19 + $0xe0] sm:$0xff]  ;;  %v200_v11 = vld [vmem:[%s435_s19 + $0xe8] sm:$0xff] }
  0x1c   : > { %294 = vst [vmem:[%s454_s24 + $0x68] sm:$0xff] %v262_v52  ;;  %v230_v62 = vmul.f32 %v430_v0, %v191_v48  ;;  %v231_v63 = vmul.f32 %v430_v0, %v192_v49  ;;  %295 = vst [vmem:[%s454_s24 + $0x70] sm:$0xff] %v263_v55  ;;  %v265_v5 = vadd.f32 %v440_v1, %v226_v56  ;;  %v201_v16 = vld [vmem:[%s435_s19 + $0xf0] sm:$0xff]  ;;  %v202_v21 = vld [vmem:[%s435_s19 + $0xf8] sm:$0xff] }
  0x1d   : > { %v266_v6 = vadd.f32 %v440_v1, %v227_v57  ;;  %v267_v7 = vadd.f32 %v440_v1, %v228_v58  ;;  %v232_v8 = vmul.f32 %v430_v0, %v193_v54  ;;  %296 = vst [vmem:[%s454_s24 + $0x78] sm:$0xff] %v264_v60  ;;  %v268_v12 = vadd.f32 %v440_v1, %v229_v61 }
  0x1e   : > { %v269_v13 = vadd.f32 %v440_v1, %v230_v62  ;;  %v270_v14 = vadd.f32 %v440_v1, %v231_v63  ;;  %v233_v15 = vmul.f32 %v430_v0, %v194_v59  ;;  %297 = vst [vmem:[%s454_s24 + $0x80] sm:$0xff] %v265_v5  ;;  %v234_v18 = vmul.f32 %v430_v0, %v195_v2 }
  0x1f   : > { %298 = vst [vmem:[%s454_s24 + $0x88] sm:$0xff] %v266_v6  ;;  %299 = vst [vmem:[%s454_s24 + $0x90] sm:$0xff] %v267_v7  ;;  %v271_v17 = vadd.f32 %v440_v1, %v232_v8  ;;  %v235_v19 = vmul.f32 %v430_v0, %v196_v3  ;;  %v236_v20 = vmul.f32 %v430_v0, %v197_v4 }
  0x20   : > { %300 = vst [vmem:[%s454_s24 + $0x98] sm:$0xff] %v268_v12  ;;  %301 = vst [vmem:[%s454_s24 + $0xa0] sm:$0xff] %v269_v13  ;;  %v272_v22 = vadd.f32 %v440_v1, %v233_v15  ;;  %v237_v23 = vmul.f32 %v430_v0, %v198_v9  ;;  %v238_v24 = vmul.f32 %v430_v0, %v199_v10 }
  0x21   : > { %302 = vst [vmem:[%s454_s24 + $0xa8] sm:$0xff] %v270_v14  ;;  %v239_v25 = vmul.f32 %v430_v0, %v200_v11  ;;  %303 = vst [vmem:[%s454_s24 + $0xb0] sm:$0xff] %v271_v17  ;;  %v273_v26 = vadd.f32 %v440_v1, %v234_v18  ;;  %v274_v27 = vadd.f32 %v440_v1, %v235_v19 }
  0x22   : > { %v275_v28 = vadd.f32 %v440_v1, %v236_v20  ;;  %v240_v29 = vmul.f32 %v430_v0, %v201_v16  ;;  %304 = vst [vmem:[%s454_s24 + $0xb8] sm:$0xff] %v272_v22  ;;  %v276_v30 = vadd.f32 %v440_v1, %v237_v23  ;;  %v277_v31 = vadd.f32 %v440_v1, %v238_v24 }
  0x23   : > { %v278_v32 = vadd.f32 %v440_v1, %v239_v25  ;;  %v241_v33 = vmul.f32 %v430_v0, %v202_v21  ;;  %305 = vst [vmem:[%s454_s24 + $0xc0] sm:$0xff] %v273_v26  ;;  %306 = vst [vmem:[%s454_s24 + $0xc8] sm:$0xff] %v274_v27 }
  0x24   : > { %307 = vst [vmem:[%s454_s24 + $0xd0] sm:$0xff] %v275_v28  ;;  %v279_v34 = vadd.f32 %v440_v1, %v240_v29  ;;  %308 = vst [vmem:[%s454_s24 + $0xd8] sm:$0xff] %v276_v30 }
  0x25   : > { %309 = vst [vmem:[%s454_s24 + $0xe0] sm:$0xff] %v277_v31  ;;  %310 = vst [vmem:[%s454_s24 + $0xe8] sm:$0xff] %v278_v32  ;;  %v280_v35 = vadd.f32 %v440_v1, %v241_v33 }
  0x26   : > { %311 = vst [vmem:[%s454_s24 + $0xf0] sm:$0xff] %v279_v34 }
  0x27   : > { %312 = vst [vmem:[%s454_s24 + $0xf8] sm:$0xff] %v280_v35 }
  0x28 PF: > { %s13_s12 = sadd.s32 1, %s397_s12  }
  0x29   : > { %p10_p4 = scmp.ge.s32.totalorder %s13_s12, 4  }
  0x2b   :  { %12 = sbr.rel (!%p10_p4) target bundleno = 1 (0x1), region = 62 }

// kernel: upconv_forward.2
= control target key start
LH: loop header
LB: loop body
LE: loop exit
PB: predicated region body
PF: predicated region fallthrough
CT: control target
= control target key end

     0   :  { %s9686_s30 = smov 0   ;;  %s11951_s0 = inlined_call_operand.vmem [shape: bf16[2,16,16,128], index: 0, kind: input, shape index: {}]   ;;  %s11952_s1 = inlined_call_operand.vmem [shape: bf16[2,16,16,128], index: 1, kind: input, shape index: {}]   ;;  %s11953_s2 = inlined_call_operand.vmem [shape: bf16[512,128], index: 2, kind: input, shape index: {}]   ;;  %s11954_s3 = inlined_call_operand.vmem [shape: f32[1,128], index: 3, kind: input, shape index: {}]   ;;  %s11955_s4 = inlined_call_operand.vmem [shape: bf16[2304,128], index: 4, kind: input, shape index: {}]   ;;  %s11956_s5 = inlined_call_operand.vmem [shape: f32[1,128], index: 5, kind: input, shape index: {}]   ;;  %s11957_s6 = inlined_call_operand.vmem [shape: bf16[1152,128], index: 6, kind: input, shape index: {}]   ;;  %s11958_s7 = inlined_call_operand.vmem [shape: f32[1,128], index: 7, kind: input, shape index: {}]   ;;  %s11959_s8 = inlined_call_operand.vmem [shape: f32[2,16,16,128], index: 8, kind: output, shape index: {0}]   ;;  %s11960_s9 = inlined_call_operand.vmem [shape: f32[2,2,128], index: 9, kind: output, shape index: {1}]  }
   0x1 LB: > { %s7136_s10 = sadd.s32 4294967295, %s9633_s30   ;;  %p7140_p0 = scmp.ge.s32.totalorder %s9633_s30, 1  ;;  %s9633_s30 = sphi %s9686_s30, %s20_s30  }
   0x2   : > { %p300_p1 = scmp.lt.s32.totalorder %s9633_s30, 3 }
   0x4   : > { %p301_p2 = pnand %p7140_p0, %p300_p1 }
   0x6   : > { %304 = sbr.rel (%p301_p2) target bundleno = 1632 (0x660), region = 52 }
   0xd   : > { %v9339_v0 = vld [vmem:[%s11953_s2 + $0x40] sm:$0xff]   ;;  %v9705_v2 = vld [vmem:[%s11953_s2 + $0x48] sm:$0xff]   ;;  %p9709_p3 = scmp.lt.s32.totalorder %s7136_s10, 1  ;;  %v9635_v3 = vmov 0.0   ;;  %v9343_v5 = vld [vmem:[%s11953_s2 + $0x50] sm:$0xff]  }
   0xe   : > { %v9700_v1 = vld [vmem:[%s11953_s2] sm:$0xff]   ;;  %9314 = vmatprep.subr.bf16.mxu1 %v9339_v0  ;;  %7562 = vmatprep.subr.bf16.mxu0 %v9339_v0  ;;  %477 = vst [vmem:[#allocation2 + $0x130] sm:$0x1] %v9635_v3  ;;  %462 = vst [vmem:[#allocation2 + $0x180] sm:$0xff] %v9635_v3  ;;  %v9342_v4 = vld [vmem:[%s11953_s2 + $0x8] sm:$0xff]  }
   0xf   : > { %463 = vst [vmem:[#allocation2 + $0x188] sm:$0xff] %v9635_v3  ;;  %464 = vst [vmem:[#allocation2 + $0x190] sm:$0x1] %v9635_v3  ;;  %9322 = vmatpush3.bf16.msra.mxu1 %v9700_v1  ;;  %7563 = vmatpush3.bf16.msra.mxu0 %v9700_v1  ;;  %s12000_s10 = smov (!%p9709_p3, %s7136_s10), 1  ;;  %v9344_v6 = vld [vmem:[%s11953_s2 + $0x10] sm:$0xff]   ;;  %v9345_v7 = vld [vmem:[%s11953_s2 + $0x58] sm:$0xff]  }
  0x10   : > { %465 = vst [vmem:[#allocation2 + $0x10] sm:$0x1] %v9635_v3  ;;  %466 = vst [vmem:[#allocation2 + $0x28] sm:$0x1] %v9635_v3  ;;  %9315 = vmatprep.subr.bf16.mxu1 %v9705_v2  ;;  %7564 = vmatprep.subr.bf16.mxu0 %v9705_v2  ;;  %s7401_s26 = sshll.u32 %s12000_s10, 7  ;;  %v9346_v8 = vld [vmem:[%s11953_s2 + $0x18] sm:$0xff]  }
  0x11   : > { %467 = vst [vmem:[#allocation2 + $0x40] sm:$0x1] %v9635_v3  ;;  %468 = vst [vmem:[#allocation2 + $0x58] sm:$0x1] %v9635_v3  ;;  %v9347_v9 = vld [vmem:[%s11953_s2 + $0x60] sm:$0xff]   ;;  %s9880_s14 = scalar_lea.vmem %s11951_s0, %s7401_s26  ;;  %v9349_v11 = vld [vmem:[%s11953_s2 + $0x68] sm:$0xff]   ;;  %s10408_s23 = scalar_lea.vmem %s11952_s1, %s7401_s26 }
  0x12   : > { %469 = vst [vmem:[#allocation2 + $0x70] sm:$0x1] %v9635_v3  ;;  %470 = vst [vmem:[#allocation2 + $0x88] sm:$0x1] %v9635_v3  ;;  %v9348_v10 = vld [vmem:[%s11953_s2 + $0x20] sm:$0xff]   ;;  %v9350_v15 = vld [vmem:[%s11953_s2 + $0x28] sm:$0xff]  }
  0x13   : > { %471 = vst [vmem:[#allocation2 + $0xa0] sm:$0x1] %v9635_v3  ;;  %472 = vst [vmem:[#allocation2 + $0xb8] sm:$0x1] %v9635_v3  ;;  %9323 = vmatpush3.bf16.msra.mxu1 %v9342_v4  ;;  %7565 = vmatpush3.bf16.msra.mxu0 %v9342_v4  ;;  %v7543_v12 = vld [vmem:[%s9880_s14 + $0x60] sm:$0xff]   ;;  %v9351_v16 = vld [vmem:[%s11953_s2 + $0x70] sm:$0xff]  }
  0x14   : > { %473 = vst [vmem:[#allocation2 + $0xd0] sm:$0x1] %v9635_v3  ;;  %474 = vst [vmem:[#allocation2 + $0xe8] sm:$0x1] %v9635_v3  ;;  %9316 = vmatprep.subr.bf16.mxu1 %v9343_v5  ;;  %7566 = vmatprep.subr.bf16.mxu0 %v9343_v5  ;;  %v7454_v13 = vunpack.c.l.bf16 %v7543_v12  ;;  %v7455_v14 = vunpack.c.h.bf16 %v7543_v12  ;;  %v7544_v17 = vld [vmem:[%s9880_s14 + $0x68] sm:$0xff]   ;;  %v9352_v20 = vld [vmem:[%s11953_s2 + $0x30] sm:$0xff]  }
  0x15   : > { %475 = vst [vmem:[#allocation2 + $0x100] sm:$0x1] %v9635_v3  ;;  %476 = vst [vmem:[#allocation2 + $0x118] sm:$0x1] %v9635_v3  ;;  %v7458_v18 = vunpack.c.l.bf16 %v7544_v17  ;;  %v7459_v19 = vunpack.c.h.bf16 %v7544_v17  ;;  %v9353_v21 = vld [vmem:[%s11953_s2 + $0x78] sm:$0xff]   ;;  %v7545_v22 = vld [vmem:[%s9880_s14 + $0x70] sm:$0xff]  }
  0x16   : > { %478 = vst [vmem:[#allocation2 + $0x148] sm:$0x1] %v9635_v3  ;;  %479 = vst [vmem:[#allocation2 + $0x160] sm:$0x1] %v9635_v3  ;;  %v7462_v25 = vunpack.c.l.bf16 %v7545_v22  ;;  %v7463_v26 = vunpack.c.h.bf16 %v7545_v22  ;;  %v9354_v27 = vld [vmem:[%s11953_s2 + $0x38] sm:$0xff]   ;;  %v9356_v29 = vld [vmem:[%s11953_s2 + $0xc0] sm:$0xff]  }
  0x17   : > { %480 = vst [vmem:[#allocation2 + $0x178] sm:$0x1] %v9635_v3  ;;  %578 = vst [vmem:[#allocation3] sm:$0xff] %v9635_v3  ;;  %9324 = vmatpush3.bf16.msra.mxu1 %v9344_v6  ;;  %7567 = vmatpush3.bf16.msra.mxu0 %v9344_v6  ;;  %v9355_v30 = vld [vmem:[%s9880_s14 + $0x60] sm:$0xff]  ;;  %v7546_v35 = vld [vmem:[%s9880_s14 + $0x78] sm:$0xff]   ;;  %s7403_s15 = sshll.u32 %s12000_s10, 8 }
  0x18   : > { %579 = vst [vmem:[#allocation3 + $0x8] sm:$0xff] %v9635_v3  ;;  %580 = vst [vmem:[#allocation3 + $0x10] sm:$0x3] %v9635_v3  ;;  %9317 = vmatprep.subr.bf16.mxu1 %v9345_v7  ;;  %7568 = vmatprep.subr.bf16.mxu0 %v9345_v7  ;;  %v9357_v33 = vld [vmem:[%s11953_s2 + $0x80] sm:$0xff]   ;;  %v9358_v36 = vld [vmem:[%s11953_s2 + $0xc8] sm:$0xff]   ;;  %v7466_v37 = vunpack.c.l.bf16 %v7546_v35  ;;  %v7467_v38 = vunpack.c.h.bf16 %v7546_v35  ;;  %s11875_s18 = scalar_lea.vmem %s11959_s8, %s7403_s15  ;;  %s7147_s19 = sshll.u32 %s12000_s10, 1 }
  0x19   : > { %582 = vst [vmem:[#allocation3 + $0x198] sm:$0xff] %v9635_v3  ;;  %583 = vst [vmem:[#allocation3 + $0x1a0] sm:$0xff] %v9635_v3  ;;  %v9359_v39 = vld [vmem:[%s11953_s2 + $0x88] sm:$0xff]   ;;  %v7405_v40 = vld [vmem:[%s9880_s14] sm:$0xff]   ;;  %s363_s22 = scalar_lea.vmem %s11960_s9, %s7147_s19 }
  0x1a   : > { %584 = vst [vmem:[#allocation3 + $0x1a8] sm:$0x3] %v9635_v3  ;;  %585 = vst [vmem:[#allocation3 + $0x18] sm:$0x1] %v9635_v3  ;;  %v7406_v43 = vunpack.c.l.bf16 %v7405_v40  ;;  %v7407_v44 = vunpack.c.h.bf16 %v7405_v40  ;;  %v9361_v45 = vld [vmem:[%s11953_s2 + $0xd0] sm:$0xff]   ;;  %v7532_v46 = vld [vmem:[%s9880_s14 + $0x8] sm:$0xff]  }
  0x1b   : > { %586 = vst [vmem:[#allocation3 + $0x30] sm:$0x1] %v9635_v3  ;;  %587 = vst [vmem:[#allocation3 + $0x48] sm:$0x1] %v9635_v3  ;;  %9325 = vmatpush3.bf16.msra.mxu1 %v9346_v8  ;;  %7569 = vmatpush3.bf16.msra.mxu0 %v9346_v8  ;;  %v9360_v47 = vld [vmem:[%s9880_s14 + $0x68] sm:$0xff]  ;;  %v7410_v49 = vunpack.c.l.bf16 %v7532_v46  ;;  %v7411_v50 = vunpack.c.h.bf16 %v7532_v46  ;;  %v7533_v51 = vld [vmem:[%s9880_s14 + $0x10] sm:$0xff]  }
  0x1c   : > { %588 = vst [vmem:[#allocation3 + $0x60] sm:$0x1] %v9635_v3  ;;  %589 = vst [vmem:[#allocation3 + $0x78] sm:$0x1] %v9635_v3  ;;  %9318 = vmatprep.subr.bf16.mxu1 %v9347_v9  ;;  %7570 = vmatprep.subr.bf16.mxu0 %v9347_v9  ;;  %v7534_v52 = vld [vmem:[%s9880_s14 + $0x18] sm:$0xff]   ;;  %v9362_v53 = vld [vmem:[%s11953_s2 + $0x90] sm:$0xff]   ;;  %v7414_v54 = vunpack.c.l.bf16 %v7533_v51  ;;  %v7415_v55 = vunpack.c.h.bf16 %v7533_v51 }
  0x1d   : > { %590 = vst [vmem:[#allocation3 + $0x90] sm:$0x1] %v9635_v3  ;;  %591 = vst [vmem:[#allocation3 + $0xa8] sm:$0x1] %v9635_v3  ;;  %v7418_v56 = vunpack.c.l.bf16 %v7534_v52  ;;  %v7419_v57 = vunpack.c.h.bf16 %v7534_v52  ;;  %v7535_v58 = vld [vmem:[%s9880_s14 + $0x20] sm:$0xff]   ;;  %v9363_v59 = vld [vmem:[%s11953_s2 + $0xd8] sm:$0xff]  }
  0x1e   : > { %592 = vst [vmem:[#allocation3 + $0xc0] sm:$0x1] %v9635_v3  ;;  %593 = vst [vmem:[#allocation3 + $0xd8] sm:$0x1] %v9635_v3  ;;  %v7422_v60 = vunpack.c.l.bf16 %v7535_v58  ;;  %v7423_v61 = vunpack.c.h.bf16 %v7535_v58  ;;  %v7536_v62 = vld [vmem:[%s9880_s14 + $0x28] sm:$0xff]   ;;  %v7537_v63 = vld [vmem:[%s9880_s14 + $0x30] sm:$0xff]  }
  0x1f   : > { %594 = vst [vmem:[#allocation3 + $0xf0] sm:$0x1] %v9635_v3  ;;  %595 = vst [vmem:[#allocation3 + $0x108] sm:$0x1] %v9635_v3  ;;  %9326 = vmatpush3.bf16.msra.mxu1 %v9348_v10  ;;  %7571 = vmatpush3.bf16.msra.mxu0 %v9348_v10  ;;  %v9364_v0 = vld [vmem:[%s11953_s2 + $0x98] sm:$0xff]   ;;  %v7426_v1 = vunpack.c.l.bf16 %v7536_v62  ;;  %v7427_v2 = vunpack.c.h.bf16 %v7536_v62  ;;  %v7431_v4 = vunpack.c.h.bf16 %v7537_v63  ;;  %v9366_v5 = vld [vmem:[%s11953_s2 + $0xe0] sm:$0xff]  }
  0x20   : > { %596 = vst [vmem:[#allocation3 + $0x120] sm:$0x1] %v9635_v3  ;;  %597 = vst [vmem:[#allocation3 + $0x138] sm:$0x1] %v9635_v3  ;;  %9319 = vmatprep.subr.bf16.mxu1 %v9349_v11  ;;  %7572 = vmatprep.subr.bf16.mxu0 %v9349_v11  ;;  %v9373_v6 = vld [vmem:[%s9880_s14] sm:$0xff]  ;;  %v7538_v7 = vld [vmem:[%s9880_s14 + $0x38] sm:$0xff]  }
  0x21   : > { %598 = vst [vmem:[#allocation3 + $0x150] sm:$0x1] %v9635_v3  ;;  %599 = vst [vmem:[#allocation3 + $0x168] sm:$0x1] %v9635_v3  ;;  %v7539_v8 = vld [vmem:[%s9880_s14 + $0x40] sm:$0xff]   ;;  %v7434_v11 = vunpack.c.l.bf16 %v7538_v7  ;;  %v7435_v12 = vunpack.c.h.bf16 %v7538_v7  ;;  %v9975_v40 = vld [vmem:[%s9880_s14 + $0x78] sm:$0xff] }
  0x22   : > { %600 = vst [vmem:[#allocation3 + $0x180] sm:$0x1] %v9635_v3  ;;  %601 = vst [vmem:[#allocation3 + $0x29] sm:$0x1] %v9635_v3  ;;  %v9367_v22 = vld [vmem:[%s11953_s2 + $0xa0] sm:$0xff]   ;;  %v9377_v51 = vld [vmem:[%s9880_s14 + $0x10] sm:$0xff] }
  0x23   : > { %602 = vst [vmem:[#allocation3 + $0x41] sm:$0x1] %v9635_v3  ;;  %603 = vst [vmem:[#allocation3 + $0x59] sm:$0x1] %v9635_v3  ;;  %9327 = vmatpush3.bf16.msra.mxu1 %v9350_v15  ;;  %7573 = vmatpush3.bf16.msra.mxu0 %v9350_v15  ;;  %v7540_v15 = vld [vmem:[%s9880_s14 + $0x48] sm:$0xff]   ;;  %v9388_v46 = vld [vmem:[%s11955_s4] sm:$0xff]  }
  0x24   : > { %604 = vst [vmem:[#allocation3 + $0x71] sm:$0x1] %v9635_v3  ;;  %605 = vst [vmem:[#allocation3 + $0x89] sm:$0x1] %v9635_v3  ;;  %9320 = vmatprep.subr.bf16.mxu1 %v9351_v16  ;;  %7574 = vmatprep.subr.bf16.mxu0 %v9351_v16  ;;  %v9395_v62 = vld [vmem:[%s11955_s4 + $0x60] sm:$0xff]   ;;  %v9380_v7 = vld [vmem:[%s9880_s14 + $0x28] sm:$0xff] }
  0x25   : > { %606 = vst [vmem:[#allocation3 + $0xa1] sm:$0x1] %v9635_v3  ;;  %607 = vst [vmem:[#allocation3 + $0xb9] sm:$0x1] %v9635_v3 }
  0x26   : > { %608 = vst [vmem:[#allocation3 + $0xd1] sm:$0x1] %v9635_v3  ;;  %609 = vst [vmem:[#allocation3 + $0xe9] sm:$0x1] %v9635_v3 }
  0x27   : > { %610 = vst [vmem:[#allocation3 + $0x101] sm:$0x1] %v9635_v3  ;;  %611 = vst [vmem:[#allocation3 + $0x119] sm:$0x1] %v9635_v3  ;;  %9328 = vmatpush3.bf16.msra.mxu1 %v9352_v20  ;;  %7575 = vmatpush3.bf16.msra.mxu0 %v9352_v20  ;;  %v7541_v20 = vld [vmem:[%s9880_s14 + $0x50] sm:$0xff]  }
  0x28   : > { %612 = vst [vmem:[#allocation3 + $0x131] sm:$0x1] %v9635_v3  ;;  %613 = vst [vmem:[#allocation3 + $0x149] sm:$0x1] %v9635_v3  ;;  %9321 = vmatprep.subr.bf16.mxu1 %v9353_v21  ;;  %7576 = vmatprep.subr.bf16.mxu0 %v9353_v21  ;;  %v9365_v21 = vld [vmem:[%s9880_s14 + $0x70] sm:$0xff] }
  0x29   : > { %614 = vst [vmem:[#allocation3 + $0x161] sm:$0x1] %v9635_v3  ;;  %615 = vst [vmem:[#allocation3 + $0x179] sm:$0x1] %v9635_v3 }
  0x2a   : > { %616 = vst [vmem:[#allocation3 + $0x191] sm:$0x1] %v9635_v3  ;;  %1395 = vst [vmem:[#allocation4] sm:$0xff] %v9635_v3 }
  0x2b   : > { %1396 = vst [vmem:[#allocation4 + $0x8] sm:$0xff] %v9635_v3  ;;  %1397 = vst [vmem:[#allocation4 + $0x10] sm:$0x3] %v9635_v3  ;;  %9329 = vmatpush3.bf16.msra.mxu1 %v9354_v27  ;;  %7577 = vmatpush3.bf16.msra.mxu0 %v9354_v27 }
  0x2c   : > { %1399 = vst [vmem:[#allocation4 + $0x198] sm:$0xff] %v9635_v3  ;;  %1400 = vst [vmem:[#allocation4 + $0x1a0] sm:$0xff] %v9635_v3  ;;  %7674 = vmatprep.subr.bf16.mxu1 %v9356_v29 }
  0x2d   : > { %1401 = vst [vmem:[#allocation4 + $0x1a8] sm:$0x3] %v9635_v3  ;;  %1403 = vst [vmem:[#allocation4 + $0x18] sm:$0x1] %v9635_v3 }
  0x2e   : > { %1404 = vst [vmem:[#allocation4 + $0x30] sm:$0x1] %v9635_v3  ;;  %1405 = vst [vmem:[#allocation4 + $0x48] sm:$0x1] %v9635_v3 }
  0x2f   : > { %1406 = vst [vmem:[#allocation4 + $0x60] sm:$0x1] %v9635_v3  ;;  %1407 = vst [vmem:[#allocation4 + $0x78] sm:$0x1] %v9635_v3 }
  0x30   : > { %1408 = vst [vmem:[#allocation4 + $0x90] sm:$0x1] %v9635_v3  ;;  %1409 = vst [vmem:[#allocation4 + $0xa8] sm:$0x1] %v9635_v3 }
  0x31   : > { %1410 = vst [vmem:[#allocation4 + $0xc0] sm:$0x1] %v9635_v3  ;;  %1411 = vst [vmem:[#allocation4 + $0xd8] sm:$0x1] %v9635_v3 }
  0x32   : > { %1412 = vst [vmem:[#allocation4 + $0xf0] sm:$0x1] %v9635_v3  ;;  %1413 = vst [vmem:[#allocation4 + $0x108] sm:$0x1] %v9635_v3 }
  0x33   : > { %1414 = vst [vmem:[#allocation4 + $0x120] sm:$0x1] %v9635_v3  ;;  %1415 = vst [vmem:[#allocation4 + $0x138] sm:$0x1] %v9635_v3 }
  0x34   : > { %1416 = vst [vmem:[#allocation4 + $0x150] sm:$0x1] %v9635_v3  ;;  %1417 = vst [vmem:[#allocation4 + $0x168] sm:$0x1] %v9635_v3 }
  0x35   : > { %1418 = vst [vmem:[#allocation4 + $0x180] sm:$0x1] %v9635_v3  ;;  %1419 = vst [vmem:[#allocation4 + $0x29] sm:$0x1] %v9635_v3 }
  0x36   : > { %1420 = vst [vmem:[#allocation4 + $0x41] sm:$0x1] %v9635_v3  ;;  %1421 = vst [vmem:[#allocation4 + $0x59] sm:$0x1] %v9635_v3 }
  0x37   : > { %1422 = vst [vmem:[#allocation4 + $0x71] sm:$0x1] %v9635_v3  ;;  %1423 = vst [vmem:[#allocation4 + $0x89] sm:$0x1] %v9635_v3 }
  0x38   : > { %1424 = vst [vmem:[#allocation4 + $0xa1] sm:$0x1] %v9635_v3  ;;  %1425 = vst [vmem:[#allocation4 + $0xb9] sm:$0x1] %v9635_v3 }
  0x39   : > { %1426 = vst [vmem:[#allocation4 + $0xd1] sm:$0x1] %v9635_v3  ;;  %1427 = vst [vmem:[#allocation4 + $0xe9] sm:$0x1] %v9635_v3 }
  0x3a   : > { %1428 = vst [vmem:[#allocation4 + $0x101] sm:$0x1] %v9635_v3  ;;  %1429 = vst [vmem:[#allocation4 + $0x119] sm:$0x1] %v9635_v3 }
  0x3b   : > { %1430 = vst [vmem:[#allocation4 + $0x131] sm:$0x1] %v9635_v3  ;;  %1431 = vst [vmem:[#allocation4 + $0x149] sm:$0x1] %v9635_v3 }
  0x3c   : > { %1432 = vst [vmem:[#allocation4 + $0x161] sm:$0x1] %v9635_v3  ;;  %1433 = vst [vmem:[#allocation4 + $0x179] sm:$0x1] %v9635_v3 }
  0x3d   : > { %1434 = vst [vmem:[#allocation4 + $0x191] sm:$0x1] %v9635_v3  ;;  %4973 = vst [vmem:[#allocation5] sm:$0xff] %v9635_v3 }
  0x3e   : > { %4974 = vst [vmem:[#allocation5 + $0x8] sm:$0xff] %v9635_v3  ;;  %4975 = vst [vmem:[#allocation5 + $0x10] sm:$0x3] %v9635_v3 }
  0x3f   : > { %4977 = vst [vmem:[#allocation5 + $0x198] sm:$0xff] %v9635_v3  ;;  %4978 = vst [vmem:[#allocation5 + $0x1a0] sm:$0xff] %v9635_v3 }
  0x40   : > { %4979 = vst [vmem:[#allocation5 + $0x1a8] sm:$0x3] %v9635_v3  ;;  %4981 = vst [vmem:[#allocation5 + $0x18] sm:$0x1] %v9635_v3 }
  0x41   : > { %4982 = vst [vmem:[#allocation5 + $0x30] sm:$0x1] %v9635_v3  ;;  %4983 = vst [vmem:[#allocation5 + $0x48] sm:$0x1] %v9635_v3 }
  0x42   : > { %4984 = vst [vmem:[#allocation5 + $0x60] sm:$0x1] %v9635_v3  ;;  %4985 = vst [vmem:[#allocation5 + $0x78] sm:$0x1] %v9635_v3 }
  0x43   : > { %4986 = vst [vmem:[#allocation5 + $0x90] sm:$0x1] %v9635_v3  ;;  %4987 = vst [vmem:[#allocation5 + $0xa8] sm:$0x1] %v9635_v3 }
  0x44   : > { %4988 = vst [vmem:[#allocation5 + $0xc0] sm:$0x1] %v9635_v3  ;;  %4989 = vst [vmem:[#allocation5 + $0xd8] sm:$0x1] %v9635_v3 }
  0x45   : > { %4990 = vst [vmem:[#allocation5 + $0xf0] sm:$0x1] %v9635_v3  ;;  %4991 = vst [vmem:[#allocation5 + $0x108] sm:$0x1] %v9635_v3 }
  0x46   : > { %4992 = vst [vmem:[#allocation5 + $0x120] sm:$0x1] %v9635_v3  ;;  %4993 = vst [vmem:[#allocation5 + $0x138] sm:$0x1] %v9635_v3 }
  0x47   : > { %4994 = vst [vmem:[#allocation5 + $0x150] sm:$0x1] %v9635_v3  ;;  %4995 = vst [vmem:[#allocation5 + $0x168] sm:$0x1] %v9635_v3 }
  0x48   : > { %4996 = vst [vmem:[#allocation5 + $0x180] sm:$0x1] %v9635_v3  ;;  %4997 = vst [vmem:[#allocation5 + $0x29] sm:$0x1] %v9635_v3 }
  0x49   : > { %4998 = vst [vmem:[#allocation5 + $0x41] sm:$0x1] %v9635_v3  ;;  %4999 = vst [vmem:[#allocation5 + $0x59] sm:$0x1] %v9635_v3 }
  0x4a   : > { %5000 = vst [vmem:[#allocation5 + $0x71] sm:$0x1] %v9635_v3  ;;  %5001 = vst [vmem:[#allocation5 + $0x89] sm:$0x1] %v9635_v3 }
  0x4b   : > { %5002 = vst [vmem:[#allocation5 + $0xa1] sm:$0x1] %v9635_v3  ;;  %5003 = vst [vmem:[#allocation5 + $0xb9] sm:$0x1] %v9635_v3 }
  0x4c   : > { %5004 = vst [vmem:[#allocation5 + $0xd1] sm:$0x1] %v9635_v3  ;;  %5005 = vst [vmem:[#allocation5 + $0xe9] sm:$0x1] %v9635_v3 }
  0x4d   : > { %5006 = vst [vmem:[#allocation5 + $0x101] sm:$0x1] %v9635_v3  ;;  %5007 = vst [vmem:[#allocation5 + $0x119] sm:$0x1] %v9635_v3 }
  0x4e   : > { %5008 = vst [vmem:[#allocation5 + $0x131] sm:$0x1] %v9635_v3  ;;  %5009 = vst [vmem:[#allocation5 + $0x149] sm:$0x1] %v9635_v3 }
  0x4f   : > { %5010 = vst [vmem:[#allocation5 + $0x161] sm:$0x1] %v9635_v3  ;;  %5011 = vst [vmem:[#allocation5 + $0x179] sm:$0x1] %v9635_v3 }
  0x50   : > { %5012 = vst [vmem:[#allocation5 + $0x191] sm:$0x1] %v9635_v3  ;;  %453 = vst [vmem:[#allocation2 + $0x120] sm:$0xff] %v7454_v13  ;;  %v7430_v3 = vunpack.c.l.bf16 %v7537_v63  ;;  %v7438_v13 = vunpack.c.l.bf16 %v7539_v8 }
  0x51   : > { %454 = vst [vmem:[#allocation2 + $0x128] sm:$0xff] %v7455_v14  ;;  %455 = vst [vmem:[#allocation2 + $0x138] sm:$0xff] %v7458_v18  ;;  %v7439_v14 = vunpack.c.h.bf16 %v7539_v8  ;;  %v7442_v18 = vunpack.c.l.bf16 %v7540_v15 }
  0x52   : > { %456 = vst [vmem:[#allocation2 + $0x140] sm:$0xff] %v7459_v19  ;;  %457 = vst [vmem:[#allocation2 + $0x150] sm:$0xff] %v7462_v25  ;;  %v7443_v19 = vunpack.c.h.bf16 %v7540_v15  ;;  %v7447_v25 = vunpack.c.h.bf16 %v7541_v20  ;;  %v9382_v15 = vld [vmem:[%s9880_s14 + $0x38] sm:$0xff] }
  0x53   : > { %458 = vst [vmem:[#allocation2 + $0x158] sm:$0xff] %v7463_v26  ;;  %459 = vst [vmem:[#allocation2 + $0x168] sm:$0xff] %v7466_v37  ;;  %v7542_v26 = vld [vmem:[%s9880_s14 + $0x58] sm:$0xff]   ;;  %v9371_v37 = vld [vmem:[%s11953_s2 + $0xf0] sm:$0xff]  }
  0x54   : > { %460 = vst [vmem:[#allocation2 + $0x170] sm:$0xff] %v7467_v38  ;;  %429 = vst [vmem:[#allocation2] sm:$0xff] %v7406_v43  ;;  %v7450_v27 = vunpack.c.l.bf16 %v7542_v26  ;;  %v7451_v29 = vunpack.c.h.bf16 %v7542_v26  ;;  %v9374_v43 = vld [vmem:[%s11953_s2 + $0xf8] sm:$0xff]  }
  0x55   : > { %430 = vst [vmem:[#allocation2 + $0x8] sm:$0xff] %v7407_v44  ;;  %431 = vst [vmem:[#allocation2 + $0x18] sm:$0xff] %v7410_v49  ;;  %v9375_v49 = vld [vmem:[%s11953_s2 + $0xb8] sm:$0xff]  }
  0x56   : > { %432 = vst [vmem:[#allocation2 + $0x20] sm:$0xff] %v7411_v50  ;;  %433 = vst [vmem:[#allocation2 + $0x30] sm:$0xff] %v7414_v54  ;;  %v9391_v54 = vld [vmem:[%s11955_s4 + $0x50] sm:$0xff]  }
  0x57   : > { %434 = vst [vmem:[#allocation2 + $0x38] sm:$0xff] %v7415_v55  ;;  %435 = vst [vmem:[#allocation2 + $0x48] sm:$0xff] %v7418_v56  ;;  %v9392_v56 = vld [vmem:[%s11955_s4 + $0x10] sm:$0xff]  }
  0x58   : > { %v689_v23 = vld [vmem:[#allocation2 + $0x121] sm:$0xff]  ;;  %v690_v24 = vld [vmem:[#allocation2 + $0x129] sm:$0xff]  ;;  %436 = vst [vmem:[#allocation2 + $0x50] sm:$0xff] %v7419_v57  ;;  %437 = vst [vmem:[#allocation2 + $0x60] sm:$0xff] %v7422_v60 }
  0x59   : > { %v9906_v28 = vpack.c.bf16 %v690_v24, %v689_v23  ;;  %v691_v31 = vld [vmem:[#allocation2 + $0x139] sm:$0xff]  ;;  %v692_v32 = vld [vmem:[#allocation2 + $0x141] sm:$0xff]  ;;  %438 = vst [vmem:[#allocation2 + $0x68] sm:$0xff] %v7423_v61  ;;  %439 = vst [vmem:[#allocation2 + $0x78] sm:$0xff] %v7426_v1  ;;  %v7446_v24 = vunpack.c.l.bf16 %v7541_v20 }
  0x5a   : > { %v9916_v34 = vpack.c.bf16 %v692_v32, %v691_v31  ;;  %v693_v41 = vld [vmem:[#allocation2 + $0x151] sm:$0xff]  ;;  %v694_v42 = vld [vmem:[#allocation2 + $0x159] sm:$0xff]  ;;  %440 = vst [vmem:[#allocation2 + $0x80] sm:$0xff] %v7427_v2  ;;  %441 = vst [vmem:[#allocation2 + $0x90] sm:$0xff] %v7430_v3 }
  0x5b   : > { %1201 = vmatprep.mubr.bf16.mxu1 %v9906_v28  ;;  %v9932_v48 = vpack.c.bf16 %v694_v42, %v693_v41  ;;  %v695_v9 = vld [vmem:[#allocation2 + $0x169] sm:$0xff]  ;;  %v696_v10 = vld [vmem:[#allocation2 + $0x171] sm:$0xff]  ;;  %442 = vst [vmem:[#allocation2 + $0x98] sm:$0xff] %v7431_v4  ;;  %443 = vst [vmem:[#allocation2 + $0xa8] sm:$0xff] %v7434_v11 }
  0x5c   : > { %1202 = vmatmul.mubr.bf16.vlgmr.msra.gmra.mrb[0].mxu1 %v9355_v30  ;;  %v665_v16 = vld [vmem:[#allocation2 + $0x1] sm:$0xff]  ;;  %v666_v17 = vld [vmem:[#allocation2 + $0x9] sm:$0xff]  ;;  %444 = vst [vmem:[#allocation2 + $0xb0] sm:$0xff] %v7435_v12  ;;  %445 = vst [vmem:[#allocation2 + $0xc0] sm:$0xff] %v7438_v13  ;;  %v9962_v30 = vpack.c.bf16 %v696_v10, %v695_v9 }
  0x5d   : > { %7675 = vmatpush3.bf16.msra.mxu1 %v9357_v33  ;;  %1209 = vmatprep.mubr.bf16.mxu1 %v9916_v34  ;;  %v697_v23 = vpack.c.bf16 %v666_v17, %v665_v16  ;;  %446 = vst [vmem:[#allocation2 + $0xc8] sm:$0xff] %v7439_v14  ;;  %447 = vst [vmem:[#allocation2 + $0xd8] sm:$0xff] %v7442_v18  ;;  %v762_v31 = vld [vmem:[#allocation2 + $0x19] sm:$0xff]  ;;  %v763_v32 = vld [vmem:[#allocation2 + $0x21] sm:$0xff] }
  0x5e   : > { %7676 = vmatprep.subr.bf16.mxu1 %v9358_v36  ;;  %448 = vst [vmem:[#allocation2 + $0xe0] sm:$0xff] %v7443_v19  ;;  %449 = vst [vmem:[#allocation2 + $0xf0] sm:$0xff] %v7446_v24  ;;  %v9368_v33 = vld [vmem:[%s11953_s2 + $0xe8] sm:$0xff]   ;;  %v794_v35 = vpack.c.bf16 %v763_v32, %v762_v31  ;;  %v764_v38 = vld [vmem:[#allocation2 + $0x31] sm:$0xff] }
  0x5f   : > { %1105 = vmatprep.mubr.bf16.mxu0 %v697_v23  ;;  %450 = vst [vmem:[#allocation2 + $0xf8] sm:$0xff] %v7447_v25  ;;  %451 = vst [vmem:[#allocation2 + $0x108] sm:$0xff] %v7450_v27  ;;  %v9369_v36 = vld [vmem:[%s11953_s2 + $0xa8] sm:$0xff]   ;;  %v9372_v42 = vld [vmem:[%s11953_s2 + $0xb0] sm:$0xff]  }
  0x60   : > { %1106 = vmatmul.mubr.bf16.vlgmr.msra.gmra.mrb[0].mxu0 %v9373_v6  ;;  %452 = vst [vmem:[#allocation2 + $0x110] sm:$0xff] %v7451_v29  ;;  %v9376_v41 = vld [vmem:[%s9880_s14 + $0x8] sm:$0xff]  ;;  %v767_v52 = vld [vmem:[#allocation2 + $0x51] sm:$0xff]  ;;  %v9379_v3 = vld [vmem:[%s9880_s14 + $0x20] sm:$0xff] }
  0x61   : > { %7677 = vmatpush3.bf16.msra.mxu1 %v9359_v39  ;;  %1113 = vmatprep.mubr.bf16.mxu0 %v794_v35  ;;  %v765_v39 = vld [vmem:[#allocation2 + $0x39] sm:$0xff]  ;;  %v766_v50 = vld [vmem:[#allocation2 + $0x49] sm:$0xff]  ;;  %v768_v58 = vld [vmem:[#allocation2 + $0x61] sm:$0xff] }
  0x62   : > { %7678 = vmatprep.subr.bf16.mxu1 %v9361_v45  ;;  %v795_v44 = vpack.c.bf16 %v765_v39, %v764_v38  ;;  %v9387_v45 = vld [vmem:[%s11955_s4 + $0x40] sm:$0xff]   ;;  %v796_v55 = vpack.c.bf16 %v767_v52, %v766_v50  ;;  %v9393_v57 = vld [vmem:[%s11955_s4 + $0x58] sm:$0xff]   ;;  %v9381_v11 = vld [vmem:[%s9880_s14 + $0x30] sm:$0xff] }
  0x63   : > { %7786 = vmatprep.subr.bf16.mxu0 %v9387_v45  ;;  %v9394_v60 = vld [vmem:[%s11955_s4 + $0x18] sm:$0xff]   ;;  %v771_v2 = vld [vmem:[#allocation2 + $0x81] sm:$0xff]  ;;  %v774_v9 = vld [vmem:[#allocation2 + $0xa9] sm:$0xff] }
  0x64   : > { %1210 = vmatmul.mubr.bf16.gmra.mrb[4].mxu1 %v9360_v47  ;;  %v9389_v47 = vld [vmem:[%s11955_s4 + $0x48] sm:$0xff]   ;;  %7787 = vmatpush3.bf16.msra.mxu0 %v9388_v46  ;;  %v9378_v61 = vld [vmem:[%s9880_s14 + $0x18] sm:$0xff]  ;;  %v9383_v19 = vld [vmem:[%s9880_s14 + $0x40] sm:$0xff] }
  0x65   : > { %7679 = vmatpush3.bf16.msra.mxu1 %v9362_v53  ;;  %1217 = vmatprep.mubr.bf16.mxu1 %v9932_v48  ;;  %v9390_v53 = vld [vmem:[%s11955_s4 + $0x8] sm:$0xff]   ;;  %v770_v1 = vld [vmem:[#allocation2 + $0x79] sm:$0xff]  ;;  %v775_v10 = vld [vmem:[#allocation2 + $0xb1] sm:$0xff] }
  0x66   : > { %7680 = vmatprep.subr.bf16.mxu1 %v9363_v59  ;;  %7788 = vmatprep.subr.bf16.mxu0 %v9389_v47  ;;  %v769_v59 = vld [vmem:[#allocation2 + $0x69] sm:$0xff]  ;;  %v798_v4 = vpack.c.bf16 %v771_v2, %v770_v1  ;;  %v773_v6 = vld [vmem:[#allocation2 + $0x99] sm:$0xff]  ;;  %v800_v12 = vpack.c.bf16 %v775_v10, %v774_v9  ;;  %v776_v13 = vld [vmem:[#allocation2 + $0xc1] sm:$0xff] }
  0x67   : > { %v797_v63 = vpack.c.bf16 %v769_v59, %v768_v58  ;;  %v777_v14 = vld [vmem:[#allocation2 + $0xc9] sm:$0xff]  ;;  %v778_v17 = vld [vmem:[#allocation2 + $0xd9] sm:$0xff]  ;;  %v779_v18 = vld [vmem:[#allocation2 + $0xe1] sm:$0xff] }
  0x68   : > { %1114 = vmatmul.mubr.bf16.gmra.mrb[4].mxu0 %v9376_v41  ;;  %v801_v16 = vpack.c.bf16 %v777_v14, %v776_v13  ;;  %v802_v20 = vpack.c.bf16 %v779_v18, %v778_v17  ;;  %v9384_v23 = vld [vmem:[%s9880_s14 + $0x48] sm:$0xff]  ;;  %v783_v26 = vld [vmem:[#allocation2 + $0x111] sm:$0xff] }
  0x69   : > { %7681 = vmatpush3.bf16.msra.mxu1 %v9364_v0  ;;  %1121 = vmatprep.mubr.bf16.mxu0 %v795_v44  ;;  %v9396_v0 = vld [vmem:[%s11955_s4 + $0x20] sm:$0xff]   ;;  %v782_v25 = vld [vmem:[#allocation2 + $0x109] sm:$0xff]  ;;  %v9407_v45 = vld [vmem:[%s11955_s4 + $0x78] sm:$0xff]  }
  0x6a   : > { %7682 = vmatprep.subr.bf16.mxu1 %v9366_v5  ;;  %7789 = vmatpush3.bf16.msra.mxu0 %v9390_v53  ;;  %v772_v5 = vld [vmem:[#allocation2 + $0x91] sm:$0xff]  ;;  %v9397_v27 = vld [vmem:[%s11955_s4 + $0x68] sm:$0xff]   ;;  %v804_v32 = vpack.c.bf16 %v783_v26, %v782_v25  ;;  %v9619_v53 = vld [vmem:[%s9880_s14 + $0x60] sm:$0xff] }
  0x6b   : > { %7790 = vmatprep.subr.bf16.mxu0 %v9391_v54  ;;  %v799_v8 = vpack.c.bf16 %v773_v6, %v772_v5  ;;  %v9385_v29 = vld [vmem:[%s9880_s14 + $0x50] sm:$0xff]  ;;  %v9398_v31 = vld [vmem:[%s11955_s4 + $0x28] sm:$0xff]   ;;  %v9410_v46 = vld [vmem:[%s11955_s4 + $0x98] sm:$0xff]  }
  0x6c   : > { %1218 = vmatmul.mubr.bf16.gmra.mrb[8].mxu1 %v9365_v21  ;;  %v780_v21 = vld [vmem:[#allocation2 + $0xf1] sm:$0xff]  ;;  %v1563_v50 = vld [vmem:[#allocation4 + $0x1] sm:$0xff]  ;;  %v9620_v54 = vld [vmem:[#allocation2 + $0x180] sm:$0xff] }
  0x6d   : > { %7683 = vmatpush3.bf16.msra.mxu1 %v9367_v22  ;;  %1225 = vmatprep.mubr.bf16.mxu1 %v9962_v30  ;;  %v781_v22 = vld [vmem:[#allocation2 + $0xf9] sm:$0xff]  ;;  %v9399_v38 = vld [vmem:[%s11955_s4 + $0x70] sm:$0xff]   ;;  %v792_v1 = vld [vmem:[#allocation2 + $0x181] sm:$0xff] }
  0x6e   : > { %7684 = vmatprep.subr.bf16.mxu1 %v9368_v33  ;;  %7791 = vmatpush3.bf16.msra.mxu0 %v9392_v56  ;;  %v803_v24 = vpack.c.bf16 %v781_v22, %v780_v21  ;;  %v9386_v33 = vld [vmem:[%s9880_s14 + $0x58] sm:$0xff]  ;;  %v9401_v39 = vld [vmem:[%s11955_s4 + $0x30] sm:$0xff]   ;;  %v9413_v56 = vld [vmem:[%s11955_s4 + $0xe8] sm:$0xff]  }
  0x6f   : > { %7792 = vmatprep.subr.bf16.mxu0 %v9393_v57  ;;  %v9409_v47 = vld [vmem:[%s11955_s4 + $0x38] sm:$0xff]   ;;  %v9414_v57 = vld [vmem:[%s11955_s4 + $0xa8] sm:$0xff]   ;;  %v9415_v58 = vld [vmem:[%s11955_s4 + $0xf0] sm:$0xff]  }
  0x70   : > { %1122 = vmatmul.mubr.bf16.gmra.mrb[8].mxu0 %v9377_v51  ;;  %v9417_v59 = vld [vmem:[%s11955_s4 + $0xb0] sm:$0xff]   ;;  %v9426_v6 = vld [vmem:[%s11955_s4 + $0x118] sm:$0xff]   ;;  %v9429_v10 = vld [vmem:[%s11955_s4 + $0x168] sm:$0xff]  }
  0x71   : > { %7685 = vmatpush3.bf16.msra.mxu1 %v9369_v36  ;;  %1129 = vmatprep.mubr.bf16.mxu0 %v796_v55  ;;  %v9402_v36 = vld [vmem:[%s11955_s4 + $0x80] sm:$0xff]   ;;  %v9423_v5 = vld [vmem:[%s11955_s4 + $0x150] sm:$0xff]  }
  0x72   : > { %7686 = vmatprep.subr.bf16.mxu1 %v9371_v37  ;;  %7793 = vmatpush3.bf16.msra.mxu0 %v9394_v60  ;;  %v9403_v37 = vld [vmem:[%s11955_s4 + $0xc8] sm:$0xff]   ;;  %v9419_v60 = vld [vmem:[%s11955_s4 + $0xf8] sm:$0xff]  }
  0x73   : > { %7794 = vmatprep.subr.bf16.mxu0 %v9395_v62  ;;  %v9416_v62 = vld [vmem:[%s11955_s4 + $0x140] sm:$0xff]  }
  0x74   : > { %1226 = vmatmul.mubr.bf16.gmra.mrb[12].mxu1 %v9975_v40 }
  0x75   : > { %7687 = vmatpush3.bf16.msra.mxu1 %v9372_v42  ;;  %1266 = vmatprep.mubr.bf16.mxu1 %v794_v35  ;;  %v9400_v35 = vld [vmem:[%s11955_s4 + $0xc0] sm:$0xff]   ;;  %v9405_v42 = vld [vmem:[%s11955_s4 + $0xd0] sm:$0xff]  }
  0x76   : > { %7688 = vmatprep.subr.bf16.mxu1 %v9374_v43  ;;  %7795 = vmatpush3.bf16.msra.mxu0 %v9396_v0  ;;  %v9406_v43 = vld [vmem:[%s11955_s4 + $0x90] sm:$0xff]  }
  0x77   : > { %7796 = vmatprep.subr.bf16.mxu0 %v9397_v27  ;;  %v9622_v0 = vld [vmem:[%s9880_s14 + $0x70] sm:$0xff] }
  0x78   : > { %1130 = vmatmul.mubr.bf16.gmra.mrb[12].mxu0 %v9378_v61 }
  0x79   : > { %7689 = vmatpush3.bf16.msra.mxu1 %v9375_v49  ;;  %1137 = vmatprep.mubr.bf16.mxu0 %v797_v63  ;;  %v9411_v49 = vld [vmem:[%s11955_s4 + $0xe0] sm:$0xff]  }
  0x7a   : > { %7797 = vmatpush3.bf16.msra.mxu0 %v9398_v31  ;;  %7898 = vmatprep.subr.bf16.mxu1 %v9400_v35  ;;  %v9432_v31 = vld [vmem:[%s11955_s4 + $0x130] sm:$0xff]   ;;  %v9433_v35 = vld [vmem:[%s11955_s4 + $0x1c0] sm:$0xff]  }
  0x7b   : > { %7798 = vmatprep.subr.bf16.mxu0 %v9399_v38 }
  0x7c   : > { %1267 = vmatmul.mubr.bf16.vlgmr.msra.gmra.mrb[16].mxu1 %v9376_v41  ;;  %v9404_v41 = vld [vmem:[%s11955_s4 + $0x88] sm:$0xff]  }
  0x7d   : > { %1274 = vmatprep.mubr.bf16.mxu1 %v795_v44  ;;  %7899 = vmatpush3.bf16.msra.mxu1 %v9402_v36  ;;  %v9408_v44 = vld [vmem:[%s11955_s4 + $0xd8] sm:$0xff]  }
  0x7e   : > { %7900 = vmatprep.subr.bf16.mxu1 %v9403_v37  ;;  %7799 = vmatpush3.bf16.msra.mxu0 %v9401_v39 }
  0x7f   : > { %7800 = vmatprep.subr.bf16.mxu0 %v9407_v45 }
  0x80   : > { %1138 = vmatmul.mubr.bf16.gmra.mrb[16].mxu0 %v9379_v3 }
  0x81   : > { %1145 = vmatprep.mubr.bf16.mxu0 %v798_v4  ;;  %7901 = vmatpush3.bf16.msra.mxu1 %v9404_v41 }
  0x82   : > { %7902 = vmatprep.subr.bf16.mxu1 %v9405_v42  ;;  %7801 = vmatpush3.bf16.msra.mxu0 %v9409_v47 }
  0x83   : > { %8010 = vmatprep.subr.bf16.mxu0 %v9416_v62 }
  0x84   : > { %1275 = vmatmul.mubr.bf16.gmra.mrb[20].mxu1 %v9377_v51  ;;  %v1564_v51 = vld [vmem:[#allocation4 + $0x9] sm:$0xff] }
  0x85   : > { %1282 = vmatprep.mubr.bf16.mxu1 %v796_v55  ;;  %7903 = vmatpush3.bf16.msra.mxu1 %v9406_v43  ;;  %v1595_v52 = vpack.c.bf16 %v1564_v51, %v1563_v50  ;;  %v761_v55 = vpack.c.bf16 %v9620_v54, %v9620_v54 }
  0x86   : > { %7904 = vmatprep.subr.bf16.mxu1 %v9408_v44 }
  0x88   : > { %1146 = vmatmul.mubr.bf16.gmra.mrb[20].mxu0 %v9380_v7 }
  0x89   : > { %1153 = vmatprep.mubr.bf16.mxu0 %v799_v8  ;;  %7905 = vmatpush3.bf16.msra.mxu1 %v9410_v46 }
  0x8a   : > { %7906 = vmatprep.subr.bf16.mxu1 %v9411_v49 }
  0x8c   : > { %1283 = vmatmul.mubr.bf16.gmra.mrb[24].mxu1 %v9378_v61  ;;  %v9420_v61 = vld [vmem:[%s11955_s4 + $0xb8] sm:$0xff]  }
  0x8d   : > { %1290 = vmatprep.mubr.bf16.mxu1 %v797_v63  ;;  %v9418_v63 = vld [vmem:[%s11955_s4 + $0x100] sm:$0xff]  }
  0x90   : > { %1154 = vmatmul.mubr.bf16.gmra.mrb[24].mxu0 %v9381_v11 }
  0x91   : > { %1161 = vmatprep.mubr.bf16.mxu0 %v800_v12 }
  0x94   : > { %1291 = vmatmul.mubr.bf16.gmra.mrb[28].mxu1 %v9379_v3  ;;  %v9421_v3 = vld [vmem:[%s11955_s4 + $0x148] sm:$0xff]  }
  0x95   : > { %1298 = vmatprep.mubr.bf16.mxu1 %v798_v4  ;;  %v9422_v4 = vld [vmem:[%s11955_s4 + $0x108] sm:$0xff]  }
  0x98   : > { %1162 = vmatmul.mubr.bf16.gmra.mrb[28].mxu0 %v9382_v15 }
  0x99   : > { %1169 = vmatprep.mubr.bf16.mxu0 %v801_v16 }
  0x9c   : > { %1299 = vmatmul.mubr.bf16.gmra.mrb[32].mxu1 %v9380_v7  ;;  %v9427_v7 = vld [vmem:[%s11955_s4 + $0x160] sm:$0xff]  }
  0x9d   : > { %1306 = vmatprep.mubr.bf16.mxu1 %v799_v8  ;;  %v9428_v8 = vld [vmem:[%s11955_s4 + $0x120] sm:$0xff]  }
  0xa0   : > { %1170 = vmatmul.mubr.bf16.gmra.mrb[32].mxu0 %v9383_v19 }
  0xa1   : > { %1177 = vmatprep.mubr.bf16.mxu0 %v802_v20 }
  0xa4   : > { %1307 = vmatmul.mubr.bf16.gmra.mrb[36].mxu1 %v9381_v11  ;;  %v9430_v11 = vld [vmem:[%s11955_s4 + $0x128] sm:$0xff]  }
  0xa5   : > { %1314 = vmatprep.mubr.bf16.mxu1 %v800_v12 }
  0xa8   : > { %1178 = vmatmul.mubr.bf16.gmra.mrb[36].mxu0 %v9384_v23 }
  0xa9   : > { %1185 = vmatprep.mubr.bf16.mxu0 %v803_v24 }
  0xac   : > { %1315 = vmatmul.mubr.bf16.gmra.mrb[40].mxu1 %v9382_v15 }
  0xad   : > { %1322 = vmatprep.mubr.bf16.mxu1 %v801_v16 }
  0xb0   : > { %1186 = vmatmul.mubr.bf16.gmra.mrb[40].mxu0 %v9385_v29 }
  0xb1   : > { %1193 = vmatprep.mubr.bf16.mxu0 %v804_v32 }
  0xb4   : > { %1323 = vmatmul.mubr.bf16.gmra.mrb[44].mxu1 %v9383_v19 }
  0xb5   : > { %1330 = vmatprep.mubr.bf16.mxu1 %v802_v20 }
  0xb8   : > { %1194 = vmatmul.mubr.bf16.gmra.mrb[44].mxu0 %v9386_v33 }
  0xb9   : > { %3524 = vmatprep.mubr.bf16.mxu0 %v1595_v52 }
  0xbc   : > { %1331 = vmatmul.mubr.bf16.gmra.mrb[48].mxu1 %v9384_v23 }
  0xbd   : > { %1338 = vmatprep.mubr.bf16.mxu1 %v803_v24 }
  0xc0   : > { %3525 = vmatmul.mubr.bf16.vlgmr.msra.gmra.mrb[48].mxu0 %v761_v55 }
  0xc1   : > { %8011 = vmatpush3.bf16.msra.mxu0 %v9418_v63 }
  0xc2   : > { %8012 = vmatprep.subr.bf16.mxu0 %v9421_v3 }
  0xc4   : > { %1339 = vmatmul.mubr.bf16.gmra.mrb[52].mxu1 %v9385_v29  ;;  %v9431_v29 = vld [vmem:[%s11955_s4 + $0x170] sm:$0xff]  }
  0xc5   : > { %1346 = vmatprep.mubr.bf16.mxu1 %v804_v32  ;;  %8013 = vmatpush3.bf16.msra.mxu0 %v9422_v4 }
  0xc6   : > { %8014 = vmatprep.subr.bf16.mxu0 %v9423_v5 }
  0xcc   : > { %1347 = vmatmul.mubr.bf16.gmra.mrb[56].mxu1 %v9386_v33 }
  0xcd   : > { %1354 = vmatprep.mubr.bf16.mxu1 %v9906_v28  ;;  %v9412_v28 = vld [vmem:[%s11955_s4 + $0xa0] sm:$0xff]  }
  0xce   : > { %7907 = vmatpush3.bf16.msra.mxu1 %v9412_v28 }
  0xcf   : > { %7908 = vmatprep.subr.bf16.mxu1 %v9413_v56 }
  0xd2   : > { %7909 = vmatpush3.bf16.msra.mxu1 %v9414_v57 }
  0xd3   : > { %7910 = vmatprep.subr.bf16.mxu1 %v9415_v58 }
  0xd4   : > { %1355 = vmatmul.mubr.bf16.gmra.mrb[60].mxu1 %v9619_v53 }
  0xd5   : > { %1362 = vmatprep.mubr.bf16.mxu1 %v9916_v34  ;;  %v9621_v34 = vld [vmem:[%s9880_s14 + $0x68] sm:$0xff] }
  0xd6   : > { %7911 = vmatpush3.bf16.msra.mxu1 %v9417_v59 }
  0xd7   : > { %7912 = vmatprep.subr.bf16.mxu1 %v9419_v60  ;;  %v9437_v60 = vld [vmem:[%s11955_s4 + $0x178] sm:$0xff]  }
  0xda   : > { %7913 = vmatpush3.bf16.msra.mxu1 %v9420_v61  ;;  %v9439_v61 = vld [vmem:[%s11955_s4 + $0x138] sm:$0xff]  }
  0xdb   : > { %8122 = vmatprep.subr.bf16.mxu1 %v9433_v35 }
  0xdc   : > { %1363 = vmatmul.mubr.bf16.gmra.mrb[64].mxu1 %v9621_v34 }
  0xdd   : > { %1370 = vmatprep.mubr.bf16.mxu1 %v9932_v48  ;;  %v793_v48 = vld [vmem:[#allocation2 + $0x189] sm:$0xff] }
  0xde   : > { %v809_v2 = vpack.c.bf16 %v793_v48, %v792_v1 }
  0xe4   : > { %1371 = vmatmul.mubr.bf16.gmra.mrb[68].mxu1 %v9622_v0 }
  0xe5   : > { %1378 = vmatprep.mubr.bf16.mxu1 %v9962_v30  ;;  %v9424_v30 = vld [vmem:[%s11955_s4 + $0x110] sm:$0xff]  }
  0xe6   : > { %8015 = vmatpush3.bf16.msra.mxu0 %v9424_v30 }
  0xec   : > { %1379 = vmatmul.mubr.bf16.gmra.mrb[72].mxu1 %v9975_v40  ;;  %v9425_v40 = vld [vmem:[%s11955_s4 + $0x158] sm:$0xff]  }
  0xed   : > { %1386 = vmatprep.mubr.bf16.mxu1 %v809_v2  ;;  %8016 = vmatprep.subr.bf16.mxu0 %v9425_v40 }
  0xee   : > { %8017 = vmatpush3.bf16.msra.mxu0 %v9426_v6 }
  0xef   : > { %8018 = vmatprep.subr.bf16.mxu0 %v9427_v7 }
  0xf2   : > { %8019 = vmatpush3.bf16.msra.mxu0 %v9428_v8 }
  0xf3   : > { %8020 = vmatprep.subr.bf16.mxu0 %v9429_v10 }
  0xf4   : > { %1387 = vmatmul.mubr.bf16.gmra.mrb[76].mxu1 %v761_v55  ;;  %v10166_v55 = vld [vmem:[%s11954_s3] ss:$0 sm:$0xff] }
  0xf6   : > { %8021 = vmatpush3.bf16.msra.mxu0 %v9430_v11 }
  0xf7   : > { %8022 = vmatprep.subr.bf16.mxu0 %v9431_v29 }
  0xfa   : > { %8023 = vmatpush3.bf16.msra.mxu0 %v9432_v31 }
  0xfb   : > { %8024 = vmatprep.subr.bf16.mxu0 %v9437_v60  ;;  %v9438_v60 = vld [vmem:[%s11955_s4 + $0x1d0] sm:$0xff]  }
  0xfe   : > { %8025 = vmatpush3.bf16.msra.mxu0 %v9439_v61 }
 0x12f   : > { %v7650_v9 = vpop.f32.mrb[0].mxu1 }
 0x130   : > { %v7651_v12 = vpop.f32.mrb[1].mxu1 }
 0x131   : > { %v10138_v13 = vadd.f32 %v7651_v12, %v7650_v9  ;;  %v7653_v14 = vpop.f32.mrb[2].mxu1 }
 0x132   : > { %v7654_v15 = vpop.f32.mrb[3].mxu1 }
 0x133   : > { %v10140_v16 = vadd.f32 %v7654_v15, %v7653_v14  ;;  %v7578_v23 = vpop.f32.mrb[0].mxu0 }
 0x134   : > { %v7579_v24 = vpop.f32.mrb[1].mxu0 }
 0x135   : > { %v7580_v26 = vadd.f32 %v7579_v24, %v7578_v23  ;;  %v7581_v27 = vpop.f32.mrb[2].mxu0 }
 0x136   : > { %v7582_v33 = vpop.f32.mrb[3].mxu0 }
 0x137   : > { %v7656_v17 = vpop.f32.mrb[4].mxu1  ;;  %v7583_v38 = vadd.f32 %v7582_v33, %v7581_v27  ;;  %v1108_v57 = vadd.f32 %v7580_v26, %v10166_v55  ;;  %v1659_v26 = vld [vmem:[#allocation4 + $0x2] sm:$0xff]  ;;  %v1660_v27 = vld [vmem:[#allocation4 + $0xa] sm:$0xff] }
 0x138   : > { %v7657_v18 = vpop.f32.mrb[5].mxu1  ;;  %v1691_v35 = vpack.c.bf16 %v1660_v27, %v1659_v26 }
 0x139   : > { %v10142_v19 = vadd.f32 %v7657_v18, %v7656_v17  ;;  %v7659_v20 = vpop.f32.mrb[6].mxu1  ;;  %v1111_v3 = vadd.f32 %v7583_v38, %v10166_v55 }
 0x13a   : > { %v7660_v21 = vpop.f32.mrb[7].mxu1 }
 0x13b   : > { %v10144_v22 = vadd.f32 %v7660_v21, %v7659_v20  ;;  %v7584_v42 = vpop.f32.mrb[4].mxu0  ;;  %v9448_v21 = vld [vmem:[%s11955_s4 + $0x240] sm:$0xff]  }
 0x13c   : > { %v7585_v43 = vpop.f32.mrb[5].mxu0  ;;  %8234 = vmatprep.subr.bf16.mxu0 %v9448_v21 }
 0x13d   : > { %v7586_v45 = vadd.f32 %v7585_v43, %v7584_v42  ;;  %v7587_v46 = vpop.f32.mrb[6].mxu0 }
 0x13e   : > { %v7588_v49 = vpop.f32.mrb[7].mxu0 }
 0x13f   : > { %v7662_v25 = vpop.f32.mrb[8].mxu1  ;;  %v7589_v51 = vadd.f32 %v7588_v49, %v7587_v46  ;;  %v1116_v7 = vadd.f32 %v7586_v45, %v10166_v55  ;;  %v9434_v46 = vld [vmem:[%s11955_s4 + $0x180] sm:$0xff]  }
 0x140   : > { %v7663_v32 = vpop.f32.mrb[9].mxu1 }
 0x141   : > { %v10155_v36 = vadd.f32 %v7663_v32, %v7662_v25  ;;  %v7665_v37 = vpop.f32.mrb[10].mxu1  ;;  %v1119_v23 = vadd.f32 %v7589_v51, %v10166_v55 }
 0x142   : > { %v7666_v39 = vpop.f32.mrb[11].mxu1 }
 0x143   : > { %v10157_v41 = vadd.f32 %v7666_v39, %v7665_v37  ;;  %v7590_v54 = vpop.f32.mrb[8].mxu0 }
 0x144   : > { %v7591_v56 = vpop.f32.mrb[9].mxu0 }
 0x145   : > { %v7592_v59 = vadd.f32 %v7591_v56, %v7590_v54  ;;  %v7593_v34 = vpop.f32.mrb[10].mxu0 }
 0x146   : > { %v7594_v63 = vpop.f32.mrb[11].mxu0 }
 0x147   : > { %v7668_v44 = vpop.f32.mrb[12].mxu1  ;;  %v7595_v48 = vadd.f32 %v7594_v63, %v7593_v34  ;;  %v1124_v38 = vadd.f32 %v7592_v59, %v10166_v55  ;;  %v9436_v34 = vld [vmem:[%s11955_s4 + $0x188] sm:$0xff]  }
 0x148   : > { %v7669_v47 = vpop.f32.mrb[13].mxu1 }
 0x149   : > { %v10159_v28 = vadd.f32 %v7669_v47, %v7668_v44  ;;  %v7671_v50 = vpop.f32.mrb[14].mxu1 }
 0x14a   : > { %v7672_v52 = vpop.f32.mrb[15].mxu1 }
 0x14b   : > { %v10161_v53 = vadd.f32 %v7672_v52, %v7671_v50  ;;  %v7596_v40 = vpop.f32.mrb[12].mxu0  ;;  %v9435_v50 = vld [vmem:[%s11955_s4 + $0x1c8] sm:$0xff]  }
 0x14c   : > { %v7597_v6 = vpop.f32.mrb[13].mxu0 }
 0x14d   : > { %v7598_v10 = vadd.f32 %v7597_v6, %v7596_v40  ;;  %v7599_v11 = vpop.f32.mrb[14].mxu0 }
 0x14e   : > { %v7600_v14 = vpop.f32.mrb[15].mxu0 }
 0x14f   : > { %v7690_v58 = vpop.f32.mrb[16].mxu1  ;;  %v10177_v18 = vadd.f32 %v7600_v14, %v7599_v11 }
 0x150   : > { %v7691_v62 = vpop.f32.mrb[17].mxu1 }
 0x151   : > { %v7692_v0 = vadd.f32 %v7691_v62, %v7690_v58  ;;  %v7693_v1 = vpop.f32.mrb[18].mxu1 }
 0x152   : > { %v7694_v2 = vpop.f32.mrb[19].mxu1 }
 0x153   : > { %v1269_v4 = vadd.f32 %v7692_v0, %v1108_v57  ;;  %v7695_v5 = vadd.f32 %v7694_v2, %v7693_v1  ;;  %v7602_v31 = vpop.f32.mrb[16].mxu0  ;;  %v1127_v57 = vadd.f32 %v7595_v48, %v10166_v55 }
 0x154   : > { %v7603_v37 = vpop.f32.mrb[17].mxu0 }
 0x155   : > { %1435 = vst [vmem:[#allocation4 + $0x19] sm:$0xff] %v1269_v4  ;;  %v1272_v30 = vadd.f32 %v7695_v5, %v1111_v3  ;;  %v10184_v44 = vadd.f32 %v7603_v37, %v7602_v31  ;;  %v7605_v45 = vpop.f32.mrb[18].mxu0  ;;  %v1132_v3 = vadd.f32 %v7598_v10, %v10166_v55  ;;  %v9441_v10 = vld [vmem:[%s11955_s4 + $0x1d8] sm:$0xff]  }
 0x156   : > { %v7606_v49 = vpop.f32.mrb[19].mxu0 }
 0x157   : > { %1436 = vst [vmem:[#allocation4 + $0x21] sm:$0xff] %v1272_v30  ;;  %v7696_v8 = vpop.f32.mrb[20].mxu1  ;;  %v1596_v9 = vpack.c.bf16 %v1272_v30, %v1269_v4  ;;  %v10192_v54 = vadd.f32 %v7606_v49, %v7605_v45  ;;  %v9444_v45 = vld [vmem:[%s11955_s4 + $0x1a0] sm:$0xff]  }
 0x158   : > { %v7697_v12 = vpop.f32.mrb[21].mxu1 }
 0x159   : > { %v7698_v15 = vadd.f32 %v7697_v12, %v7696_v8  ;;  %v7699_v17 = vpop.f32.mrb[22].mxu1  ;;  %3532 = vmatprep.mubr.bf16.mxu0 %v1596_v9 }
 0x15a   : > { %v7700_v20 = vpop.f32.mrb[23].mxu1 }
 0x15b   : > { %v1277_v24 = vadd.f32 %v7698_v15, %v1116_v7  ;;  %v7701_v25 = vadd.f32 %v7700_v20, %v7699_v17  ;;  %v7608_v0 = vpop.f32.mrb[20].mxu0  ;;  %v9440_v7 = vld [vmem:[%s11955_s4 + $0x190] sm:$0xff]   ;;  %v1135_v20 = vadd.f32 %v10177_v18, %v10166_v55 }
 0x15c   : > { %v1755_v32 = vld [vmem:[#allocation4 + $0x18] sm:$0xff]  ;;  %v7609_v48 = vpop.f32.mrb[21].mxu0 }
 0x15d   : > { %1437 = vst [vmem:[#allocation4 + $0x31] sm:$0xff] %v1277_v24  ;;  %v1280_v29 = vadd.f32 %v7701_v25, %v1119_v23  ;;  %v10202_v40 = vadd.f32 %v7609_v48, %v7608_v0  ;;  %v7611_v6 = vpop.f32.mrb[22].mxu0  ;;  %v9443_v25 = vld [vmem:[%s11955_s4 + $0x1e0] sm:$0xff]  }
 0x15e   : > { %v1756_v33 = vld [vmem:[#allocation4 + $0x20] sm:$0xff]  ;;  %v7612_v11 = vpop.f32.mrb[23].mxu0 }
 0x15f   : > { %1438 = vst [vmem:[#allocation4 + $0x39] sm:$0xff] %v1280_v29  ;;  %v7702_v39 = vpop.f32.mrb[24].mxu1  ;;  %v1787_v42 = vpack.c.bf16 %v1756_v33, %v1755_v32  ;;  %v1597_v43 = vpack.c.bf16 %v1280_v29, %v1277_v24  ;;  %v1661_v62 = vld [vmem:[#allocation4 + $0x1a] sm:$0xff]  ;;  %v1662_v63 = vld [vmem:[#allocation4 + $0x22] sm:$0xff]  ;;  %v10212_v15 = vadd.f32 %v7612_v11, %v7611_v6  ;;  %v9442_v24 = vld [vmem:[%s11955_s4 + $0x198] sm:$0xff]   ;;  %v1148_v48 = vadd.f32 %v10202_v40, %v10166_v55 }
 0x160   : > { %v7703_v47 = vpop.f32.mrb[25].mxu1  ;;  %v10207_v9 = vpack.c.bf16 %v1662_v63, %v1661_v62 }
 0x161   : > { %v7704_v51 = vadd.f32 %v7703_v47, %v7702_v39  ;;  %v7705_v52 = vpop.f32.mrb[26].mxu1  ;;  %3685 = vmatprep.mubr.bf16.mxu1 %v1787_v42  ;;  %3533 = vmatmul.mubr.bf16.gmra.mrb[52].mxu0 %v1787_v42 }
 0x162   : > { %v7706_v56 = vpop.f32.mrb[27].mxu1  ;;  %3686 = vmatmul.mubr.bf16.vlgmr.msra.gmra.mrb[80].mxu1 %v1691_v35  ;;  %3540 = vmatprep.mubr.bf16.mxu0 %v1597_v43  ;;  %v1140_v35 = vadd.f32 %v10184_v44, %v10166_v55  ;;  %v9445_v44 = vld [vmem:[%s11955_s4 + $0x1e8] sm:$0xff]  }
 0x163   : > { %v1285_v58 = vadd.f32 %v7704_v51, %v1124_v38  ;;  %v7707_v59 = vadd.f32 %v7706_v56, %v7705_v52  ;;  %8123 = vmatpush3.bf16.msra.mxu1 %v9434_v46  ;;  %v7614_v31 = vpop.f32.mrb[24].mxu0 }
 0x164   : > { %8124 = vmatprep.subr.bf16.mxu1 %v9435_v50  ;;  %v1757_v1 = vld [vmem:[#allocation4 + $0x30] sm:$0xff]  ;;  %v7615_v18 = vpop.f32.mrb[25].mxu0 }
 0x165   : > { %1439 = vst [vmem:[#allocation4 + $0x49] sm:$0xff] %v1285_v58  ;;  %v1288_v61 = vadd.f32 %v7707_v59, %v1127_v57  ;;  %v10225_v42 = vadd.f32 %v7615_v18, %v7614_v31  ;;  %v7617_v43 = vpop.f32.mrb[26].mxu0  ;;  %v1143_v57 = vadd.f32 %v10192_v54, %v10166_v55 }
 0x166   : > { %v1758_v2 = vld [vmem:[#allocation4 + $0x38] sm:$0xff]  ;;  %v7618_v49 = vpop.f32.mrb[27].mxu0 }
 0x167   : > { %1440 = vst [vmem:[#allocation4 + $0x51] sm:$0xff] %v1288_v61  ;;  %v7708_v4 = vpop.f32.mrb[28].mxu1  ;;  %v1788_v5 = vpack.c.bf16 %v1758_v2, %v1757_v1  ;;  %v1598_v30 = vpack.c.bf16 %v1288_v61, %v1285_v58  ;;  %8125 = vmatpush3.bf16.msra.mxu1 %v9436_v34  ;;  %v1663_v27 = vld [vmem:[#allocation4 + $0x32] sm:$0xff]  ;;  %v1664_v29 = vld [vmem:[#allocation4 + $0x3a] sm:$0xff]  ;;  %v10235_v52 = vadd.f32 %v7618_v49, %v7617_v43 }
 0x168   : > { %v7709_v8 = vpop.f32.mrb[29].mxu1  ;;  %8126 = vmatprep.subr.bf16.mxu1 %v9438_v60  ;;  %v10230_v47 = vpack.c.bf16 %v1664_v29, %v1663_v27  ;;  %v9446_v34 = vld [vmem:[%s11955_s4 + $0x1a8] sm:$0xff]   ;;  %v9447_v60 = vld [vmem:[%s11955_s4 + $0x1f0] sm:$0xff]  }
 0x169   : > { %v7710_v12 = vadd.f32 %v7709_v8, %v7708_v4  ;;  %v7711_v14 = vpop.f32.mrb[30].mxu1  ;;  %3693 = vmatprep.mubr.bf16.mxu1 %v1788_v5  ;;  %3541 = vmatmul.mubr.bf16.gmra.mrb[56].mxu0 %v1788_v5 }
 0x16a   : > { %v7712_v17 = vpop.f32.mrb[31].mxu1  ;;  %3694 = vmatmul.mubr.bf16.gmra.mrb[84].mxu1 %v10207_v9  ;;  %3548 = vmatprep.mubr.bf16.mxu0 %v1598_v30 }
 0x16b   : > { %v1293_v21 = vadd.f32 %v7710_v12, %v1132_v3  ;;  %v7713_v23 = vadd.f32 %v7712_v17, %v7711_v14  ;;  %8127 = vmatpush3.bf16.msra.mxu1 %v9440_v7  ;;  %v7620_v0 = vpop.f32.mrb[28].mxu0  ;;  %v9449_v7 = vld [vmem:[%s11955_s4 + $0x1b0] sm:$0xff]   ;;  %v9451_v12 = vld [vmem:[%s11955_s4 + $0x1f8] sm:$0xff]  }
 0x16c   : > { %8128 = vmatprep.subr.bf16.mxu1 %v9441_v10  ;;  %v1759_v32 = vld [vmem:[#allocation4 + $0x48] sm:$0xff]  ;;  %v7621_v54 = vpop.f32.mrb[29].mxu0 }
 0x16d   : > { %1441 = vst [vmem:[#allocation4 + $0x61] sm:$0xff] %v1293_v21  ;;  %v1296_v26 = vadd.f32 %v7713_v23, %v1135_v20  ;;  %v7622_v30 = vadd.f32 %v7621_v54, %v7620_v0  ;;  %v7623_v6 = vpop.f32.mrb[30].mxu0 }
 0x16e   : > { %v1760_v33 = vld [vmem:[#allocation4 + $0x50] sm:$0xff]  ;;  %v7624_v10 = vpop.f32.mrb[31].mxu0 }
 0x16f   : > { %1442 = vst [vmem:[#allocation4 + $0x69] sm:$0xff] %v1296_v26  ;;  %v7714_v37 = vpop.f32.mrb[32].mxu1  ;;  %v1789_v38 = vpack.c.bf16 %v1760_v33, %v1759_v32  ;;  %v1599_v39 = vpack.c.bf16 %v1296_v26, %v1293_v21  ;;  %8129 = vmatpush3.bf16.msra.mxu1 %v9442_v24  ;;  %v1665_v62 = vld [vmem:[#allocation4 + $0x4a] sm:$0xff]  ;;  %v1666_v63 = vld [vmem:[#allocation4 + $0x52] sm:$0xff]  ;;  %v10256_v17 = vadd.f32 %v7624_v10, %v7623_v6 }
 0x170   : > { %v7715_v46 = vpop.f32.mrb[33].mxu1  ;;  %8130 = vmatprep.subr.bf16.mxu1 %v9443_v25  ;;  %v10251_v11 = vpack.c.bf16 %v1666_v63, %v1665_v62  ;;  %v1151_v21 = vadd.f32 %v10212_v15, %v10166_v55  ;;  %v9452_v25 = vld [vmem:[%s11955_s4 + $0x1b8] sm:$0xff]   ;;  %v1156_v15 = vadd.f32 %v10225_v42, %v10166_v55  ;;  %v1159_v42 = vadd.f32 %v10235_v52, %v10166_v55 }
 0x171   : > { %v7716_v50 = vadd.f32 %v7715_v46, %v7714_v37  ;;  %v7717_v51 = vpop.f32.mrb[34].mxu1  ;;  %3701 = vmatprep.mubr.bf16.mxu1 %v1789_v38  ;;  %3549 = vmatmul.mubr.bf16.gmra.mrb[60].mxu0 %v1789_v38 }
 0x172   : > { %v7718_v56 = vpop.f32.mrb[35].mxu1  ;;  %3702 = vmatmul.mubr.bf16.gmra.mrb[88].mxu1 %v10230_v47  ;;  %3556 = vmatprep.mubr.bf16.mxu0 %v1599_v39 }
 0x173   : > { %v1301_v58 = vadd.f32 %v7716_v50, %v1140_v35  ;;  %v7719_v59 = vadd.f32 %v7718_v56, %v7717_v51  ;;  %8131 = vmatpush3.bf16.msra.mxu1 %v9444_v45  ;;  %v7626_v31 = vpop.f32.mrb[32].mxu0 }
 0x174   : > { %8132 = vmatprep.subr.bf16.mxu1 %v9445_v44  ;;  %v1761_v1 = vld [vmem:[#allocation4 + $0x60] sm:$0xff]  ;;  %v7627_v18 = vpop.f32.mrb[33].mxu0 }
 0x175   : > { %1443 = vst [vmem:[#allocation4 + $0x79] sm:$0xff] %v1301_v58  ;;  %v1304_v61 = vadd.f32 %v7719_v59, %v1143_v57  ;;  %v7628_v39 = vadd.f32 %v7627_v18, %v7626_v31  ;;  %v7629_v43 = vpop.f32.mrb[34].mxu0 }
 0x176   : > { %v1762_v2 = vld [vmem:[#allocation4 + $0x68] sm:$0xff]  ;;  %v7630_v49 = vpop.f32.mrb[35].mxu0 }
 0x177   : > { %1444 = vst [vmem:[#allocation4 + $0x81] sm:$0xff] %v1304_v61  ;;  %v7720_v3 = vpop.f32.mrb[36].mxu1  ;;  %v1790_v4 = vpack.c.bf16 %v1762_v2, %v1761_v1  ;;  %v1600_v5 = vpack.c.bf16 %v1304_v61, %v1301_v58  ;;  %8133 = vmatpush3.bf16.msra.mxu1 %v9446_v34  ;;  %v1667_v27 = vld [vmem:[#allocation4 + $0x62] sm:$0xff]  ;;  %v1668_v29 = vld [vmem:[#allocation4 + $0x6a] sm:$0xff]  ;;  %v7631_v51 = vadd.f32 %v7630_v49, %v7629_v43 }
 0x178   : > { %v7721_v8 = vpop.f32.mrb[37].mxu1  ;;  %8134 = vmatprep.subr.bf16.mxu1 %v9447_v60  ;;  %v10268_v46 = vpack.c.bf16 %v1668_v29, %v1667_v27  ;;  %v1164_v1 = vadd.f32 %v7622_v30, %v10166_v55  ;;  %v1167_v30 = vadd.f32 %v10256_v17, %v10166_v55  ;;  %v1172_v29 = vadd.f32 %v7628_v39, %v10166_v55 }
 0x179   : > { %v7722_v40 = vadd.f32 %v7721_v8, %v7720_v3  ;;  %v7723_v14 = vpop.f32.mrb[38].mxu1  ;;  %3709 = vmatprep.mubr.bf16.mxu1 %v1790_v4  ;;  %3557 = vmatmul.mubr.bf16.gmra.mrb[64].mxu0 %v1790_v4  ;;  %v1175_v39 = vadd.f32 %v7631_v51, %v10166_v55 }
 0x17a   : > { %v7724_v20 = vpop.f32.mrb[39].mxu1  ;;  %3710 = vmatmul.mubr.bf16.gmra.mrb[92].mxu1 %v10251_v11  ;;  %3564 = vmatprep.mubr.bf16.mxu0 %v1600_v5 }
 0x17b   : > { %v1309_v23 = vadd.f32 %v7722_v40, %v1148_v48  ;;  %v7725_v24 = vadd.f32 %v7724_v20, %v7723_v14  ;;  %8135 = vmatpush3.bf16.msra.mxu1 %v9449_v7  ;;  %v7632_v61 = vpop.f32.mrb[36].mxu0 }
 0x17c   : > { %8136 = vmatprep.subr.bf16.mxu1 %v9451_v12  ;;  %v1763_v32 = vld [vmem:[#allocation4 + $0x78] sm:$0xff]  ;;  %v7633_v0 = vpop.f32.mrb[37].mxu0 }
 0x17d   : > { %1445 = vst [vmem:[#allocation4 + $0x91] sm:$0xff] %v1309_v23  ;;  %v1312_v26 = vadd.f32 %v7725_v24, %v1151_v21  ;;  %v7634_v3 = vadd.f32 %v7633_v0, %v7632_v61  ;;  %v7635_v4 = vpop.f32.mrb[38].mxu0 }
 0x17e   : > { %v1764_v33 = vld [vmem:[#allocation4 + $0x80] sm:$0xff]  ;;  %v7636_v6 = vpop.f32.mrb[39].mxu0 }
 0x17f   : > { %1446 = vst [vmem:[#allocation4 + $0x99] sm:$0xff] %v1312_v26  ;;  %v7726_v35 = vpop.f32.mrb[40].mxu1  ;;  %v10266_v37 = vpack.c.bf16 %v1764_v33, %v1763_v32  ;;  %v1601_v38 = vpack.c.bf16 %v1312_v26, %v1309_v23  ;;  %8137 = vmatpush3.bf16.msra.mxu1 %v9452_v25  ;;  %v1669_v34 = vld [vmem:[#allocation4 + $0x7a] sm:$0xff]  ;;  %v1670_v60 = vld [vmem:[#allocation4 + $0x82] sm:$0xff]  ;;  %v7637_v10 = vadd.f32 %v7636_v6, %v7635_v4 }
 0x180   : > { %v7727_v45 = vpop.f32.mrb[41].mxu1  ;;  %v10278_v5 = vpack.c.bf16 %v1670_v60, %v1669_v34 }
 0x181   : > { %v7728_v44 = vadd.f32 %v7727_v45, %v7726_v35  ;;  %v7729_v50 = vpop.f32.mrb[42].mxu1  ;;  %3717 = vmatprep.mubr.bf16.mxu1 %v10266_v37  ;;  %3565 = vmatmul.mubr.bf16.gmra.mrb[68].mxu0 %v10266_v37 }
 0x182   : > { %v7730_v56 = vpop.f32.mrb[43].mxu1  ;;  %3718 = vmatmul.mubr.bf16.gmra.mrb[96].mxu1 %v10268_v46  ;;  %3572 = vmatprep.mubr.bf16.mxu0 %v1601_v38 }
 0x183   : > { %v1317_v57 = vadd.f32 %v7728_v44, %v1156_v15  ;;  %v7731_v58 = vadd.f32 %v7730_v56, %v7729_v50  ;;  %v7638_v24 = vpop.f32.mrb[40].mxu0 }
 0x184   : > { %v1765_v62 = vld [vmem:[#allocation4 + $0x90] sm:$0xff]  ;;  %v7639_v27 = vpop.f32.mrb[41].mxu0 }
 0x185   : > { %1447 = vst [vmem:[#allocation4 + $0xa9] sm:$0xff] %v1317_v57  ;;  %v1320_v59 = vadd.f32 %v7731_v58, %v1159_v42  ;;  %v7640_v18 = vadd.f32 %v7639_v27, %v7638_v24  ;;  %v7641_v15 = vpop.f32.mrb[42].mxu0 }
 0x186   : > { %v1766_v63 = vld [vmem:[#allocation4 + $0x98] sm:$0xff]  ;;  %v7642_v38 = vpop.f32.mrb[43].mxu0 }
 0x187   : > { %1448 = vst [vmem:[#allocation4 + $0xb1] sm:$0xff] %v1320_v59  ;;  %v7732_v2 = vpop.f32.mrb[44].mxu1  ;;  %v10276_v54 = vpack.c.bf16 %v1766_v63, %v1765_v62  ;;  %v1602_v48 = vpack.c.bf16 %v1320_v59, %v1317_v57  ;;  %v1671_v21 = vld [vmem:[#allocation4 + $0x92] sm:$0xff]  ;;  %v1672_v23 = vld [vmem:[#allocation4 + $0x9a] sm:$0xff]  ;;  %v7643_v49 = vadd.f32 %v7642_v38, %v7641_v15  ;;  %v1180_v62 = vadd.f32 %v7634_v3, %v10166_v55 }
 0x188   : > { %v7733_v52 = vpop.f32.mrb[45].mxu1  ;;  %v10288_v35 = vpack.c.bf16 %v1672_v23, %v1671_v21  ;;  %v1183_v3 = vadd.f32 %v7637_v10, %v10166_v55 }
 0x189   : > { %v7734_v7 = vadd.f32 %v7733_v52, %v7732_v2  ;;  %v7735_v8 = vpop.f32.mrb[46].mxu1  ;;  %3725 = vmatprep.mubr.bf16.mxu1 %v10276_v54  ;;  %3573 = vmatmul.mubr.bf16.gmra.mrb[72].mxu0 %v10276_v54 }
 0x18a   : > { %v7736_v12 = vpop.f32.mrb[47].mxu1  ;;  %3726 = vmatmul.mubr.bf16.gmra.mrb[100].mxu1 %v10278_v5  ;;  %3580 = vmatprep.mubr.bf16.mxu0 %v1602_v48 }
 0x18b   : > { %v1325_v40 = vadd.f32 %v7734_v7, %v1164_v1  ;;  %v7737_v14 = vadd.f32 %v7736_v12, %v7735_v8  ;;  %v7644_v59 = vpop.f32.mrb[44].mxu0 }
 0x18c   : > { %v1767_v25 = vld [vmem:[#allocation4 + $0xa8] sm:$0xff]  ;;  %v7645_v61 = vpop.f32.mrb[45].mxu0 }
 0x18d   : > { %1449 = vst [vmem:[#allocation4 + $0xc1] sm:$0xff] %v1325_v40  ;;  %v1328_v20 = vadd.f32 %v7737_v14, %v1167_v30  ;;  %v7646_v2 = vadd.f32 %v7645_v61, %v7644_v59  ;;  %v7647_v51 = vpop.f32.mrb[46].mxu0 }
 0x18e   : > { %v1768_v26 = vld [vmem:[#allocation4 + $0xb0] sm:$0xff]  ;;  %v7648_v52 = vpop.f32.mrb[47].mxu0 }
 0x18f   : > { %1450 = vst [vmem:[#allocation4 + $0xc9] sm:$0xff] %v1328_v20  ;;  %v7738_v31 = vpop.f32.mrb[48].mxu1  ;;  %v10286_v32 = vpack.c.bf16 %v1768_v26, %v1767_v25  ;;  %v1603_v33 = vpack.c.bf16 %v1328_v20, %v1325_v40  ;;  %v1673_v57 = vld [vmem:[#allocation4 + $0xaa] sm:$0xff]  ;;  %v1674_v58 = vld [vmem:[#allocation4 + $0xb2] sm:$0xff]  ;;  %v7649_v8 = vadd.f32 %v7648_v52, %v7647_v51  ;;  %v1188_v25 = vadd.f32 %v7640_v18, %v10166_v55 }
 0x190   : > { %v7739_v17 = vpop.f32.mrb[49].mxu1  ;;  %v10299_v4 = vpack.c.bf16 %v1674_v58, %v1673_v57  ;;  %v1191_v18 = vadd.f32 %v7643_v49, %v10166_v55 }
 0x191   : > { %v7740_v43 = vadd.f32 %v7739_v17, %v7738_v31  ;;  %v7741_v45 = vpop.f32.mrb[50].mxu1  ;;  %3733 = vmatprep.mubr.bf16.mxu1 %v10286_v32  ;;  %3581 = vmatmul.mubr.bf16.gmra.mrb[76].mxu0 %v10286_v32 }
 0x192   : > { %v7742_v44 = vpop.f32.mrb[51].mxu1  ;;  %3734 = vmatmul.mubr.bf16.gmra.mrb[104].mxu1 %v10288_v35  ;;  %3588 = vmatprep.mubr.bf16.mxu0 %v1603_v33 }
 0x193   : > { %v1333_v50 = vadd.f32 %v7740_v43, %v1172_v29  ;;  %v7743_v56 = vadd.f32 %v7742_v44, %v7741_v45 }
 0x194   : > { %v1769_v34 = vld [vmem:[#allocation4 + $0xc0] sm:$0xff] }
 0x195   : > { %1451 = vst [vmem:[#allocation4 + $0xd9] sm:$0xff] %v1333_v50  ;;  %v1336_v42 = vadd.f32 %v7743_v56, %v1175_v39 }
 0x196   : > { %v1770_v60 = vld [vmem:[#allocation4 + $0xc8] sm:$0xff] }
 0x197   : > { %1452 = vst [vmem:[#allocation4 + $0xe1] sm:$0xff] %v1336_v42  ;;  %v7744_v63 = vpop.f32.mrb[52].mxu1  ;;  %v10295_v0 = vpack.c.bf16 %v1770_v60, %v1769_v34  ;;  %v10297_v1 = vpack.c.bf16 %v1336_v42, %v1333_v50  ;;  %v1675_v20 = vld [vmem:[#allocation4 + $0xc2] sm:$0xff]  ;;  %v1676_v21 = vld [vmem:[#allocation4 + $0xca] sm:$0xff]  ;;  %v1196_v42 = vadd.f32 %v7646_v2, %v10166_v55  ;;  %v1199_v2 = vadd.f32 %v7649_v8, %v10166_v55 }
 0x198   : > { %v7745_v48 = vpop.f32.mrb[53].mxu1  ;;  %v10311_v33 = vpack.c.bf16 %v1676_v21, %v1675_v20 }
 0x199   : > { %v7746_v6 = vadd.f32 %v7745_v48, %v7744_v63  ;;  %v7747_v7 = vpop.f32.mrb[54].mxu1  ;;  %3741 = vmatprep.mubr.bf16.mxu1 %v10295_v0  ;;  %3589 = vmatmul.mubr.bf16.gmra.mrb[80].mxu0 %v10295_v0  ;;  %v7802_v63 = vpop.f32.mrb[48].mxu0 }
 0x19a   : > { %v7748_v12 = vpop.f32.mrb[55].mxu1  ;;  %3742 = vmatmul.mubr.bf16.gmra.mrb[108].mxu1 %v10299_v4  ;;  %3596 = vmatprep.mubr.bf16.mxu0 %v10297_v1  ;;  %v7803_v52 = vpop.f32.mrb[49].mxu0 }
 0x19b   : > { %v1341_v30 = vadd.f32 %v7746_v6, %v1180_v62  ;;  %v7749_v40 = vadd.f32 %v7748_v12, %v7747_v7  ;;  %v10330_v6 = vadd.f32 %v7803_v52, %v7802_v63  ;;  %v7805_v7 = vpop.f32.mrb[50].mxu0 }
 0x19c   : > { %v1771_v23 = vld [vmem:[#allocation4 + $0xd8] sm:$0xff] }
 0x19d   : > { %1453 = vst [vmem:[#allocation4 + $0xf1] sm:$0xff] %v1341_v30  ;;  %v1344_v14 = vadd.f32 %v7749_v40, %v1183_v3  ;;  %v7806_v40 = vpop.f32.mrb[51].mxu0 }
 0x19e   : > { %v1772_v24 = vld [vmem:[#allocation4 + $0xe0] sm:$0xff]  ;;  %v10332_v21 = vadd.f32 %v7806_v40, %v7805_v7 }
 0x19f   : > { %1454 = vst [vmem:[#allocation4 + $0xf9] sm:$0xff] %v1344_v14  ;;  %v7750_v26 = vpop.f32.mrb[56].mxu1  ;;  %v10307_v27 = vpack.c.bf16 %v1772_v24, %v1771_v23  ;;  %v10309_v29 = vpack.c.bf16 %v1344_v14, %v1341_v30  ;;  %v1677_v44 = vld [vmem:[#allocation4 + $0xda] sm:$0xff]  ;;  %v1678_v39 = vld [vmem:[#allocation4 + $0xe2] sm:$0xff] }
 0x1a0   : > { %v7751_v31 = vpop.f32.mrb[57].mxu1  ;;  %v10323_v60 = vpack.c.bf16 %v1678_v39, %v1677_v44 }
 0x1a1   : > { %v7752_v10 = vadd.f32 %v7751_v31, %v7750_v26  ;;  %v7753_v15 = vpop.f32.mrb[58].mxu1  ;;  %3749 = vmatprep.mubr.bf16.mxu1 %v10307_v27  ;;  %3597 = vmatmul.mubr.bf16.gmra.mrb[84].mxu0 %v10307_v27  ;;  %v1204_v31 = vadd.f32 %v10138_v13, %v10166_v55 }
 0x1a2   : > { %v7754_v17 = vpop.f32.mrb[59].mxu1  ;;  %3750 = vmatmul.mubr.bf16.gmra.mrb[112].mxu1 %v10311_v33  ;;  %3604 = vmatprep.mubr.bf16.mxu0 %v10309_v29 }
 0x1a3   : > { %v1349_v38 = vadd.f32 %v7752_v10, %v1188_v25  ;;  %v7755_v43 = vadd.f32 %v7754_v17, %v7753_v15 }
 0x1a4   : > { %v1773_v50 = vld [vmem:[#allocation4 + $0xf0] sm:$0xff] }
 0x1a5   : > { %1455 = vst [vmem:[#allocation4 + $0x109] sm:$0xff] %v1349_v38  ;;  %v1352_v45 = vadd.f32 %v7755_v43, %v1191_v18  ;;  %v1207_v18 = vadd.f32 %v10140_v16, %v10166_v55  ;;  %v1212_v16 = vadd.f32 %v10142_v19, %v10166_v55 }
 0x1a6   : > { %v1774_v56 = vld [vmem:[#allocation4 + $0xf8] sm:$0xff] }
 0x1a7   : > { %1456 = vst [vmem:[#allocation4 + $0x111] sm:$0xff] %v1352_v45  ;;  %v7756_v57 = vpop.f32.mrb[60].mxu1  ;;  %v10319_v58 = vpack.c.bf16 %v1774_v56, %v1773_v50  ;;  %v10321_v59 = vpack.c.bf16 %v1352_v45, %v1349_v38  ;;  %v1679_v3 = vld [vmem:[#allocation4 + $0xf2] sm:$0xff]  ;;  %v1680_v30 = vld [vmem:[#allocation4 + $0xfa] sm:$0xff] }
 0x1a8   : > { %v7757_v34 = vpop.f32.mrb[61].mxu1  ;;  %v10338_v26 = vpack.c.bf16 %v1680_v30, %v1679_v3 }
 0x1a9   : > { %v7758_v49 = vadd.f32 %v7757_v34, %v7756_v57  ;;  %v7759_v61 = vpop.f32.mrb[62].mxu1  ;;  %3757 = vmatprep.mubr.bf16.mxu1 %v10319_v58  ;;  %3605 = vmatmul.mubr.bf16.gmra.mrb[88].mxu0 %v10319_v58 }
 0x1aa   : > { %v7760_v62 = vpop.f32.mrb[63].mxu1  ;;  %3758 = vmatmul.mubr.bf16.gmra.mrb[116].mxu1 %v10323_v60  ;;  %3612 = vmatprep.mubr.bf16.mxu0 %v10321_v59 }
 0x1ab   : > { %v1357_v51 = vadd.f32 %v7758_v49, %v1196_v42  ;;  %v7761_v48 = vadd.f32 %v7760_v62, %v7759_v61 }
 0x1ac   : > { %v1775_v14 = vld [vmem:[#allocation4 + $0x108] sm:$0xff] }
 0x1ad   : > { %1457 = vst [vmem:[#allocation4 + $0x121] sm:$0xff] %v1357_v51  ;;  %v1360_v12 = vadd.f32 %v7761_v48, %v1199_v2  ;;  %v1215_v2 = vadd.f32 %v10144_v22, %v10166_v55  ;;  %v1220_v22 = vadd.f32 %v10155_v36, %v10166_v55 }
 0x1ae   : > { %v1776_v20 = vld [vmem:[#allocation4 + $0x110] sm:$0xff] }
 0x1af   : > { %1458 = vst [vmem:[#allocation4 + $0x129] sm:$0xff] %v1360_v12  ;;  %v7762_v23 = vpop.f32.mrb[64].mxu1  ;;  %v10334_v24 = vpack.c.bf16 %v1776_v20, %v1775_v14  ;;  %v10336_v8 = vpack.c.bf16 %v1360_v12, %v1357_v51  ;;  %v1681_v44 = vld [vmem:[#allocation4 + $0x10a] sm:$0xff]  ;;  %v1682_v13 = vld [vmem:[#allocation4 + $0x112] sm:$0xff] }
 0x1b0   : > { %v7763_v25 = vpop.f32.mrb[65].mxu1  ;;  %v10352_v49 = vpack.c.bf16 %v1682_v13, %v1681_v44 }
 0x1b1   : > { %v7764_v10 = vadd.f32 %v7763_v25, %v7762_v23  ;;  %v7765_v15 = vpop.f32.mrb[66].mxu1  ;;  %3765 = vmatprep.mubr.bf16.mxu1 %v10334_v24  ;;  %3613 = vmatmul.mubr.bf16.gmra.mrb[92].mxu0 %v10334_v24 }
 0x1b2   : > { %v7766_v17 = vpop.f32.mrb[67].mxu1  ;;  %3766 = vmatmul.mubr.bf16.gmra.mrb[120].mxu1 %v10338_v26  ;;  %3620 = vmatprep.mubr.bf16.mxu0 %v10336_v8 }
 0x1b3   : > { %v1365_v38 = vadd.f32 %v7764_v10, %v1204_v31  ;;  %v7767_v43 = vadd.f32 %v7766_v17, %v7765_v15  ;;  %v9465_v10 = vld [vmem:[%s11955_s4 + $0x2c0] sm:$0xff]   ;;  %v1223_v17 = vadd.f32 %v10157_v41, %v10166_v55  ;;  %v1228_v41 = vadd.f32 %v10159_v28, %v10166_v55 }
 0x1b4   : > { %v1777_v39 = vld [vmem:[#allocation4 + $0x120] sm:$0xff]  ;;  %8346 = vmatprep.subr.bf16.mxu1 %v9465_v10 }
 0x1b5   : > { %1459 = vst [vmem:[#allocation4 + $0x139] sm:$0xff] %v1365_v38  ;;  %v1368_v45 = vadd.f32 %v7767_v43, %v1207_v18 }
 0x1b6   : > { %v1778_v50 = vld [vmem:[#allocation4 + $0x128] sm:$0xff] }
 0x1b7   : > { %1460 = vst [vmem:[#allocation4 + $0x141] sm:$0xff] %v1368_v45  ;;  %v7768_v56 = vpop.f32.mrb[68].mxu1  ;;  %v10348_v42 = vpack.c.bf16 %v1778_v50, %v1777_v39  ;;  %v10350_v57 = vpack.c.bf16 %v1368_v45, %v1365_v38  ;;  %v1683_v7 = vld [vmem:[#allocation4 + $0x122] sm:$0xff]  ;;  %v1684_v19 = vld [vmem:[#allocation4 + $0x12a] sm:$0xff] }
 0x1b8   : > { %v7769_v34 = vpop.f32.mrb[69].mxu1  ;;  %v10366_v23 = vpack.c.bf16 %v1684_v19, %v1683_v7 }
 0x1b9   : > { %v7770_v61 = vadd.f32 %v7769_v34, %v7768_v56  ;;  %v7771_v62 = vpop.f32.mrb[70].mxu1  ;;  %3773 = vmatprep.mubr.bf16.mxu1 %v10348_v42  ;;  %3621 = vmatmul.mubr.bf16.gmra.mrb[96].mxu0 %v10348_v42 }
 0x1ba   : > { %v7772_v63 = vpop.f32.mrb[71].mxu1  ;;  %3774 = vmatmul.mubr.bf16.gmra.mrb[124].mxu1 %v10352_v49  ;;  %3628 = vmatprep.mubr.bf16.mxu0 %v10350_v57 }
 0x1bb   : > { %v1373_v51 = vadd.f32 %v7770_v61, %v1212_v16  ;;  %v7773_v48 = vadd.f32 %v7772_v63, %v7771_v62 }
 0x1bc   : > { %v1779_v12 = vld [vmem:[#allocation4 + $0x138] sm:$0xff] }
 0x1bd   : > { %1461 = vst [vmem:[#allocation4 + $0x151] sm:$0xff] %v1373_v51  ;;  %v1376_v52 = vadd.f32 %v7773_v48, %v1215_v2  ;;  %v1231_v2 = vadd.f32 %v10161_v53, %v10166_v55  ;;  %v1852_v53 = vld [vmem:[#allocation4 + $0x21] sm:$0xff] }
 0x1be   : > { %v1780_v3 = vld [vmem:[#allocation4 + $0x140] sm:$0xff] }
 0x1bf   : > { %1462 = vst [vmem:[#allocation4 + $0x159] sm:$0xff] %v1376_v52  ;;  %v7774_v30 = vpop.f32.mrb[72].mxu1  ;;  %v10362_v40 = vpack.c.bf16 %v1780_v3, %v1779_v12  ;;  %v10364_v14 = vpack.c.bf16 %v1376_v52, %v1373_v51  ;;  %v1685_v43 = vld [vmem:[#allocation4 + $0x13a] sm:$0xff]  ;;  %v1686_v45 = vld [vmem:[#allocation4 + $0x142] sm:$0xff] }
 0x1c0   : > { %v7775_v20 = vpop.f32.mrb[73].mxu1  ;;  %v10383_v16 = vpack.c.bf16 %v1686_v45, %v1685_v43  ;;  %v9453_v43 = vld [vmem:[%s11955_s4 + $0x248] sm:$0xff]   ;;  %v7469_v45 = vld [vmem:[%s10408_s23] sm:$0xff]  }
 0x1c1   : > { %v7776_v25 = vadd.f32 %v7775_v20, %v7774_v30  ;;  %v7777_v31 = vpop.f32.mrb[74].mxu1  ;;  %3781 = vmatprep.mubr.bf16.mxu1 %v10362_v40  ;;  %3629 = vmatmul.mubr.bf16.gmra.mrb[100].mxu0 %v10362_v40 }
 0x1c2   : > { %v7778_v15 = vpop.f32.mrb[75].mxu1  ;;  %3782 = vmatmul.mubr.bf16.gmra.mrb[128].mxu1 %v10366_v23  ;;  %3636 = vmatprep.mubr.bf16.mxu0 %v10364_v14 }
 0x1c3   : > { %v1381_v18 = vadd.f32 %v7776_v25, %v1220_v22  ;;  %v7779_v36 = vadd.f32 %v7778_v15, %v7777_v31  ;;  %v1851_v25 = vld [vmem:[#allocation4 + $0x19] sm:$0xff] }
 0x1c4   : > { %v1781_v44 = vld [vmem:[#allocation4 + $0x150] sm:$0xff]  ;;  %v2142_v15 = vld [vmem:[#allocation4 + $0x39] sm:$0xff] }
 0x1c5   : > { %1463 = vst [vmem:[#allocation4 + $0x169] sm:$0xff] %v1381_v18  ;;  %v1384_v38 = vadd.f32 %v7779_v36, %v1223_v17 }
 0x1c6   : > { %v1782_v13 = vld [vmem:[#allocation4 + $0x158] sm:$0xff] }
 0x1c7   : > { %1464 = vst [vmem:[#allocation4 + $0x171] sm:$0xff] %v1384_v38  ;;  %v7780_v39 = vpop.f32.mrb[76].mxu1  ;;  %v10379_v50 = vpack.c.bf16 %v1782_v13, %v1781_v44  ;;  %v10381_v56 = vpack.c.bf16 %v1384_v38, %v1381_v18  ;;  %v1687_v28 = vld [vmem:[#allocation4 + $0x152] sm:$0xff]  ;;  %v1688_v7 = vld [vmem:[#allocation4 + $0x15a] sm:$0xff]  ;;  %v1883_v18 = vpack.c.bf16 %v1852_v53, %v1851_v25  ;;  %v7470_v13 = vunpack.c.l.bf16 %v7469_v45 }
 0x1c8   : > { %v7781_v34 = vpop.f32.mrb[77].mxu1  ;;  %v10397_v20 = vpack.c.bf16 %v1688_v7, %v1687_v28  ;;  %v2141_v38 = vld [vmem:[#allocation4 + $0x31] sm:$0xff]  ;;  %v2143_v28 = vld [vmem:[#allocation4 + $0x49] sm:$0xff]  ;;  %v9467_v53 = vld [vmem:[%s11955_s4 + $0x2c8] sm:$0xff]  }
 0x1c9   : > { %v7782_v61 = vadd.f32 %v7781_v34, %v7780_v39  ;;  %v7783_v62 = vpop.f32.mrb[78].mxu1  ;;  %3789 = vmatprep.mubr.bf16.mxu1 %v10379_v50  ;;  %3637 = vmatmul.mubr.bf16.gmra.mrb[104].mxu0 %v10379_v50  ;;  %v2173_v44 = vpack.c.bf16 %v2142_v15, %v2141_v38  ;;  %v7471_v39 = vunpack.c.h.bf16 %v7469_v45  ;;  %v9454_v34 = vld [vmem:[%s11955_s4 + $0x208] sm:$0xff]   ;;  %546 = vst [vmem:[#allocation3 + $0x19] sm:$0xff] %v7470_v13  ;;  %v9457_v7 = vld [vmem:[%s11955_s4 + $0x258] sm:$0xff]   ;;  %v7548_v15 = vld [vmem:[%s10408_s23 + $0x10] sm:$0xff]  }
 0x1ca   : > { %v7784_v63 = vpop.f32.mrb[79].mxu1  ;;  %3790 = vmatmul.mubr.bf16.gmra.mrb[132].mxu1 %v10383_v16  ;;  %3644 = vmatprep.mubr.bf16.mxu0 %v10381_v56  ;;  %v9468_v25 = vld [vmem:[%s11955_s4 + $0x288] sm:$0xff]   ;;  %v7478_v38 = vunpack.c.l.bf16 %v7548_v15 }
 0x1cb   : > { %v1389_v51 = vadd.f32 %v7782_v61, %v1228_v41  ;;  %v7785_v48 = vadd.f32 %v7784_v63, %v7783_v62  ;;  %547 = vst [vmem:[#allocation3 + $0x21] sm:$0xff] %v7471_v39  ;;  %v9455_v41 = vld [vmem:[%s11955_s4 + $0x250] sm:$0xff]   ;;  %v2045_v61 = vld [vmem:[#allocation4 + $0x38] sm:$0xff]  ;;  %v7547_v63 = vld [vmem:[%s10408_s23 + $0x8] sm:$0xff]  }
 0x1cc   : > { %v1783_v19 = vld [vmem:[#allocation4 + $0x168] sm:$0xff]  ;;  %v2144_v62 = vld [vmem:[#allocation4 + $0x51] sm:$0xff]  ;;  %v9461_v13 = vld [vmem:[%s11955_s4 + $0x268] sm:$0xff]   ;;  %550 = vst [vmem:[#allocation3 + $0x49] sm:$0xff] %v7478_v38 }
 0x1cd   : > { %1465 = vst [vmem:[#allocation4 + $0x181] sm:$0xff] %v1389_v51  ;;  %v1392_v52 = vadd.f32 %v7785_v48, %v1231_v2  ;;  %v2044_v2 = vld [vmem:[#allocation4 + $0x30] sm:$0xff]  ;;  %v7475_v48 = vunpack.c.h.bf16 %v7547_v63  ;;  %v9472_v39 = vld [vmem:[%s11955_s4 + $0x290] sm:$0xff]  }
 0x1ce   : > { %v1784_v12 = vld [vmem:[#allocation4 + $0x170] sm:$0xff] }
 0x1cf   : > { %1466 = vst [vmem:[#allocation4 + $0x189] sm:$0xff] %v1392_v52  ;;  %v10393_v3 = vpack.c.bf16 %v1784_v12, %v1783_v19  ;;  %v10395_v30 = vpack.c.bf16 %v1392_v52, %v1389_v51  ;;  %v1689_v55 = vld [vmem:[#allocation4 + $0x16a] sm:$0xff]  ;;  %v1690_v22 = vld [vmem:[#allocation4 + $0x172] sm:$0xff]  ;;  %v7474_v51 = vunpack.c.l.bf16 %v7547_v63  ;;  %v2076_v52 = vpack.c.bf16 %v2045_v61, %v2044_v2  ;;  %549 = vst [vmem:[#allocation3 + $0x39] sm:$0xff] %v7475_v48 }
 0x1d0   : > { %v10415_v36 = vpack.c.bf16 %v1690_v22, %v1689_v55  ;;  %v9466_v19 = vld [vmem:[%s11955_s4 + $0x280] sm:$0xff]   ;;  %v2174_v12 = vpack.c.bf16 %v2144_v62, %v2143_v28  ;;  %v9458_v55 = vld [vmem:[%s11955_s4 + $0x218] sm:$0xff]   ;;  %v9462_v61 = vld [vmem:[%s11955_s4 + $0x228] sm:$0xff]  }
 0x1d1   : > { %3797 = vmatprep.mubr.bf16.mxu1 %v10393_v3  ;;  %3645 = vmatmul.mubr.bf16.gmra.mrb[108].mxu0 %v10393_v3  ;;  %548 = vst [vmem:[#allocation3 + $0x31] sm:$0xff] %v7474_v51  ;;  %v9459_v22 = vld [vmem:[%s11955_s4 + $0x260] sm:$0xff]   ;;  %v9463_v62 = vld [vmem:[%s11955_s4 + $0x270] sm:$0xff]   ;;  %v9474_v63 = vld [vmem:[%s11955_s4 + $0x298] sm:$0xff]  }
 0x1d2   : > { %3798 = vmatmul.mubr.bf16.gmra.mrb[136].mxu1 %v10397_v20  ;;  %3846 = vmatprep.mubr.bf16.mxu0 %v10207_v9  ;;  %v9450_v9 = vld [vmem:[%s11955_s4 + $0x200] sm:$0xff]   ;;  %v2049_v2 = vld [vmem:[#allocation4 + $0x68] sm:$0xff]  ;;  %v7549_v51 = vld [vmem:[%s10408_s23 + $0x18] sm:$0xff]  }
 0x1d3   : > { %v2048_v48 = vld [vmem:[#allocation4 + $0x60] sm:$0xff]  ;;  %v7482_v28 = vunpack.c.l.bf16 %v7549_v51 }
 0x1d4   : > { %v1785_v31 = vld [vmem:[#allocation4 + $0x180] sm:$0xff] }
 0x1d5   : > { %552 = vst [vmem:[#allocation3 + $0x61] sm:$0xff] %v7482_v28 }
 0x1d6   : > { %v1786_v10 = vld [vmem:[#allocation4 + $0x188] sm:$0xff] }
 0x1d7   : > { %v10410_v17 = vpack.c.bf16 %v1786_v10, %v1785_v31  ;;  %v2047_v31 = vld [vmem:[#allocation4 + $0x50] sm:$0xff] }
 0x1d8   : > { %v2146_v10 = vld [vmem:[#allocation4 + $0x69] sm:$0xff] }
 0x1d9   : > { %3805 = vmatprep.mubr.bf16.mxu1 %v10410_v17  ;;  %3847 = vmatmul.mubr.bf16.vlgmr.msra.gmra.mrb[112].mxu0 %v1883_v18  ;;  %v2046_v18 = vld [vmem:[#allocation4 + $0x48] sm:$0xff] }
 0x1da   : > { %3806 = vmatmul.mubr.bf16.gmra.mrb[140].mxu1 %v10415_v36  ;;  %3854 = vmatprep.mubr.bf16.mxu0 %v10230_v47  ;;  %v9456_v47 = vld [vmem:[%s11955_s4 + $0x210] sm:$0xff]   ;;  %v2077_v45 = vpack.c.bf16 %v2047_v31, %v2046_v18  ;;  %v9471_v31 = vld [vmem:[%s11955_s4 + $0x238] sm:$0xff]   ;;  %v7550_v18 = vld [vmem:[%s10408_s23 + $0x20] sm:$0xff]  }
 0x1db   : > { %4007 = vmatprep.mubr.bf16.mxu1 %v2173_v44  ;;  %8235 = vmatpush3.bf16.msra.mxu0 %v9450_v9  ;;  %v9460_v9 = vld [vmem:[%s11955_s4 + $0x220] sm:$0xff]   ;;  %v7487_v38 = vunpack.c.h.bf16 %v7550_v18 }
 0x1dc   : > { %8236 = vmatprep.subr.bf16.mxu0 %v9453_v43  ;;  %v7479_v43 = vunpack.c.h.bf16 %v7548_v15  ;;  %v2150_v15 = vld [vmem:[#allocation4 + $0x99] sm:$0xff] }
 0x1dd   : > { %555 = vst [vmem:[#allocation3 + $0x81] sm:$0xff] %v7487_v38 }
 0x1de   : > { %551 = vst [vmem:[#allocation3 + $0x51] sm:$0xff] %v7479_v43  ;;  %v2149_v43 = vld [vmem:[#allocation4 + $0x91] sm:$0xff] }
 0x1df   : > { %8237 = vmatpush3.bf16.msra.mxu0 %v9454_v34 }
 0x1e0   : > { %8238 = vmatprep.subr.bf16.mxu0 %v9455_v41  ;;  %v9473_v41 = vld [vmem:[%s11955_s4 + $0x2d8] sm:$0xff]  }
 0x1e1   : > { %3855 = vmatmul.mubr.bf16.gmra.mrb[116].mxu0 %v2173_v44  ;;  %v2145_v44 = vld [vmem:[#allocation4 + $0x61] sm:$0xff] }
 0x1e2   : > { %4008 = vmatmul.mubr.bf16.vlgmr.msra.gmra.mrb[144].mxu1 %v2076_v52  ;;  %3862 = vmatprep.mubr.bf16.mxu0 %v10251_v11  ;;  %v9470_v11 = vld [vmem:[%s11955_s4 + $0x2d0] sm:$0xff]   ;;  %v2175_v34 = vpack.c.bf16 %v2146_v10, %v2145_v44  ;;  %v9480_v10 = vld [vmem:[%s11955_s4 + $0x340] sm:$0xff]   ;;  %v2177_v44 = vpack.c.bf16 %v2150_v15, %v2149_v43 }
 0x1e3   : > { %4015 = vmatprep.mubr.bf16.mxu1 %v2174_v12  ;;  %8239 = vmatpush3.bf16.msra.mxu0 %v9456_v47  ;;  %v2148_v47 = vld [vmem:[#allocation4 + $0x81] sm:$0xff] }
 0x1e4   : > { %8240 = vmatprep.subr.bf16.mxu0 %v9457_v7  ;;  %8347 = vmatpush3.bf16.msra.mxu1 %v9466_v19  ;;  %v9464_v52 = vld [vmem:[%s11955_s4 + $0x230] sm:$0xff]   ;;  %v7483_v7 = vunpack.c.h.bf16 %v7549_v51  ;;  %v2078_v19 = vpack.c.bf16 %v2049_v2, %v2048_v48 }
 0x1e5   : > { %8348 = vmatprep.subr.bf16.mxu1 %v9467_v53  ;;  %v9469_v53 = vld [vmem:[%s11955_s4 + $0x278] sm:$0xff]   ;;  %v2153_v51 = vld [vmem:[#allocation4 + $0xc1] sm:$0xff] }
 0x1e6   : > { %553 = vst [vmem:[#allocation3 + $0x69] sm:$0xff] %v7483_v7 }
 0x1e7   : > { %8241 = vmatpush3.bf16.msra.mxu0 %v9458_v55  ;;  %v9476_v55 = vld [vmem:[%s11955_s4 + $0x2a0] sm:$0xff]  }
 0x1e8   : > { %8242 = vmatprep.subr.bf16.mxu0 %v9459_v22  ;;  %8349 = vmatpush3.bf16.msra.mxu1 %v9468_v25  ;;  %v9477_v25 = vld [vmem:[%s11955_s4 + $0x2e8] sm:$0xff]  }
 0x1e9   : > { %3863 = vmatmul.mubr.bf16.gmra.mrb[120].mxu0 %v2174_v12  ;;  %8350 = vmatprep.subr.bf16.mxu1 %v9470_v11  ;;  %v2147_v12 = vld [vmem:[#allocation4 + $0x79] sm:$0xff] }
 0x1ea   : > { %4016 = vmatmul.mubr.bf16.gmra.mrb[148].mxu1 %v2077_v45  ;;  %3870 = vmatprep.mubr.bf16.mxu0 %v10268_v46  ;;  %v9475_v46 = vld [vmem:[%s11955_s4 + $0x2e0] sm:$0xff]   ;;  %v2176_v22 = vpack.c.bf16 %v2148_v47, %v2147_v12  ;;  %v9478_v11 = vld [vmem:[%s11955_s4 + $0x2a8] sm:$0xff]   ;;  %v9481_v45 = vld [vmem:[%s11955_s4 + $0x2b0] sm:$0xff]  }
 0x1eb   : > { %4023 = vmatprep.mubr.bf16.mxu1 %v2175_v34  ;;  %8243 = vmatpush3.bf16.msra.mxu0 %v9460_v9  ;;  %v7486_v9 = vunpack.c.l.bf16 %v7550_v18 }
 0x1ec   : > { %8244 = vmatprep.subr.bf16.mxu0 %v9461_v13  ;;  %8351 = vmatpush3.bf16.msra.mxu1 %v9472_v39  ;;  %v9483_v13 = vld [vmem:[%s11955_s4 + $0x2f8] sm:$0xff]  }
 0x1ed   : > { %8352 = vmatprep.subr.bf16.mxu1 %v9473_v41  ;;  %554 = vst [vmem:[#allocation3 + $0x79] sm:$0xff] %v7486_v9  ;;  %v9484_v39 = vld [vmem:[%s11955_s4 + $0x2b8] sm:$0xff]   ;;  %v7551_v41 = vld [vmem:[%s10408_s23 + $0x28] sm:$0xff]  }
 0x1ef   : > { %8245 = vmatpush3.bf16.msra.mxu0 %v9462_v61  ;;  %v7490_v61 = vunpack.c.l.bf16 %v7551_v41 }
 0x1f0   : > { %8246 = vmatprep.subr.bf16.mxu0 %v9463_v62  ;;  %8353 = vmatpush3.bf16.msra.mxu1 %v9474_v63  ;;  %v7491_v62 = vunpack.c.h.bf16 %v7551_v41  ;;  %v2151_v63 = vld [vmem:[#allocation4 + $0xa9] sm:$0xff] }
 0x1f1   : > { %3871 = vmatmul.mubr.bf16.gmra.mrb[124].mxu0 %v2175_v34  ;;  %8354 = vmatprep.subr.bf16.mxu1 %v9475_v46  ;;  %v2152_v34 = vld [vmem:[#allocation4 + $0xb1] sm:$0xff]  ;;  %556 = vst [vmem:[#allocation3 + $0x91] sm:$0xff] %v7490_v61 }
 0x1f2   : > { %4024 = vmatmul.mubr.bf16.gmra.mrb[152].mxu1 %v2078_v19  ;;  %3878 = vmatprep.mubr.bf16.mxu0 %v10278_v5  ;;  %v9479_v5 = vld [vmem:[%s11955_s4 + $0x2f0] sm:$0xff]   ;;  %v2178_v2 = vpack.c.bf16 %v2152_v34, %v2151_v63  ;;  %557 = vst [vmem:[#allocation3 + $0x99] sm:$0xff] %v7491_v62 }
 0x1f3   : > { %4031 = vmatprep.mubr.bf16.mxu1 %v2176_v22  ;;  %8247 = vmatpush3.bf16.msra.mxu0 %v9464_v52  ;;  %v7553_v52 = vld [vmem:[%s10408_s23 + $0x38] sm:$0xff]  }
 0x1f4   : > { %8248 = vmatprep.subr.bf16.mxu0 %v9469_v53  ;;  %8355 = vmatpush3.bf16.msra.mxu1 %v9476_v55  ;;  %v7499_v28 = vunpack.c.h.bf16 %v7553_v52 }
 0x1f5   : > { %8356 = vmatprep.subr.bf16.mxu1 %v9477_v25 }
 0x1f6   : > { %561 = vst [vmem:[#allocation3 + $0xc9] sm:$0xff] %v7499_v28 }
 0x1f7   : > { %8249 = vmatpush3.bf16.msra.mxu0 %v9471_v31 }
 0x1f8   : > { %8357 = vmatpush3.bf16.msra.mxu1 %v9478_v11  ;;  %8458 = vmatprep.subr.bf16.mxu0 %v9480_v10 }
 0x1f9   : > { %3879 = vmatmul.mubr.bf16.gmra.mrb[128].mxu0 %v2176_v22  ;;  %8358 = vmatprep.subr.bf16.mxu1 %v9479_v5 }
 0x1fa   : > { %4032 = vmatmul.mubr.bf16.gmra.mrb[156].mxu1 %v10266_v37  ;;  %3886 = vmatprep.mubr.bf16.mxu0 %v10288_v35  ;;  %v2154_v37 = vld [vmem:[#allocation4 + $0xc9] sm:$0xff] }
 0x1fb   : > { %4039 = vmatprep.mubr.bf16.mxu1 %v2177_v44  ;;  %v7552_v35 = vld [vmem:[%s10408_s23 + $0x30] sm:$0xff]   ;;  %v2179_v48 = vpack.c.bf16 %v2154_v37, %v2153_v51 }
 0x1fc   : > { %8359 = vmatpush3.bf16.msra.mxu1 %v9481_v45  ;;  %v7494_v46 = vunpack.c.l.bf16 %v7552_v35  ;;  %v7495_v47 = vunpack.c.h.bf16 %v7552_v35 }
 0x1fd   : > { %8360 = vmatprep.subr.bf16.mxu1 %v9483_v13 }
 0x1fe   : > { %558 = vst [vmem:[#allocation3 + $0xa9] sm:$0xff] %v7494_v46  ;;  %559 = vst [vmem:[#allocation3 + $0xb1] sm:$0xff] %v7495_v47  ;;  %v9509_v47 = vld [vmem:[%s11955_s4 + $0x3c0] sm:$0xff]  }
 0x200   : > { %8361 = vmatpush3.bf16.msra.mxu1 %v9484_v39  ;;  %v7559_v39 = vld [vmem:[%s10408_s23 + $0x68] sm:$0xff]  }
 0x201   : > { %3887 = vmatmul.mubr.bf16.gmra.mrb[132].mxu0 %v2177_v44  ;;  %v7522_v62 = vunpack.c.l.bf16 %v7559_v39  ;;  %8570 = vmatprep.subr.bf16.mxu1 %v9509_v47 }
 0x202   : > { %4040 = vmatmul.mubr.bf16.gmra.mrb[160].mxu1 %v10276_v54  ;;  %3894 = vmatprep.mubr.bf16.mxu0 %v10299_v4  ;;  %v7498_v54 = vunpack.c.l.bf16 %v7553_v52  ;;  %v7554_v4 = vld [vmem:[%s10408_s23 + $0x40] sm:$0xff]  }
 0x203   : > { %4047 = vmatprep.mubr.bf16.mxu1 %v2178_v2  ;;  %v7502_v7 = vunpack.c.l.bf16 %v7554_v4  ;;  %v7503_v19 = vunpack.c.h.bf16 %v7554_v4  ;;  %572 = vst [vmem:[#allocation3 + $0x151] sm:$0xff] %v7522_v62 }
 0x204   : > { %560 = vst [vmem:[#allocation3 + $0xc1] sm:$0xff] %v7498_v54  ;;  %v1977_v54 = vld [vmem:[#allocation4 + $0x182] sm:$0xff] }
 0x205   : > { %562 = vst [vmem:[#allocation3 + $0xd9] sm:$0xff] %v7502_v7  ;;  %563 = vst [vmem:[#allocation3 + $0xe1] sm:$0xff] %v7503_v19 }
 0x209   : > { %3895 = vmatmul.mubr.bf16.gmra.mrb[136].mxu0 %v2178_v2 }
 0x20a   : > { %4048 = vmatmul.mubr.bf16.gmra.mrb[164].mxu1 %v10286_v32  ;;  %3902 = vmatprep.mubr.bf16.mxu0 %v10311_v33  ;;  %v7555_v32 = vld [vmem:[%s10408_s23 + $0x48] sm:$0xff]  }
 0x20b   : > { %4055 = vmatprep.mubr.bf16.mxu1 %v2179_v48  ;;  %v7507_v33 = vunpack.c.h.bf16 %v7555_v32 }
 0x20d   : > { %565 = vst [vmem:[#allocation3 + $0xf9] sm:$0xff] %v7507_v33 }
 0x211   : > { %3903 = vmatmul.mubr.bf16.gmra.mrb[140].mxu0 %v2179_v48 }
 0x212   : > { %4056 = vmatmul.mubr.bf16.gmra.mrb[168].mxu1 %v10295_v0  ;;  %3910 = vmatprep.mubr.bf16.mxu0 %v10323_v60  ;;  %v7506_v0 = vunpack.c.l.bf16 %v7555_v32 }
 0x213   : > { %4063 = vmatprep.mubr.bf16.mxu1 %v10297_v1 }
 0x214   : > { %564 = vst [vmem:[#allocation3 + $0xf1] sm:$0xff] %v7506_v0 }
 0x219   : > { %3911 = vmatmul.mubr.bf16.gmra.mrb[144].mxu0 %v10297_v1  ;;  %v7556_v1 = vld [vmem:[%s10408_s23 + $0x50] sm:$0xff]  }
 0x21a   : > { %4064 = vmatmul.mubr.bf16.gmra.mrb[172].mxu1 %v10307_v27  ;;  %3918 = vmatprep.mubr.bf16.mxu0 %v10338_v26  ;;  %v7510_v27 = vunpack.c.l.bf16 %v7556_v1  ;;  %v7511_v60 = vunpack.c.h.bf16 %v7556_v1 }
 0x21b   : > { %4071 = vmatprep.mubr.bf16.mxu1 %v10309_v29 }
 0x21c   : > { %566 = vst [vmem:[#allocation3 + $0x109] sm:$0xff] %v7510_v27  ;;  %567 = vst [vmem:[#allocation3 + $0x111] sm:$0xff] %v7511_v60 }
 0x221   : > { %3919 = vmatmul.mubr.bf16.gmra.mrb[148].mxu0 %v10309_v29  ;;  %v7557_v29 = vld [vmem:[%s10408_s23 + $0x58] sm:$0xff]  }
 0x222   : > { %4072 = vmatmul.mubr.bf16.gmra.mrb[176].mxu1 %v10319_v58  ;;  %3926 = vmatprep.mubr.bf16.mxu0 %v10352_v49  ;;  %v7514_v58 = vunpack.c.l.bf16 %v7557_v29  ;;  %v7515_v26 = vunpack.c.h.bf16 %v7557_v29 }
 0x223   : > { %4079 = vmatprep.mubr.bf16.mxu1 %v10321_v59 }
 0x224   : > { %568 = vst [vmem:[#allocation3 + $0x121] sm:$0xff] %v7514_v58  ;;  %569 = vst [vmem:[#allocation3 + $0x129] sm:$0xff] %v7515_v26 }
 0x229   : > { %3927 = vmatmul.mubr.bf16.gmra.mrb[152].mxu0 %v10321_v59  ;;  %v10553_v59 = vld [vmem:[%s11956_s5] ss:$0 sm:$0xff] }
 0x22a   : > { %4080 = vmatmul.mubr.bf16.gmra.mrb[180].mxu1 %v10334_v24  ;;  %3934 = vmatprep.mubr.bf16.mxu0 %v10366_v23  ;;  %v3527_v22 = vadd.f32 %v10330_v6, %v10553_v59  ;;  %v3530_v15 = vadd.f32 %v10332_v21, %v10553_v59 }
 0x22b   : > { %4087 = vmatprep.mubr.bf16.mxu1 %v10336_v8 }
 0x231   : > { %3935 = vmatmul.mubr.bf16.gmra.mrb[156].mxu0 %v10336_v8  ;;  %v7558_v8 = vld [vmem:[%s10408_s23 + $0x60] sm:$0xff]  }
 0x232   : > { %4088 = vmatmul.mubr.bf16.gmra.mrb[184].mxu1 %v10348_v42  ;;  %3942 = vmatprep.mubr.bf16.mxu0 %v10383_v16  ;;  %v7518_v31 = vunpack.c.l.bf16 %v7558_v8  ;;  %v7519_v11 = vunpack.c.h.bf16 %v7558_v8 }
 0x233   : > { %4095 = vmatprep.mubr.bf16.mxu1 %v10350_v57 }
 0x234   : > { %v7808_v24 = vpop.f32.mrb[52].mxu0  ;;  %570 = vst [vmem:[#allocation3 + $0x139] sm:$0xff] %v7518_v31  ;;  %571 = vst [vmem:[#allocation3 + $0x141] sm:$0xff] %v7519_v11 }
 0x235   : > { %v7914_v49 = vpop.f32.mrb[80].mxu1  ;;  %v7809_v23 = vpop.f32.mrb[53].mxu0 }
 0x236   : > { %v7810_v12 = vadd.f32 %v7809_v23, %v7808_v24  ;;  %v7915_v53 = vpop.f32.mrb[81].mxu1  ;;  %v7811_v55 = vpop.f32.mrb[54].mxu0 }
 0x237   : > { %v7916_v42 = vadd.f32 %v7915_v53, %v7914_v49  ;;  %v7917_v25 = vpop.f32.mrb[82].mxu1  ;;  %v7812_v16 = vpop.f32.mrb[55].mxu0  ;;  %v2172_v53 = vld [vmem:[#allocation4 + $0x1a1] sm:$0xff] }
 0x238   : > { %v7813_v10 = vadd.f32 %v7812_v16, %v7811_v55  ;;  %v7918_v5 = vpop.f32.mrb[83].mxu1  ;;  %v3535_v34 = vadd.f32 %v7810_v12, %v10553_v59  ;;  %v2171_v12 = vld [vmem:[#allocation4 + $0x199] sm:$0xff] }
 0x239   : > { %v10560_v18 = vadd.f32 %v7916_v42, %v3527_v22  ;;  %v7919_v9 = vadd.f32 %v7918_v5, %v7917_v25  ;;  %3943 = vmatmul.mubr.bf16.gmra.mrb[160].mxu0 %v10350_v57  ;;  %v9623_v16 = vld [vmem:[#allocation2 + $0x180] sm:$0xff]  ;;  %v2188_v5 = vpack.c.bf16 %v2172_v53, %v2171_v12 }
 0x23a   : > { %4096 = vmatmul.mubr.bf16.gmra.mrb[188].mxu1 %v10362_v40  ;;  %3950 = vmatprep.mubr.bf16.mxu0 %v10397_v20  ;;  %v7523_v40 = vunpack.c.h.bf16 %v7559_v39  ;;  %v3538_v2 = vadd.f32 %v7813_v10, %v10553_v59  ;;  %v1547_v31 = vpack.c.bf16 %v9623_v16, %v9623_v16  ;;  %v1707_v39 = vld [vmem:[#allocation3 + $0x2] sm:$0xff] }
 0x23b   : > { %v10565_v6 = vadd.f32 %v7919_v9, %v3530_v15  ;;  %4103 = vmatprep.mubr.bf16.mxu1 %v10364_v14  ;;  %v1710_v12 = vld [vmem:[#allocation3 + $0x22] sm:$0xff] }
 0x23c   : > { %v7814_v38 = vpop.f32.mrb[56].mxu0  ;;  %573 = vst [vmem:[#allocation3 + $0x159] sm:$0xff] %v7523_v40 }
 0x23d   : > { %v7920_v43 = vpop.f32.mrb[84].mxu1  ;;  %v7815_v45 = vpop.f32.mrb[57].mxu0 }
 0x23e   : > { %v7816_v21 = vadd.f32 %v7815_v45, %v7814_v38  ;;  %v7921_v44 = vpop.f32.mrb[85].mxu1  ;;  %v7817_v13 = vpop.f32.mrb[58].mxu0 }
 0x23f   : > { %v7922_v57 = vadd.f32 %v7921_v44, %v7920_v43  ;;  %v7923_v41 = vpop.f32.mrb[86].mxu1  ;;  %v7818_v61 = vpop.f32.mrb[59].mxu0  ;;  %v2237_v44 = vld [vmem:[#allocation4 + $0x32] sm:$0xff] }
 0x240   : > { %v7819_v63 = vadd.f32 %v7818_v61, %v7817_v13  ;;  %v7924_v20 = vpop.f32.mrb[87].mxu1  ;;  %v2238_v13 = vld [vmem:[#allocation4 + $0x3a] sm:$0xff] }
 0x241   : > { %v10571_v37 = vadd.f32 %v7922_v57, %v3535_v34  ;;  %v7925_v35 = vadd.f32 %v7924_v20, %v7923_v41  ;;  %3951 = vmatmul.mubr.bf16.gmra.mrb[164].mxu0 %v10364_v14  ;;  %v1978_v14 = vld [vmem:[#allocation4 + $0x18a] sm:$0xff]  ;;  %v1708_v61 = vld [vmem:[#allocation3 + $0xa] sm:$0xff] }
 0x242   : > { %4104 = vmatmul.mubr.bf16.gmra.mrb[192].mxu1 %v10379_v50  ;;  %3958 = vmatprep.mubr.bf16.mxu0 %v10415_v36  ;;  %v7560_v50 = vld [vmem:[%s10408_s23 + $0x70] sm:$0xff]   ;;  %v3543_v36 = vadd.f32 %v7816_v21, %v10553_v59  ;;  %v1994_v29 = vpack.c.bf16 %v1978_v14, %v1977_v54  ;;  %v3546_v58 = vadd.f32 %v7819_v63, %v10553_v59  ;;  %v1518_v41 = vld [vmem:[#allocation3 + $0x20] sm:$0xff] }
 0x243   : > { %v10576_v46 = vadd.f32 %v7925_v35, %v3538_v2  ;;  %4111 = vmatprep.mubr.bf16.mxu1 %v10381_v56  ;;  %v7526_v33 = vunpack.c.l.bf16 %v7560_v50  ;;  %v7527_v1 = vunpack.c.h.bf16 %v7560_v50  ;;  %v1517_v57 = vld [vmem:[#allocation3 + $0x18] sm:$0xff]  ;;  %v2269_v35 = vpack.c.bf16 %v2238_v13, %v2237_v44  ;;  %v9510_v44 = vld [vmem:[%s11955_s4 + $0x380] sm:$0xff]  }
 0x244   : > { %v7820_v51 = vpop.f32.mrb[60].mxu0  ;;  %v1739_v54 = vpack.c.bf16 %v1708_v61, %v1707_v39  ;;  %v2242_v61 = vld [vmem:[#allocation4 + $0x6a] sm:$0xff] }
 0x245   : > { %v7926_v48 = vpop.f32.mrb[88].mxu1  ;;  %v7821_v52 = vpop.f32.mrb[61].mxu0  ;;  %574 = vst [vmem:[#allocation3 + $0x169] sm:$0xff] %v7526_v33  ;;  %575 = vst [vmem:[#allocation3 + $0x171] sm:$0xff] %v7527_v1  ;;  %v9487_v33 = vld [vmem:[%s11955_s4 + $0x308] sm:$0xff]  }
 0x246   : > { %v7822_v28 = vadd.f32 %v7821_v52, %v7820_v51  ;;  %v7927_v4 = vpop.f32.mrb[89].mxu1  ;;  %v7823_v7 = vpop.f32.mrb[62].mxu0  ;;  %v1548_v52 = vpack.c.bf16 %v1518_v41, %v1517_v57  ;;  %v9511_v57 = vld [vmem:[%s11955_s4 + $0x3c8] sm:$0xff]  }
 0x247   : > { %v7928_v19 = vadd.f32 %v7927_v4, %v7926_v48  ;;  %v7929_v32 = vpop.f32.mrb[90].mxu1  ;;  %v7824_v0 = vpop.f32.mrb[63].mxu0  ;;  %v9486_v4 = vld [vmem:[%s11955_s4 + $0x348] sm:$0xff]  }
 0x248   : > { %v7825_v27 = vadd.f32 %v7824_v0, %v7823_v7  ;;  %v7930_v60 = vpop.f32.mrb[91].mxu1  ;;  %v1612_v0 = vld [vmem:[#allocation3 + $0x9] sm:$0xff]  ;;  %v2241_v41 = vld [vmem:[#allocation4 + $0x62] sm:$0xff] }
 0x249   : > { %v10585_v26 = vadd.f32 %v7928_v19, %v3543_v36  ;;  %v7931_v24 = vadd.f32 %v7930_v60, %v7929_v32  ;;  %3959 = vmatmul.mubr.bf16.gmra.mrb[168].mxu0 %v10381_v56  ;;  %v3551_v56 = vadd.f32 %v7822_v28, %v10553_v59  ;;  %v2239_v19 = vld [vmem:[#allocation4 + $0x4a] sm:$0xff] }
 0x24a   : > { %4112 = vmatmul.mubr.bf16.gmra.mrb[196].mxu1 %v10393_v3  ;;  %3966 = vmatprep.mubr.bf16.mxu0 %v1994_v29  ;;  %v3554_v38 = vadd.f32 %v7825_v27, %v10553_v59  ;;  %v1611_v32 = vld [vmem:[#allocation3 + $0x1] sm:$0xff]  ;;  %v1519_v27 = vld [vmem:[#allocation3 + $0x30] sm:$0xff]  ;;  %v1520_v60 = vld [vmem:[#allocation3 + $0x38] sm:$0xff] }
 0x24b   : > { %v10589_v49 = vadd.f32 %v7931_v24, %v3546_v58  ;;  %4119 = vmatprep.mubr.bf16.mxu1 %v10395_v30  ;;  %v9490_v29 = vld [vmem:[%s11955_s4 + $0x350] sm:$0xff]   ;;  %v2240_v24 = vld [vmem:[#allocation4 + $0x52] sm:$0xff]  ;;  %v1549_v16 = vpack.c.bf16 %v1520_v60, %v1519_v27 }
 0x24c   : > { %v7826_v23 = vpop.f32.mrb[64].mxu0  ;;  %v9499_v60 = vld [vmem:[%s11955_s4 + $0x320] sm:$0xff]  }
 0x24d   : > { %v7932_v55 = vpop.f32.mrb[92].mxu1  ;;  %v7827_v8 = vpop.f32.mrb[65].mxu0 }
 0x24e   : > { %v7828_v22 = vadd.f32 %v7827_v8, %v7826_v23  ;;  %v7933_v42 = vpop.f32.mrb[93].mxu1  ;;  %v7829_v25 = vpop.f32.mrb[66].mxu0  ;;  %v1709_v23 = vld [vmem:[#allocation3 + $0x1a] sm:$0xff] }
 0x24f   : > { %v7934_v11 = vadd.f32 %v7933_v42, %v7932_v55  ;;  %v7935_v10 = vpop.f32.mrb[94].mxu1  ;;  %v7830_v3 = vpop.f32.mrb[67].mxu0 }
 0x250   : > { %v7831_v15 = vadd.f32 %v7830_v3, %v7829_v25  ;;  %v7936_v9 = vpop.f32.mrb[95].mxu1  ;;  %v1643_v25 = vpack.c.bf16 %v1612_v0, %v1611_v32  ;;  %v2270_v3 = vpack.c.bf16 %v2240_v24, %v2239_v19  ;;  %v9502_v24 = vld [vmem:[%s11955_s4 + $0x368] sm:$0xff]  }
 0x251   : > { %v10594_v43 = vadd.f32 %v7934_v11, %v3551_v56  ;;  %v7937_v45 = vadd.f32 %v7936_v9, %v7935_v10  ;;  %3967 = vmatmul.mubr.bf16.gmra.mrb[172].mxu0 %v10395_v30  ;;  %v9482_v30 = vld [vmem:[%s11955_s4 + $0x300] sm:$0xff]  }
 0x252   : > { %4120 = vmatmul.mubr.bf16.gmra.mrb[200].mxu1 %v10410_v17  ;;  %4168 = vmatprep.mubr.bf16.mxu0 %v1547_v31  ;;  %v3559_v17 = vadd.f32 %v7828_v22, %v10553_v59  ;;  %v3562_v7 = vadd.f32 %v7831_v15, %v10553_v59  ;;  %v9491_v15 = vld [vmem:[%s11955_s4 + $0x310] sm:$0xff]  }
 0x253   : > { %v10598_v21 = vadd.f32 %v7937_v45, %v3554_v38  ;;  %4127 = vmatprep.mubr.bf16.mxu1 %v2188_v5  ;;  %v1740_v5 = vpack.c.bf16 %v1710_v12, %v1709_v23  ;;  %v9494_v45 = vld [vmem:[%s11955_s4 + $0x358] sm:$0xff]   ;;  %v9517_v23 = vld [vmem:[%s11955_s4 + $0x390] sm:$0xff]  }
 0x254   : > { %v7832_v34 = vpop.f32.mrb[68].mxu0 }
 0x255   : > { %v7938_v62 = vpop.f32.mrb[96].mxu1  ;;  %v7833_v40 = vpop.f32.mrb[69].mxu0 }
 0x256   : > { %v7834_v63 = vadd.f32 %v7833_v40, %v7832_v34  ;;  %v7939_v20 = vpop.f32.mrb[97].mxu1  ;;  %v7835_v2 = vpop.f32.mrb[70].mxu0 }
 0x257   : > { %v7940_v47 = vadd.f32 %v7939_v20, %v7938_v62  ;;  %v7941_v51 = vpop.f32.mrb[98].mxu1  ;;  %v7836_v48 = vpop.f32.mrb[71].mxu0  ;;  %v1521_v62 = vld [vmem:[#allocation3 + $0x48] sm:$0xff]  ;;  %v1711_v20 = vld [vmem:[#allocation3 + $0x32] sm:$0xff] }
 0x258   : > { %v7837_v14 = vadd.f32 %v7836_v48, %v7835_v2  ;;  %v7942_v28 = vpop.f32.mrb[99].mxu1  ;;  %v9495_v2 = vld [vmem:[%s11955_s4 + $0x318] sm:$0xff]  }
 0x259   : > { %v10608_v50 = vadd.f32 %v7940_v47, %v3559_v17  ;;  %v7943_v36 = vadd.f32 %v7942_v28, %v7941_v51  ;;  %4169 = vmatmul.mubr.bf16.vlgmr.msra.gmra.mrb[176].mxu0 %v2269_v35  ;;  %v9498_v17 = vld [vmem:[%s11955_s4 + $0x360] sm:$0xff]   ;;  %v9512_v47 = vld [vmem:[%s11955_s4 + $0x388] sm:$0xff]  }
 0x25a   : > { %4128 = vmatmul.mubr.bf16.gmra.mrb[204].mxu1 %v1547_v31  ;;  %8459 = vmatpush3.bf16.msra.mxu0 %v9482_v30  ;;  %v3567_v31 = vadd.f32 %v7834_v63, %v10553_v59  ;;  %v3570_v13 = vadd.f32 %v7837_v14, %v10553_v59  ;;  %v1522_v63 = vld [vmem:[#allocation3 + $0x50] sm:$0xff]  ;;  %v1712_v30 = vld [vmem:[#allocation3 + $0x3a] sm:$0xff] }
 0x25b   : > { %v10613_v1 = vadd.f32 %v7943_v36, %v3562_v7  ;;  %4176 = vmatprep.mubr.bf16.mxu0 %v1548_v52  ;;  %4329 = vmatprep.mubr.bf16.mxu1 %v1739_v54  ;;  %v9515_v52 = vld [vmem:[%s11955_s4 + $0x3d0] sm:$0xff]   ;;  %v1550_v7 = vpack.c.bf16 %v1522_v63, %v1521_v62  ;;  %v1741_v27 = vpack.c.bf16 %v1712_v30, %v1711_v20 }
 0x25c   : > { %v7838_v58 = vpop.f32.mrb[72].mxu0  ;;  %8460 = vmatprep.subr.bf16.mxu0 %v9486_v4  ;;  %v9485_v4 = vld [vmem:[%s10408_s23] sm:$0xff]  ;;  %v9507_v30 = vld [vmem:[%s11955_s4 + $0x330] sm:$0xff]  }
 0x25d   : > { %v7944_v53 = vpop.f32.mrb[100].mxu1  ;;  %v7839_v55 = vpop.f32.mrb[73].mxu0 }
 0x25e   : > { %v7840_v8 = vadd.f32 %v7839_v55, %v7838_v58  ;;  %v7945_v22 = vpop.f32.mrb[101].mxu1  ;;  %v7841_v42 = vpop.f32.mrb[74].mxu0  ;;  %8461 = vmatpush3.bf16.msra.mxu0 %v9487_v33  ;;  %v2271_v33 = vpack.c.bf16 %v2242_v61, %v2241_v41 }
 0x25f   : > { %v7946_v56 = vadd.f32 %v7945_v22, %v7944_v53  ;;  %v7947_v11 = vpop.f32.mrb[102].mxu1  ;;  %v7842_v10 = vpop.f32.mrb[75].mxu0  ;;  %8462 = vmatprep.subr.bf16.mxu0 %v9490_v29  ;;  %v2243_v22 = vld [vmem:[#allocation4 + $0x7a] sm:$0xff] }
 0x260   : > { %v7843_v9 = vadd.f32 %v7842_v10, %v7841_v42  ;;  %v7948_v38 = vpop.f32.mrb[103].mxu1  ;;  %v3575_v36 = vadd.f32 %v7840_v8, %v10553_v59  ;;  %v9518_v8 = vld [vmem:[%s11955_s4 + $0x3d8] sm:$0xff]   ;;  %v2244_v42 = vld [vmem:[#allocation4 + $0x82] sm:$0xff] }
 0x261   : > { %v10629_v39 = vadd.f32 %v7946_v56, %v3567_v31  ;;  %v7949_v34 = vadd.f32 %v7948_v38, %v7947_v11  ;;  %4177 = vmatmul.mubr.bf16.gmra.mrb[180].mxu0 %v2270_v3  ;;  %v1524_v31 = vld [vmem:[#allocation3 + $0x68] sm:$0xff]  ;;  %v9503_v11 = vld [vmem:[%s11955_s4 + $0x328] sm:$0xff]  }
 0x262   : > { %4330 = vmatmul.mubr.bf16.vlgmr.msra.gmra.mrb[208].mxu1 %v1643_v25  ;;  %4184 = vmatprep.mubr.bf16.mxu0 %v1549_v16  ;;  %v3578_v12 = vadd.f32 %v7843_v9, %v10553_v59  ;;  %v1523_v25 = vld [vmem:[#allocation3 + $0x60] sm:$0xff]  ;;  %v1713_v56 = vld [vmem:[#allocation3 + $0x4a] sm:$0xff]  ;;  %v1714_v3 = vld [vmem:[#allocation3 + $0x52] sm:$0xff] }
 0x263   : > { %v10634_v40 = vadd.f32 %v7949_v34, %v3570_v13  ;;  %4337 = vmatprep.mubr.bf16.mxu1 %v1740_v5  ;;  %8463 = vmatpush3.bf16.msra.mxu0 %v9491_v15  ;;  %v9506_v5 = vld [vmem:[%s11955_s4 + $0x370] sm:$0xff]   ;;  %v9519_v15 = vld [vmem:[%s11955_s4 + $0x398] sm:$0xff]   ;;  %v1551_v41 = vpack.c.bf16 %v1524_v31, %v1523_v25 }
 0x264   : > { %v7844_v35 = vpop.f32.mrb[76].mxu0  ;;  %8464 = vmatprep.subr.bf16.mxu0 %v9494_v45  ;;  %8571 = vmatpush3.bf16.msra.mxu1 %v9510_v44  ;;  %v9521_v45 = vld [vmem:[%s11955_s4 + $0x3e0] sm:$0xff]  }
 0x265   : > { %v7950_v51 = vpop.f32.mrb[104].mxu1  ;;  %v7845_v48 = vpop.f32.mrb[77].mxu0  ;;  %8572 = vmatprep.subr.bf16.mxu1 %v9511_v57  ;;  %v9488_v57 = vld [vmem:[%s10408_s23 + $0x8] sm:$0xff] }
 0x266   : > { %v7846_v54 = vadd.f32 %v7845_v48, %v7844_v35  ;;  %v7951_v14 = vpop.f32.mrb[105].mxu1  ;;  %v7847_v28 = vpop.f32.mrb[78].mxu0  ;;  %v1742_v35 = vpack.c.bf16 %v1714_v3, %v1713_v56  ;;  %v9522_v48 = vld [vmem:[%s11955_s4 + $0x3a0] sm:$0xff]  }
 0x267   : > { %v7952_v19 = vadd.f32 %v7951_v14, %v7950_v51  ;;  %v7953_v32 = vpop.f32.mrb[106].mxu1  ;;  %v7848_v0 = vpop.f32.mrb[79].mxu0  ;;  %8465 = vmatpush3.bf16.msra.mxu0 %v9495_v2  ;;  %v2272_v2 = vpack.c.bf16 %v2244_v42, %v2243_v22  ;;  %v9514_v51 = vld [vmem:[%s11955_s4 + $0x378] sm:$0xff]   ;;  %v9489_v42 = vld [vmem:[%s10408_s23 + $0x10] sm:$0xff] }
 0x268   : > { %v7849_v29 = vadd.f32 %v7848_v0, %v7847_v28  ;;  %v7954_v58 = vpop.f32.mrb[107].mxu1  ;;  %8466 = vmatprep.subr.bf16.mxu0 %v9498_v17  ;;  %8573 = vmatpush3.bf16.msra.mxu1 %v9512_v47  ;;  %v3583_v61 = vadd.f32 %v7846_v54, %v10553_v59  ;;  %v9523_v28 = vld [vmem:[%s11955_s4 + $0x3e8] sm:$0xff]   ;;  %v1715_v0 = vld [vmem:[#allocation3 + $0x62] sm:$0xff] }
 0x269   : > { %v10660_v53 = vadd.f32 %v7952_v19, %v3575_v36  ;;  %v7955_v55 = vadd.f32 %v7954_v58, %v7953_v32  ;;  %4185 = vmatmul.mubr.bf16.gmra.mrb[184].mxu0 %v2271_v33  ;;  %8574 = vmatprep.subr.bf16.mxu1 %v9515_v52  ;;  %v1525_v36 = vld [vmem:[#allocation3 + $0x78] sm:$0xff]  ;;  %v1526_v32 = vld [vmem:[#allocation3 + $0x80] sm:$0xff]  ;;  %v9527_v58 = vld [vmem:[%s11955_s4 + $0x440] sm:$0xff]  }
 0x26a   : > { %4338 = vmatmul.mubr.bf16.gmra.mrb[212].mxu1 %v9485_v4  ;;  %4192 = vmatprep.mubr.bf16.mxu0 %v1550_v7  ;;  %v3586_v52 = vadd.f32 %v7849_v29, %v10553_v59  ;;  %v2245_v4 = vld [vmem:[#allocation4 + $0x92] sm:$0xff]  ;;  %v2246_v7 = vld [vmem:[#allocation4 + $0x9a] sm:$0xff]  ;;  %v1552_v25 = vpack.c.bf16 %v1526_v32, %v1525_v36 }
 0x26b   : > { %v10665_v16 = vadd.f32 %v7955_v55, %v3578_v12  ;;  %4345 = vmatprep.mubr.bf16.mxu1 %v1741_v27  ;;  %8467 = vmatpush3.bf16.msra.mxu0 %v9499_v60  ;;  %v9516_v33 = vld [vmem:[%s11955_s4 + $0x338] sm:$0xff]   ;;  %v1716_v60 = vld [vmem:[#allocation3 + $0x6a] sm:$0xff]  ;;  %v9526_v12 = vld [vmem:[%s11955_s4 + $0x3f0] sm:$0xff]   ;;  %v2273_v3 = vpack.c.bf16 %v2246_v7, %v2245_v4 }
 0x26c   : > { %v7850_v10 = vpop.f32.mrb[80].mxu0  ;;  %8468 = vmatprep.subr.bf16.mxu0 %v9502_v24  ;;  %8575 = vmatpush3.bf16.msra.mxu1 %v9517_v23  ;;  %v9524_v29 = vld [vmem:[%s11955_s4 + $0x3a8] sm:$0xff]  }
 0x26d   : > { %v7956_v9 = vpop.f32.mrb[108].mxu1  ;;  %v7851_v38 = vpop.f32.mrb[81].mxu0  ;;  %8576 = vmatprep.subr.bf16.mxu1 %v9518_v8 }
 0x26e   : > { %v7852_v44 = vadd.f32 %v7851_v38, %v7850_v10  ;;  %v7957_v13 = vpop.f32.mrb[109].mxu1  ;;  %v7853_v34 = vpop.f32.mrb[82].mxu0  ;;  %v9528_v38 = vld [vmem:[%s11955_s4 + $0x3b0] sm:$0xff]  }
 0x26f   : > { %v7958_v62 = vadd.f32 %v7957_v13, %v7956_v9  ;;  %v7959_v63 = vpop.f32.mrb[110].mxu1  ;;  %v7854_v20 = vpop.f32.mrb[83].mxu0  ;;  %8469 = vmatpush3.bf16.msra.mxu0 %v9503_v11 }
 0x270   : > { %v7855_v17 = vadd.f32 %v7854_v20, %v7853_v34  ;;  %v7960_v47 = vpop.f32.mrb[111].mxu1  ;;  %8470 = vmatprep.subr.bf16.mxu0 %v9506_v5  ;;  %8577 = vmatpush3.bf16.msra.mxu1 %v9519_v15  ;;  %v3591_v31 = vadd.f32 %v7852_v44, %v10553_v59  ;;  %v1743_v5 = vpack.c.bf16 %v1716_v60, %v1715_v0  ;;  %v9530_v44 = vld [vmem:[%s11955_s4 + $0x3f8] sm:$0xff]  }
 0x271   : > { %v10691_v54 = vadd.f32 %v7958_v62, %v3583_v61  ;;  %v7961_v14 = vadd.f32 %v7960_v47, %v7959_v63  ;;  %4193 = vmatmul.mubr.bf16.gmra.mrb[188].mxu0 %v2272_v2  ;;  %8578 = vmatprep.subr.bf16.mxu1 %v9521_v45  ;;  %v2248_v61 = vld [vmem:[#allocation4 + $0xb2] sm:$0xff]  ;;  %v1527_v62 = vld [vmem:[#allocation3 + $0x90] sm:$0xff]  ;;  %v1528_v63 = vld [vmem:[#allocation3 + $0x98] sm:$0xff] }
 0x272   : > { %4346 = vmatmul.mubr.bf16.gmra.mrb[216].mxu1 %v9488_v57  ;;  %4200 = vmatprep.mubr.bf16.mxu0 %v1551_v41  ;;  %v3594_v45 = vadd.f32 %v7855_v17, %v10553_v59  ;;  %v2247_v57 = vld [vmem:[#allocation4 + $0xaa] sm:$0xff] }
 0x273   : > { %v10696_v19 = vadd.f32 %v7961_v14, %v3586_v52  ;;  %4353 = vmatprep.mubr.bf16.mxu1 %v1742_v35  ;;  %8471 = vmatpush3.bf16.msra.mxu0 %v9507_v30  ;;  %v1717_v2 = vld [vmem:[#allocation3 + $0x7a] sm:$0xff]  ;;  %v1718_v35 = vld [vmem:[#allocation3 + $0x82] sm:$0xff]  ;;  %v2274_v0 = vpack.c.bf16 %v2248_v61, %v2247_v57 }
 0x274   : > { %v7856_v27 = vpop.f32.mrb[84].mxu0  ;;  %8472 = vmatprep.subr.bf16.mxu0 %v9514_v51  ;;  %8579 = vmatpush3.bf16.msra.mxu1 %v9522_v48  ;;  %v9531_v30 = vld [vmem:[%s11955_s4 + $0x3b8] sm:$0xff]  }
 0x275   : > { %v7962_v24 = vpop.f32.mrb[112].mxu1  ;;  %v7857_v23 = vpop.f32.mrb[85].mxu0  ;;  %8580 = vmatprep.subr.bf16.mxu1 %v9523_v28  ;;  %v9492_v14 = vld [vmem:[%s10408_s23 + $0x18] sm:$0xff]  ;;  %v1553_v28 = vpack.c.bf16 %v1528_v63, %v1527_v62 }
 0x276   : > { %v7858_v55 = vadd.f32 %v7857_v23, %v7856_v27  ;;  %v7963_v8 = vpop.f32.mrb[113].mxu1  ;;  %v7859_v22 = vpop.f32.mrb[86].mxu0 }
 0x277   : > { %v7964_v56 = vadd.f32 %v7963_v8, %v7962_v24  ;;  %v7965_v11 = vpop.f32.mrb[114].mxu1  ;;  %v7860_v10 = vpop.f32.mrb[87].mxu0  ;;  %8473 = vmatpush3.bf16.msra.mxu0 %v9516_v33  ;;  %v1744_v33 = vpack.c.bf16 %v1718_v35, %v1717_v2  ;;  %v1530_v8 = vld [vmem:[#allocation3 + $0xb0] sm:$0xff] }
 0x278   : > { %v7861_v15 = vadd.f32 %v7860_v10, %v7859_v22  ;;  %v7966_v9 = vpop.f32.mrb[115].mxu1  ;;  %8581 = vmatpush3.bf16.msra.mxu1 %v9524_v29  ;;  %8682 = vmatprep.subr.bf16.mxu0 %v9527_v58  ;;  %v3599_v4 = vadd.f32 %v7858_v55, %v10553_v59  ;;  %v1529_v55 = vld [vmem:[#allocation3 + $0xa8] sm:$0xff] }
 0x279   : > { %v10716_v13 = vadd.f32 %v7964_v56, %v3591_v31  ;;  %v7967_v34 = vadd.f32 %v7966_v9, %v7965_v11  ;;  %4201 = vmatmul.mubr.bf16.gmra.mrb[192].mxu0 %v2273_v3  ;;  %8582 = vmatprep.subr.bf16.mxu1 %v9526_v12  ;;  %v2249_v12 = vld [vmem:[#allocation4 + $0xc2] sm:$0xff]  ;;  %v1720_v31 = vld [vmem:[#allocation3 + $0x9a] sm:$0xff]  ;;  %v1554_v9 = vpack.c.bf16 %v1530_v8, %v1529_v55 }
 0x27a   : > { %4354 = vmatmul.mubr.bf16.gmra.mrb[220].mxu1 %v9489_v42  ;;  %4208 = vmatprep.mubr.bf16.mxu0 %v1552_v25  ;;  %v3602_v29 = vadd.f32 %v7861_v15, %v10553_v59  ;;  %v2250_v42 = vld [vmem:[#allocation4 + $0xca] sm:$0xff]  ;;  %v1719_v25 = vld [vmem:[#allocation3 + $0x92] sm:$0xff]  ;;  %v9493_v15 = vld [vmem:[%s10408_s23 + $0x20] sm:$0xff] }
 0x27b   : > { %v10721_v41 = vadd.f32 %v7967_v34, %v3594_v45  ;;  %4361 = vmatprep.mubr.bf16.mxu1 %v1743_v5  ;;  %v2275_v57 = vpack.c.bf16 %v2250_v42, %v2249_v12  ;;  %v1745_v61 = vpack.c.bf16 %v1720_v31, %v1719_v25 }
 0x27c   : > { %v7862_v20 = vpop.f32.mrb[88].mxu0  ;;  %8583 = vmatpush3.bf16.msra.mxu1 %v9528_v38 }
 0x27d   : > { %v7968_v17 = vpop.f32.mrb[116].mxu1  ;;  %v7863_v47 = vpop.f32.mrb[89].mxu0  ;;  %8584 = vmatprep.subr.bf16.mxu1 %v9530_v44 }
 0x27e   : > { %v7864_v51 = vadd.f32 %v7863_v47, %v7862_v20  ;;  %v7969_v48 = vpop.f32.mrb[117].mxu1  ;;  %v7865_v52 = vpop.f32.mrb[90].mxu0  ;;  %v1531_v47 = vld [vmem:[#allocation3 + $0xc0] sm:$0xff] }
 0x27f   : > { %v7970_v7 = vadd.f32 %v7969_v48, %v7968_v17  ;;  %v7971_v36 = vpop.f32.mrb[118].mxu1  ;;  %v7866_v32 = vpop.f32.mrb[91].mxu0  ;;  %v2251_v17 = vld [vmem:[#allocation4 + $0xda] sm:$0xff] }
 0x280   : > { %v7867_v27 = vadd.f32 %v7866_v32, %v7865_v52  ;;  %v7972_v60 = vpop.f32.mrb[119].mxu1  ;;  %8585 = vmatpush3.bf16.msra.mxu1 %v9531_v30  ;;  %v3607_v38 = vadd.f32 %v7864_v51, %v10553_v59  ;;  %v1532_v51 = vld [vmem:[#allocation3 + $0xc8] sm:$0xff]  ;;  %v2252_v52 = vld [vmem:[#allocation4 + $0xe2] sm:$0xff] }
 0x281   : > { %v10729_v58 = vadd.f32 %v7970_v7, %v3599_v4  ;;  %v7973_v24 = vadd.f32 %v7972_v60, %v7971_v36  ;;  %4209 = vmatmul.mubr.bf16.gmra.mrb[196].mxu0 %v2274_v0  ;;  %v2276_v55 = vpack.c.bf16 %v2252_v52, %v2251_v17 }
 0x282   : > { %4362 = vmatmul.mubr.bf16.gmra.mrb[224].mxu1 %v9492_v14  ;;  %4216 = vmatprep.mubr.bf16.mxu0 %v1553_v28  ;;  %v3610_v20 = vadd.f32 %v7867_v27, %v10553_v59  ;;  %v1721_v14 = vld [vmem:[#allocation3 + $0xaa] sm:$0xff]  ;;  %v1722_v28 = vld [vmem:[#allocation3 + $0xb2] sm:$0xff]  ;;  %v1555_v27 = vpack.c.bf16 %v1532_v51, %v1531_v47 }
 0x283   : > { %v10731_v23 = vadd.f32 %v7973_v24, %v3602_v29  ;;  %4369 = vmatprep.mubr.bf16.mxu1 %v1744_v33  ;;  %v9496_v33 = vld [vmem:[%s10408_s23 + $0x28] sm:$0xff]  ;;  %v1746_v8 = vpack.c.bf16 %v1722_v28, %v1721_v14 }
 0x284   : > { %v7868_v22 = vpop.f32.mrb[92].mxu0 }
 0x285   : > { %v7974_v56 = vpop.f32.mrb[120].mxu1  ;;  %v7869_v11 = vpop.f32.mrb[93].mxu0 }
 0x286   : > { %v7870_v10 = vadd.f32 %v7869_v11, %v7868_v22  ;;  %v7975_v3 = vpop.f32.mrb[121].mxu1  ;;  %v7871_v5 = vpop.f32.mrb[94].mxu0 }
 0x287   : > { %v7976_v45 = vadd.f32 %v7975_v3, %v7974_v56  ;;  %v7977_v34 = vpop.f32.mrb[122].mxu1  ;;  %v7872_v44 = vpop.f32.mrb[95].mxu0  ;;  %v1533_v3 = vld [vmem:[#allocation3 + $0xd8] sm:$0xff] }
 0x288   : > { %v7873_v62 = vadd.f32 %v7872_v44, %v7871_v5  ;;  %v7978_v63 = vpop.f32.mrb[123].mxu1  ;;  %v3615_v60 = vadd.f32 %v7870_v10, %v10553_v59  ;;  %v2253_v10 = vld [vmem:[#allocation4 + $0xf2] sm:$0xff] }
 0x289   : > { %v10736_v2 = vadd.f32 %v7976_v45, %v3607_v38  ;;  %v7979_v35 = vadd.f32 %v7978_v63, %v7977_v34  ;;  %4217 = vmatmul.mubr.bf16.gmra.mrb[200].mxu0 %v2275_v57  ;;  %v1534_v5 = vld [vmem:[#allocation3 + $0xe0] sm:$0xff]  ;;  %v1724_v45 = vld [vmem:[#allocation3 + $0xca] sm:$0xff]  ;;  %v9497_v63 = vld [vmem:[%s10408_s23 + $0x30] sm:$0xff] }
 0x28a   : > { %4370 = vmatmul.mubr.bf16.gmra.mrb[228].mxu1 %v9493_v15  ;;  %4224 = vmatprep.mubr.bf16.mxu0 %v1554_v9  ;;  %v3618_v25 = vadd.f32 %v7873_v62, %v10553_v59  ;;  %v2254_v9 = vld [vmem:[#allocation4 + $0xfa] sm:$0xff]  ;;  %v1723_v38 = vld [vmem:[#allocation3 + $0xc2] sm:$0xff] }
 0x28b   : > { %v10738_v30 = vadd.f32 %v7979_v35, %v3610_v20  ;;  %4377 = vmatprep.mubr.bf16.mxu1 %v1745_v61  ;;  %v1556_v20 = vpack.c.bf16 %v1534_v5, %v1533_v3  ;;  %v1747_v52 = vpack.c.bf16 %v1724_v45, %v1723_v38 }
 0x28c   : > { %v7874_v48 = vpop.f32.mrb[96].mxu0 }
 0x28d   : > { %v7980_v4 = vpop.f32.mrb[124].mxu1  ;;  %v7875_v7 = vpop.f32.mrb[97].mxu0 }
 0x28e   : > { %v7876_v36 = vadd.f32 %v7875_v7, %v7874_v48  ;;  %v7981_v32 = vpop.f32.mrb[125].mxu1  ;;  %v7877_v0 = vpop.f32.mrb[98].mxu0  ;;  %v2277_v48 = vpack.c.bf16 %v2254_v9, %v2253_v10 }
 0x28f   : > { %v7982_v29 = vadd.f32 %v7981_v32, %v7980_v4  ;;  %v7983_v24 = vpop.f32.mrb[126].mxu1  ;;  %v7878_v12 = vpop.f32.mrb[99].mxu0 }
 0x290   : > { %v7879_v22 = vadd.f32 %v7878_v12, %v7877_v0  ;;  %v7984_v42 = vpop.f32.mrb[127].mxu1  ;;  %v3623_v35 = vadd.f32 %v7876_v36, %v10553_v59  ;;  %v2255_v36 = vld [vmem:[#allocation4 + $0x10a] sm:$0xff]  ;;  %v1726_v12 = vld [vmem:[#allocation3 + $0xe2] sm:$0xff] }
 0x291   : > { %v10743_v31 = vadd.f32 %v7982_v29, %v3615_v60  ;;  %v7985_v56 = vadd.f32 %v7984_v42, %v7983_v24  ;;  %4225 = vmatmul.mubr.bf16.gmra.mrb[204].mxu0 %v2276_v55  ;;  %v2256_v29 = vld [vmem:[#allocation4 + $0x112] sm:$0xff]  ;;  %v1725_v24 = vld [vmem:[#allocation3 + $0xda] sm:$0xff] }
 0x292   : > { %4378 = vmatmul.mubr.bf16.gmra.mrb[232].mxu1 %v9496_v33  ;;  %4232 = vmatprep.mubr.bf16.mxu0 %v1555_v27  ;;  %v3626_v4 = vadd.f32 %v7879_v22, %v10553_v59  ;;  %v1535_v33 = vld [vmem:[#allocation3 + $0xf0] sm:$0xff]  ;;  %v1536_v27 = vld [vmem:[#allocation3 + $0xf8] sm:$0xff]  ;;  %v2278_v38 = vpack.c.bf16 %v2256_v29, %v2255_v36  ;;  %v1748_v45 = vpack.c.bf16 %v1726_v12, %v1725_v24 }
 0x293   : > { %v10745_v11 = vadd.f32 %v7985_v56, %v3618_v25  ;;  %4385 = vmatprep.mubr.bf16.mxu1 %v1746_v8  ;;  %v9500_v56 = vld [vmem:[%s10408_s23 + $0x38] sm:$0xff]  ;;  %v1557_v10 = vpack.c.bf16 %v1536_v27, %v1535_v33  ;;  %v9501_v33 = vld [vmem:[%s10408_s23 + $0x40] sm:$0xff] }
 0x294   : > { %v7880_v15 = vpop.f32.mrb[100].mxu0 }
 0x295   : > { %v7986_v34 = vpop.f32.mrb[128].mxu1  ;;  %v7881_v44 = vpop.f32.mrb[101].mxu0 }
 0x296   : > { %v7882_v57 = vadd.f32 %v7881_v44, %v7880_v15  ;;  %v7987_v61 = vpop.f32.mrb[129].mxu1  ;;  %v7883_v62 = vpop.f32.mrb[102].mxu0 }
 0x297   : > { %v7988_v17 = vadd.f32 %v7987_v61, %v7986_v34  ;;  %v7989_v47 = vpop.f32.mrb[130].mxu1  ;;  %v7884_v51 = vpop.f32.mrb[103].mxu0 }
 0x298   : > { %v7885_v14 = vadd.f32 %v7884_v51, %v7883_v62  ;;  %v7990_v28 = vpop.f32.mrb[131].mxu1  ;;  %v3631_v3 = vadd.f32 %v7882_v57, %v10553_v59  ;;  %v2257_v57 = vld [vmem:[#allocation4 + $0x122] sm:$0xff]  ;;  %v2258_v51 = vld [vmem:[#allocation4 + $0x12a] sm:$0xff] }
 0x299   : > { %v10750_v7 = vadd.f32 %v7988_v17, %v3623_v35  ;;  %v7991_v32 = vadd.f32 %v7990_v28, %v7989_v47  ;;  %4233 = vmatmul.mubr.bf16.gmra.mrb[208].mxu0 %v2277_v48  ;;  %v1537_v35 = vld [vmem:[#allocation3 + $0x108] sm:$0xff]  ;;  %v1538_v17 = vld [vmem:[#allocation3 + $0x110] sm:$0xff] }
 0x29a   : > { %4386 = vmatmul.mubr.bf16.gmra.mrb[236].mxu1 %v9497_v63  ;;  %4240 = vmatprep.mubr.bf16.mxu0 %v1556_v20  ;;  %v3634_v61 = vadd.f32 %v7885_v14, %v10553_v59  ;;  %v1727_v48 = vld [vmem:[#allocation3 + $0xf2] sm:$0xff]  ;;  %v1558_v27 = vpack.c.bf16 %v1538_v17, %v1537_v35 }
 0x29b   : > { %v10752_v0 = vadd.f32 %v7991_v32, %v3626_v4  ;;  %4393 = vmatprep.mubr.bf16.mxu1 %v1747_v52  ;;  %v1728_v52 = vld [vmem:[#allocation3 + $0xfa] sm:$0xff]  ;;  %v9504_v17 = vld [vmem:[%s10408_s23 + $0x48] sm:$0xff] }
 0x29c   : > { %v7886_v60 = vpop.f32.mrb[104].mxu0 }
 0x29d   : > { %v7992_v55 = vpop.f32.mrb[132].mxu1  ;;  %v7887_v8 = vpop.f32.mrb[105].mxu0 }
 0x29e   : > { %v7888_v22 = vadd.f32 %v7887_v8, %v7886_v60  ;;  %v7993_v42 = vpop.f32.mrb[133].mxu1  ;;  %v7889_v25 = vpop.f32.mrb[106].mxu0  ;;  %v1749_v8 = vpack.c.bf16 %v1728_v52, %v1727_v48 }
 0x29f   : > { %v7994_v5 = vadd.f32 %v7993_v42, %v7992_v55  ;;  %v7995_v15 = vpop.f32.mrb[134].mxu1  ;;  %v7890_v9 = vpop.f32.mrb[107].mxu0  ;;  %v2279_v55 = vpack.c.bf16 %v2258_v51, %v2257_v57  ;;  %v9624_v51 = vld [vmem:[%s11956_s5] ss:$0 sm:$0xff] }
 0x2a0   : > { %v7891_v34 = vadd.f32 %v7890_v9, %v7889_v25  ;;  %v7996_v44 = vpop.f32.mrb[135].mxu1  ;;  %v3639_v60 = vadd.f32 %v7888_v22, %v10553_v59  ;;  %v2259_v22 = vld [vmem:[#allocation4 + $0x13a] sm:$0xff] }
 0x2a1   : > { %v10757_v62 = vadd.f32 %v7994_v5, %v3631_v3  ;;  %v7997_v63 = vadd.f32 %v7996_v44, %v7995_v15  ;;  %4241 = vmatmul.mubr.bf16.gmra.mrb[212].mxu0 %v2278_v38  ;;  %v1539_v15 = vld [vmem:[#allocation3 + $0x120] sm:$0xff]  ;;  %v1540_v9 = vld [vmem:[#allocation3 + $0x128] sm:$0xff] }
 0x2a2   : > { %4394 = vmatmul.mubr.bf16.gmra.mrb[240].mxu1 %v9500_v56  ;;  %4248 = vmatprep.mubr.bf16.mxu0 %v1557_v10  ;;  %v3642_v56 = vadd.f32 %v7891_v34, %v10553_v59  ;;  %v1729_v44 = vld [vmem:[#allocation3 + $0x10a] sm:$0xff] }
 0x2a3   : > { %v10759_v20 = vadd.f32 %v7997_v63, %v3634_v61  ;;  %4401 = vmatprep.mubr.bf16.mxu1 %v1748_v45  ;;  %v2260_v45 = vld [vmem:[#allocation4 + $0x142] sm:$0xff] }
 0x2a4   : > { %v7892_v47 = vpop.f32.mrb[108].mxu0  ;;  %v1730_v61 = vld [vmem:[#allocation3 + $0x112] sm:$0xff] }
 0x2a5   : > { %v7998_v28 = vpop.f32.mrb[136].mxu1  ;;  %v7893_v4 = vpop.f32.mrb[109].mxu0 }
 0x2a6   : > { %v7894_v14 = vadd.f32 %v7893_v4, %v7892_v47  ;;  %v7999_v32 = vpop.f32.mrb[137].mxu1  ;;  %v7895_v36 = vpop.f32.mrb[110].mxu0  ;;  %v1559_v47 = vpack.c.bf16 %v1540_v9, %v1539_v15  ;;  %v1732_v15 = vld [vmem:[#allocation3 + $0x12a] sm:$0xff] }
 0x2a7   : > { %v8000_v29 = vadd.f32 %v7999_v32, %v7998_v28  ;;  %v8001_v24 = vpop.f32.mrb[138].mxu1  ;;  %v7896_v12 = vpop.f32.mrb[111].mxu0  ;;  %v2280_v32 = vpack.c.bf16 %v2260_v45, %v2259_v22  ;;  %v1731_v22 = vld [vmem:[#allocation3 + $0x122] sm:$0xff] }
 0x2a8   : > { %v7897_v42 = vadd.f32 %v7896_v12, %v7895_v36  ;;  %v8002_v25 = vpop.f32.mrb[139].mxu1  ;;  %v3647_v48 = vadd.f32 %v9624_v51, %v7894_v14  ;;  %v1750_v36 = vpack.c.bf16 %v1730_v61, %v1729_v44  ;;  %v9505_v61 = vld [vmem:[%s10408_s23 + $0x50] sm:$0xff] }
 0x2a9   : > { %v10764_v10 = vadd.f32 %v8000_v29, %v3639_v60  ;;  %v8003_v3 = vadd.f32 %v8002_v25, %v8001_v24  ;;  %4249 = vmatmul.mubr.bf16.gmra.mrb[216].mxu0 %v2279_v55  ;;  %v1541_v25 = vld [vmem:[#allocation3 + $0x138] sm:$0xff] }
 0x2aa   : > { %4402 = vmatmul.mubr.bf16.gmra.mrb[244].mxu1 %v9501_v33  ;;  %4256 = vmatprep.mubr.bf16.mxu0 %v1558_v27  ;;  %v3650_v29 = vadd.f32 %v9624_v51, %v7897_v42 }
 0x2ab   : > { %v10766_v5 = vadd.f32 %v8003_v3, %v3642_v56  ;;  %4409 = vmatprep.mubr.bf16.mxu1 %v1749_v8  ;;  %v2261_v8 = vld [vmem:[#allocation4 + $0x152] sm:$0xff] }
 0x2ac   : > { %v8026_v38 = vpop.f32.mrb[112].mxu0  ;;  %v1542_v56 = vld [vmem:[#allocation3 + $0x140] sm:$0xff] }
 0x2ad   : > { %v8004_v63 = vpop.f32.mrb[140].mxu1  ;;  %v8027_v57 = vpop.f32.mrb[113].mxu0 }
 0x2ae   : > { %v8005_v59 = vpop.f32.mrb[141].mxu1  ;;  %v8028_v34 = vadd.f32 %v8027_v57, %v8026_v38  ;;  %v8029_v35 = vpop.f32.mrb[114].mxu0 }
 0x2af   : > { %v8006_v52 = vadd.f32 %v8005_v59, %v8004_v63  ;;  %v8007_v28 = vpop.f32.mrb[142].mxu1  ;;  %v8030_v4 = vpop.f32.mrb[115].mxu0 }
 0x2b0   : > { %v3849_v33 = vadd.f32 %v8028_v34, %v10560_v18  ;;  %v8008_v27 = vpop.f32.mrb[143].mxu1  ;;  %v8031_v60 = vadd.f32 %v8030_v4, %v8029_v35  ;;  %v2262_v18 = vld [vmem:[#allocation4 + $0x15a] sm:$0xff]  ;;  %v1751_v35 = vpack.c.bf16 %v1732_v15, %v1731_v22 }
 0x2b1   : > { %v10773_v24 = vadd.f32 %v8006_v52, %v3647_v48  ;;  %v8009_v12 = vadd.f32 %v8008_v27, %v8007_v28  ;;  %4257 = vmatmul.mubr.bf16.gmra.mrb[220].mxu0 %v2280_v32  ;;  %v2281_v34 = vpack.c.bf16 %v2262_v18, %v2261_v8  ;;  %v2263_v32 = vld [vmem:[#allocation4 + $0x16a] sm:$0xff] }
 0x2b2   : > { %v3852_v55 = vadd.f32 %v8031_v60, %v10565_v6  ;;  %4410 = vmatmul.mubr.bf16.gmra.mrb[248].mxu1 %v9504_v17  ;;  %4264 = vmatprep.mubr.bf16.mxu0 %v1559_v47  ;;  %v1560_v6 = vpack.c.bf16 %v1542_v56, %v1541_v25  ;;  %v1544_v27 = vld [vmem:[#allocation3 + $0x158] sm:$0xff]  ;;  %v9508_v18 = vld [vmem:[%s10408_s23 + $0x58] sm:$0xff] }
 0x2b3   : > { %v10776_v14 = vadd.f32 %v8009_v12, %v3650_v29  ;;  %4417 = vmatprep.mubr.bf16.mxu1 %v1750_v36  ;;  %v1543_v36 = vld [vmem:[#allocation3 + $0x150] sm:$0xff]  ;;  %v2264_v29 = vld [vmem:[#allocation4 + $0x172] sm:$0xff] }
 0x2b4   : > { %v8032_v3 = vpop.f32.mrb[116].mxu0  ;;  %v1734_v12 = vld [vmem:[#allocation3 + $0x142] sm:$0xff] }
 0x2b5   : > { %v8138_v42 = vpop.f32.mrb[144].mxu1  ;;  %v8033_v9 = vpop.f32.mrb[117].mxu0 }
 0x2b6   : > { %v8034_v38 = vadd.f32 %v8033_v9, %v8032_v3  ;;  %v8139_v45 = vpop.f32.mrb[145].mxu1  ;;  %v8035_v44 = vpop.f32.mrb[118].mxu0 }
 0x2b7   : > { %v8140_v63 = vadd.f32 %v8139_v45, %v8138_v42  ;;  %v8141_v57 = vpop.f32.mrb[146].mxu1  ;;  %v8036_v59 = vpop.f32.mrb[119].mxu0 }
 0x2b8   : > { %v3857_v17 = vadd.f32 %v8034_v38, %v10571_v37  ;;  %v8037_v47 = vadd.f32 %v8036_v59, %v8035_v44  ;;  %v8142_v51 = vpop.f32.mrb[147].mxu1  ;;  %v1733_v37 = vld [vmem:[#allocation3 + $0x13a] sm:$0xff]  ;;  %v2265_v59 = vld [vmem:[#allocation4 + $0x182] sm:$0xff] }
 0x2b9   : > { %v10780_v48 = vadd.f32 %v8140_v63, %v3849_v33  ;;  %v8143_v52 = vadd.f32 %v8142_v51, %v8141_v57  ;;  %4265 = vmatmul.mubr.bf16.gmra.mrb[224].mxu0 %v2281_v34  ;;  %v1752_v9 = vpack.c.bf16 %v1734_v12, %v1733_v37  ;;  %v1545_v34 = vld [vmem:[#allocation3 + $0x168] sm:$0xff]  ;;  %v1735_v51 = vld [vmem:[#allocation3 + $0x152] sm:$0xff] }
 0x2ba   : > { %v3860_v28 = vadd.f32 %v8037_v47, %v10576_v46  ;;  %4418 = vmatmul.mubr.bf16.gmra.mrb[252].mxu1 %v9505_v61  ;;  %4272 = vmatprep.mubr.bf16.mxu0 %v1560_v6  ;;  %v1561_v46 = vpack.c.bf16 %v1544_v27, %v1543_v36 }
 0x2bb   : > { %v10783_v4 = vadd.f32 %v8143_v52, %v3852_v55  ;;  %4425 = vmatprep.mubr.bf16.mxu1 %v1751_v35  ;;  %v2282_v55 = vpack.c.bf16 %v2264_v29, %v2263_v32  ;;  %v1546_v35 = vld [vmem:[#allocation3 + $0x170] sm:$0xff]  ;;  %v1736_v52 = vld [vmem:[#allocation3 + $0x15a] sm:$0xff] }
 0x2bc   : > { %v8038_v60 = vpop.f32.mrb[120].mxu0  ;;  %v1562_v29 = vpack.c.bf16 %v1546_v35, %v1545_v34  ;;  %v1737_v34 = vld [vmem:[#allocation3 + $0x16a] sm:$0xff] }
 0x2bd   : > { %v8144_v8 = vpop.f32.mrb[148].mxu1  ;;  %v8039_v33 = vpop.f32.mrb[121].mxu0 }
 0x2be   : > { %v8040_v25 = vadd.f32 %v8039_v33, %v8038_v60  ;;  %v8145_v56 = vpop.f32.mrb[149].mxu1  ;;  %v8041_v3 = vpop.f32.mrb[122].mxu0  ;;  %v1753_v33 = vpack.c.bf16 %v1736_v52, %v1735_v51 }
 0x2bf   : > { %v8146_v22 = vadd.f32 %v8145_v56, %v8144_v8  ;;  %v8147_v15 = vpop.f32.mrb[150].mxu1  ;;  %v8042_v42 = vpop.f32.mrb[123].mxu0 }
 0x2c0   : > { %v3865_v38 = vadd.f32 %v8040_v25, %v10585_v26  ;;  %v8043_v45 = vadd.f32 %v8042_v42, %v8041_v3  ;;  %v8148_v44 = vpop.f32.mrb[151].mxu1  ;;  %v2266_v26 = vld [vmem:[#allocation4 + $0x18a] sm:$0xff] }
 0x2c1   : > { %v10787_v61 = vadd.f32 %v8146_v22, %v3857_v17  ;;  %v8149_v6 = vadd.f32 %v8148_v44, %v8147_v15  ;;  %4273 = vmatmul.mubr.bf16.gmra.mrb[228].mxu0 %v2282_v55  ;;  %v2283_v8 = vpack.c.bf16 %v2266_v26, %v2265_v59  ;;  %v7561_v25 = vld [vmem:[%s10408_s23 + $0x78] sm:$0xff]  }
 0x2c2   : > { %v3868_v63 = vadd.f32 %v8043_v45, %v10589_v49  ;;  %4426 = vmatmul.mubr.bf16.gmra.mrb[0].mxu1 %v9508_v18  ;;  %4280 = vmatprep.mubr.bf16.mxu0 %v1561_v46  ;;  %v9513_v49 = vld [vmem:[%s10408_s23 + $0x60] sm:$0xff]  ;;  %v7530_v46 = vunpack.c.l.bf16 %v7561_v25  ;;  %v7531_v22 = vunpack.c.h.bf16 %v7561_v25  ;;  %v2268_v45 = vld [vmem:[#allocation4 + $0x1a2] sm:$0xff]  ;;  %v1804_v25 = vld [vmem:[#allocation3 + $0x20] sm:$0xff] }
 0x2c3   : > { %v10790_v57 = vadd.f32 %v8149_v6, %v3860_v28  ;;  %4433 = vmatprep.mubr.bf16.mxu1 %v1752_v9  ;;  %v2267_v9 = vld [vmem:[#allocation4 + $0x19a] sm:$0xff]  ;;  %v1900_v6 = vld [vmem:[#allocation3 + $0x21] sm:$0xff] }
 0x2c4   : > { %v8044_v47 = vpop.f32.mrb[124].mxu0  ;;  %576 = vst [vmem:[#allocation3 + $0x181] sm:$0xff] %v7530_v46  ;;  %577 = vst [vmem:[#allocation3 + $0x189] sm:$0xff] %v7531_v22  ;;  %v2284_v26 = vpack.c.bf16 %v2268_v45, %v2267_v9  ;;  %v1902_v22 = vld [vmem:[#allocation3 + $0x39] sm:$0xff] }
 0x2c5   : > { %v8150_v17 = vpop.f32.mrb[152].mxu1  ;;  %v8045_v32 = vpop.f32.mrb[125].mxu0 }
 0x2c6   : > { %v8046_v36 = vadd.f32 %v8045_v32, %v8044_v47  ;;  %v8151_v27 = vpop.f32.mrb[153].mxu1  ;;  %v8047_v60 = vpop.f32.mrb[126].mxu0 }
 0x2c7   : > { %v8152_v37 = vadd.f32 %v8151_v27, %v8150_v17  ;;  %v8153_v12 = vpop.f32.mrb[154].mxu1  ;;  %v8048_v28 = vpop.f32.mrb[127].mxu0  ;;  %v9520_v17 = vld [vmem:[%s10408_s23 + $0x68] sm:$0xff] }
 0x2c8   : > { %v3873_v56 = vadd.f32 %v8046_v36, %v10594_v43  ;;  %v8049_v3 = vadd.f32 %v8048_v28, %v8047_v60  ;;  %v8154_v18 = vpop.f32.mrb[155].mxu1  ;;  %v1899_v43 = vld [vmem:[#allocation3 + $0x19] sm:$0xff] }
 0x2c9   : > { %v10795_v15 = vadd.f32 %v8152_v37, %v3865_v38  ;;  %v8155_v42 = vadd.f32 %v8154_v18, %v8153_v12  ;;  %4281 = vmatmul.mubr.bf16.gmra.mrb[232].mxu0 %v2283_v8  ;;  %v1738_v38 = vld [vmem:[#allocation3 + $0x172] sm:$0xff]  ;;  %v1931_v32 = vpack.c.bf16 %v1900_v6, %v1899_v43 }
 0x2ca   : > { %v3876_v55 = vadd.f32 %v8049_v3, %v10598_v21  ;;  %4434 = vmatmul.mubr.bf16.gmra.mrb[4].mxu1 %v9513_v49  ;;  %4288 = vmatprep.mubr.bf16.mxu0 %v1562_v29  ;;  %v1754_v49 = vpack.c.bf16 %v1738_v38, %v1737_v34  ;;  %v1901_v18 = vld [vmem:[#allocation3 + $0x31] sm:$0xff]  ;;  %v9529_v34 = vld [vmem:[%s11955_s4 + $0x400] sm:$0xff]  }
 0x2cb   : > { %v10798_v44 = vadd.f32 %v8155_v42, %v3868_v63  ;;  %4441 = vmatprep.mubr.bf16.mxu1 %v1753_v33  ;;  %v1803_v33 = vld [vmem:[#allocation3 + $0x18] sm:$0xff] }
 0x2cc   : > { %v8050_v59 = vpop.f32.mrb[128].mxu0  ;;  %v2094_v42 = vld [vmem:[#allocation3 + $0x38] sm:$0xff]  ;;  %v1835_v45 = vpack.c.bf16 %v1804_v25, %v1803_v33  ;;  %v2096_v25 = vld [vmem:[#allocation3 + $0x50] sm:$0xff] }
 0x2cd   : > { %v8156_v35 = vpop.f32.mrb[156].mxu1  ;;  %v8051_v47 = vpop.f32.mrb[129].mxu0 }
 0x2ce   : > { %v8052_v51 = vadd.f32 %v8051_v47, %v8050_v59  ;;  %v8157_v21 = vpop.f32.mrb[157].mxu1  ;;  %v8053_v52 = vpop.f32.mrb[130].mxu0  ;;  %v1932_v47 = vpack.c.bf16 %v1902_v22, %v1901_v18 }
 0x2cf   : > { %v8158_v36 = vadd.f32 %v8157_v21, %v8156_v35  ;;  %v8159_v27 = vpop.f32.mrb[158].mxu1  ;;  %v8054_v60 = vpop.f32.mrb[131].mxu0 }
 0x2d0   : > { %v3881_v63 = vadd.f32 %v8052_v51, %v10608_v50  ;;  %v8055_v29 = vadd.f32 %v8054_v60, %v8053_v52  ;;  %v8160_v37 = vpop.f32.mrb[159].mxu1  ;;  %v2093_v50 = vld [vmem:[#allocation3 + $0x30] sm:$0xff]  ;;  %v1995_v60 = vld [vmem:[#allocation3 + $0x1a] sm:$0xff] }
 0x2d1   : > { %v10802_v12 = vadd.f32 %v8158_v36, %v3873_v56  ;;  %v8161_v28 = vadd.f32 %v8160_v37, %v8159_v27  ;;  %4289 = vmatmul.mubr.bf16.gmra.mrb[236].mxu0 %v2284_v26  ;;  %v2125_v26 = vpack.c.bf16 %v2094_v42, %v2093_v50  ;;  %v1903_v37 = vld [vmem:[#allocation3 + $0x49] sm:$0xff] }
 0x2d2   : > { %v3884_v8 = vadd.f32 %v8055_v29, %v10613_v1  ;;  %4442 = vmatmul.mubr.bf16.gmra.mrb[8].mxu1 %v9520_v17  ;;  %4490 = vmatprep.mubr.bf16.mxu0 %v1931_v32  ;;  %v9525_v1 = vld [vmem:[%s10408_s23 + $0x70] sm:$0xff]  ;;  %v9532_v17 = vld [vmem:[%s11955_s4 + $0x448] sm:$0xff]  }
 0x2d3   : > { %v10805_v3 = vadd.f32 %v8161_v28, %v3876_v55  ;;  %4449 = vmatprep.mubr.bf16.mxu1 %v1754_v49  ;;  %v1996_v49 = vld [vmem:[#allocation3 + $0x22] sm:$0xff]  ;;  %v1904_v28 = vld [vmem:[#allocation3 + $0x51] sm:$0xff] }
 0x2d4   : > { %v8056_v46 = vpop.f32.mrb[132].mxu0 }
 0x2d5   : > { %v8162_v9 = vpop.f32.mrb[160].mxu1  ;;  %v8057_v56 = vpop.f32.mrb[133].mxu0 }
 0x2d6   : > { %v8058_v43 = vadd.f32 %v8057_v56, %v8056_v46  ;;  %v8163_v6 = vpop.f32.mrb[161].mxu1  ;;  %v8059_v59 = vpop.f32.mrb[134].mxu0 }
 0x2d7   : > { %v8164_v38 = vadd.f32 %v8163_v6, %v8162_v9  ;;  %v8165_v55 = vpop.f32.mrb[162].mxu1  ;;  %v8060_v35 = vpop.f32.mrb[135].mxu0  ;;  %v2027_v9 = vpack.c.bf16 %v1996_v49, %v1995_v60  ;;  %v1906_v60 = vld [vmem:[#allocation3 + $0x69] sm:$0xff]  ;;  %v9537_v49 = vld [vmem:[%s11955_s4 + $0x418] sm:$0xff]  }
 0x2d8   : > { %v3889_v51 = vadd.f32 %v8058_v43, %v10629_v39  ;;  %v8061_v21 = vadd.f32 %v8060_v35, %v8059_v59  ;;  %v8166_v52 = vpop.f32.mrb[163].mxu1  ;;  %v9533_v39 = vld [vmem:[%s11955_s4 + $0x408] sm:$0xff]   ;;  %v9535_v59 = vld [vmem:[%s11955_s4 + $0x410] sm:$0xff]  }
 0x2d9   : > { %v10815_v32 = vadd.f32 %v8164_v38, %v3881_v63  ;;  %v8167_v36 = vadd.f32 %v8166_v52, %v8165_v55  ;;  %4491 = vmatmul.mubr.bf16.vlgmr.msra.gmra.mrb[240].mxu0 %v1835_v45  ;;  %v9534_v63 = vld [vmem:[%s11955_s4 + $0x450] sm:$0xff]   ;;  %v9536_v55 = vld [vmem:[%s11955_s4 + $0x458] sm:$0xff]  }
 0x2da   : > { %v3892_v27 = vadd.f32 %v8061_v21, %v10634_v40  ;;  %4450 = vmatmul.mubr.bf16.gmra.mrb[12].mxu1 %v9525_v1  ;;  %8683 = vmatpush3.bf16.msra.mxu0 %v9529_v34  ;;  %v2095_v40 = vld [vmem:[#allocation3 + $0x48] sm:$0xff]  ;;  %v1997_v52 = vld [vmem:[#allocation3 + $0x32] sm:$0xff] }
 0x2db   : > { %v10821_v29 = vadd.f32 %v8167_v36, %v3884_v8  ;;  %4498 = vmatprep.mubr.bf16.mxu0 %v1932_v47  ;;  %4651 = vmatprep.mubr.bf16.mxu1 %v2125_v26  ;;  %v1933_v8 = vpack.c.bf16 %v1904_v28, %v1903_v37  ;;  %v2126_v6 = vpack.c.bf16 %v2096_v25, %v2095_v40  ;;  %v2098_v37 = vld [vmem:[#allocation3 + $0x68] sm:$0xff] }
 0x2dc   : > { %v8062_v33 = vpop.f32.mrb[136].mxu0  ;;  %8684 = vmatprep.subr.bf16.mxu0 %v9532_v17  ;;  %v1998_v17 = vld [vmem:[#allocation3 + $0x3a] sm:$0xff] }
 0x2dd   : > { %v8168_v18 = vpop.f32.mrb[164].mxu1  ;;  %v8063_v46 = vpop.f32.mrb[137].mxu0  ;;  %v10844_v40 = vpack.c.bf16 %v1998_v17, %v1997_v52  ;;  %v1908_v52 = vld [vmem:[#allocation3 + $0x81] sm:$0xff] }
 0x2de   : > { %v8064_v22 = vadd.f32 %v8063_v46, %v8062_v33  ;;  %v8169_v50 = vpop.f32.mrb[165].mxu1  ;;  %v8065_v42 = vpop.f32.mrb[138].mxu0  ;;  %8685 = vmatpush3.bf16.msra.mxu0 %v9533_v39  ;;  %v2097_v39 = vld [vmem:[#allocation3 + $0x60] sm:$0xff] }
 0x2df   : > { %v8170_v56 = vadd.f32 %v8169_v50, %v8168_v18  ;;  %v8171_v45 = vpop.f32.mrb[166].mxu1  ;;  %v8066_v43 = vpop.f32.mrb[139].mxu0  ;;  %8686 = vmatprep.subr.bf16.mxu0 %v9534_v63  ;;  %v2127_v50 = vpack.c.bf16 %v2098_v37, %v2097_v39 }
 0x2e0   : > { %v3897_v1 = vadd.f32 %v8064_v22, %v10660_v53  ;;  %v8067_v34 = vadd.f32 %v8066_v43, %v8065_v42  ;;  %v8172_v38 = vpop.f32.mrb[167].mxu1  ;;  %v1905_v53 = vld [vmem:[#allocation3 + $0x61] sm:$0xff] }
 0x2e1   : > { %v10833_v35 = vadd.f32 %v8170_v56, %v3889_v51  ;;  %v8173_v47 = vadd.f32 %v8172_v38, %v8171_v45  ;;  %4499 = vmatmul.mubr.bf16.gmra.mrb[244].mxu0 %v2125_v26  ;;  %v1934_v25 = vpack.c.bf16 %v1906_v60, %v1905_v53  ;;  %v9539_v42 = vld [vmem:[%s11955_s4 + $0x420] sm:$0xff]   ;;  %v9540_v45 = vld [vmem:[%s11955_s4 + $0x468] sm:$0xff]   ;;  %v2099_v53 = vld [vmem:[#allocation3 + $0x78] sm:$0xff] }
 0x2e2   : > { %v3900_v21 = vadd.f32 %v8067_v34, %v10665_v16  ;;  %4652 = vmatmul.mubr.bf16.vlgmr.msra.gmra.mrb[16].mxu1 %v2027_v9  ;;  %4506 = vmatprep.mubr.bf16.mxu0 %v1933_v8  ;;  %v9538_v16 = vld [vmem:[%s11955_s4 + $0x460] sm:$0xff]  }
 0x2e3   : > { %v10836_v36 = vadd.f32 %v8173_v47, %v3892_v27  ;;  %4659 = vmatprep.mubr.bf16.mxu1 %v2126_v6  ;;  %8687 = vmatpush3.bf16.msra.mxu0 %v9535_v59  ;;  %v1999_v38 = vld [vmem:[#allocation3 + $0x4a] sm:$0xff] }
 0x2e4   : > { %v8068_v51 = vpop.f32.mrb[140].mxu0  ;;  %8688 = vmatprep.subr.bf16.mxu0 %v9536_v55  ;;  %v2000_v55 = vld [vmem:[#allocation3 + $0x52] sm:$0xff] }
 0x2e5   : > { %v8174_v26 = vpop.f32.mrb[168].mxu1  ;;  %v8069_v28 = vpop.f32.mrb[141].mxu0  ;;  %v10865_v37 = vpack.c.bf16 %v2000_v55, %v1999_v38  ;;  %v1909_v38 = vld [vmem:[#allocation3 + $0x91] sm:$0xff]  ;;  %v1910_v55 = vld [vmem:[#allocation3 + $0x99] sm:$0xff] }
 0x2e6   : > { %v8070_v27 = vadd.f32 %v8069_v28, %v8068_v51  ;;  %v8175_v63 = vpop.f32.mrb[169].mxu1  ;;  %v8071_v33 = vpop.f32.mrb[142].mxu0 }
 0x2e7   : > { %v8176_v18 = vadd.f32 %v8175_v63, %v8174_v26  ;;  %v8177_v46 = vpop.f32.mrb[170].mxu1  ;;  %v8072_v22 = vpop.f32.mrb[143].mxu0  ;;  %8689 = vmatpush3.bf16.msra.mxu0 %v9537_v49 }
 0x2e8   : > { %v3905_v9 = vadd.f32 %v8070_v27, %v10691_v54  ;;  %v8073_v8 = vadd.f32 %v8072_v22, %v8071_v33  ;;  %v8178_v56 = vpop.f32.mrb[171].mxu1  ;;  %8690 = vmatprep.subr.bf16.mxu0 %v9538_v16  ;;  %v1907_v54 = vld [vmem:[#allocation3 + $0x79] sm:$0xff] }
 0x2e9   : > { %v10853_v43 = vadd.f32 %v8176_v18, %v3897_v1  ;;  %v8179_v59 = vadd.f32 %v8178_v56, %v8177_v46  ;;  %4507 = vmatmul.mubr.bf16.gmra.mrb[248].mxu0 %v2126_v6  ;;  %v9541_v1 = vld [vmem:[%s11955_s4 + $0x428] sm:$0xff]   ;;  %v2100_v6 = vld [vmem:[#allocation3 + $0x80] sm:$0xff]  ;;  %v10867_v16 = vpack.c.bf16 %v1908_v52, %v1907_v54  ;;  %v9543_v33 = vld [vmem:[%s11955_s4 + $0x430] sm:$0xff]  }
 0x2ea   : > { %v3908_v34 = vadd.f32 %v8073_v8, %v10696_v19  ;;  %4660 = vmatmul.mubr.bf16.gmra.mrb[20].mxu1 %v10844_v40  ;;  %4514 = vmatprep.mubr.bf16.mxu0 %v1934_v25  ;;  %v9542_v19 = vld [vmem:[%s11955_s4 + $0x470] sm:$0xff]   ;;  %v2128_v63 = vpack.c.bf16 %v2100_v6, %v2099_v53  ;;  %v9544_v22 = vld [vmem:[%s11955_s4 + $0x478] sm:$0xff]  }
 0x2eb   : > { %v10857_v47 = vadd.f32 %v8179_v59, %v3900_v21  ;;  %4667 = vmatprep.mubr.bf16.mxu1 %v2127_v50  ;;  %8691 = vmatpush3.bf16.msra.mxu0 %v9539_v42  ;;  %v2002_v59 = vld [vmem:[#allocation3 + $0x6a] sm:$0xff]  ;;  %v2102_v52 = vld [vmem:[#allocation3 + $0x98] sm:$0xff] }
 0x2ec   : > { %v8074_v17 = vpop.f32.mrb[144].mxu0  ;;  %8692 = vmatprep.subr.bf16.mxu0 %v9540_v45  ;;  %v2001_v45 = vld [vmem:[#allocation3 + $0x62] sm:$0xff] }
 0x2ed   : > { %v8180_v60 = vpop.f32.mrb[172].mxu1  ;;  %v8075_v49 = vpop.f32.mrb[145].mxu0 }
 0x2ee   : > { %v8076_v21 = vadd.f32 %v8075_v49, %v8074_v17  ;;  %v8181_v51 = vpop.f32.mrb[173].mxu1  ;;  %v8077_v39 = vpop.f32.mrb[146].mxu0 }
 0x2ef   : > { %v8182_v26 = vadd.f32 %v8181_v51, %v8180_v60  ;;  %v8183_v28 = vpop.f32.mrb[174].mxu1  ;;  %v8078_v27 = vpop.f32.mrb[147].mxu0  ;;  %8693 = vmatpush3.bf16.msra.mxu0 %v9541_v1 }
 0x2f0   : > { %v3913_v25 = vadd.f32 %v8076_v21, %v10716_v13  ;;  %v8079_v18 = vadd.f32 %v8078_v27, %v8077_v39  ;;  %v8184_v46 = vpop.f32.mrb[175].mxu1  ;;  %8694 = vmatprep.subr.bf16.mxu0 %v9542_v19  ;;  %v10886_v19 = vpack.c.bf16 %v2002_v59, %v2001_v45  ;;  %v1911_v45 = vld [vmem:[#allocation3 + $0xa9] sm:$0xff]  ;;  %v1912_v59 = vld [vmem:[#allocation3 + $0xb1] sm:$0xff] }
 0x2f1   : > { %v10876_v42 = vadd.f32 %v8182_v26, %v3905_v9  ;;  %v8185_v8 = vadd.f32 %v8184_v46, %v8183_v28  ;;  %4515 = vmatmul.mubr.bf16.gmra.mrb[252].mxu0 %v2127_v50  ;;  %v9545_v9 = vld [vmem:[%s11955_s4 + $0x438] sm:$0xff]   ;;  %v2101_v50 = vld [vmem:[#allocation3 + $0x90] sm:$0xff] }
 0x2f2   : > { %v3916_v56 = vadd.f32 %v8079_v18, %v10721_v41  ;;  %4668 = vmatmul.mubr.bf16.gmra.mrb[24].mxu1 %v10865_v37  ;;  %4522 = vmatprep.mubr.bf16.mxu0 %v10867_v16  ;;  %v2129_v51 = vpack.c.bf16 %v2102_v52, %v2101_v50  ;;  %v2003_v46 = vld [vmem:[#allocation3 + $0x7a] sm:$0xff]  ;;  %v10900_v52 = vpack.c.bf16 %v1912_v59, %v1911_v45  ;;  %v1914_v45 = vld [vmem:[#allocation3 + $0xc9] sm:$0xff] }
 0x2f3   : > { %v10881_v13 = vadd.f32 %v8185_v8, %v3908_v34  ;;  %4675 = vmatprep.mubr.bf16.mxu1 %v2128_v63  ;;  %8695 = vmatpush3.bf16.msra.mxu0 %v9543_v33  ;;  %v10888_v34 = vpack.c.bf16 %v1910_v55, %v1909_v38  ;;  %v2004_v8 = vld [vmem:[#allocation3 + $0x82] sm:$0xff]  ;;  %v2104_v55 = vld [vmem:[#allocation3 + $0xb0] sm:$0xff] }
 0x2f4   : > { %v8080_v54 = vpop.f32.mrb[148].mxu0  ;;  %8696 = vmatprep.subr.bf16.mxu0 %v9544_v22  ;;  %v2103_v38 = vld [vmem:[#allocation3 + $0xa8] sm:$0xff]  ;;  %v2105_v59 = vld [vmem:[#allocation3 + $0xc0] sm:$0xff] }
 0x2f5   : > { %v8186_v41 = vpop.f32.mrb[176].mxu1  ;;  %v8081_v1 = vpop.f32.mrb[149].mxu0 }
 0x2f6   : > { %v8082_v17 = vadd.f32 %v8081_v1, %v8080_v54  ;;  %v8187_v53 = vpop.f32.mrb[177].mxu1  ;;  %v8083_v6 = vpop.f32.mrb[150].mxu0 }
 0x2f7   : > { %v8188_v60 = vadd.f32 %v8187_v53, %v8186_v41  ;;  %v8189_v49 = vpop.f32.mrb[178].mxu1  ;;  %v8084_v21 = vpop.f32.mrb[151].mxu0  ;;  %8697 = vmatpush3.bf16.msra.mxu0 %v9545_v9 }
 0x2f8   : > { %v3921_v39 = vadd.f32 %v8082_v17, %v10729_v58  ;;  %v8085_v26 = vadd.f32 %v8084_v21, %v8083_v6  ;;  %v8190_v28 = vpop.f32.mrb[179].mxu1  ;;  %v2130_v17 = vpack.c.bf16 %v2104_v55, %v2103_v38 }
 0x2f9   : > { %v10891_v27 = vadd.f32 %v8188_v60, %v3913_v25  ;;  %v8191_v33 = vadd.f32 %v8190_v28, %v8189_v49  ;;  %4523 = vmatmul.mubr.bf16.gmra.mrb[0].mxu0 %v2128_v63  ;;  %v2005_v28 = vld [vmem:[#allocation3 + $0x92] sm:$0xff] }
 0x2fa   : > { %v3924_v18 = vadd.f32 %v8085_v26, %v10731_v23  ;;  %4676 = vmatmul.mubr.bf16.gmra.mrb[28].mxu1 %v10886_v19  ;;  %4530 = vmatprep.mubr.bf16.mxu0 %v10888_v34  ;;  %v10898_v23 = vpack.c.bf16 %v2004_v8, %v2003_v46  ;;  %v2006_v46 = vld [vmem:[#allocation3 + $0x9a] sm:$0xff] }
 0x2fb   : > { %v10896_v22 = vadd.f32 %v8191_v33, %v3916_v56  ;;  %4683 = vmatprep.mubr.bf16.mxu1 %v2129_v51  ;;  %v1913_v8 = vld [vmem:[#allocation3 + $0xc1] sm:$0xff] }
 0x2fc   : > { %v8086_v58 = vpop.f32.mrb[152].mxu0 }
 0x2fd   : > { %v8192_v25 = vpop.f32.mrb[180].mxu1  ;;  %v8087_v9 = vpop.f32.mrb[153].mxu0 }
 0x2fe   : > { %v8088_v54 = vadd.f32 %v8087_v9, %v8086_v58  ;;  %v8193_v63 = vpop.f32.mrb[181].mxu1  ;;  %v8089_v50 = vpop.f32.mrb[154].mxu0  ;;  %v2106_v58 = vld [vmem:[#allocation3 + $0xc8] sm:$0xff]  ;;  %v10912_v9 = vpack.c.bf16 %v1914_v45, %v1913_v8  ;;  %v2008_v8 = vld [vmem:[#allocation3 + $0xb2] sm:$0xff] }
 0x2ff   : > { %v8194_v41 = vadd.f32 %v8193_v63, %v8192_v25  ;;  %v8195_v1 = vpop.f32.mrb[182].mxu1  ;;  %v8090_v56 = vpop.f32.mrb[155].mxu0  ;;  %v1915_v45 = vld [vmem:[#allocation3 + $0xd9] sm:$0xff] }
 0x300   : > { %v3929_v53 = vadd.f32 %v8088_v54, %v10736_v2  ;;  %v8091_v6 = vadd.f32 %v8090_v56, %v8089_v50  ;;  %v8196_v60 = vpop.f32.mrb[183].mxu1  ;;  %11969 = vst [vmem:[#allocation6_spill] sm:$0xff] %v10912_v9  ;;  %v2131_v50 = vpack.c.bf16 %v2106_v58, %v2105_v59  ;;  %v2107_v59 = vld [vmem:[#allocation3 + $0xd8] sm:$0xff]  ;;  %v2108_v58 = vld [vmem:[#allocation3 + $0xe0] sm:$0xff] }
 0x301   : > { %v10903_v49 = vadd.f32 %v8194_v41, %v3921_v39  ;;  %v8197_v21 = vadd.f32 %v8196_v60, %v8195_v1  ;;  %4531 = vmatmul.mubr.bf16.gmra.mrb[4].mxu0 %v2129_v51 }
 0x302   : > { %v3932_v26 = vadd.f32 %v8091_v6, %v10738_v30  ;;  %4684 = vmatmul.mubr.bf16.gmra.mrb[32].mxu1 %v10898_v23  ;;  %4538 = vmatprep.mubr.bf16.mxu0 %v10900_v52  ;;  %v10910_v30 = vpack.c.bf16 %v2006_v46, %v2005_v28  ;;  %v2007_v28 = vld [vmem:[#allocation3 + $0xaa] sm:$0xff] }
 0x303   : > { %v10908_v33 = vadd.f32 %v8197_v21, %v3924_v18  ;;  %4691 = vmatprep.mubr.bf16.mxu1 %v2130_v17 }
 0x304   : > { %v8092_v2 = vpop.f32.mrb[156].mxu0 }
 0x305   : > { %v8198_v39 = vpop.f32.mrb[184].mxu1  ;;  %v8093_v38 = vpop.f32.mrb[157].mxu0 }
 0x306   : > { %v8094_v55 = vadd.f32 %v8093_v38, %v8092_v2  ;;  %v8199_v51 = vpop.f32.mrb[185].mxu1  ;;  %v8095_v25 = vpop.f32.mrb[158].mxu0  ;;  %v1916_v2 = vld [vmem:[#allocation3 + $0xe1] sm:$0xff] }
 0x307   : > { %v8200_v54 = vadd.f32 %v8199_v51, %v8198_v39  ;;  %v8201_v63 = vpop.f32.mrb[186].mxu1  ;;  %v8096_v18 = vpop.f32.mrb[159].mxu0  ;;  %v10924_v51 = vpack.c.bf16 %v1916_v2, %v1915_v45  ;;  %v2010_v45 = vld [vmem:[#allocation3 + $0xca] sm:$0xff] }
 0x308   : > { %v3937_v41 = vadd.f32 %v8094_v55, %v10743_v31  ;;  %v8097_v1 = vadd.f32 %v8096_v18, %v8095_v25  ;;  %v8202_v56 = vpop.f32.mrb[187].mxu1  ;;  %v1917_v2 = vld [vmem:[#allocation3 + $0xf1] sm:$0xff] }
 0x309   : > { %v10915_v6 = vadd.f32 %v8200_v54, %v3929_v53  ;;  %v8203_v60 = vadd.f32 %v8202_v56, %v8201_v63  ;;  %4539 = vmatmul.mubr.bf16.gmra.mrb[8].mxu0 %v2130_v17  ;;  %11970 = vst [vmem:[#allocation7_spill] sm:$0xff] %v10924_v51  ;;  %v2132_v63 = vpack.c.bf16 %v2108_v58, %v2107_v59  ;;  %v1918_v59 = vld [vmem:[#allocation3 + $0xf9] sm:$0xff]  ;;  %v2109_v58 = vld [vmem:[#allocation3 + $0xf0] sm:$0xff] }
 0x30a   : > { %v3940_v21 = vadd.f32 %v8097_v1, %v10745_v11  ;;  %4692 = vmatmul.mubr.bf16.gmra.mrb[36].mxu1 %v10910_v30  ;;  %4546 = vmatprep.mubr.bf16.mxu0 %v10912_v9  ;;  %v10922_v11 = vpack.c.bf16 %v2008_v8, %v2007_v28  ;;  %v2009_v28 = vld [vmem:[#allocation3 + $0xc2] sm:$0xff] }
 0x30b   : > { %v10920_v46 = vadd.f32 %v8203_v60, %v3932_v26  ;;  %4699 = vmatprep.mubr.bf16.mxu1 %v2131_v50 }
 0x30c   : > { %v8098_v31 = vpop.f32.mrb[160].mxu0 }
 0x30d   : > { %v8204_v53 = vpop.f32.mrb[188].mxu1  ;;  %v8099_v39 = vpop.f32.mrb[161].mxu0 }
 0x30e   : > { %v8100_v38 = vadd.f32 %v8099_v39, %v8098_v31  ;;  %v8205_v17 = vpop.f32.mrb[189].mxu1  ;;  %v8101_v55 = vpop.f32.mrb[162].mxu0 }
 0x30f   : > { %v8206_v25 = vadd.f32 %v8205_v17, %v8204_v53  ;;  %v8207_v54 = vpop.f32.mrb[190].mxu1  ;;  %v8102_v26 = vpop.f32.mrb[163].mxu0  ;;  %v2110_v53 = vld [vmem:[#allocation3 + $0xf8] sm:$0xff] }
 0x310   : > { %v3945_v18 = vadd.f32 %v8100_v38, %v10750_v7  ;;  %v8103_v1 = vadd.f32 %v8102_v26, %v8101_v55  ;;  %v8208_v56 = vpop.f32.mrb[191].mxu1  ;;  %v10936_v55 = vpack.c.bf16 %v1918_v59, %v1917_v2  ;;  %v2012_v2 = vld [vmem:[#allocation3 + $0xe2] sm:$0xff] }
 0x311   : > { %v10927_v60 = vadd.f32 %v8206_v25, %v3937_v41  ;;  %v8209_v9 = vadd.f32 %v8208_v56, %v8207_v54  ;;  %4547 = vmatmul.mubr.bf16.gmra.mrb[12].mxu0 %v2131_v50  ;;  %v1919_v59 = vld [vmem:[#allocation3 + $0x109] sm:$0xff] }
 0x312   : > { %v3948_v31 = vadd.f32 %v8103_v1, %v10752_v0  ;;  %4700 = vmatmul.mubr.bf16.gmra.mrb[40].mxu1 %v10922_v11  ;;  %4554 = vmatprep.mubr.bf16.mxu0 %v10924_v51  ;;  %v10934_v0 = vpack.c.bf16 %v2010_v45, %v2009_v28  ;;  %11972 = vst [vmem:[#allocation9_spill] sm:$0xff] %v10936_v55  ;;  %v2011_v28 = vld [vmem:[#allocation3 + $0xda] sm:$0xff] }
 0x313   : > { %v10932_v8 = vadd.f32 %v8209_v9, %v3940_v21  ;;  %4707 = vmatprep.mubr.bf16.mxu1 %v2132_v63  ;;  %v2133_v21 = vpack.c.bf16 %v2110_v53, %v2109_v58  ;;  %v1920_v58 = vld [vmem:[#allocation3 + $0x111] sm:$0xff]  ;;  %v2111_v53 = vld [vmem:[#allocation3 + $0x108] sm:$0xff] }
 0x314   : > { %v8104_v7 = vpop.f32.mrb[164].mxu0 }
 0x315   : > { %11971 = vst [vmem:[#allocation8_spill] sm:$0xff] %v10932_v8  ;;  %v8210_v41 = vpop.f32.mrb[192].mxu1  ;;  %v8105_v39 = vpop.f32.mrb[165].mxu0 }
 0x316   : > { %v8106_v38 = vadd.f32 %v8105_v39, %v8104_v7  ;;  %v8211_v50 = vpop.f32.mrb[193].mxu1  ;;  %v8107_v17 = vpop.f32.mrb[166].mxu0 }
 0x317   : > { %v8212_v25 = vadd.f32 %v8211_v50, %v8210_v41  ;;  %v8213_v54 = vpop.f32.mrb[194].mxu1  ;;  %v8108_v9 = vpop.f32.mrb[167].mxu0  ;;  %v2112_v41 = vld [vmem:[#allocation3 + $0x110] sm:$0xff] }
 0x318   : > { %v3953_v26 = vadd.f32 %v8106_v38, %v10757_v62  ;;  %v8109_v1 = vadd.f32 %v8108_v9, %v8107_v17  ;;  %v8214_v56 = vpop.f32.mrb[195].mxu1  ;;  %v10948_v17 = vpack.c.bf16 %v1920_v58, %v1919_v59  ;;  %v2014_v59 = vld [vmem:[#allocation3 + $0xfa] sm:$0xff] }
 0x319   : > { %v10939_v51 = vadd.f32 %v8212_v25, %v3945_v18  ;;  %v8215_v8 = vadd.f32 %v8214_v56, %v8213_v54  ;;  %4555 = vmatmul.mubr.bf16.gmra.mrb[16].mxu0 %v2132_v63  ;;  %v1921_v58 = vld [vmem:[#allocation3 + $0x121] sm:$0xff] }
 0x31a   : > { %v3956_v7 = vadd.f32 %v8109_v1, %v10759_v20  ;;  %4708 = vmatmul.mubr.bf16.gmra.mrb[44].mxu1 %v10934_v0  ;;  %4562 = vmatprep.mubr.bf16.mxu0 %v10936_v55  ;;  %v10946_v20 = vpack.c.bf16 %v2012_v2, %v2011_v28  ;;  %11974 = vst [vmem:[#allocation11_spill] sm:$0xff] %v10948_v17  ;;  %v2013_v28 = vld [vmem:[#allocation3 + $0xf2] sm:$0xff] }
 0x31b   : > { %v10944_v45 = vadd.f32 %v8215_v8, %v3948_v31  ;;  %4715 = vmatprep.mubr.bf16.mxu1 %v2133_v21  ;;  %v2134_v8 = vpack.c.bf16 %v2112_v41, %v2111_v53  ;;  %v1922_v53 = vld [vmem:[#allocation3 + $0x129] sm:$0xff]  ;;  %v2113_v41 = vld [vmem:[#allocation3 + $0x120] sm:$0xff] }
 0x31c   : > { %v8110_v62 = vpop.f32.mrb[168].mxu0 }
 0x31d   : > { %11973 = vst [vmem:[#allocation10_spill] sm:$0xff] %v10944_v45  ;;  %v8216_v18 = vpop.f32.mrb[196].mxu1  ;;  %v8111_v39 = vpop.f32.mrb[169].mxu0 }
 0x31e   : > { %v8112_v38 = vadd.f32 %v8111_v39, %v8110_v62  ;;  %v8217_v63 = vpop.f32.mrb[197].mxu1  ;;  %v8113_v50 = vpop.f32.mrb[170].mxu0 }
 0x31f   : > { %v8218_v25 = vadd.f32 %v8217_v63, %v8216_v18  ;;  %v8219_v54 = vpop.f32.mrb[198].mxu1  ;;  %v8114_v31 = vpop.f32.mrb[171].mxu0  ;;  %v2114_v18 = vld [vmem:[#allocation3 + $0x128] sm:$0xff] }
 0x320   : > { %v3961_v9 = vadd.f32 %v8112_v38, %v10764_v10  ;;  %v8115_v1 = vadd.f32 %v8114_v31, %v8113_v50  ;;  %v8220_v56 = vpop.f32.mrb[199].mxu1  ;;  %v10960_v50 = vpack.c.bf16 %v1922_v53, %v1921_v58  ;;  %v2016_v58 = vld [vmem:[#allocation3 + $0x112] sm:$0xff] }
 0x321   : > { %v10951_v55 = vadd.f32 %v8218_v25, %v3953_v26  ;;  %v8221_v45 = vadd.f32 %v8220_v56, %v8219_v54  ;;  %4563 = vmatmul.mubr.bf16.gmra.mrb[20].mxu0 %v2133_v21  ;;  %v1923_v53 = vld [vmem:[#allocation3 + $0x139] sm:$0xff] }
 0x322   : > { %v3964_v62 = vadd.f32 %v8115_v1, %v10766_v5  ;;  %4716 = vmatmul.mubr.bf16.gmra.mrb[48].mxu1 %v10946_v20  ;;  %4570 = vmatprep.mubr.bf16.mxu0 %v10948_v17  ;;  %v10958_v5 = vpack.c.bf16 %v2014_v59, %v2013_v28  ;;  %11976 = vst [vmem:[#allocation13_spill] sm:$0xff] %v10960_v50  ;;  %v2015_v28 = vld [vmem:[#allocation3 + $0x10a] sm:$0xff] }
 0x323   : > { %v10956_v2 = vadd.f32 %v8221_v45, %v3956_v7  ;;  %4723 = vmatprep.mubr.bf16.mxu1 %v2134_v8  ;;  %v2135_v45 = vpack.c.bf16 %v2114_v18, %v2113_v41  ;;  %v1924_v41 = vld [vmem:[#allocation3 + $0x141] sm:$0xff]  ;;  %v2115_v18 = vld [vmem:[#allocation3 + $0x138] sm:$0xff] }
 0x324   : > { %v8116_v10 = vpop.f32.mrb[172].mxu0 }
 0x325   : > { %11975 = vst [vmem:[#allocation12_spill] sm:$0xff] %v10956_v2  ;;  %v8222_v26 = vpop.f32.mrb[200].mxu1  ;;  %v8117_v39 = vpop.f32.mrb[173].mxu0 }
 0x326   : > { %v8118_v38 = vadd.f32 %v8117_v39, %v8116_v10  ;;  %v8223_v21 = vpop.f32.mrb[201].mxu1  ;;  %v8119_v63 = vpop.f32.mrb[174].mxu0 }
 0x327   : > { %v8224_v25 = vadd.f32 %v8223_v21, %v8222_v26  ;;  %v8225_v54 = vpop.f32.mrb[202].mxu1  ;;  %v8120_v7 = vpop.f32.mrb[175].mxu0  ;;  %v2116_v26 = vld [vmem:[#allocation3 + $0x140] sm:$0xff] }
 0x328   : > { %v3969_v31 = vadd.f32 %v8118_v38, %v10773_v24  ;;  %v8121_v1 = vadd.f32 %v8120_v7, %v8119_v63  ;;  %v8226_v56 = vpop.f32.mrb[203].mxu1  ;;  %v10972_v63 = vpack.c.bf16 %v1924_v41, %v1923_v53  ;;  %v2018_v53 = vld [vmem:[#allocation3 + $0x12a] sm:$0xff] }
 0x329   : > { %v10963_v17 = vadd.f32 %v8224_v25, %v3961_v9  ;;  %v8227_v2 = vadd.f32 %v8226_v56, %v8225_v54  ;;  %4571 = vmatmul.mubr.bf16.gmra.mrb[24].mxu0 %v2134_v8  ;;  %v1925_v41 = vld [vmem:[#allocation3 + $0x151] sm:$0xff] }
 0x32a   : > { %v3972_v10 = vadd.f32 %v8121_v1, %v10776_v14  ;;  %4724 = vmatmul.mubr.bf16.gmra.mrb[52].mxu1 %v10958_v5  ;;  %4578 = vmatprep.mubr.bf16.mxu0 %v10960_v50  ;;  %v10970_v14 = vpack.c.bf16 %v2016_v58, %v2015_v28  ;;  %11979 = vst [vmem:[#allocation16_spill] sm:$0xff] %v10972_v63  ;;  %v2017_v28 = vld [vmem:[#allocation3 + $0x122] sm:$0xff] }
 0x32b   : > { %11977 = vst [vmem:[#allocation14_spill] sm:$0xff] %v10963_v17  ;;  %v10968_v59 = vadd.f32 %v8227_v2, %v3964_v62  ;;  %4731 = vmatprep.mubr.bf16.mxu1 %v2135_v45  ;;  %v2136_v2 = vpack.c.bf16 %v2116_v26, %v2115_v18  ;;  %v2117_v18 = vld [vmem:[#allocation3 + $0x150] sm:$0xff]  ;;  %v2118_v26 = vld [vmem:[#allocation3 + $0x158] sm:$0xff] }
 0x32c   : > { %v8250_v24 = vpop.f32.mrb[176].mxu0 }
 0x32d   : > { %11978 = vst [vmem:[#allocation15_spill] sm:$0xff] %v10968_v59  ;;  %v8228_v9 = vpop.f32.mrb[204].mxu1  ;;  %v8251_v39 = vpop.f32.mrb[177].mxu0 }
 0x32e   : > { %v8229_v38 = vpop.f32.mrb[205].mxu1  ;;  %v8252_v8 = vadd.f32 %v8251_v39, %v8250_v24  ;;  %v8253_v21 = vpop.f32.mrb[178].mxu0  ;;  %v1926_v24 = vld [vmem:[#allocation3 + $0x159] sm:$0xff] }
 0x32f   : > { %v8230_v25 = vadd.f32 %v8229_v38, %v8228_v9  ;;  %v8231_v54 = vpop.f32.mrb[206].mxu1  ;;  %v8254_v62 = vpop.f32.mrb[179].mxu0 }
 0x330   : > { %v4171_v7 = vadd.f32 %v8252_v8, %v10780_v48  ;;  %v8232_v1 = vpop.f32.mrb[207].mxu1  ;;  %v8255_v56 = vadd.f32 %v8254_v62, %v8253_v21  ;;  %v10984_v8 = vpack.c.bf16 %v1926_v24, %v1925_v41  ;;  %v1927_v41 = vld [vmem:[#allocation3 + $0x169] sm:$0xff]  ;;  %v1928_v24 = vld [vmem:[#allocation3 + $0x171] sm:$0xff] }
 0x331   : > { %v10975_v50 = vadd.f32 %v8230_v25, %v3969_v31  ;;  %v8233_v59 = vadd.f32 %v8232_v1, %v8231_v54  ;;  %4579 = vmatmul.mubr.bf16.gmra.mrb[28].mxu0 %v2135_v45 }
 0x332   : > { %v4174_v17 = vadd.f32 %v8255_v56, %v10783_v4  ;;  %4732 = vmatmul.mubr.bf16.gmra.mrb[56].mxu1 %v10970_v14  ;;  %4586 = vmatprep.mubr.bf16.mxu0 %v10972_v63  ;;  %v10982_v4 = vpack.c.bf16 %v2018_v53, %v2017_v28  ;;  %11981 = vst [vmem:[#allocation18_spill] sm:$0xff] %v10984_v8  ;;  %v2019_v28 = vld [vmem:[#allocation3 + $0x13a] sm:$0xff]  ;;  %v2020_v53 = vld [vmem:[#allocation3 + $0x142] sm:$0xff] }
 0x333   : > { %v10980_v58 = vadd.f32 %v8233_v59, %v3972_v10  ;;  %4739 = vmatprep.mubr.bf16.mxu1 %v2136_v2  ;;  %v2137_v59 = vpack.c.bf16 %v2118_v26, %v2117_v18  ;;  %v2120_v26 = vld [vmem:[#allocation3 + $0x170] sm:$0xff] }
 0x334   : > { %v8256_v48 = vpop.f32.mrb[180].mxu0 }
 0x335   : > { %11980 = vst [vmem:[#allocation17_spill] sm:$0xff] %v10980_v58  ;;  %v8362_v31 = vpop.f32.mrb[208].mxu1  ;;  %v8257_v9 = vpop.f32.mrb[181].mxu0 }
 0x336   : > { %v8258_v39 = vadd.f32 %v8257_v9, %v8256_v48  ;;  %v8363_v45 = vpop.f32.mrb[209].mxu1  ;;  %v8259_v38 = vpop.f32.mrb[182].mxu0 }
 0x337   : > { %v8364_v21 = vadd.f32 %v8363_v45, %v8362_v31  ;;  %v8365_v25 = vpop.f32.mrb[210].mxu1  ;;  %v8260_v10 = vpop.f32.mrb[183].mxu0 }
 0x338   : > { %v4179_v54 = vadd.f32 %v8258_v39, %v10787_v61  ;;  %v8261_v62 = vadd.f32 %v8260_v10, %v8259_v38  ;;  %v8366_v1 = vpop.f32.mrb[211].mxu1  ;;  %v9547_v61 = vld [vmem:[%s11957_s6 + $0x40] sm:$0xff]  }
 0x339   : > { %v8367_v56 = vadd.f32 %v8366_v1, %v8365_v25  ;;  %4587 = vmatmul.mubr.bf16.gmra.mrb[32].mxu0 %v2136_v2  ;;  %v10987_v63 = vadd.f32 %v8364_v21, %v4171_v7  ;;  %v9548_v2 = vld [vmem:[%s11957_s6] sm:$0xff]   ;;  %8794 = vmatprep.subr.bf16.mxu1 %v9547_v61  ;;  %v11000_v21 = vpack.c.bf16 %v2020_v53, %v2019_v28  ;;  %v2021_v28 = vld [vmem:[#allocation3 + $0x152] sm:$0xff]  ;;  %v2022_v53 = vld [vmem:[#allocation3 + $0x15a] sm:$0xff] }
 0x33a   : > { %v4182_v48 = vadd.f32 %v8261_v62, %v10790_v57  ;;  %4740 = vmatmul.mubr.bf16.gmra.mrb[60].mxu1 %v10982_v4  ;;  %4594 = vmatprep.mubr.bf16.mxu0 %v10984_v8  ;;  %v2119_v7 = vld [vmem:[#allocation3 + $0x168] sm:$0xff] }
 0x33b   : > { %11982 = vst [vmem:[#allocation19_spill] sm:$0xff] %v10987_v63  ;;  %4747 = vmatprep.mubr.bf16.mxu1 %v2137_v59  ;;  %v10992_v18 = vadd.f32 %v8367_v56, %v4174_v17  ;;  %v11002_v17 = vpack.c.bf16 %v1928_v24, %v1927_v41  ;;  %8795 = vmatpush3.bf16.msra.mxu1 %v9548_v2  ;;  %v2122_v2 = vld [vmem:[#allocation3 + $0x188] sm:$0xff] }
 0x33c   : > { %v8262_v57 = vpop.f32.mrb[184].mxu0  ;;  %v2138_v1 = vpack.c.bf16 %v2120_v26, %v2119_v7  ;;  %v11012_v26 = vpack.c.bf16 %v2022_v53, %v2021_v28  ;;  %v2024_v28 = vld [vmem:[#allocation3 + $0x172] sm:$0xff] }
 0x33d   : > { %11983 = vst [vmem:[#allocation20_spill] sm:$0xff] %v10992_v18  ;;  %v8368_v31 = vpop.f32.mrb[212].mxu1  ;;  %v8263_v9 = vpop.f32.mrb[185].mxu0 }
 0x33e   : > { %v8264_v39 = vadd.f32 %v8263_v9, %v8262_v57  ;;  %v8369_v45 = vpop.f32.mrb[213].mxu1  ;;  %v8265_v38 = vpop.f32.mrb[186].mxu0 }
 0x33f   : > { %v8370_v25 = vadd.f32 %v8369_v45, %v8368_v31  ;;  %v8371_v10 = vpop.f32.mrb[214].mxu1  ;;  %v8266_v62 = vpop.f32.mrb[187].mxu0 }
 0x340   : > { %v4187_v56 = vadd.f32 %v8264_v39, %v10795_v15  ;;  %v8267_v8 = vadd.f32 %v8266_v62, %v8265_v38  ;;  %v8372_v18 = vpop.f32.mrb[215].mxu1  ;;  %v2121_v15 = vld [vmem:[#allocation3 + $0x180] sm:$0xff]  ;;  %v2023_v62 = vld [vmem:[#allocation3 + $0x16a] sm:$0xff] }
 0x341   : > { %v8373_v63 = vadd.f32 %v8372_v18, %v8371_v10  ;;  %4595 = vmatmul.mubr.bf16.gmra.mrb[36].mxu0 %v2137_v59  ;;  %v11005_v58 = vadd.f32 %v8370_v25, %v4179_v54  ;;  %v2139_v39 = vpack.c.bf16 %v2122_v2, %v2121_v15 }
 0x342   : > { %v4190_v61 = vadd.f32 %v8267_v8, %v10798_v44  ;;  %4748 = vmatmul.mubr.bf16.gmra.mrb[64].mxu1 %v11000_v21  ;;  %4602 = vmatprep.mubr.bf16.mxu0 %v11002_v17  ;;  %v11015_v44 = vld [vmem:[%s10408_s23 + $0x78] sm:$0xff] }
 0x343   : > { %4755 = vmatprep.mubr.bf16.mxu1 %v2138_v1  ;;  %v11010_v41 = vadd.f32 %v8373_v63, %v4182_v48 }
 0x344   : > { %v8268_v24 = vpop.f32.mrb[188].mxu0 }
 0x345   : > { %v8374_v57 = vpop.f32.mrb[216].mxu1  ;;  %v8269_v18 = vpop.f32.mrb[189].mxu0 }
 0x346   : > { %v8270_v59 = vadd.f32 %v8269_v18, %v8268_v24  ;;  %v8375_v54 = vpop.f32.mrb[217].mxu1  ;;  %v8271_v7 = vpop.f32.mrb[190].mxu0  ;;  %v11031_v18 = vpack.c.bf16 %v2024_v28, %v2023_v62  ;;  %v2189_v62 = vld [vmem:[#allocation3 + $0x31] sm:$0xff]  ;;  %v2190_v28 = vld [vmem:[#allocation3 + $0x39] sm:$0xff] }
 0x347   : > { %v8376_v8 = vadd.f32 %v8375_v54, %v8374_v57  ;;  %v8377_v31 = vpop.f32.mrb[218].mxu1  ;;  %v8272_v9 = vpop.f32.mrb[191].mxu0 }
 0x348   : > { %v4195_v45 = vadd.f32 %v8270_v59, %v10802_v12  ;;  %v8273_v63 = vadd.f32 %v8272_v9, %v8271_v7  ;;  %v8378_v48 = vpop.f32.mrb[219].mxu1  ;;  %v9549_v12 = vld [vmem:[%s11957_s6 + $0x48] sm:$0xff]   ;;  %v9625_v7 = vld [vmem:[#allocation2 + $0x180] sm:$0xff] }
 0x349   : > { %v8379_v38 = vadd.f32 %v8378_v48, %v8377_v31  ;;  %4603 = vmatmul.mubr.bf16.gmra.mrb[40].mxu0 %v2138_v1  ;;  %v11018_v25 = vadd.f32 %v8376_v8, %v4187_v56  ;;  %v9550_v1 = vld [vmem:[%s11957_s6 + $0x8] sm:$0xff]   ;;  %8796 = vmatprep.subr.bf16.mxu1 %v9549_v12  ;;  %v11033_v8 = vpack.c.bf16 %v9625_v7, %v9625_v7 }
 0x34a   : > { %v4198_v10 = vadd.f32 %v8273_v63, %v10805_v3  ;;  %4756 = vmatmul.mubr.bf16.gmra.mrb[68].mxu1 %v11012_v26  ;;  %4610 = vmatprep.mubr.bf16.mxu0 %v11015_v44 }
 0x34b   : > { %4763 = vmatprep.mubr.bf16.mxu1 %v2139_v39  ;;  %v11023_v53 = vadd.f32 %v8379_v38, %v4190_v61  ;;  %8797 = vmatpush3.bf16.msra.mxu1 %v9550_v1  ;;  %v2025_v1 = vld [vmem:[#allocation3 + $0x182] sm:$0xff] }
 0x34c   : > { %v8274_v56 = vpop.f32.mrb[192].mxu0 }
 0x34d   : > { %v8380_v24 = vpop.f32.mrb[220].mxu1  ;;  %v8275_v3 = vpop.f32.mrb[193].mxu0 }
 0x34e   : > { %v8276_v15 = vadd.f32 %v8275_v3, %v8274_v56  ;;  %v8381_v2 = vpop.f32.mrb[221].mxu1  ;;  %v8277_v57 = vpop.f32.mrb[194].mxu0  ;;  %v2026_v56 = vld [vmem:[#allocation3 + $0x18a] sm:$0xff] }
 0x34f   : > { %v8382_v61 = vadd.f32 %v8381_v2, %v8380_v24  ;;  %v8383_v59 = vpop.f32.mrb[222].mxu1  ;;  %v8278_v54 = vpop.f32.mrb[195].mxu0 }
 0x350   : > { %v4203_v31 = vadd.f32 %v8276_v15, %v10815_v32  ;;  %v8279_v9 = vadd.f32 %v8278_v54, %v8277_v57  ;;  %v8384_v63 = vpop.f32.mrb[223].mxu1 }
 0x351   : > { %v8385_v48 = vadd.f32 %v8384_v63, %v8383_v59  ;;  %4611 = vmatmul.mubr.bf16.gmra.mrb[44].mxu0 %v2139_v39  ;;  %v11036_v38 = vadd.f32 %v8382_v61, %v4195_v45  ;;  %v2221_v39 = vpack.c.bf16 %v2190_v28, %v2189_v62  ;;  %v2191_v62 = vld [vmem:[#allocation3 + $0x49] sm:$0xff]  ;;  %v2192_v28 = vld [vmem:[#allocation3 + $0x51] sm:$0xff] }
 0x352   : > { %v4206_v12 = vadd.f32 %v8279_v9, %v10821_v29  ;;  %4764 = vmatmul.mubr.bf16.gmra.mrb[72].mxu1 %v11031_v18  ;;  %4812 = vmatprep.mubr.bf16.mxu0 %v10844_v40  ;;  %v11044_v29 = vpack.c.bf16 %v2026_v56, %v2025_v1  ;;  %v9552_v56 = vld [vmem:[%s11957_s6 + $0x10] sm:$0xff]  }
 0x353   : > { %4771 = vmatprep.mubr.bf16.mxu1 %v11033_v8  ;;  %v11042_v24 = vadd.f32 %v8385_v48, %v4198_v10 }
 0x354   : > { %v8280_v32 = vpop.f32.mrb[196].mxu0 }
 0x355   : > { %v8386_v3 = vpop.f32.mrb[224].mxu1  ;;  %v8281_v15 = vpop.f32.mrb[197].mxu0 }
 0x356   : > { %v8282_v45 = vadd.f32 %v8281_v15, %v8280_v32  ;;  %v8387_v2 = vpop.f32.mrb[225].mxu1  ;;  %v8283_v57 = vpop.f32.mrb[198].mxu0 }
 0x357   : > { %v8388_v61 = vadd.f32 %v8387_v2, %v8386_v3  ;;  %v8389_v59 = vpop.f32.mrb[226].mxu1  ;;  %v8284_v40 = vpop.f32.mrb[199].mxu0 }
 0x358   : > { %v4211_v54 = vadd.f32 %v8282_v45, %v10833_v35  ;;  %v8285_v7 = vadd.f32 %v8284_v40, %v8283_v57  ;;  %v8390_v9 = vpop.f32.mrb[227].mxu1  ;;  %v9551_v35 = vld [vmem:[%s11957_s6 + $0x50] sm:$0xff]  }
 0x359   : > { %v8391_v63 = vadd.f32 %v8390_v9, %v8389_v59  ;;  %4813 = vmatmul.mubr.bf16.vlgmr.msra.gmra.mrb[48].mxu0 %v2221_v39  ;;  %v11047_v10 = vadd.f32 %v8388_v61, %v4203_v31  ;;  %8798 = vmatprep.subr.bf16.mxu1 %v9551_v35 }
 0x35a   : > { %v4214_v48 = vadd.f32 %v8285_v7, %v10836_v36  ;;  %4772 = vmatmul.mubr.bf16.gmra.mrb[76].mxu1 %v11044_v29  ;;  %4820 = vmatprep.mubr.bf16.mxu0 %v10865_v37  ;;  %v2222_v36 = vpack.c.bf16 %v2192_v28, %v2191_v62  ;;  %v2194_v62 = vld [vmem:[#allocation3 + $0x69] sm:$0xff] }
 0x35b   : > { %v11052_v1 = vadd.f32 %v8391_v63, %v4206_v12  ;;  %8799 = vmatpush3.bf16.msra.mxu1 %v9552_v56  ;;  %v2193_v63 = vld [vmem:[#allocation3 + $0x61] sm:$0xff] }
 0x35c   : > { %v8286_v31 = vpop.f32.mrb[200].mxu0 }
 0x35d   : > { %v8392_v32 = vpop.f32.mrb[228].mxu1  ;;  %v8287_v3 = vpop.f32.mrb[201].mxu0 }
 0x35e   : > { %v8288_v15 = vadd.f32 %v8287_v3, %v8286_v31  ;;  %v8393_v39 = vpop.f32.mrb[229].mxu1  ;;  %v8289_v37 = vpop.f32.mrb[202].mxu0 }
 0x35f   : > { %v8394_v45 = vadd.f32 %v8393_v39, %v8392_v32  ;;  %v8395_v12 = vpop.f32.mrb[230].mxu1  ;;  %v8290_v2 = vpop.f32.mrb[203].mxu0  ;;  %v2223_v32 = vpack.c.bf16 %v2194_v62, %v2193_v63 }
 0x360   : > { %v4219_v57 = vadd.f32 %v8288_v15, %v10853_v43  ;;  %v8291_v61 = vadd.f32 %v8290_v2, %v8289_v37  ;;  %v8396_v59 = vpop.f32.mrb[231].mxu1 }
 0x361   : > { %v8397_v40 = vadd.f32 %v8396_v59, %v8395_v12  ;;  %4821 = vmatmul.mubr.bf16.gmra.mrb[52].mxu0 %v2222_v36  ;;  %v11061_v7 = vadd.f32 %v8394_v45, %v4211_v54 }
 0x362   : > { %v4222_v9 = vadd.f32 %v8291_v61, %v10857_v47  ;;  %4828 = vmatprep.mubr.bf16.mxu0 %v10886_v19  ;;  %v9553_v61 = vld [vmem:[%s11957_s6 + $0x58] sm:$0xff]  }
 0x363   : > { %v11065_v28 = vadd.f32 %v8397_v40, %v4214_v48  ;;  %8800 = vmatprep.subr.bf16.mxu1 %v9553_v61 }
 0x364   : > { %v8292_v35 = vpop.f32.mrb[204].mxu0 }
 0x365   : > { %v8398_v56 = vpop.f32.mrb[232].mxu1  ;;  %v8293_v31 = vpop.f32.mrb[205].mxu0 }
 0x366   : > { %v8294_v3 = vadd.f32 %v8293_v31, %v8292_v35  ;;  %v8399_v43 = vpop.f32.mrb[233].mxu1  ;;  %v8295_v15 = vpop.f32.mrb[206].mxu0 }
 0x367   : > { %v8400_v39 = vadd.f32 %v8399_v43, %v8398_v56  ;;  %v8401_v37 = vpop.f32.mrb[234].mxu1  ;;  %v8296_v36 = vpop.f32.mrb[207].mxu0 }
 0x368   : > { %v4227_v54 = vadd.f32 %v8294_v3, %v10876_v42  ;;  %v8297_v45 = vadd.f32 %v8296_v36, %v8295_v15  ;;  %v8402_v47 = vpop.f32.mrb[235].mxu1  ;;  %v9554_v42 = vld [vmem:[%s11957_s6 + $0x18] sm:$0xff]  }
 0x369   : > { %v8403_v12 = vadd.f32 %v8402_v47, %v8401_v37  ;;  %4829 = vmatmul.mubr.bf16.gmra.mrb[56].mxu0 %v2223_v32  ;;  %v11068_v19 = vadd.f32 %v8400_v39, %v4219_v57  ;;  %8801 = vmatpush3.bf16.msra.mxu1 %v9554_v42 }
 0x36a   : > { %v4230_v48 = vadd.f32 %v8297_v45, %v10881_v13  ;;  %4836 = vmatprep.mubr.bf16.mxu0 %v10898_v23 }
 0x36b   : > { %v11072_v2 = vadd.f32 %v8403_v12, %v4222_v9 }
 0x36c   : > { %v8298_v59 = vpop.f32.mrb[208].mxu0 }
 0x36d   : > { %v8404_v40 = vpop.f32.mrb[236].mxu1  ;;  %v8299_v63 = vpop.f32.mrb[209].mxu0 }
 0x36e   : > { %v8300_v57 = vadd.f32 %v8299_v63, %v8298_v59  ;;  %v8405_v62 = vpop.f32.mrb[237].mxu1  ;;  %v8301_v35 = vpop.f32.mrb[210].mxu0 }
 0x36f   : > { %v8406_v13 = vadd.f32 %v8405_v62, %v8404_v40  ;;  %v8407_v23 = vpop.f32.mrb[238].mxu1  ;;  %v8302_v9 = vpop.f32.mrb[211].mxu0  ;;  %v9556_v62 = vld [vmem:[%s11957_s6 + $0xc0] sm:$0xff]  }
 0x370   : > { %v8303_v56 = vadd.f32 %v8302_v9, %v8301_v35  ;;  %v8408_v31 = vpop.f32.mrb[239].mxu1  ;;  %v4235_v32 = vadd.f32 %v8300_v57, %v10891_v27  ;;  %v9555_v57 = vld [vmem:[%s11957_s6 + $0x60] sm:$0xff]   ;;  %8906 = vmatprep.subr.bf16.mxu0 %v9556_v62 }
 0x371   : > { %v8409_v3 = vadd.f32 %v8408_v31, %v8407_v23  ;;  %4837 = vmatmul.mubr.bf16.gmra.mrb[60].mxu0 %v10867_v16  ;;  %v11082_v43 = vadd.f32 %v8406_v13, %v4227_v54  ;;  %8802 = vmatprep.subr.bf16.mxu1 %v9555_v57 }
 0x372   : > { %v4238_v15 = vadd.f32 %v8303_v56, %v10896_v22  ;;  %4844 = vmatprep.mubr.bf16.mxu0 %v10910_v30 }
 0x373   : > { %v11086_v39 = vadd.f32 %v8409_v3, %v4230_v48 }
 0x374   : > { %v8304_v37 = vpop.f32.mrb[212].mxu0 }
 0x375   : > { %v8410_v36 = vpop.f32.mrb[240].mxu1  ;;  %v8305_v45 = vpop.f32.mrb[213].mxu0 }
 0x376   : > { %v8306_v47 = vadd.f32 %v8305_v45, %v8304_v37  ;;  %v8411_v12 = vpop.f32.mrb[241].mxu1  ;;  %v8307_v61 = vpop.f32.mrb[214].mxu0 }
 0x377   : > { %v8412_v42 = vadd.f32 %v8411_v12, %v8410_v36  ;;  %v8413_v59 = vpop.f32.mrb[242].mxu1  ;;  %v8308_v27 = vpop.f32.mrb[215].mxu0 }
 0x378   : > { %v8309_v40 = vadd.f32 %v8308_v27, %v8307_v61  ;;  %v8414_v63 = vpop.f32.mrb[243].mxu1  ;;  %v4243_v16 = vadd.f32 %v8306_v47, %v10903_v49  ;;  %v9557_v49 = vld [vmem:[%s11957_s6 + $0x20] sm:$0xff]  }
 0x379   : > { %v11089_v54 = vadd.f32 %v8412_v42, %v4235_v32  ;;  %v8415_v22 = vadd.f32 %v8414_v63, %v8413_v59  ;;  %4845 = vmatmul.mubr.bf16.gmra.mrb[64].mxu0 %v10888_v34  ;;  %v9558_v34 = vld [vmem:[%s11957_s6 + $0x80] sm:$0xff]   ;;  %8803 = vmatpush3.bf16.msra.mxu1 %v9557_v49 }
 0x37a   : > { %v4246_v30 = vadd.f32 %v8309_v40, %v10908_v33  ;;  %4852 = vmatprep.mubr.bf16.mxu0 %v10922_v11  ;;  %8907 = vmatpush3.bf16.msra.mxu0 %v9558_v34 }
 0x37b   : > { %v11094_v48 = vadd.f32 %v8415_v22, %v4238_v15 }
 0x37c   : > { %v8310_v35 = vpop.f32.mrb[216].mxu0 }
 0x37d   : > { %v8416_v33 = vpop.f32.mrb[244].mxu1  ;;  %v8311_v11 = vpop.f32.mrb[217].mxu0 }
 0x37e   : > { %v8312_v13 = vadd.f32 %v8311_v11, %v8310_v35  ;;  %v8417_v23 = vpop.f32.mrb[245].mxu1  ;;  %v8313_v9 = vpop.f32.mrb[218].mxu0  ;;  %v11984_v35 = vld [vmem:[#allocation6_spill] sm:$0xff] }
 0x37f   : > { %v8418_v56 = vadd.f32 %v8417_v23, %v8416_v33  ;;  %v8419_v31 = vpop.f32.mrb[246].mxu1  ;;  %v8314_v32 = vpop.f32.mrb[219].mxu0  ;;  %v9559_v33 = vld [vmem:[%s11957_s6 + $0x68] sm:$0xff]  }
 0x380   : > { %v8315_v3 = vadd.f32 %v8314_v32, %v8313_v9  ;;  %v8420_v15 = vpop.f32.mrb[247].mxu1  ;;  %v4251_v37 = vadd.f32 %v8312_v13, %v10915_v6  ;;  %v9560_v11 = vld [vmem:[%s11957_s6 + $0xc8] sm:$0xff]   ;;  %8804 = vmatprep.subr.bf16.mxu1 %v9559_v33 }
 0x381   : > { %v11109_v36 = vadd.f32 %v8418_v56, %v4243_v16  ;;  %v8421_v45 = vadd.f32 %v8420_v15, %v8419_v31  ;;  %4853 = vmatmul.mubr.bf16.gmra.mrb[68].mxu0 %v10900_v52  ;;  %v9562_v23 = vld [vmem:[%s11957_s6 + $0x88] sm:$0xff]   ;;  %8908 = vmatprep.subr.bf16.mxu0 %v9560_v11 }
 0x382   : > { %v4254_v47 = vadd.f32 %v8315_v3, %v10920_v46  ;;  %4860 = vmatprep.mubr.bf16.mxu0 %v10934_v0  ;;  %v11985_v0 = vld [vmem:[#allocation8_spill] sm:$0xff]  ;;  %8909 = vmatpush3.bf16.msra.mxu0 %v9562_v23 }
 0x383   : > { %v11114_v12 = vadd.f32 %v8421_v45, %v4246_v30 }
 0x384   : > { %v8316_v61 = vpop.f32.mrb[220].mxu0 }
 0x385   : > { %v8422_v42 = vpop.f32.mrb[248].mxu1  ;;  %v8317_v59 = vpop.f32.mrb[221].mxu0 }
 0x386   : > { %v8318_v27 = vadd.f32 %v8317_v59, %v8316_v61  ;;  %v8423_v40 = vpop.f32.mrb[249].mxu1  ;;  %v8319_v63 = vpop.f32.mrb[222].mxu0 }
 0x387   : > { %v8424_v22 = vadd.f32 %v8423_v40, %v8422_v42  ;;  %v8425_v57 = vpop.f32.mrb[250].mxu1  ;;  %v8320_v6 = vpop.f32.mrb[223].mxu0  ;;  %v11987_v40 = vld [vmem:[#allocation10_spill] sm:$0xff] }
 0x388   : > { %v8321_v16 = vadd.f32 %v8320_v6, %v8319_v63  ;;  %v8426_v62 = vpop.f32.mrb[251].mxu1  ;;  %v4259_v49 = vadd.f32 %v8318_v27, %v10927_v60  ;;  %v9561_v60 = vld [vmem:[%s11957_s6 + $0x28] sm:$0xff]   ;;  %v11986_v27 = vld [vmem:[#allocation7_spill] sm:$0xff] }
 0x389   : > { %v11117_v52 = vadd.f32 %v8424_v22, %v4251_v37  ;;  %v8427_v46 = vadd.f32 %v8426_v62, %v8425_v57  ;;  %4861 = vmatmul.mubr.bf16.gmra.mrb[72].mxu0 %v11984_v35  ;;  %8805 = vmatpush3.bf16.msra.mxu1 %v9561_v60 }
 0x38a   : > { %v4262_v30 = vadd.f32 %v8321_v16, %v11985_v0  ;;  %4868 = vmatprep.mubr.bf16.mxu0 %v10946_v20 }
 0x38b   : > { %v11122_v34 = vadd.f32 %v8427_v46, %v4254_v47 }
 0x38c   : > { %v8322_v13 = vpop.f32.mrb[224].mxu0 }
 0x38d   : > { %v8428_v20 = vpop.f32.mrb[252].mxu1  ;;  %v8323_v9 = vpop.f32.mrb[225].mxu0 }
 0x38e   : > { %v8324_v56 = vadd.f32 %v8323_v9, %v8322_v13  ;;  %v8429_v31 = vpop.f32.mrb[253].mxu1  ;;  %v8325_v32 = vpop.f32.mrb[226].mxu0 }
 0x38f   : > { %v8430_v3 = vadd.f32 %v8429_v31, %v8428_v20  ;;  %v8431_v15 = vpop.f32.mrb[254].mxu1  ;;  %v8326_v37 = vpop.f32.mrb[227].mxu0  ;;  %v11988_v20 = vld [vmem:[#allocation9_spill] sm:$0xff]  ;;  %v9564_v31 = vld [vmem:[%s11957_s6 + $0xd0] sm:$0xff]  }
 0x390   : > { %v8327_v45 = vadd.f32 %v8326_v37, %v8325_v32  ;;  %v8432_v47 = vpop.f32.mrb[255].mxu1  ;;  %v4267_v61 = vadd.f32 %v8324_v56, %v10939_v51  ;;  %v9563_v56 = vld [vmem:[%s11957_s6 + $0x70] sm:$0xff]   ;;  %8910 = vmatprep.subr.bf16.mxu0 %v9564_v31 }
 0x391   : > { %v11137_v42 = vadd.f32 %v8430_v3, %v4259_v49  ;;  %v8433_v59 = vadd.f32 %v8432_v47, %v8431_v15  ;;  %4869 = vmatmul.mubr.bf16.gmra.mrb[76].mxu0 %v11986_v27  ;;  %v9566_v3 = vld [vmem:[%s11957_s6 + $0x90] sm:$0xff]   ;;  %8806 = vmatprep.subr.bf16.mxu1 %v9563_v56 }
 0x392   : > { %v4270_v63 = vadd.f32 %v8327_v45, %v11987_v40  ;;  %4876 = vmatprep.mubr.bf16.mxu0 %v10958_v5  ;;  %v11989_v5 = vld [vmem:[#allocation12_spill] sm:$0xff]  ;;  %8911 = vmatpush3.bf16.msra.mxu0 %v9566_v3 }
 0x393   : > { %v11142_v22 = vadd.f32 %v8433_v59, %v4262_v30 }
 0x394   : > { %v8328_v57 = vpop.f32.mrb[228].mxu0 }
 0x395   : > { %v8434_v6 = vpop.f32.mrb[0].mxu1  ;;  %v8329_v16 = vpop.f32.mrb[229].mxu0 }
 0x396   : > { %v8330_v62 = vadd.f32 %v8329_v16, %v8328_v57  ;;  %v8435_v46 = vpop.f32.mrb[1].mxu1  ;;  %v8331_v35 = vpop.f32.mrb[230].mxu0  ;;  %v11990_v57 = vld [vmem:[#allocation14_spill] sm:$0xff] }
 0x397   : > { %v8436_v0 = vadd.f32 %v8435_v46, %v8434_v6  ;;  %v8437_v33 = vpop.f32.mrb[2].mxu1  ;;  %v8332_v51 = vpop.f32.mrb[231].mxu0  ;;  %v11991_v46 = vld [vmem:[#allocation11_spill] sm:$0xff] }
 0x398   : > { %v8333_v49 = vadd.f32 %v8332_v51, %v8331_v35  ;;  %v8438_v11 = vpop.f32.mrb[3].mxu1  ;;  %v4275_v60 = vadd.f32 %v8330_v62, %v10951_v55  ;;  %v9565_v55 = vld [vmem:[%s11957_s6 + $0x30] sm:$0xff]  }
 0x399   : > { %v11145_v13 = vadd.f32 %v8436_v0, %v4267_v61  ;;  %v8439_v23 = vadd.f32 %v8438_v11, %v8437_v33  ;;  %4877 = vmatmul.mubr.bf16.gmra.mrb[80].mxu0 %v11988_v20  ;;  %8807 = vmatpush3.bf16.msra.mxu1 %v9565_v55  ;;  %v11992_v35 = vld [vmem:[#allocation15_spill] sm:$0xff] }
 0x39a   : > { %v4278_v30 = vadd.f32 %v8333_v49, %v11989_v5  ;;  %4884 = vmatprep.mubr.bf16.mxu0 %v10970_v14 }
 0x39b   : > { %v11150_v9 = vadd.f32 %v8439_v23, %v4270_v63 }
 0x39c   : > { %v8334_v32 = vpop.f32.mrb[232].mxu0 }
 0x39d   : > { %v8440_v14 = vpop.f32.mrb[4].mxu1  ;;  %v8335_v15 = vpop.f32.mrb[233].mxu0 }
 0x39e   : > { %v8336_v37 = vadd.f32 %v8335_v15, %v8334_v32  ;;  %v8441_v45 = vpop.f32.mrb[5].mxu1  ;;  %v8337_v47 = vpop.f32.mrb[234].mxu0 }
 0x39f   : > { %v8442_v61 = vadd.f32 %v8441_v45, %v8440_v14  ;;  %v8443_v59 = vpop.f32.mrb[6].mxu1  ;;  %v8338_v27 = vpop.f32.mrb[235].mxu0 }
 0x3a0   : > { %v8339_v40 = vadd.f32 %v8338_v27, %v8337_v47  ;;  %v8444_v63 = vpop.f32.mrb[7].mxu1  ;;  %v4283_v6 = vadd.f32 %v8336_v37, %v11990_v57  ;;  %v11993_v37 = vld [vmem:[#allocation13_spill] sm:$0xff]  ;;  %v9567_v47 = vld [vmem:[%s11957_s6 + $0x78] sm:$0xff]  }
 0x3a1   : > { %v11165_v16 = vadd.f32 %v8442_v61, %v4275_v60  ;;  %v8445_v62 = vadd.f32 %v8444_v63, %v8443_v59  ;;  %4885 = vmatmul.mubr.bf16.gmra.mrb[84].mxu0 %v11991_v46  ;;  %v9568_v61 = vld [vmem:[%s11957_s6 + $0xd8] sm:$0xff]   ;;  %8808 = vmatprep.subr.bf16.mxu1 %v9567_v47 }
 0x3a2   : > { %v4286_v0 = vadd.f32 %v8339_v40, %v11992_v35  ;;  %4892 = vmatprep.mubr.bf16.mxu0 %v10982_v4  ;;  %v11994_v4 = vld [vmem:[#allocation17_spill] sm:$0xff]  ;;  %v9570_v27 = vld [vmem:[%s11957_s6 + $0x98] sm:$0xff]   ;;  %8912 = vmatprep.subr.bf16.mxu0 %v9568_v61 }
 0x3a3   : > { %v11170_v33 = vadd.f32 %v8445_v62, %v4278_v30  ;;  %8913 = vmatpush3.bf16.msra.mxu0 %v9570_v27 }
 0x3a4   : > { %v8340_v51 = vpop.f32.mrb[236].mxu0 }
 0x3a5   : > { %v8446_v49 = vpop.f32.mrb[8].mxu1  ;;  %v8341_v11 = vpop.f32.mrb[237].mxu0 }
 0x3a6   : > { %v8342_v23 = vadd.f32 %v8341_v11, %v8340_v51  ;;  %v8447_v20 = vpop.f32.mrb[9].mxu1  ;;  %v8343_v5 = vpop.f32.mrb[238].mxu0 }
 0x3a7   : > { %v8448_v56 = vadd.f32 %v8447_v20, %v8446_v49  ;;  %v8449_v31 = vpop.f32.mrb[10].mxu1  ;;  %v8344_v55 = vpop.f32.mrb[239].mxu0 }
 0x3a8   : > { %v8345_v60 = vadd.f32 %v8344_v55, %v8343_v5  ;;  %v8450_v32 = vpop.f32.mrb[11].mxu1  ;;  %v4291_v3 = vadd.f32 %v8342_v23, %v10975_v50  ;;  %v9569_v50 = vld [vmem:[%s11957_s6 + $0x38] sm:$0xff]   ;;  %v9571_v55 = vld [vmem:[%s11957_s6 + $0xe0] sm:$0xff]  }
 0x3a9   : > { %v11173_v14 = vadd.f32 %v8448_v56, %v4283_v6  ;;  %v8451_v15 = vadd.f32 %v8450_v32, %v8449_v31  ;;  %4893 = vmatmul.mubr.bf16.gmra.mrb[88].mxu0 %v11993_v37  ;;  %8809 = vmatpush3.bf16.msra.mxu1 %v9569_v50  ;;  %v11996_v5 = vld [vmem:[#allocation16_spill] sm:$0xff]  ;;  %v9572_v32 = vld [vmem:[%s11957_s6 + $0xa0] sm:$0xff]  }
 0x3aa   : > { %v4294_v30 = vadd.f32 %v8345_v60, %v11994_v4  ;;  %4900 = vmatprep.mubr.bf16.mxu0 %v11000_v21  ;;  %v11997_v56 = vld [vmem:[#allocation20_spill] sm:$0xff]  ;;  %8914 = vmatprep.subr.bf16.mxu0 %v9571_v55  ;;  %v5094_v37 = vld [vmem:[#allocation5 + $0x9] sm:$0xff] }
 0x3ab   : > { %v11178_v45 = vadd.f32 %v8451_v15, %v4286_v0  ;;  %v11995_v0 = vld [vmem:[#allocation19_spill] sm:$0xff]  ;;  %8915 = vmatpush3.bf16.msra.mxu0 %v9572_v32 }
 0x3ac   : > { %v8474_v59 = vpop.f32.mrb[240].mxu0 }
 0x3ad   : > { %v8452_v21 = vpop.f32.mrb[12].mxu1  ;;  %v8475_v40 = vpop.f32.mrb[241].mxu0 }
 0x3ae   : > { %v8453_v63 = vpop.f32.mrb[13].mxu1  ;;  %v8476_v57 = vadd.f32 %v8475_v40, %v8474_v59  ;;  %v8477_v6 = vpop.f32.mrb[242].mxu0 }
 0x3af   : > { %v8454_v62 = vadd.f32 %v8453_v63, %v8452_v21  ;;  %v8455_v46 = vpop.f32.mrb[14].mxu1  ;;  %v8478_v35 = vpop.f32.mrb[243].mxu0  ;;  %v9574_v63 = vld [vmem:[%s11957_s6 + $0xa8] sm:$0xff]  }
 0x3b0   : > { %v4493_v51 = vadd.f32 %v8476_v57, %v11995_v0  ;;  %v8456_v49 = vpop.f32.mrb[15].mxu1  ;;  %v8479_v11 = vadd.f32 %v8478_v35, %v8477_v6  ;;  %v11998_v0 = vld [vmem:[#allocation18_spill] sm:$0xff] }
 0x3b1   : > { %v11193_v23 = vadd.f32 %v8454_v62, %v4291_v3  ;;  %v8457_v20 = vadd.f32 %v8456_v49, %v8455_v46  ;;  %4901 = vmatmul.mubr.bf16.gmra.mrb[92].mxu0 %v11996_v5  ;;  %v5093_v3 = vld [vmem:[#allocation5 + $0x1] sm:$0xff] }
 0x3b2   : > { %v4496_v31 = vadd.f32 %v8479_v11, %v11997_v56  ;;  %4908 = vmatprep.mubr.bf16.mxu0 %v11012_v26  ;;  %v5125_v61 = vpack.c.bf16 %v5094_v37, %v5093_v3  ;;  %v9575_v11 = vld [vmem:[%s11957_s6 + $0xf0] sm:$0xff]   ;;  %v9580_v3 = vld [vmem:[%s11957_s6 + $0xb8] sm:$0xff]  }
 0x3b3   : > { %v11201_v60 = vadd.f32 %v8457_v20, %v4294_v30  ;;  %v9573_v30 = vld [vmem:[%s11957_s6 + $0xe8] sm:$0xff]  }
 0x3b4   : > { %v8480_v15 = vpop.f32.mrb[244].mxu0  ;;  %6093 = vmatprep.mubr.bf16.mxu1 %v5125_v61  ;;  %8916 = vmatprep.subr.bf16.mxu0 %v9573_v30  ;;  %v2315_v30 = vld [vmem:[#allocation3 + $0x19a] sm:$0xff] }
 0x3b5   : > { %v8586_v4 = vpop.f32.mrb[16].mxu1  ;;  %v8481_v47 = vpop.f32.mrb[245].mxu0  ;;  %6094 = vmatmul.mubr.bf16.vlgmr.msra.gmra.mrb[80].mxu1 %v11033_v8  ;;  %8917 = vmatpush3.bf16.msra.mxu0 %v9574_v63  ;;  %v9577_v8 = vld [vmem:[%s11957_s6 + $0xb0] sm:$0xff]  }
 0x3b6   : > { %v8482_v50 = vadd.f32 %v8481_v47, %v8480_v15  ;;  %v8587_v26 = vpop.f32.mrb[17].mxu1  ;;  %v8483_v59 = vpop.f32.mrb[246].mxu0  ;;  %8918 = vmatprep.subr.bf16.mxu0 %v9575_v11 }
 0x3b7   : > { %v8588_v27 = vadd.f32 %v8587_v26, %v8586_v4  ;;  %v8589_v21 = vpop.f32.mrb[18].mxu1  ;;  %v8484_v40 = vpop.f32.mrb[247].mxu0 }
 0x3b8   : > { %v4501_v57 = vadd.f32 %v8482_v50, %v11005_v58  ;;  %v8485_v6 = vadd.f32 %v8484_v40, %v8483_v59  ;;  %v8590_v62 = vpop.f32.mrb[19].mxu1 }
 0x3b9   : > { %v11214_v46 = vadd.f32 %v8588_v27, %v4493_v51  ;;  %v8591_v35 = vadd.f32 %v8590_v62, %v8589_v21  ;;  %4909 = vmatmul.mubr.bf16.gmra.mrb[96].mxu0 %v11998_v0  ;;  %v2316_v27 = vld [vmem:[#allocation3 + $0x1a2] sm:$0xff] }
 0x3ba   : > { %v4504_v49 = vadd.f32 %v8485_v6, %v11010_v41  ;;  %4916 = vmatprep.mubr.bf16.mxu0 %v11031_v18  ;;  %8919 = vmatpush3.bf16.msra.mxu0 %v9577_v8  ;;  %v9579_v18 = vld [vmem:[%s11957_s6 + $0xf8] sm:$0xff]  }
 0x3bb   : > { %v11222_v58 = vadd.f32 %v8591_v35, %v4496_v31  ;;  %8920 = vmatprep.subr.bf16.mxu0 %v9579_v18 }
 0x3bc   : > { %v8486_v51 = vpop.f32.mrb[248].mxu0 }
 0x3bd   : > { %v8592_v20 = vpop.f32.mrb[20].mxu1  ;;  %v8487_v5 = vpop.f32.mrb[249].mxu0 }
 0x3be   : > { %v8488_v56 = vadd.f32 %v8487_v5, %v8486_v51  ;;  %v8593_v55 = vpop.f32.mrb[21].mxu1  ;;  %v8489_v41 = vpop.f32.mrb[250].mxu0  ;;  %8921 = vmatpush3.bf16.msra.mxu0 %v9580_v3 }
 0x3bf   : > { %v8594_v32 = vadd.f32 %v8593_v55, %v8592_v20  ;;  %v8595_v15 = vpop.f32.mrb[22].mxu1  ;;  %v8490_v31 = vpop.f32.mrb[251].mxu0  ;;  %v2220_v55 = vld [vmem:[#allocation3 + $0x1a1] sm:$0xff] }
 0x3c0   : > { %v4509_v37 = vadd.f32 %v8488_v56, %v11018_v25  ;;  %v8491_v4 = vadd.f32 %v8490_v31, %v8489_v41  ;;  %v8596_v47 = vpop.f32.mrb[23].mxu1  ;;  %v2219_v56 = vld [vmem:[#allocation3 + $0x199] sm:$0xff] }
 0x3c1   : > { %v11234_v61 = vadd.f32 %v8594_v32, %v4501_v57  ;;  %v8597_v50 = vadd.f32 %v8596_v47, %v8595_v15  ;;  %4917 = vmatmul.mubr.bf16.gmra.mrb[100].mxu0 %v11002_v17  ;;  %v2332_v57 = vpack.c.bf16 %v2316_v27, %v2315_v30  ;;  %v9576_v17 = vld [vmem:[%s11957_s6 + $0x140] sm:$0xff]  }
 0x3c2   : > { %v4512_v26 = vadd.f32 %v8491_v4, %v11023_v53  ;;  %4924 = vmatprep.mubr.bf16.mxu0 %v11044_v29  ;;  %v9578_v53 = vld [vmem:[%s11957_s6 + $0x100] sm:$0xff]   ;;  %9018 = vmatprep.subr.bf16.mxu1 %v9576_v17 }
 0x3c3   : > { %v11239_v59 = vadd.f32 %v8597_v50, %v4504_v49  ;;  %9019 = vmatpush3.bf16.msra.mxu1 %v9578_v53 }
 0x3c4   : > { %v8492_v21 = vpop.f32.mrb[252].mxu0 }
 0x3c5   : > { %v8598_v40 = vpop.f32.mrb[24].mxu1  ;;  %v8493_v25 = vpop.f32.mrb[253].mxu0 }
 0x3c6   : > { %v8494_v63 = vadd.f32 %v8493_v25, %v8492_v21  ;;  %v8599_v6 = vpop.f32.mrb[25].mxu1  ;;  %v8495_v62 = vpop.f32.mrb[254].mxu0 }
 0x3c7   : > { %v8600_v29 = vadd.f32 %v8599_v6, %v8598_v40  ;;  %v8601_v35 = vpop.f32.mrb[26].mxu1  ;;  %v8496_v0 = vpop.f32.mrb[255].mxu0 }
 0x3c8   : > { %v4517_v49 = vadd.f32 %v8494_v63, %v11036_v38  ;;  %v8497_v11 = vadd.f32 %v8496_v0, %v8495_v62  ;;  %v8602_v8 = vpop.f32.mrb[27].mxu1  ;;  %v2236_v38 = vpack.c.bf16 %v2220_v55, %v2219_v56 }
 0x3c9   : > { %v11248_v51 = vadd.f32 %v8600_v29, %v4509_v37  ;;  %v8603_v20 = vadd.f32 %v8602_v8, %v8601_v35  ;;  %4925 = vmatmul.mubr.bf16.gmra.mrb[104].mxu0 %v11015_v44  ;;  %v9581_v37 = vld [vmem:[%s11957_s6 + $0x148] sm:$0xff]  }
 0x3ca   : > { %v4520_v5 = vadd.f32 %v8497_v11, %v11042_v24  ;;  %4932 = vmatprep.mubr.bf16.mxu0 %v2332_v57  ;;  %v9582_v44 = vld [vmem:[%s11957_s6 + $0x108] sm:$0xff]   ;;  %9020 = vmatprep.subr.bf16.mxu1 %v9581_v37 }
 0x3cb   : > { %v11252_v41 = vadd.f32 %v8603_v20, %v4512_v26  ;;  %9021 = vmatpush3.bf16.msra.mxu1 %v9582_v44 }
 0x3cc   : > { %v8498_v18 = vpop.f32.mrb[0].mxu0 }
 0x3cd   : > { %v8604_v32 = vpop.f32.mrb[28].mxu1  ;;  %v8499_v15 = vpop.f32.mrb[1].mxu0 }
 0x3ce   : > { %v8500_v31 = vadd.f32 %v8499_v15, %v8498_v18  ;;  %v8605_v3 = vpop.f32.mrb[29].mxu1  ;;  %v8501_v4 = vpop.f32.mrb[2].mxu0 }
 0x3cf   : > { %v8606_v24 = vadd.f32 %v8605_v3, %v8604_v32  ;;  %v8607_v47 = vpop.f32.mrb[30].mxu1  ;;  %v8502_v50 = vpop.f32.mrb[3].mxu0  ;;  %v9583_v3 = vld [vmem:[%s11957_s6 + $0x150] sm:$0xff]  }
 0x3d0   : > { %v4525_v26 = vadd.f32 %v8500_v31, %v11047_v10  ;;  %v8503_v30 = vadd.f32 %v8502_v50, %v8501_v4  ;;  %v8608_v27 = vpop.f32.mrb[31].mxu1  ;;  %9022 = vmatprep.subr.bf16.mxu1 %v9583_v3 }
 0x3d1   : > { %v11261_v21 = vadd.f32 %v8606_v24, %v4517_v49  ;;  %v8609_v40 = vadd.f32 %v8608_v27, %v8607_v47  ;;  %4933 = vmatmul.mubr.bf16.gmra.mrb[108].mxu0 %v2236_v38 }
 0x3d2   : > { %v4528_v25 = vadd.f32 %v8503_v30, %v11052_v1 }
 0x3d3   : > { %v11264_v63 = vadd.f32 %v8609_v40, %v4520_v5 }
 0x3d4   : > { %v8504_v6 = vpop.f32.mrb[4].mxu0 }
 0x3d5   : > { %v8610_v62 = vpop.f32.mrb[32].mxu1  ;;  %v8505_v57 = vpop.f32.mrb[5].mxu0 }
 0x3d6   : > { %v8506_v17 = vadd.f32 %v8505_v57, %v8504_v6  ;;  %v8611_v53 = vpop.f32.mrb[33].mxu1  ;;  %v8507_v29 = vpop.f32.mrb[6].mxu0 }
 0x3d7   : > { %v8612_v35 = vadd.f32 %v8611_v53, %v8610_v62  ;;  %v8613_v10 = vpop.f32.mrb[34].mxu1  ;;  %v8508_v0 = vpop.f32.mrb[7].mxu0 }
 0x3d8   : > { %v4533_v11 = vadd.f32 %v8506_v17, %v11061_v7  ;;  %v8509_v49 = vadd.f32 %v8508_v0, %v8507_v29  ;;  %v8614_v8 = vpop.f32.mrb[35].mxu1  ;;  %v9584_v7 = vld [vmem:[%s11957_s6 + $0x110] sm:$0xff]  }
 0x3d9   : > { %v11267_v20 = vadd.f32 %v8612_v35, %v4525_v26  ;;  %v8615_v56 = vadd.f32 %v8614_v8, %v8613_v10  ;;  %9023 = vmatpush3.bf16.msra.mxu1 %v9584_v7 }
 0x3da   : > { %v4536_v1 = vadd.f32 %v8509_v49, %v11065_v28 }
 0x3db   : > { %v11270_v5 = vadd.f32 %v8615_v56, %v4528_v25 }
 0x3dc   : > { %v8510_v55 = vpop.f32.mrb[8].mxu0 }
 0x3dd   : > { %v8616_v18 = vpop.f32.mrb[36].mxu1  ;;  %v8511_v32 = vpop.f32.mrb[9].mxu0 }
 0x3de   : > { %v8512_v15 = vadd.f32 %v8511_v32, %v8510_v55  ;;  %v8617_v38 = vpop.f32.mrb[37].mxu1  ;;  %v8513_v31 = vpop.f32.mrb[10].mxu0 }
 0x3df   : > { %v8618_v4 = vadd.f32 %v8617_v38, %v8616_v18  ;;  %v8619_v37 = vpop.f32.mrb[38].mxu1  ;;  %v8514_v44 = vpop.f32.mrb[11].mxu0  ;;  %v9585_v38 = vld [vmem:[%s11957_s6 + $0x158] sm:$0xff]  }
 0x3e0   : > { %v4541_v28 = vadd.f32 %v8512_v15, %v11068_v19  ;;  %v8515_v24 = vadd.f32 %v8514_v44, %v8513_v31  ;;  %v8620_v47 = vpop.f32.mrb[39].mxu1  ;;  %9024 = vmatprep.subr.bf16.mxu1 %v9585_v38 }
 0x3e1   : > { %v11279_v50 = vadd.f32 %v8618_v4, %v4533_v11  ;;  %v8621_v26 = vadd.f32 %v8620_v47, %v8619_v37 }
 0x3e2   : > { %v4544_v30 = vadd.f32 %v8515_v24, %v11072_v2 }
 0x3e3   : > { %v11282_v27 = vadd.f32 %v8621_v26, %v4536_v1 }
 0x3e4   : > { %v8516_v40 = vpop.f32.mrb[12].mxu0 }
 0x3e5   : > { %v8622_v25 = vpop.f32.mrb[40].mxu1  ;;  %v8517_v6 = vpop.f32.mrb[13].mxu0 }
 0x3e6   : > { %v8518_v62 = vadd.f32 %v8517_v6, %v8516_v40  ;;  %v8623_v57 = vpop.f32.mrb[41].mxu1  ;;  %v8519_v17 = vpop.f32.mrb[14].mxu0 }
 0x3e7   : > { %v8624_v53 = vadd.f32 %v8623_v57, %v8622_v25  ;;  %v8625_v29 = vpop.f32.mrb[42].mxu1  ;;  %v8520_v19 = vpop.f32.mrb[15].mxu0 }
 0x3e8   : > { %v4549_v35 = vadd.f32 %v8518_v62, %v11082_v43  ;;  %v8521_v10 = vadd.f32 %v8520_v19, %v8519_v17  ;;  %v8626_v0 = vpop.f32.mrb[43].mxu1  ;;  %v9586_v43 = vld [vmem:[%s11957_s6 + $0x118] sm:$0xff]  }
 0x3e9   : > { %v11285_v11 = vadd.f32 %v8624_v53, %v4541_v28  ;;  %v8627_v49 = vadd.f32 %v8626_v0, %v8625_v29  ;;  %9025 = vmatpush3.bf16.msra.mxu1 %v9586_v43 }
 0x3ea   : > { %v4552_v2 = vadd.f32 %v8521_v10, %v11086_v39 }
 0x3eb   : > { %v11288_v8 = vadd.f32 %v8627_v49, %v4544_v30 }
 0x3ec   : > { %v8522_v56 = vpop.f32.mrb[16].mxu0 }
 0x3ed   : > { %v8628_v1 = vpop.f32.mrb[44].mxu1  ;;  %v8523_v55 = vpop.f32.mrb[17].mxu0 }
 0x3ee   : > { %v8524_v18 = vadd.f32 %v8523_v55, %v8522_v56  ;;  %v8629_v32 = vpop.f32.mrb[45].mxu1  ;;  %v8525_v15 = vpop.f32.mrb[18].mxu0 }
 0x3ef   : > { %v8630_v31 = vadd.f32 %v8629_v32, %v8628_v1  ;;  %v8631_v3 = vpop.f32.mrb[46].mxu1  ;;  %v8526_v7 = vpop.f32.mrb[19].mxu0  ;;  %v9587_v32 = vld [vmem:[%s11957_s6 + $0x160] sm:$0xff]  }
 0x3f0   : > { %v4557_v39 = vadd.f32 %v8524_v18, %v11089_v54  ;;  %v8527_v4 = vadd.f32 %v8526_v7, %v8525_v15  ;;  %v8632_v37 = vpop.f32.mrb[47].mxu1  ;;  %9026 = vmatprep.subr.bf16.mxu1 %v9587_v32 }
 0x3f1   : > { %v11297_v44 = vadd.f32 %v8630_v31, %v4549_v35  ;;  %v8633_v28 = vadd.f32 %v8632_v37, %v8631_v3 }
 0x3f2   : > { %v4560_v24 = vadd.f32 %v8527_v4, %v11094_v48 }
 0x3f3   : > { %v11300_v47 = vadd.f32 %v8633_v28, %v4552_v2 }
 0x3f4   : > { %v8528_v26 = vpop.f32.mrb[20].mxu0 }
 0x3f5   : > { %v8634_v30 = vpop.f32.mrb[48].mxu1  ;;  %v8529_v40 = vpop.f32.mrb[21].mxu0 }
 0x3f6   : > { %v8530_v25 = vadd.f32 %v8529_v40, %v8528_v26  ;;  %v8635_v6 = vpop.f32.mrb[49].mxu1  ;;  %v8531_v62 = vpop.f32.mrb[22].mxu0 }
 0x3f7   : > { %v8636_v57 = vadd.f32 %v8635_v6, %v8634_v30  ;;  %v8637_v17 = vpop.f32.mrb[50].mxu1  ;;  %v8532_v54 = vpop.f32.mrb[23].mxu0 }
 0x3f8   : > { %v4565_v53 = vadd.f32 %v8530_v25, %v11109_v36  ;;  %v8533_v29 = vadd.f32 %v8532_v54, %v8531_v62  ;;  %v8638_v19 = vpop.f32.mrb[51].mxu1  ;;  %v9588_v36 = vld [vmem:[%s11957_s6 + $0x1c0] sm:$0xff]  }
 0x3f9   : > { %v11303_v35 = vadd.f32 %v8636_v57, %v4557_v39  ;;  %v8639_v10 = vadd.f32 %v8638_v19, %v8637_v17  ;;  %9130 = vmatprep.subr.bf16.mxu0 %v9588_v36 }
 0x3fa   : > { %v4568_v48 = vadd.f32 %v8533_v29, %v11114_v12  ;;  %v9589_v12 = vld [vmem:[%s11957_s6 + $0x120] sm:$0xff]  }
 0x3fb   : > { %v11306_v0 = vadd.f32 %v8639_v10, %v4560_v24  ;;  %9027 = vmatpush3.bf16.msra.mxu1 %v9589_v12 }
 0x3fc   : > { %v8534_v49 = vpop.f32.mrb[24].mxu0 }
 0x3fd   : > { %v8640_v2 = vpop.f32.mrb[52].mxu1  ;;  %v8535_v56 = vpop.f32.mrb[25].mxu0 }
 0x3fe   : > { %v8536_v1 = vadd.f32 %v8535_v56, %v8534_v49  ;;  %v8641_v55 = vpop.f32.mrb[53].mxu1  ;;  %v8537_v18 = vpop.f32.mrb[26].mxu0 }
 0x3ff   : > { %v8642_v15 = vadd.f32 %v8641_v55, %v8640_v2  ;;  %v8643_v38 = vpop.f32.mrb[54].mxu1  ;;  %v8538_v43 = vpop.f32.mrb[27].mxu0 }
 0x400   : > { %v4573_v31 = vadd.f32 %v8536_v1, %v11117_v52  ;;  %v8539_v3 = vadd.f32 %v8538_v43, %v8537_v18  ;;  %v8644_v7 = vpop.f32.mrb[55].mxu1  ;;  %v9591_v18 = vld [vmem:[%s11957_s6 + $0x168] sm:$0xff]  }
 0x401   : > { %v11318_v39 = vadd.f32 %v8642_v15, %v4565_v53  ;;  %v8645_v4 = vadd.f32 %v8644_v7, %v8643_v38  ;;  %9028 = vmatprep.subr.bf16.mxu1 %v9591_v18 }
 0x402   : > { %v4576_v37 = vadd.f32 %v8539_v3, %v11122_v34 }
 0x403   : > { %v11321_v28 = vadd.f32 %v8645_v4, %v4568_v48 }
 0x404   : > { %v8540_v24 = vpop.f32.mrb[28].mxu0 }
 0x405   : > { %v8646_v26 = vpop.f32.mrb[56].mxu1  ;;  %v8541_v30 = vpop.f32.mrb[29].mxu0 }
 0x406   : > { %v8542_v40 = vadd.f32 %v8541_v30, %v8540_v24  ;;  %v8647_v25 = vpop.f32.mrb[57].mxu1  ;;  %v8543_v6 = vpop.f32.mrb[30].mxu0 }
 0x407   : > { %v8648_v62 = vadd.f32 %v8647_v25, %v8646_v26  ;;  %v8649_v52 = vpop.f32.mrb[58].mxu1  ;;  %v8544_v57 = vpop.f32.mrb[31].mxu0 }
 0x408   : > { %v4581_v17 = vadd.f32 %v8542_v40, %v11137_v42  ;;  %v8545_v54 = vadd.f32 %v8544_v57, %v8543_v6  ;;  %v8650_v53 = vpop.f32.mrb[59].mxu1  ;;  %v9593_v42 = vld [vmem:[%s11957_s6 + $0x128] sm:$0xff]  }
 0x409   : > { %v11324_v29 = vadd.f32 %v8648_v62, %v4573_v31  ;;  %v8651_v19 = vadd.f32 %v8650_v53, %v8649_v52  ;;  %9029 = vmatpush3.bf16.msra.mxu1 %v9593_v42 }
 0x40a   : > { %v4584_v34 = vadd.f32 %v8545_v54, %v11142_v22 }
 0x40b   : > { %v11327_v10 = vadd.f32 %v8651_v19, %v4576_v37 }
 0x40c   : > { %v8546_v48 = vpop.f32.mrb[32].mxu0 }
 0x40d   : > { %v8652_v49 = vpop.f32.mrb[60].mxu1  ;;  %v8547_v2 = vpop.f32.mrb[33].mxu0 }
 0x40e   : > { %v8548_v56 = vadd.f32 %v8547_v2, %v8546_v48  ;;  %v8653_v1 = vpop.f32.mrb[61].mxu1  ;;  %v8549_v55 = vpop.f32.mrb[34].mxu0 }
 0x40f   : > { %v8654_v32 = vadd.f32 %v8653_v1, %v8652_v49  ;;  %v8655_v36 = vpop.f32.mrb[62].mxu1  ;;  %v8550_v12 = vpop.f32.mrb[35].mxu0  ;;  %v9595_v1 = vld [vmem:[%s11957_s6 + $0x170] sm:$0xff]  }
 0x410   : > { %v4589_v22 = vadd.f32 %v8548_v56, %v11145_v13  ;;  %v8551_v15 = vadd.f32 %v8550_v12, %v8549_v55  ;;  %v8656_v38 = vpop.f32.mrb[63].mxu1  ;;  %9030 = vmatprep.subr.bf16.mxu1 %v9595_v1 }
 0x411   : > { %v11336_v43 = vadd.f32 %v8654_v32, %v4581_v17  ;;  %v8657_v31 = vadd.f32 %v8656_v38, %v8655_v36 }
 0x412   : > { %v4592_v3 = vadd.f32 %v8551_v15, %v11150_v9 }
 0x413   : > { %v11339_v7 = vadd.f32 %v8657_v31, %v4584_v34 }
 0x414   : > { %v8552_v4 = vpop.f32.mrb[36].mxu0 }
 0x415   : > { %v8658_v37 = vpop.f32.mrb[64].mxu1  ;;  %v8553_v24 = vpop.f32.mrb[37].mxu0 }
 0x416   : > { %v8554_v26 = vadd.f32 %v8553_v24, %v8552_v4  ;;  %v8659_v30 = vpop.f32.mrb[65].mxu1  ;;  %v8555_v40 = vpop.f32.mrb[38].mxu0 }
 0x417   : > { %v8660_v25 = vadd.f32 %v8659_v30, %v8658_v37  ;;  %v8661_v6 = vpop.f32.mrb[66].mxu1  ;;  %v8556_v13 = vpop.f32.mrb[39].mxu0 }
 0x418   : > { %v4597_v62 = vadd.f32 %v8554_v26, %v11165_v16  ;;  %v8557_v52 = vadd.f32 %v8556_v13, %v8555_v40  ;;  %v8662_v57 = vpop.f32.mrb[67].mxu1  ;;  %v9597_v16 = vld [vmem:[%s11957_s6 + $0x130] sm:$0xff]  }
 0x419   : > { %v11342_v17 = vadd.f32 %v8660_v25, %v4589_v22  ;;  %v8663_v54 = vadd.f32 %v8662_v57, %v8661_v6  ;;  %9031 = vmatpush3.bf16.msra.mxu1 %v9597_v16 }
 0x41a   : > { %v4600_v9 = vadd.f32 %v8557_v52, %v11170_v33 }
 0x41b   : > { %v11345_v53 = vadd.f32 %v8663_v54, %v4592_v3 }
 0x41c   : > { %v8558_v19 = vpop.f32.mrb[40].mxu0 }
 0x41d   : > { %v8664_v34 = vpop.f32.mrb[68].mxu1  ;;  %v8559_v48 = vpop.f32.mrb[41].mxu0 }
 0x41e   : > { %v8560_v49 = vadd.f32 %v8559_v48, %v8558_v19  ;;  %v8665_v2 = vpop.f32.mrb[69].mxu1  ;;  %v8561_v56 = vpop.f32.mrb[42].mxu0 }
 0x41f   : > { %v8666_v55 = vadd.f32 %v8665_v2, %v8664_v34  ;;  %v8667_v18 = vpop.f32.mrb[70].mxu1  ;;  %v8562_v42 = vpop.f32.mrb[43].mxu0  ;;  %v9599_v2 = vld [vmem:[%s11957_s6 + $0x178] sm:$0xff]  }
 0x420   : > { %v4605_v33 = vadd.f32 %v8560_v49, %v11173_v14  ;;  %v8563_v32 = vadd.f32 %v8562_v42, %v8561_v56  ;;  %v8668_v36 = vpop.f32.mrb[71].mxu1  ;;  %9032 = vmatprep.subr.bf16.mxu1 %v9599_v2 }
 0x421   : > { %v11354_v12 = vadd.f32 %v8666_v55, %v4597_v62  ;;  %v8669_v22 = vadd.f32 %v8668_v36, %v8667_v18 }
 0x422   : > { %v4608_v15 = vadd.f32 %v8563_v32, %v11178_v45 }
 0x423   : > { %v11357_v38 = vadd.f32 %v8669_v22, %v4600_v9 }
 0x424   : > { %v8564_v31 = vpop.f32.mrb[44].mxu0 }
 0x425   : > { %v8670_v3 = vpop.f32.mrb[72].mxu1  ;;  %v8565_v4 = vpop.f32.mrb[45].mxu0 }
 0x426   : > { %v8566_v37 = vadd.f32 %v8565_v4, %v8564_v31  ;;  %v8671_v24 = vpop.f32.mrb[73].mxu1  ;;  %v8567_v26 = vpop.f32.mrb[46].mxu0 }
 0x427   : > { %v8672_v30 = vadd.f32 %v8671_v24, %v8670_v3  ;;  %v8673_v40 = vpop.f32.mrb[74].mxu1  ;;  %v8568_v14 = vpop.f32.mrb[47].mxu0 }
 0x428   : > { %v4613_v25 = vadd.f32 %v8566_v37, %v11193_v23  ;;  %v8569_v6 = vadd.f32 %v8568_v14, %v8567_v26  ;;  %v8674_v13 = vpop.f32.mrb[75].mxu1  ;;  %v9601_v23 = vld [vmem:[%s11957_s6 + $0x138] sm:$0xff]  }
 0x429   : > { %v11360_v62 = vadd.f32 %v8672_v30, %v4605_v33  ;;  %v8675_v52 = vadd.f32 %v8674_v13, %v8673_v40  ;;  %9033 = vmatpush3.bf16.msra.mxu1 %v9601_v23  ;;  %v9592_v23 = vld [vmem:[%s11957_s6 + $0x1c8] sm:$0xff]  }
 0x42a   : > { %v4616_v45 = vadd.f32 %v8569_v6, %v11201_v60  ;;  %v5142_v6 = vld [vmem:[#allocation5 + $0xa] sm:$0xff] }
 0x42b   : > { %v11363_v57 = vadd.f32 %v8675_v52, %v4608_v15 }
 0x42c   : > { %v8698_v54 = vpop.f32.mrb[48].mxu0 }
 0x42d   : > { %v8676_v9 = vpop.f32.mrb[76].mxu1  ;;  %v8699_v19 = vpop.f32.mrb[49].mxu0 }
 0x42e   : > { %v8677_v34 = vpop.f32.mrb[77].mxu1  ;;  %v8700_v48 = vadd.f32 %v8699_v19, %v8698_v54  ;;  %v8701_v49 = vpop.f32.mrb[50].mxu0 }
 0x42f   : > { %v8678_v56 = vadd.f32 %v8677_v34, %v8676_v9  ;;  %v8679_v1 = vpop.f32.mrb[78].mxu1  ;;  %v8702_v16 = vpop.f32.mrb[51].mxu0 }
 0x430   : > { %v4815_v60 = vadd.f32 %v8700_v48, %v11214_v46  ;;  %v8680_v55 = vpop.f32.mrb[79].mxu1  ;;  %v8703_v18 = vadd.f32 %v8702_v16, %v8701_v49 }
 0x431   : > { %v11372_v42 = vadd.f32 %v8678_v56, %v4613_v25  ;;  %v8681_v33 = vadd.f32 %v8680_v55, %v8679_v1  ;;  %v5141_v25 = vld [vmem:[#allocation5 + $0x2] sm:$0xff]  ;;  %v9594_v55 = vld [vmem:[%s11957_s6 + $0x188] sm:$0xff]  }
 0x432   : > { %v4941_v32 = vmax.f32 %v4815_v60, 0.0  ;;  %v4818_v36 = vadd.f32 %v8703_v18, %v11222_v58  ;;  %v11384_v58 = vld [vmem:[%s11957_s6 + $0x200] sm:$0xff]   ;;  %v5173_v9 = vpack.c.bf16 %v5142_v6, %v5141_v25  ;;  %v9596_v18 = vld [vmem:[%s11957_s6 + $0x1d0] sm:$0xff]  }
 0x433   : > { %v11375_v22 = vadd.f32 %v8681_v33, %v4616_v45  ;;  %9266 = vmatprep.subr.bf16.mxu1 %v11384_v58 }
 0x434   : > { %5013 = vst [vmem:[#allocation5 + $0x19] sm:$0xff] %v4941_v32  ;;  %v4942_v15 = vmax.f32 %v4818_v36, 0.0  ;;  %v8704_v31 = vpop.f32.mrb[52].mxu0 }
 0x435   : > { %v8705_v3 = vpop.f32.mrb[53].mxu0 }
 0x436   : > { %5014 = vst [vmem:[#allocation5 + $0x21] sm:$0xff] %v4942_v15  ;;  %v11377_v4 = vpack.c.bf16 %v4942_v15, %v4941_v32  ;;  %v8706_v46 = vadd.f32 %v8705_v3, %v8704_v31  ;;  %v8707_v37 = vpop.f32.mrb[54].mxu0 }
 0x437   : > { %v8708_v24 = vpop.f32.mrb[55].mxu0 }
 0x438   : > { %v4823_v26 = vadd.f32 %v8706_v46, %v11234_v61  ;;  %v8709_v30 = vadd.f32 %v8708_v24, %v8707_v37  ;;  %6101 = vmatprep.mubr.bf16.mxu1 %v11377_v4 }
 0x43a   : > { %v4943_v40 = vmax.f32 %v4823_v26, 0.0  ;;  %v4826_v14 = vadd.f32 %v8709_v30, %v11239_v59  ;;  %v9590_v59 = vld [vmem:[%s11957_s6 + $0x180] sm:$0xff]   ;;  %v9598_v26 = vld [vmem:[%s11957_s6 + $0x190] sm:$0xff]  }
 0x43b   : > { %v5189_v61 = vld [vmem:[#allocation5 + $0x18] sm:$0xff] }
 0x43c   : > { %5015 = vst [vmem:[#allocation5 + $0x31] sm:$0xff] %v4943_v40  ;;  %v4944_v13 = vmax.f32 %v4826_v14, 0.0  ;;  %v8710_v52 = vpop.f32.mrb[56].mxu0  ;;  %v9600_v14 = vld [vmem:[%s11957_s6 + $0x1d8] sm:$0xff]  }
 0x43d   : > { %v8711_v45 = vpop.f32.mrb[57].mxu0  ;;  %v5190_v54 = vld [vmem:[#allocation5 + $0x20] sm:$0xff] }
 0x43e   : > { %5016 = vst [vmem:[#allocation5 + $0x39] sm:$0xff] %v4944_v13  ;;  %v8712_v19 = vadd.f32 %v8711_v45, %v8710_v52  ;;  %v8713_v34 = vpop.f32.mrb[58].mxu0  ;;  %v5221_v48 = vpack.c.bf16 %v5190_v54, %v5189_v61  ;;  %v5127_v49 = vpack.c.bf16 %v4944_v13, %v4943_v40  ;;  %v5143_v32 = vld [vmem:[#allocation5 + $0x1a] sm:$0xff]  ;;  %v5144_v36 = vld [vmem:[#allocation5 + $0x22] sm:$0xff] }
 0x43f   : > { %v8714_v2 = vpop.f32.mrb[59].mxu0  ;;  %v11407_v40 = vpack.c.bf16 %v5144_v36, %v5143_v32  ;;  %v9602_v45 = vld [vmem:[%s11957_s6 + $0x198] sm:$0xff]   ;;  %v9606_v32 = vld [vmem:[%s11957_s6 + $0x1a8] sm:$0xff]  }
 0x440   : > { %v4831_v56 = vadd.f32 %v8712_v19, %v11248_v51  ;;  %v8715_v1 = vadd.f32 %v8714_v2, %v8713_v34  ;;  %6254 = vmatprep.mubr.bf16.mxu0 %v5221_v48  ;;  %6102 = vmatmul.mubr.bf16.gmra.mrb[84].mxu1 %v5221_v48 }
 0x441   : > { %6255 = vmatmul.mubr.bf16.vlgmr.msra.gmra.mrb[112].mxu0 %v5173_v9  ;;  %6109 = vmatprep.mubr.bf16.mxu1 %v5127_v49 }
 0x442   : > { %v4945_v16 = vmax.f32 %v4831_v56, 0.0  ;;  %v4834_v60 = vadd.f32 %v8715_v1, %v11252_v41  ;;  %9131 = vmatpush3.bf16.msra.mxu0 %v9590_v59  ;;  %v9604_v56 = vld [vmem:[%s11957_s6 + $0x1a0] sm:$0xff]  }
 0x443   : > { %9132 = vmatprep.subr.bf16.mxu0 %v9592_v23  ;;  %v5334_v15 = vld [vmem:[#allocation5 + $0x30] sm:$0xff] }
 0x444   : > { %5017 = vst [vmem:[#allocation5 + $0x49] sm:$0xff] %v4945_v16  ;;  %v4946_v51 = vmax.f32 %v4834_v60, 0.0  ;;  %v8716_v33 = vpop.f32.mrb[60].mxu0  ;;  %v9605_v60 = vld [vmem:[%s11957_s6 + $0x1e8] sm:$0xff]  }
 0x445   : > { %v5335_v31 = vld [vmem:[#allocation5 + $0x38] sm:$0xff]  ;;  %v8717_v3 = vpop.f32.mrb[61].mxu0 }
 0x446   : > { %v11402_v46 = vpack.c.bf16 %v5335_v31, %v5334_v15  ;;  %5018 = vst [vmem:[#allocation5 + $0x51] sm:$0xff] %v4946_v51  ;;  %v8718_v41 = vadd.f32 %v8717_v3, %v8716_v33  ;;  %v8719_v37 = vpop.f32.mrb[62].mxu0  ;;  %v5128_v24 = vpack.c.bf16 %v4946_v51, %v4945_v16  ;;  %9133 = vmatpush3.bf16.msra.mxu0 %v9594_v55  ;;  %v5145_v9 = vld [vmem:[#allocation5 + $0x32] sm:$0xff]  ;;  %v5146_v19 = vld [vmem:[#allocation5 + $0x3a] sm:$0xff] }
 0x447   : > { %v8720_v30 = vpop.f32.mrb[63].mxu0  ;;  %9134 = vmatprep.subr.bf16.mxu0 %v9596_v18  ;;  %v11428_v16 = vpack.c.bf16 %v5146_v19, %v5145_v9  ;;  %v9611_v9 = vld [vmem:[%s11957_s6 + $0x1b8] sm:$0xff]  }
 0x448   : > { %v4839_v25 = vadd.f32 %v8718_v41, %v11261_v21  ;;  %v8721_v6 = vadd.f32 %v8720_v30, %v8719_v37  ;;  %6262 = vmatprep.mubr.bf16.mxu0 %v11402_v46  ;;  %6110 = vmatmul.mubr.bf16.gmra.mrb[88].mxu1 %v11402_v46  ;;  %v9603_v21 = vld [vmem:[%s11957_s6 + $0x1e0] sm:$0xff]  }
 0x449   : > { %6263 = vmatmul.mubr.bf16.gmra.mrb[116].mxu0 %v11407_v40  ;;  %6117 = vmatprep.mubr.bf16.mxu1 %v5128_v24 }
 0x44a   : > { %v4947_v13 = vmax.f32 %v4839_v25, 0.0  ;;  %v4842_v52 = vadd.f32 %v8721_v6, %v11264_v63  ;;  %9135 = vmatpush3.bf16.msra.mxu0 %v9598_v26  ;;  %v9609_v25 = vld [vmem:[%s11957_s6 + $0x1b0] sm:$0xff]  }
 0x44b   : > { %9136 = vmatprep.subr.bf16.mxu0 %v9600_v14  ;;  %v5193_v48 = vld [vmem:[#allocation5 + $0x48] sm:$0xff] }
 0x44c   : > { %5019 = vst [vmem:[#allocation5 + $0x61] sm:$0xff] %v4947_v13  ;;  %v4948_v61 = vmax.f32 %v4842_v52, 0.0  ;;  %v8722_v54 = vpop.f32.mrb[64].mxu0  ;;  %v9610_v52 = vld [vmem:[%s11957_s6 + $0x1f8] sm:$0xff]  }
 0x44d   : > { %v8723_v34 = vpop.f32.mrb[65].mxu0  ;;  %v5194_v49 = vld [vmem:[#allocation5 + $0x50] sm:$0xff] }
 0x44e   : > { %5020 = vst [vmem:[#allocation5 + $0x69] sm:$0xff] %v4948_v61  ;;  %v8724_v63 = vadd.f32 %v8723_v34, %v8722_v54  ;;  %v8725_v59 = vpop.f32.mrb[66].mxu0  ;;  %v11423_v2 = vpack.c.bf16 %v5194_v49, %v5193_v48  ;;  %v5129_v23 = vpack.c.bf16 %v4948_v61, %v4947_v13  ;;  %9137 = vmatpush3.bf16.msra.mxu0 %v9602_v45  ;;  %v5432_v36 = vld [vmem:[#allocation5 + $0x4a] sm:$0xff]  ;;  %v5433_v15 = vld [vmem:[#allocation5 + $0x52] sm:$0xff] }
 0x44f   : > { %v8726_v1 = vpop.f32.mrb[67].mxu0  ;;  %9138 = vmatprep.subr.bf16.mxu0 %v9603_v21  ;;  %v11449_v6 = vpack.c.bf16 %v5433_v15, %v5432_v36 }
 0x450   : > { %v4847_v55 = vadd.f32 %v8724_v63, %v11267_v20  ;;  %v8727_v18 = vadd.f32 %v8726_v1, %v8725_v59  ;;  %6270 = vmatprep.mubr.bf16.mxu0 %v11423_v2  ;;  %6118 = vmatmul.mubr.bf16.gmra.mrb[92].mxu1 %v11423_v2  ;;  %v9607_v20 = vld [vmem:[%s11957_s6 + $0x1f0] sm:$0xff]  }
 0x451   : > { %6271 = vmatmul.mubr.bf16.gmra.mrb[120].mxu0 %v11428_v16  ;;  %6125 = vmatprep.mubr.bf16.mxu1 %v5129_v23 }
 0x452   : > { %v4949_v51 = vmax.f32 %v4847_v55, 0.0  ;;  %v4850_v33 = vadd.f32 %v8727_v18, %v11270_v5  ;;  %9139 = vmatpush3.bf16.msra.mxu0 %v9604_v56 }
 0x453   : > { %9140 = vmatprep.subr.bf16.mxu0 %v9605_v60  ;;  %v5195_v37 = vld [vmem:[#allocation5 + $0x60] sm:$0xff] }
 0x454   : > { %5021 = vst [vmem:[#allocation5 + $0x79] sm:$0xff] %v4949_v51  ;;  %v4950_v31 = vmax.f32 %v4850_v33, 0.0  ;;  %v8728_v3 = vpop.f32.mrb[68].mxu0 }
 0x455   : > { %v8729_v41 = vpop.f32.mrb[69].mxu0  ;;  %v5196_v24 = vld [vmem:[#allocation5 + $0x68] sm:$0xff] }
 0x456   : > { %5022 = vst [vmem:[#allocation5 + $0x81] sm:$0xff] %v4950_v31  ;;  %v8730_v5 = vadd.f32 %v8729_v41, %v8728_v3  ;;  %v8731_v26 = vpop.f32.mrb[70].mxu0  ;;  %v11444_v30 = vpack.c.bf16 %v5196_v24, %v5195_v37  ;;  %v5130_v14 = vpack.c.bf16 %v4950_v31, %v4949_v51  ;;  %9141 = vmatpush3.bf16.msra.mxu0 %v9606_v32  ;;  %v5149_v34 = vld [vmem:[#allocation5 + $0x62] sm:$0xff]  ;;  %v5150_v48 = vld [vmem:[#allocation5 + $0x6a] sm:$0xff] }
 0x457   : > { %v8732_v13 = vpop.f32.mrb[71].mxu0  ;;  %9142 = vmatprep.subr.bf16.mxu0 %v9607_v20  ;;  %v11464_v55 = vpack.c.bf16 %v5150_v48, %v5149_v34 }
 0x458   : > { %v4855_v45 = vadd.f32 %v8730_v5, %v11279_v50  ;;  %v8733_v21 = vadd.f32 %v8732_v13, %v8731_v26  ;;  %6278 = vmatprep.mubr.bf16.mxu0 %v11444_v30  ;;  %6126 = vmatmul.mubr.bf16.gmra.mrb[96].mxu1 %v11444_v30 }
 0x459   : > { %6279 = vmatmul.mubr.bf16.gmra.mrb[124].mxu0 %v11449_v6  ;;  %6133 = vmatprep.mubr.bf16.mxu1 %v5130_v14 }
 0x45a   : > { %v4951_v61 = vmax.f32 %v4855_v45, 0.0  ;;  %v4858_v54 = vadd.f32 %v8733_v21, %v11282_v27  ;;  %9143 = vmatpush3.bf16.msra.mxu0 %v9609_v25 }
 0x45b   : > { %9144 = vmatprep.subr.bf16.mxu0 %v9610_v52  ;;  %v5197_v63 = vld [vmem:[#allocation5 + $0x78] sm:$0xff] }
 0x45c   : > { %5023 = vst [vmem:[#allocation5 + $0x91] sm:$0xff] %v4951_v61  ;;  %v4952_v19 = vmax.f32 %v4858_v54, 0.0  ;;  %v8734_v50 = vpop.f32.mrb[72].mxu0 }
 0x45d   : > { %v8735_v49 = vpop.f32.mrb[73].mxu0  ;;  %v5198_v59 = vld [vmem:[#allocation5 + $0x80] sm:$0xff] }
 0x45e   : > { %5024 = vst [vmem:[#allocation5 + $0x99] sm:$0xff] %v4952_v19  ;;  %v8736_v23 = vadd.f32 %v8735_v49, %v8734_v50  ;;  %v8737_v56 = vpop.f32.mrb[74].mxu0  ;;  %v11462_v1 = vpack.c.bf16 %v5198_v59, %v5197_v63  ;;  %v5131_v27 = vpack.c.bf16 %v4952_v19, %v4951_v61  ;;  %9145 = vmatpush3.bf16.msra.mxu0 %v9611_v9  ;;  %v5151_v15 = vld [vmem:[#allocation5 + $0x7a] sm:$0xff]  ;;  %v5152_v31 = vld [vmem:[#allocation5 + $0x82] sm:$0xff] }
 0x45f   : > { %v8738_v60 = vpop.f32.mrb[75].mxu0  ;;  %v11475_v25 = vpack.c.bf16 %v5152_v31, %v5151_v15 }
 0x460   : > { %v4863_v18 = vadd.f32 %v8736_v23, %v11285_v11  ;;  %v8739_v51 = vadd.f32 %v8738_v60, %v8737_v56  ;;  %6286 = vmatprep.mubr.bf16.mxu0 %v11462_v1  ;;  %6134 = vmatmul.mubr.bf16.gmra.mrb[100].mxu1 %v11462_v1 }
 0x461   : > { %6287 = vmatmul.mubr.bf16.gmra.mrb[128].mxu0 %v11464_v55  ;;  %6141 = vmatprep.mubr.bf16.mxu1 %v5131_v27 }
 0x462   : > { %v4953_v33 = vmax.f32 %v4863_v18, 0.0  ;;  %v4866_v32 = vadd.f32 %v8739_v51, %v11288_v8 }
 0x463   : > { %v5199_v41 = vld [vmem:[#allocation5 + $0x90] sm:$0xff] }
 0x464   : > { %5025 = vst [vmem:[#allocation5 + $0xa9] sm:$0xff] %v4953_v33  ;;  %v4954_v20 = vmax.f32 %v4866_v32, 0.0  ;;  %v8740_v36 = vpop.f32.mrb[76].mxu0 }
 0x465   : > { %v8741_v3 = vpop.f32.mrb[77].mxu0  ;;  %v5200_v37 = vld [vmem:[#allocation5 + $0x98] sm:$0xff] }
 0x466   : > { %5026 = vst [vmem:[#allocation5 + $0xb1] sm:$0xff] %v4954_v20  ;;  %v8742_v11 = vadd.f32 %v8741_v3, %v8740_v36  ;;  %v8743_v24 = vpop.f32.mrb[78].mxu0  ;;  %v11471_v5 = vpack.c.bf16 %v5200_v37, %v5199_v41  ;;  %v11473_v26 = vpack.c.bf16 %v4954_v20, %v4953_v33  ;;  %v5153_v54 = vld [vmem:[#allocation5 + $0x92] sm:$0xff]  ;;  %v5154_v9 = vld [vmem:[#allocation5 + $0x9a] sm:$0xff] }
 0x467   : > { %v8744_v14 = vpop.f32.mrb[79].mxu0  ;;  %v11487_v23 = vpack.c.bf16 %v5154_v9, %v5153_v54 }
 0x468   : > { %v4871_v8 = vadd.f32 %v8742_v11, %v11297_v44  ;;  %v8745_v13 = vadd.f32 %v8744_v14, %v8743_v24  ;;  %6294 = vmatprep.mubr.bf16.mxu0 %v11471_v5  ;;  %6142 = vmatmul.mubr.bf16.gmra.mrb[104].mxu1 %v11471_v5 }
 0x469   : > { %6295 = vmatmul.mubr.bf16.gmra.mrb[132].mxu0 %v11475_v25  ;;  %6149 = vmatprep.mubr.bf16.mxu1 %v11473_v26 }
 0x46a   : > { %v4955_v52 = vmax.f32 %v4871_v8, 0.0  ;;  %v4874_v45 = vadd.f32 %v8745_v13, %v11300_v47 }
 0x46b   : > { %v5201_v50 = vld [vmem:[#allocation5 + $0xa8] sm:$0xff] }
 0x46c   : > { %5027 = vst [vmem:[#allocation5 + $0xc1] sm:$0xff] %v4955_v52  ;;  %v4956_v21 = vmax.f32 %v4874_v45, 0.0  ;;  %v8746_v61 = vpop.f32.mrb[80].mxu0 }
 0x46d   : > { %v8747_v19 = vpop.f32.mrb[81].mxu0  ;;  %v5202_v44 = vld [vmem:[#allocation5 + $0xb0] sm:$0xff] }
 0x46e   : > { %5028 = vst [vmem:[#allocation5 + $0xc9] sm:$0xff] %v4956_v21  ;;  %v8748_v34 = vadd.f32 %v8747_v19, %v8746_v61  ;;  %v8749_v48 = vpop.f32.mrb[82].mxu0  ;;  %v11483_v49 = vpack.c.bf16 %v5202_v44, %v5201_v50  ;;  %v11485_v63 = vpack.c.bf16 %v4956_v21, %v4955_v52  ;;  %v5155_v33 = vld [vmem:[#allocation5 + $0xaa] sm:$0xff]  ;;  %v5156_v32 = vld [vmem:[#allocation5 + $0xb2] sm:$0xff] }
 0x46f   : > { %v8750_v59 = vpop.f32.mrb[83].mxu0  ;;  %v11499_v11 = vpack.c.bf16 %v5156_v32, %v5155_v33 }
 0x470   : > { %v4879_v47 = vadd.f32 %v8748_v34, %v11303_v35  ;;  %v8751_v56 = vadd.f32 %v8750_v59, %v8749_v48  ;;  %6302 = vmatprep.mubr.bf16.mxu0 %v11483_v49  ;;  %6150 = vmatmul.mubr.bf16.gmra.mrb[108].mxu1 %v11483_v49 }
 0x471   : > { %6303 = vmatmul.mubr.bf16.gmra.mrb[136].mxu0 %v11487_v23  ;;  %6157 = vmatprep.mubr.bf16.mxu1 %v11485_v63 }
 0x472   : > { %v4957_v27 = vmax.f32 %v4879_v47, 0.0  ;;  %v4882_v60 = vadd.f32 %v8751_v56, %v11306_v0 }
 0x473   : > { %v5203_v36 = vld [vmem:[#allocation5 + $0xc0] sm:$0xff] }
 0x474   : > { %5029 = vst [vmem:[#allocation5 + $0xd9] sm:$0xff] %v4957_v27  ;;  %v4958_v18 = vmax.f32 %v4882_v60, 0.0  ;;  %v8752_v51 = vpop.f32.mrb[84].mxu0 }
 0x475   : > { %v8753_v20 = vpop.f32.mrb[85].mxu0  ;;  %v5204_v35 = vld [vmem:[#allocation5 + $0xc8] sm:$0xff] }
 0x476   : > { %5030 = vst [vmem:[#allocation5 + $0xe1] sm:$0xff] %v4958_v18  ;;  %v8754_v15 = vadd.f32 %v8753_v20, %v8752_v51  ;;  %v8755_v31 = vpop.f32.mrb[86].mxu0  ;;  %v11495_v3 = vpack.c.bf16 %v5204_v35, %v5203_v36  ;;  %v11497_v41 = vpack.c.bf16 %v4958_v18, %v4957_v27  ;;  %v5157_v45 = vld [vmem:[#allocation5 + $0xc2] sm:$0xff]  ;;  %v5158_v21 = vld [vmem:[#allocation5 + $0xca] sm:$0xff] }
 0x477   : > { %v8756_v37 = vpop.f32.mrb[87].mxu0  ;;  %v11511_v48 = vpack.c.bf16 %v5158_v21, %v5157_v45 }
 0x478   : > { %v4887_v0 = vadd.f32 %v8754_v15, %v11318_v39  ;;  %v8757_v24 = vadd.f32 %v8756_v37, %v8755_v31  ;;  %6310 = vmatprep.mubr.bf16.mxu0 %v11495_v3  ;;  %6158 = vmatmul.mubr.bf16.gmra.mrb[112].mxu1 %v11495_v3 }
 0x479   : > { %6311 = vmatmul.mubr.bf16.gmra.mrb[140].mxu0 %v11499_v11  ;;  %6165 = vmatprep.mubr.bf16.mxu1 %v11497_v41 }
 0x47a   : > { %v4959_v14 = vmax.f32 %v4887_v0, 0.0  ;;  %v4890_v8 = vadd.f32 %v8757_v24, %v11321_v28 }
 0x47b   : > { %v5205_v54 = vld [vmem:[#allocation5 + $0xd8] sm:$0xff] }
 0x47c   : > { %5031 = vst [vmem:[#allocation5 + $0xf1] sm:$0xff] %v4959_v14  ;;  %v4960_v13 = vmax.f32 %v4890_v8, 0.0  ;;  %v8758_v52 = vpop.f32.mrb[88].mxu0 }
 0x47d   : > { %v8759_v61 = vpop.f32.mrb[89].mxu0  ;;  %v5206_v39 = vld [vmem:[#allocation5 + $0xe0] sm:$0xff] }
 0x47e   : > { %5032 = vst [vmem:[#allocation5 + $0xf9] sm:$0xff] %v4960_v13  ;;  %v8760_v9 = vadd.f32 %v8759_v61, %v8758_v52  ;;  %v8761_v19 = vpop.f32.mrb[90].mxu0  ;;  %v11507_v50 = vpack.c.bf16 %v5206_v39, %v5205_v54  ;;  %v11509_v44 = vpack.c.bf16 %v4960_v13, %v4959_v14  ;;  %v5159_v18 = vld [vmem:[#allocation5 + $0xda] sm:$0xff]  ;;  %v5160_v51 = vld [vmem:[#allocation5 + $0xe2] sm:$0xff] }
 0x47f   : > { %v8762_v34 = vpop.f32.mrb[91].mxu0  ;;  %v11523_v37 = vpack.c.bf16 %v5160_v51, %v5159_v18 }
 0x480   : > { %v4895_v28 = vadd.f32 %v8760_v9, %v11324_v29  ;;  %v8763_v59 = vadd.f32 %v8762_v34, %v8761_v19  ;;  %6318 = vmatprep.mubr.bf16.mxu0 %v11507_v50  ;;  %6166 = vmatmul.mubr.bf16.gmra.mrb[116].mxu1 %v11507_v50 }
 0x481   : > { %6319 = vmatmul.mubr.bf16.gmra.mrb[144].mxu0 %v11511_v48  ;;  %6173 = vmatprep.mubr.bf16.mxu1 %v11509_v44 }
 0x482   : > { %v4961_v47 = vmax.f32 %v4895_v28, 0.0  ;;  %v4898_v56 = vadd.f32 %v8763_v59, %v11327_v10 }
 0x483   : > { %v5207_v32 = vld [vmem:[#allocation5 + $0xf0] sm:$0xff] }
 0x484   : > { %5033 = vst [vmem:[#allocation5 + $0x109] sm:$0xff] %v4961_v47  ;;  %v4962_v27 = vmax.f32 %v4898_v56, 0.0  ;;  %v8764_v60 = vpop.f32.mrb[92].mxu0 }
 0x485   : > { %v8765_v33 = vpop.f32.mrb[93].mxu0  ;;  %v5208_v29 = vld [vmem:[#allocation5 + $0xf8] sm:$0xff] }
 0x486   : > { %5034 = vst [vmem:[#allocation5 + $0x111] sm:$0xff] %v4962_v27  ;;  %v8766_v20 = vadd.f32 %v8765_v33, %v8764_v60  ;;  %v8767_v36 = vpop.f32.mrb[94].mxu0  ;;  %v11519_v35 = vpack.c.bf16 %v5208_v29, %v5207_v32  ;;  %v11521_v15 = vpack.c.bf16 %v4962_v27, %v4961_v47  ;;  %v5161_v45 = vld [vmem:[#allocation5 + $0xf2] sm:$0xff]  ;;  %v5162_v21 = vld [vmem:[#allocation5 + $0xfa] sm:$0xff] }
 0x487   : > { %v8768_v31 = vpop.f32.mrb[95].mxu0  ;;  %v11537_v27 = vpack.c.bf16 %v5162_v21, %v5161_v45 }
 0x488   : > { %v4903_v10 = vadd.f32 %v8766_v20, %v11336_v43  ;;  %v8769_v0 = vadd.f32 %v8768_v31, %v8767_v36  ;;  %6326 = vmatprep.mubr.bf16.mxu0 %v11519_v35  ;;  %6174 = vmatmul.mubr.bf16.gmra.mrb[120].mxu1 %v11519_v35  ;;  %v8810_v8 = vpop.f32.mrb[80].mxu1 }
 0x489   : > { %6327 = vmatmul.mubr.bf16.gmra.mrb[148].mxu0 %v11523_v37  ;;  %6181 = vmatprep.mubr.bf16.mxu1 %v11521_v15  ;;  %v8811_v61 = vpop.f32.mrb[81].mxu1 }
 0x48a   : > { %v4963_v24 = vmax.f32 %v4903_v10, 0.0  ;;  %v4906_v14 = vadd.f32 %v8769_v0, %v11339_v7  ;;  %v11531_v9 = vadd.f32 %v8811_v61, %v8810_v8  ;;  %v8813_v19 = vpop.f32.mrb[82].mxu1 }
 0x48b   : > { %v5209_v54 = vld [vmem:[#allocation5 + $0x108] sm:$0xff]  ;;  %v8814_v7 = vpop.f32.mrb[83].mxu1 }
 0x48c   : > { %5035 = vst [vmem:[#allocation5 + $0x121] sm:$0xff] %v4963_v24  ;;  %v4964_v13 = vmax.f32 %v4906_v14, 0.0  ;;  %v8770_v52 = vpop.f32.mrb[96].mxu0  ;;  %v11539_v60 = vadd.f32 %v8814_v7, %v8813_v19 }
 0x48d   : > { %v8771_v43 = vpop.f32.mrb[97].mxu0  ;;  %v5210_v39 = vld [vmem:[#allocation5 + $0x110] sm:$0xff] }
 0x48e   : > { %5036 = vst [vmem:[#allocation5 + $0x129] sm:$0xff] %v4964_v13  ;;  %v8772_v34 = vadd.f32 %v8771_v43, %v8770_v52  ;;  %v8773_v28 = vpop.f32.mrb[98].mxu0  ;;  %v11533_v59 = vpack.c.bf16 %v5210_v39, %v5209_v54  ;;  %v11535_v47 = vpack.c.bf16 %v4964_v13, %v4963_v24  ;;  %v5163_v36 = vld [vmem:[#allocation5 + $0x10a] sm:$0xff]  ;;  %v5164_v31 = vld [vmem:[#allocation5 + $0x112] sm:$0xff] }
 0x48f   : > { %v8774_v56 = vpop.f32.mrb[99].mxu0  ;;  %v11551_v45 = vpack.c.bf16 %v5164_v31, %v5163_v36 }
 0x490   : > { %v4911_v18 = vadd.f32 %v8772_v34, %v11342_v17  ;;  %v8775_v51 = vadd.f32 %v8774_v56, %v8773_v28  ;;  %6334 = vmatprep.mubr.bf16.mxu0 %v11533_v59  ;;  %6182 = vmatmul.mubr.bf16.gmra.mrb[124].mxu1 %v11533_v59 }
 0x491   : > { %6335 = vmatmul.mubr.bf16.gmra.mrb[152].mxu0 %v11537_v27  ;;  %6189 = vmatprep.mubr.bf16.mxu1 %v11535_v47 }
 0x492   : > { %v4965_v33 = vmax.f32 %v4911_v18, 0.0  ;;  %v4914_v32 = vadd.f32 %v8775_v51, %v11345_v53 }
 0x493   : > { %v5211_v0 = vld [vmem:[#allocation5 + $0x120] sm:$0xff] }
 0x494   : > { %5037 = vst [vmem:[#allocation5 + $0x139] sm:$0xff] %v4965_v33  ;;  %v4966_v29 = vmax.f32 %v4914_v32, 0.0  ;;  %v8776_v20 = vpop.f32.mrb[100].mxu0 }
 0x495   : > { %v8777_v10 = vpop.f32.mrb[101].mxu0  ;;  %v5212_v17 = vld [vmem:[#allocation5 + $0x128] sm:$0xff] }
 0x496   : > { %5038 = vst [vmem:[#allocation5 + $0x141] sm:$0xff] %v4966_v29  ;;  %v8778_v24 = vadd.f32 %v8777_v10, %v8776_v20  ;;  %v8779_v14 = vpop.f32.mrb[102].mxu0  ;;  %v11547_v8 = vpack.c.bf16 %v5212_v17, %v5211_v0  ;;  %v11549_v13 = vpack.c.bf16 %v4966_v29, %v4965_v33  ;;  %v5165_v19 = vld [vmem:[#allocation5 + $0x122] sm:$0xff]  ;;  %v5166_v34 = vld [vmem:[#allocation5 + $0x12a] sm:$0xff] }
 0x497   : > { %v8780_v52 = vpop.f32.mrb[103].mxu0  ;;  %v11563_v29 = vpack.c.bf16 %v5166_v34, %v5165_v19 }
 0x498   : > { %v4919_v53 = vadd.f32 %v8778_v24, %v11354_v12  ;;  %v8781_v21 = vadd.f32 %v8780_v52, %v8779_v14  ;;  %6342 = vmatprep.mubr.bf16.mxu0 %v11547_v8  ;;  %6190 = vmatmul.mubr.bf16.gmra.mrb[128].mxu1 %v11547_v8 }
 0x499   : > { %6343 = vmatmul.mubr.bf16.gmra.mrb[156].mxu0 %v11551_v45  ;;  %6197 = vmatprep.mubr.bf16.mxu1 %v11549_v13 }
 0x49a   : > { %v4967_v61 = vmax.f32 %v4919_v53, 0.0  ;;  %v4922_v43 = vadd.f32 %v8781_v21, %v11357_v38 }
 0x49b   : > { %v5213_v7 = vld [vmem:[#allocation5 + $0x138] sm:$0xff] }
 0x49c   : > { %5039 = vst [vmem:[#allocation5 + $0x151] sm:$0xff] %v4967_v61  ;;  %v4968_v54 = vmax.f32 %v4922_v43, 0.0  ;;  %v8782_v39 = vpop.f32.mrb[104].mxu0 }
 0x49d   : > { %v8783_v28 = vpop.f32.mrb[105].mxu0  ;;  %v5214_v12 = vld [vmem:[#allocation5 + $0x140] sm:$0xff] }
 0x49e   : > { %5040 = vst [vmem:[#allocation5 + $0x159] sm:$0xff] %v4968_v54  ;;  %v8784_v56 = vadd.f32 %v8783_v28, %v8782_v39  ;;  %v8785_v18 = vpop.f32.mrb[106].mxu0  ;;  %v11559_v51 = vpack.c.bf16 %v5214_v12, %v5213_v7  ;;  %v11561_v33 = vpack.c.bf16 %v4968_v54, %v4967_v61  ;;  %v5167_v17 = vld [vmem:[#allocation5 + $0x13a] sm:$0xff]  ;;  %v5168_v24 = vld [vmem:[#allocation5 + $0x142] sm:$0xff] }
 0x49f   : > { %v8786_v32 = vpop.f32.mrb[107].mxu0  ;;  %v11575_v39 = vpack.c.bf16 %v5168_v24, %v5167_v17 }
 0x4a0   : > { %v4927_v38 = vadd.f32 %v8784_v56, %v11360_v62  ;;  %v8787_v20 = vadd.f32 %v8786_v32, %v8785_v18  ;;  %6350 = vmatprep.mubr.bf16.mxu0 %v11559_v51  ;;  %6198 = vmatmul.mubr.bf16.gmra.mrb[132].mxu1 %v11559_v51 }
 0x4a1   : > { %6351 = vmatmul.mubr.bf16.gmra.mrb[160].mxu0 %v11563_v29  ;;  %6205 = vmatprep.mubr.bf16.mxu1 %v11561_v33 }
 0x4a2   : > { %v4969_v36 = vmax.f32 %v4927_v38, 0.0  ;;  %v4930_v31 = vadd.f32 %v8787_v20, %v11363_v57 }
 0x4a3   : > { %v5215_v52 = vld [vmem:[#allocation5 + $0x150] sm:$0xff] }
 0x4a4   : > { %5041 = vst [vmem:[#allocation5 + $0x169] sm:$0xff] %v4969_v36  ;;  %v4970_v10 = vmax.f32 %v4930_v31, 0.0  ;;  %v8788_v0 = vpop.f32.mrb[108].mxu0 }
 0x4a5   : > { %v8789_v14 = vpop.f32.mrb[109].mxu0  ;;  %v5216_v62 = vld [vmem:[#allocation5 + $0x158] sm:$0xff] }
 0x4a6   : > { %5042 = vst [vmem:[#allocation5 + $0x171] sm:$0xff] %v4970_v10  ;;  %v8790_v53 = vadd.f32 %v8789_v14, %v8788_v0  ;;  %v8791_v21 = vpop.f32.mrb[110].mxu0  ;;  %v11571_v61 = vpack.c.bf16 %v5216_v62, %v5215_v52  ;;  %v11573_v43 = vpack.c.bf16 %v4970_v10, %v4969_v36  ;;  %v5169_v12 = vld [vmem:[#allocation5 + $0x152] sm:$0xff]  ;;  %v5170_v56 = vld [vmem:[#allocation5 + $0x15a] sm:$0xff] }
 0x4a7   : > { %v8792_v54 = vpop.f32.mrb[111].mxu0  ;;  %v11587_v20 = vpack.c.bf16 %v5170_v56, %v5169_v12  ;;  %v5383_v0 = vld [vmem:[#allocation5 + $0x39] sm:$0xff]  ;;  %v5382_v14 = vld [vmem:[#allocation5 + $0x31] sm:$0xff]  ;;  %v5389_v56 = vld [vmem:[#allocation5 + $0x81] sm:$0xff] }
 0x4a8   : > { %v4935_v57 = vadd.f32 %v8790_v53, %v11372_v42  ;;  %v8793_v19 = vadd.f32 %v8792_v54, %v8791_v21  ;;  %6358 = vmatprep.mubr.bf16.mxu0 %v11571_v61  ;;  %6206 = vmatmul.mubr.bf16.gmra.mrb[136].mxu1 %v11571_v61  ;;  %v9612_v52 = vld [vmem:[%s11957_s6 + $0x208] sm:$0xff]   ;;  %v5414_v62 = vpack.c.bf16 %v5383_v0, %v5382_v14 }
 0x4a9   : > { %6359 = vmatmul.mubr.bf16.gmra.mrb[164].mxu0 %v11575_v39  ;;  %6213 = vmatprep.mubr.bf16.mxu1 %v11573_v43  ;;  %v5289_v53 = vld [vmem:[#allocation5 + $0x4a] sm:$0xff]  ;;  %v5290_v21 = vld [vmem:[#allocation5 + $0x52] sm:$0xff] }
 0x4aa   : > { %v4971_v34 = vmax.f32 %v4935_v57, 0.0  ;;  %v4938_v28 = vadd.f32 %v8793_v19, %v11375_v22  ;;  %v5385_v54 = vld [vmem:[#allocation5 + $0x51] sm:$0xff]  ;;  %v5319_v57 = vpack.c.bf16 %v5290_v21, %v5289_v53  ;;  %v5384_v19 = vld [vmem:[#allocation5 + $0x49] sm:$0xff] }
 0x4ab   : > { %v5217_v18 = vld [vmem:[#allocation5 + $0x168] sm:$0xff] }
 0x4ac   : > { %5043 = vst [vmem:[#allocation5 + $0x181] sm:$0xff] %v4971_v34  ;;  %v4972_v7 = vmax.f32 %v4938_v28, 0.0  ;;  %v5386_v28 = vld [vmem:[#allocation5 + $0x61] sm:$0xff] }
 0x4ad   : > { %v5218_v32 = vld [vmem:[#allocation5 + $0x170] sm:$0xff] }
 0x4ae   : > { %5044 = vst [vmem:[#allocation5 + $0x189] sm:$0xff] %v4972_v7  ;;  %v11583_v42 = vpack.c.bf16 %v5218_v32, %v5217_v18  ;;  %v11585_v38 = vpack.c.bf16 %v4972_v7, %v4971_v34  ;;  %v5171_v22 = vld [vmem:[#allocation5 + $0x16a] sm:$0xff]  ;;  %v5172_v36 = vld [vmem:[#allocation5 + $0x172] sm:$0xff]  ;;  %v9618_v32 = vld [vmem:[%s11957_s6 + $0x238] sm:$0xff]  }
 0x4af   : > { %v11595_v24 = vpack.c.bf16 %v5172_v36, %v5171_v22  ;;  %v5387_v34 = vld [vmem:[#allocation5 + $0x69] sm:$0xff]  ;;  %v5388_v18 = vld [vmem:[#allocation5 + $0x79] sm:$0xff] }
 0x4b0   : > { %6366 = vmatprep.mubr.bf16.mxu0 %v11583_v42  ;;  %6214 = vmatmul.mubr.bf16.gmra.mrb[140].mxu1 %v11583_v42  ;;  %v9616_v7 = vld [vmem:[%s11957_s6 + $0x228] sm:$0xff]   ;;  %v5416_v12 = vpack.c.bf16 %v5387_v34, %v5386_v28  ;;  %v5417_v22 = vpack.c.bf16 %v5389_v56, %v5388_v18  ;;  %v5412_v18 = vld [vmem:[#allocation5 + $0x199] sm:$0xff] }
 0x4b1   : > { %6367 = vmatmul.mubr.bf16.gmra.mrb[168].mxu0 %v11587_v20  ;;  %6415 = vmatprep.mubr.bf16.mxu1 %v11407_v40  ;;  %v9613_v40 = vld [vmem:[%s11957_s6 + $0x210] sm:$0xff]  }
 0x4b3   : > { %v5219_v31 = vld [vmem:[#allocation5 + $0x180] sm:$0xff] }
 0x4b5   : > { %v5220_v10 = vld [vmem:[#allocation5 + $0x188] sm:$0xff] }
 0x4b6   : > { %v11593_v17 = vpack.c.bf16 %v5220_v10, %v5219_v31  ;;  %v5315_v53 = vld [vmem:[#allocation5 + $0x182] sm:$0xff]  ;;  %v5316_v21 = vld [vmem:[#allocation5 + $0x18a] sm:$0xff] }
 0x4b8   : > { %6374 = vmatprep.mubr.bf16.mxu0 %v11593_v17  ;;  %6416 = vmatmul.mubr.bf16.vlgmr.msra.gmra.mrb[144].mxu1 %v11377_v4  ;;  %v9614_v4 = vld [vmem:[%s11957_s6 + $0x218] sm:$0xff]  }
 0x4b9   : > { %6375 = vmatmul.mubr.bf16.gmra.mrb[172].mxu0 %v11595_v24  ;;  %6423 = vmatprep.mubr.bf16.mxu1 %v11428_v16  ;;  %v5415_v16 = vpack.c.bf16 %v5385_v54, %v5384_v19 }
 0x4ba   : > { %6576 = vmatprep.mubr.bf16.mxu0 %v5414_v62  ;;  %9267 = vmatpush3.bf16.msra.mxu1 %v11384_v58  ;;  %v9615_v58 = vld [vmem:[%s11957_s6 + $0x220] sm:$0xff]  }
 0x4bb   : > { %9268 = vmatprep.subr.bf16.mxu1 %v9612_v52 }
 0x4be   : > { %9269 = vmatpush3.bf16.msra.mxu1 %v9612_v52 }
 0x4bf   : > { %9270 = vmatprep.subr.bf16.mxu1 %v9613_v40 }
 0x4c0   : > { %6424 = vmatmul.mubr.bf16.gmra.mrb[148].mxu1 %v5414_v62 }
 0x4c1   : > { %6577 = vmatmul.mubr.bf16.vlgmr.msra.gmra.mrb[176].mxu0 %v11402_v46  ;;  %6431 = vmatprep.mubr.bf16.mxu1 %v5319_v57  ;;  %v9617_v46 = vld [vmem:[%s11957_s6 + $0x230] sm:$0xff]  }
 0x4c2   : > { %6584 = vmatprep.mubr.bf16.mxu0 %v5415_v16  ;;  %9271 = vmatpush3.bf16.msra.mxu1 %v9613_v40 }
 0x4c3   : > { %9272 = vmatprep.subr.bf16.mxu1 %v9614_v4 }
 0x4c6   : > { %9273 = vmatpush3.bf16.msra.mxu1 %v9614_v4 }
 0x4c7   : > { %9274 = vmatprep.subr.bf16.mxu1 %v9615_v58 }
 0x4c8   : > { %6432 = vmatmul.mubr.bf16.gmra.mrb[152].mxu1 %v5415_v16 }
 0x4c9   : > { %6585 = vmatmul.mubr.bf16.gmra.mrb[180].mxu0 %v11423_v2  ;;  %6439 = vmatprep.mubr.bf16.mxu1 %v11464_v55  ;;  %v5391_v2 = vld [vmem:[#allocation5 + $0x99] sm:$0xff]  ;;  %v5390_v55 = vld [vmem:[#allocation5 + $0x91] sm:$0xff] }
 0x4ca   : > { %6592 = vmatprep.mubr.bf16.mxu0 %v5416_v12  ;;  %9275 = vmatpush3.bf16.msra.mxu1 %v9615_v58  ;;  %v5418_v36 = vpack.c.bf16 %v5391_v2, %v5390_v55  ;;  %v5430_v55 = vld [vmem:[#allocation5 + $0x32] sm:$0xff] }
 0x4cb   : > { %9276 = vmatprep.subr.bf16.mxu1 %v9616_v7 }
 0x4ce   : > { %9277 = vmatpush3.bf16.msra.mxu1 %v9616_v7 }
 0x4cf   : > { %9278 = vmatprep.subr.bf16.mxu1 %v9617_v46 }
 0x4d0   : > { %6440 = vmatmul.mubr.bf16.gmra.mrb[156].mxu1 %v5416_v12 }
 0x4d1   : > { %6593 = vmatmul.mubr.bf16.gmra.mrb[184].mxu0 %v11444_v30  ;;  %6447 = vmatprep.mubr.bf16.mxu1 %v11475_v25  ;;  %v11660_v30 = vld [vmem:[%s11958_s7] ss:$0 sm:$0xff] }
 0x4d2   : > { %6600 = vmatprep.mubr.bf16.mxu0 %v5417_v22  ;;  %9279 = vmatpush3.bf16.msra.mxu1 %v9617_v46 }
 0x4d3   : > { %9280 = vmatprep.subr.bf16.mxu1 %v9618_v32 }
 0x4d6   : > { %9281 = vmatpush3.bf16.msra.mxu1 %v9618_v32  ;;  %v5413_v32 = vld [vmem:[#allocation5 + $0x1a1] sm:$0xff] }
 0x4d8   : > { %6448 = vmatmul.mubr.bf16.gmra.mrb[160].mxu1 %v5417_v22 }
 0x4d9   : > { %6601 = vmatmul.mubr.bf16.gmra.mrb[188].mxu0 %v11462_v1  ;;  %6455 = vmatprep.mubr.bf16.mxu1 %v11487_v23  ;;  %v6096_v23 = vadd.f32 %v11531_v9, %v11660_v30 }
 0x4da   : > { %6608 = vmatprep.mubr.bf16.mxu0 %v5418_v36 }
 0x4e0   : > { %6456 = vmatmul.mubr.bf16.gmra.mrb[164].mxu1 %v5418_v36  ;;  %v5431_v36 = vld [vmem:[#allocation5 + $0x3a] sm:$0xff] }
 0x4e1   : > { %6609 = vmatmul.mubr.bf16.gmra.mrb[192].mxu0 %v11471_v5  ;;  %6463 = vmatprep.mubr.bf16.mxu1 %v11499_v11 }
 0x4e2   : > { %6616 = vmatprep.mubr.bf16.mxu0 %v11473_v26 }
 0x4e8   : > { %6464 = vmatmul.mubr.bf16.gmra.mrb[168].mxu1 %v11473_v26 }
 0x4e9   : > { %6617 = vmatmul.mubr.bf16.gmra.mrb[196].mxu0 %v11483_v49  ;;  %6471 = vmatprep.mubr.bf16.mxu1 %v11511_v48  ;;  %v6099_v48 = vadd.f32 %v11539_v60, %v11660_v30 }
 0x4ea   : > { %6624 = vmatprep.mubr.bf16.mxu0 %v11485_v63 }
 0x4f0   : > { %6472 = vmatmul.mubr.bf16.gmra.mrb[172].mxu1 %v11485_v63 }
 0x4f1   : > { %6625 = vmatmul.mubr.bf16.gmra.mrb[200].mxu0 %v11495_v3  ;;  %6479 = vmatprep.mubr.bf16.mxu1 %v11523_v37 }
 0x4f2   : > { %6632 = vmatprep.mubr.bf16.mxu0 %v11497_v41 }
 0x4f8   : > { %6480 = vmatmul.mubr.bf16.gmra.mrb[176].mxu1 %v11497_v41 }
 0x4f9   : > { %6633 = vmatmul.mubr.bf16.gmra.mrb[204].mxu0 %v11507_v50  ;;  %6487 = vmatprep.mubr.bf16.mxu1 %v11537_v27 }
 0x4fa   : > { %6640 = vmatprep.mubr.bf16.mxu0 %v11509_v44 }
 0x500   : > { %6488 = vmatmul.mubr.bf16.gmra.mrb[180].mxu1 %v11509_v44 }
 0x501   : > { %6641 = vmatmul.mubr.bf16.gmra.mrb[208].mxu0 %v11519_v35  ;;  %6495 = vmatprep.mubr.bf16.mxu1 %v11551_v45 }
 0x502   : > { %6648 = vmatprep.mubr.bf16.mxu0 %v11521_v15 }
 0x508   : > { %6496 = vmatmul.mubr.bf16.gmra.mrb[184].mxu1 %v11521_v15 }
 0x509   : > { %6649 = vmatmul.mubr.bf16.gmra.mrb[212].mxu0 %v11533_v59  ;;  %6503 = vmatprep.mubr.bf16.mxu1 %v11563_v29 }
 0x50a   : > { %6656 = vmatprep.mubr.bf16.mxu0 %v11535_v47 }
 0x510   : > { %6504 = vmatmul.mubr.bf16.gmra.mrb[188].mxu1 %v11535_v47 }
 0x511   : > { %6657 = vmatmul.mubr.bf16.gmra.mrb[216].mxu0 %v11547_v8  ;;  %6511 = vmatprep.mubr.bf16.mxu1 %v11575_v39 }
 0x512   : > { %6664 = vmatprep.mubr.bf16.mxu0 %v11549_v13 }
 0x513   : > { %v8816_v1 = vpop.f32.mrb[84].mxu1 }
 0x514   : > { %v8922_v5 = vpop.f32.mrb[112].mxu0  ;;  %v8817_v26 = vpop.f32.mrb[85].mxu1 }
 0x515   : > { %v8818_v25 = vadd.f32 %v8817_v26, %v8816_v1  ;;  %v8923_v49 = vpop.f32.mrb[113].mxu0  ;;  %v8819_v63 = vpop.f32.mrb[86].mxu1 }
 0x516   : > { %v8924_v3 = vadd.f32 %v8923_v49, %v8922_v5  ;;  %v8925_v41 = vpop.f32.mrb[114].mxu0  ;;  %v8820_v11 = vpop.f32.mrb[87].mxu1 }
 0x517   : > { %v8821_v50 = vadd.f32 %v8820_v11, %v8819_v63  ;;  %v8926_v44 = vpop.f32.mrb[115].mxu0  ;;  %v6104_v60 = vadd.f32 %v8818_v25, %v11660_v30  ;;  %v5429_v63 = vpack.c.bf16 %v5413_v32, %v5412_v18 }
 0x518   : > { %v11666_v35 = vadd.f32 %v8924_v3, %v6096_v23  ;;  %v8927_v15 = vadd.f32 %v8926_v44, %v8925_v41  ;;  %6512 = vmatmul.mubr.bf16.gmra.mrb[192].mxu1 %v11549_v13  ;;  %v5462_v41 = vpack.c.bf16 %v5431_v36, %v5430_v55 }
 0x519   : > { %6665 = vmatmul.mubr.bf16.gmra.mrb[220].mxu0 %v11559_v51  ;;  %6519 = vmatprep.mubr.bf16.mxu1 %v11587_v20  ;;  %v6107_v51 = vadd.f32 %v8821_v50, %v11660_v30 }
 0x51a   : > { %v11671_v37 = vadd.f32 %v8927_v15, %v6099_v48  ;;  %6672 = vmatprep.mubr.bf16.mxu0 %v11561_v33 }
 0x51b   : > { %v8822_v9 = vpop.f32.mrb[88].mxu1 }
 0x51c   : > { %v8928_v59 = vpop.f32.mrb[116].mxu0  ;;  %v8823_v47 = vpop.f32.mrb[89].mxu1 }
 0x51d   : > { %v8824_v27 = vadd.f32 %v8823_v47, %v8822_v9  ;;  %v8929_v8 = vpop.f32.mrb[117].mxu0  ;;  %v8825_v45 = vpop.f32.mrb[90].mxu1  ;;  %v5434_v47 = vld [vmem:[#allocation5 + $0x62] sm:$0xff] }
 0x51e   : > { %v8930_v29 = vadd.f32 %v8929_v8, %v8928_v59  ;;  %v8931_v39 = vpop.f32.mrb[118].mxu0  ;;  %v8826_v31 = vpop.f32.mrb[91].mxu1 }
 0x51f   : > { %v8827_v13 = vadd.f32 %v8826_v31, %v8825_v45  ;;  %v8932_v10 = vpop.f32.mrb[119].mxu0  ;;  %v6112_v4 = vadd.f32 %v8824_v27, %v11660_v30  ;;  %v5435_v27 = vld [vmem:[#allocation5 + $0x6a] sm:$0xff] }
 0x520   : > { %v11676_v20 = vadd.f32 %v8930_v29, %v6104_v60  ;;  %v8933_v0 = vadd.f32 %v8932_v10, %v8931_v39  ;;  %6520 = vmatmul.mubr.bf16.gmra.mrb[196].mxu1 %v11561_v33  ;;  %v9626_v29 = vld [vmem:[#allocation2 + $0x180] sm:$0xff] }
 0x521   : > { %6673 = vmatmul.mubr.bf16.gmra.mrb[224].mxu0 %v11571_v61  ;;  %6527 = vmatprep.mubr.bf16.mxu1 %v11595_v24  ;;  %v11685_v24 = vpack.c.bf16 %v5316_v21, %v5315_v53  ;;  %v6115_v28 = vadd.f32 %v8827_v13, %v11660_v30  ;;  %v5381_v39 = vpack.c.bf16 %v9626_v29, %v9626_v29 }
 0x522   : > { %v11681_v14 = vadd.f32 %v8933_v0, %v6107_v51  ;;  %6680 = vmatprep.mubr.bf16.mxu0 %v11573_v43  ;;  %v5464_v0 = vpack.c.bf16 %v5435_v27, %v5434_v47 }
 0x523   : > { %v8828_v52 = vpop.f32.mrb[92].mxu1 }
 0x524   : > { %v8934_v62 = vpop.f32.mrb[120].mxu0  ;;  %v8829_v40 = vpop.f32.mrb[93].mxu1 }
 0x525   : > { %v8830_v54 = vadd.f32 %v8829_v40, %v8828_v52  ;;  %v8935_v57 = vpop.f32.mrb[121].mxu0  ;;  %v8831_v19 = vpop.f32.mrb[94].mxu1 }
 0x526   : > { %v8936_v16 = vadd.f32 %v8935_v57, %v8934_v62  ;;  %v8937_v33 = vpop.f32.mrb[122].mxu0  ;;  %v8832_v58 = vpop.f32.mrb[95].mxu1  ;;  %v5437_v57 = vld [vmem:[#allocation5 + $0x82] sm:$0xff] }
 0x527   : > { %v8833_v61 = vadd.f32 %v8832_v58, %v8831_v19  ;;  %v8938_v34 = vpop.f32.mrb[123].mxu0 }
 0x528   : > { %v11688_v7 = vadd.f32 %v8936_v16, %v6112_v4  ;;  %v8939_v12 = vadd.f32 %v8938_v34, %v8937_v33  ;;  %6528 = vmatmul.mubr.bf16.gmra.mrb[200].mxu1 %v11573_v43  ;;  %v6120_v43 = vadd.f32 %v8830_v54, %v11660_v30  ;;  %v5436_v54 = vld [vmem:[#allocation5 + $0x7a] sm:$0xff]  ;;  %v5438_v16 = vld [vmem:[#allocation5 + $0x92] sm:$0xff] }
 0x529   : > { %6681 = vmatmul.mubr.bf16.gmra.mrb[228].mxu0 %v11583_v42  ;;  %6535 = vmatprep.mubr.bf16.mxu1 %v11685_v24  ;;  %v6123_v11 = vadd.f32 %v8833_v61, %v11660_v30  ;;  %v5439_v33 = vld [vmem:[#allocation5 + $0x9a] sm:$0xff] }
 0x52a   : > { %v11693_v46 = vadd.f32 %v8939_v12, %v6115_v28  ;;  %6688 = vmatprep.mubr.bf16.mxu0 %v11585_v38 }
 0x52b   : > { %v8834_v56 = vpop.f32.mrb[96].mxu1 }
 0x52c   : > { %v8940_v22 = vpop.f32.mrb[124].mxu0  ;;  %v8835_v2 = vpop.f32.mrb[97].mxu1 }
 0x52d   : > { %v8836_v1 = vadd.f32 %v8835_v2, %v8834_v56  ;;  %v8941_v5 = vpop.f32.mrb[125].mxu0  ;;  %v8837_v26 = vpop.f32.mrb[98].mxu1  ;;  %v5466_v2 = vpack.c.bf16 %v5439_v33, %v5438_v16 }
 0x52e   : > { %v8942_v25 = vadd.f32 %v8941_v5, %v8940_v22  ;;  %v8943_v42 = vpop.f32.mrb[126].mxu0  ;;  %v8838_v49 = vpop.f32.mrb[99].mxu1 }
 0x52f   : > { %v8839_v23 = vadd.f32 %v8838_v49, %v8837_v26  ;;  %v8944_v3 = vpop.f32.mrb[127].mxu0  ;;  %v6128_v31 = vadd.f32 %v8836_v1, %v11660_v30 }
 0x530   : > { %v11698_v50 = vadd.f32 %v8942_v25, %v6120_v43  ;;  %v8945_v44 = vadd.f32 %v8944_v3, %v8943_v42  ;;  %6536 = vmatmul.mubr.bf16.gmra.mrb[204].mxu1 %v11585_v38  ;;  %v5440_v43 = vld [vmem:[#allocation5 + $0xaa] sm:$0xff]  ;;  %v5441_v25 = vld [vmem:[#allocation5 + $0xb2] sm:$0xff] }
 0x531   : > { %6689 = vmatmul.mubr.bf16.gmra.mrb[232].mxu0 %v11593_v17  ;;  %9282 = vmatprep.mubr.bf16.mxu1 %v5462_v41  ;;  %v6131_v52 = vadd.f32 %v8839_v23, %v11660_v30  ;;  %v5443_v23 = vld [vmem:[#allocation5 + $0xca] sm:$0xff]  ;;  %v5467_v47 = vpack.c.bf16 %v5441_v25, %v5440_v43 }
 0x532   : > { %v11702_v48 = vadd.f32 %v8945_v44, %v6123_v11  ;;  %6696 = vmatprep.mubr.bf16.mxu0 %v5429_v63  ;;  %v5442_v63 = vld [vmem:[#allocation5 + $0xc2] sm:$0xff] }
 0x533   : > { %v8840_v15 = vpop.f32.mrb[100].mxu1 }
 0x534   : > { %v8946_v9 = vpop.f32.mrb[128].mxu0  ;;  %v8841_v59 = vpop.f32.mrb[101].mxu1 }
 0x535   : > { %v8842_v8 = vadd.f32 %v8841_v59, %v8840_v15  ;;  %v8947_v45 = vpop.f32.mrb[129].mxu0  ;;  %v8843_v60 = vpop.f32.mrb[102].mxu1 }
 0x536   : > { %v8948_v13 = vadd.f32 %v8947_v45, %v8946_v9  ;;  %v8949_v38 = vpop.f32.mrb[130].mxu0  ;;  %v8844_v10 = vpop.f32.mrb[103].mxu1  ;;  %v5468_v45 = vpack.c.bf16 %v5443_v23, %v5442_v63 }
 0x537   : > { %v8845_v17 = vadd.f32 %v8844_v10, %v8843_v60  ;;  %v8950_v51 = vpop.f32.mrb[131].mxu0  ;;  %v6136_v28 = vadd.f32 %v8842_v8, %v11660_v30  ;;  %v5445_v10 = vld [vmem:[#allocation5 + $0xe2] sm:$0xff] }
 0x538   : > { %v11706_v62 = vadd.f32 %v8948_v13, %v6128_v31  ;;  %v8951_v40 = vadd.f32 %v8950_v51, %v8949_v38  ;;  %9283 = vmatmul.mubr.bf16.vlgmr.msra.gmra.mrb[208].mxu1 %v11449_v6  ;;  %v5465_v6 = vpack.c.bf16 %v5437_v57, %v5436_v54  ;;  %v5444_v38 = vld [vmem:[#allocation5 + $0xda] sm:$0xff] }
 0x539   : > { %6697 = vmatmul.mubr.bf16.gmra.mrb[236].mxu0 %v5381_v39  ;;  %9286 = vmatprep.mubr.bf16.mxu1 %v5464_v0  ;;  %v6139_v55 = vadd.f32 %v8845_v17, %v11660_v30  ;;  %v5446_v0 = vld [vmem:[#allocation5 + $0xf2] sm:$0xff]  ;;  %v5469_v33 = vpack.c.bf16 %v5445_v10, %v5444_v38  ;;  %v5455_v10 = vld [vmem:[#allocation5 + $0x15a] sm:$0xff] }
 0x53a   : > { %v11709_v53 = vadd.f32 %v8951_v40, %v6131_v52  ;;  %v5447_v52 = vld [vmem:[#allocation5 + $0xfa] sm:$0xff]  ;;  %v5454_v38 = vld [vmem:[#allocation5 + $0x152] sm:$0xff] }
 0x53b   : > { %v8846_v21 = vpop.f32.mrb[104].mxu1 }
 0x53c   : > { %v8952_v19 = vpop.f32.mrb[132].mxu0  ;;  %v8847_v4 = vpop.f32.mrb[105].mxu1 }
 0x53d   : > { %v8848_v58 = vadd.f32 %v8847_v4, %v8846_v21  ;;  %v8953_v61 = vpop.f32.mrb[133].mxu0  ;;  %v8849_v34 = vpop.f32.mrb[106].mxu1 }
 0x53e   : > { %v8954_v12 = vadd.f32 %v8953_v61, %v8952_v19  ;;  %v8955_v56 = vpop.f32.mrb[134].mxu0  ;;  %v8850_v18 = vpop.f32.mrb[107].mxu1 }
 0x53f   : > { %v8851_v32 = vadd.f32 %v8850_v18, %v8849_v34  ;;  %v8956_v22 = vpop.f32.mrb[135].mxu0  ;;  %v6144_v44 = vadd.f32 %v8848_v58, %v11660_v30  ;;  %v5470_v34 = vpack.c.bf16 %v5447_v52, %v5446_v0 }
 0x540   : > { %v11713_v36 = vadd.f32 %v8954_v12, %v6136_v28  ;;  %v8957_v1 = vadd.f32 %v8956_v22, %v8955_v56  ;;  %9287 = vmatmul.mubr.bf16.gmra.mrb[212].mxu1 %v5465_v6  ;;  %v5449_v22 = vld [vmem:[#allocation5 + $0x112] sm:$0xff] }
 0x541   : > { %9290 = vmatprep.mubr.bf16.mxu1 %v5466_v2  ;;  %v6147_v60 = vadd.f32 %v8851_v32, %v11660_v30  ;;  %v5448_v32 = vld [vmem:[#allocation5 + $0x10a] sm:$0xff] }
 0x542   : > { %v11715_v5 = vadd.f32 %v8957_v1, %v6139_v55  ;;  %v5450_v1 = vld [vmem:[#allocation5 + $0x122] sm:$0xff] }
 0x543   : > { %v8852_v26 = vpop.f32.mrb[108].mxu1 }
 0x544   : > { %v8958_v42 = vpop.f32.mrb[136].mxu0  ;;  %v8853_v49 = vpop.f32.mrb[109].mxu1 }
 0x545   : > { %v8854_v3 = vadd.f32 %v8853_v49, %v8852_v26  ;;  %v8959_v41 = vpop.f32.mrb[137].mxu0  ;;  %v8855_v11 = vpop.f32.mrb[110].mxu1  ;;  %v5451_v26 = vld [vmem:[#allocation5 + $0x12a] sm:$0xff] }
 0x546   : > { %v8960_v15 = vadd.f32 %v8959_v41, %v8958_v42  ;;  %v8961_v9 = vpop.f32.mrb[138].mxu0  ;;  %v8856_v59 = vpop.f32.mrb[111].mxu1  ;;  %v5471_v41 = vpack.c.bf16 %v5449_v22, %v5448_v32 }
 0x547   : > { %v8857_v27 = vadd.f32 %v8856_v59, %v8855_v11  ;;  %v8962_v8 = vpop.f32.mrb[139].mxu0  ;;  %v6152_v57 = vadd.f32 %v8854_v3, %v11660_v30 }
 0x548   : > { %v11719_v29 = vadd.f32 %v8960_v15, %v6144_v44  ;;  %v8963_v39 = vadd.f32 %v8962_v8, %v8961_v9  ;;  %9291 = vmatmul.mubr.bf16.gmra.mrb[216].mxu1 %v5467_v47  ;;  %v5472_v15 = vpack.c.bf16 %v5451_v26, %v5450_v1 }
 0x549   : > { %9294 = vmatprep.mubr.bf16.mxu1 %v5468_v45  ;;  %v6155_v28 = vadd.f32 %v8857_v27, %v11660_v30  ;;  %v5452_v45 = vld [vmem:[#allocation5 + $0x13a] sm:$0xff] }
 0x54a   : > { %v11721_v31 = vadd.f32 %v8963_v39, %v6147_v60  ;;  %v5453_v60 = vld [vmem:[#allocation5 + $0x142] sm:$0xff] }
 0x54b   : > { %v8858_v13 = vpop.f32.mrb[112].mxu1 }
 0x54c   : > { %v8964_v17 = vpop.f32.mrb[140].mxu0  ;;  %v8859_v51 = vpop.f32.mrb[113].mxu1 }
 0x54d   : > { %v8860_v40 = vadd.f32 %v8859_v51, %v8858_v13  ;;  %v8965_v21 = vpop.f32.mrb[141].mxu0  ;;  %v8861_v54 = vpop.f32.mrb[114].mxu1 }
 0x54e   : > { %v8966_v19 = vadd.f32 %v8965_v21, %v8964_v17  ;;  %v8967_v4 = vpop.f32.mrb[142].mxu0  ;;  %v8862_v16 = vpop.f32.mrb[115].mxu1 }
 0x54f   : > { %v8863_v58 = vadd.f32 %v8862_v16, %v8861_v54  ;;  %v8968_v61 = vpop.f32.mrb[143].mxu0  ;;  %v6160_v49 = vadd.f32 %v8860_v40, %v11660_v30  ;;  %v5474_v16 = vpack.c.bf16 %v5455_v10, %v5454_v38 }
 0x550   : > { %v11725_v12 = vadd.f32 %v8966_v19, %v6152_v57  ;;  %v8969_v56 = vadd.f32 %v8968_v61, %v8967_v4  ;;  %9295 = vmatmul.mubr.bf16.gmra.mrb[220].mxu1 %v5469_v33  ;;  %v5473_v57 = vpack.c.bf16 %v5453_v60, %v5452_v45 }
 0x551   : > { %9298 = vmatprep.mubr.bf16.mxu1 %v5470_v34  ;;  %v6163_v9 = vadd.f32 %v8863_v58, %v11660_v30 }
 0x552   : > { %v11727_v18 = vadd.f32 %v8969_v56, %v6155_v28  ;;  %v5456_v56 = vld [vmem:[#allocation5 + $0x16a] sm:$0xff] }
 0x553   : > { %v8864_v6 = vpop.f32.mrb[116].mxu1 }
 0x554   : > { %v8970_v2 = vpop.f32.mrb[144].mxu0  ;;  %v8865_v55 = vpop.f32.mrb[117].mxu1 }
 0x555   : > { %v8866_v43 = vadd.f32 %v8865_v55, %v8864_v6  ;;  %v8971_v25 = vpop.f32.mrb[145].mxu0  ;;  %v8867_v42 = vpop.f32.mrb[118].mxu1  ;;  %v5457_v6 = vld [vmem:[#allocation5 + $0x172] sm:$0xff] }
 0x556   : > { %v8972_v63 = vadd.f32 %v8971_v25, %v8970_v2  ;;  %v8973_v23 = vpop.f32.mrb[146].mxu0  ;;  %v8868_v3 = vpop.f32.mrb[119].mxu1 }
 0x557   : > { %v8869_v11 = vadd.f32 %v8868_v3, %v8867_v42  ;;  %v8974_v44 = vpop.f32.mrb[147].mxu0  ;;  %v6168_v52 = vadd.f32 %v8866_v43, %v11660_v30 }
 0x558   : > { %v11731_v59 = vadd.f32 %v8972_v63, %v6160_v49  ;;  %v8975_v47 = vadd.f32 %v8974_v44, %v8973_v23  ;;  %9299 = vmatmul.mubr.bf16.gmra.mrb[224].mxu1 %v5471_v41  ;;  %v5475_v49 = vpack.c.bf16 %v5457_v6, %v5456_v56  ;;  %v5460_v44 = vld [vmem:[#allocation5 + $0x19a] sm:$0xff] }
 0x559   : > { %9302 = vmatprep.mubr.bf16.mxu1 %v5472_v15  ;;  %v6171_v33 = vadd.f32 %v8869_v11, %v11660_v30  ;;  %v5461_v15 = vld [vmem:[#allocation5 + $0x1a2] sm:$0xff] }
 0x55a   : > { %v11733_v27 = vadd.f32 %v8975_v47, %v6163_v9  ;;  %v5477_v60 = vpack.c.bf16 %v5461_v15, %v5460_v44 }
 0x55b   : > { %v8870_v8 = vpop.f32.mrb[120].mxu1 }
 0x55c   : > { %v8976_v39 = vpop.f32.mrb[148].mxu0  ;;  %v8871_v13 = vpop.f32.mrb[121].mxu1 }
 0x55d   : > { %v8872_v17 = vadd.f32 %v8871_v13, %v8870_v8  ;;  %v8977_v51 = vpop.f32.mrb[149].mxu0  ;;  %v8873_v0 = vpop.f32.mrb[122].mxu1 }
 0x55e   : > { %v8978_v40 = vadd.f32 %v8977_v51, %v8976_v39  ;;  %v8979_v21 = vpop.f32.mrb[150].mxu0  ;;  %v8874_v54 = vpop.f32.mrb[123].mxu1 }
 0x55f   : > { %v8875_v19 = vadd.f32 %v8874_v54, %v8873_v0  ;;  %v8980_v4 = vpop.f32.mrb[151].mxu0  ;;  %v6176_v26 = vadd.f32 %v8872_v17, %v11660_v30 }
 0x560   : > { %v11737_v58 = vadd.f32 %v8978_v40, %v6168_v52  ;;  %v8981_v61 = vadd.f32 %v8980_v4, %v8979_v21  ;;  %9303 = vmatmul.mubr.bf16.gmra.mrb[228].mxu1 %v5473_v57 }
 0x561   : > { %9306 = vmatprep.mubr.bf16.mxu1 %v5474_v16  ;;  %v6179_v3 = vadd.f32 %v8875_v19, %v11660_v30 }
 0x562   : > { %v11739_v34 = vadd.f32 %v8981_v61, %v6171_v33 }
 0x563   : > { %v8876_v28 = vpop.f32.mrb[124].mxu1 }
 0x564   : > { %v8982_v32 = vpop.f32.mrb[152].mxu0  ;;  %v8877_v22 = vpop.f32.mrb[125].mxu1 }
 0x565   : > { %v8878_v2 = vadd.f32 %v8877_v22, %v8876_v28  ;;  %v8983_v55 = vpop.f32.mrb[153].mxu0  ;;  %v8879_v1 = vpop.f32.mrb[126].mxu1 }
 0x566   : > { %v8984_v43 = vadd.f32 %v8983_v55, %v8982_v32  ;;  %v8985_v25 = vpop.f32.mrb[154].mxu0  ;;  %v8880_v42 = vpop.f32.mrb[127].mxu1 }
 0x567   : > { %v8881_v63 = vadd.f32 %v8880_v42, %v8879_v1  ;;  %v8986_v23 = vpop.f32.mrb[155].mxu0  ;;  %v6184_v10 = vadd.f32 %v8878_v2, %v11660_v30 }
 0x568   : > { %v11743_v41 = vadd.f32 %v8984_v43, %v6176_v26  ;;  %v8987_v11 = vadd.f32 %v8986_v23, %v8985_v25  ;;  %9307 = vmatmul.mubr.bf16.gmra.mrb[232].mxu1 %v5475_v49 }
 0x569   : > { %9310 = vmatprep.mubr.bf16.mxu1 %v11685_v24  ;;  %v6187_v24 = vadd.f32 %v8881_v63, %v11660_v30 }
 0x56a   : > { %v11746_v9 = vadd.f32 %v8987_v11, %v6179_v3 }
 0x56b   : > { %v8882_v47 = vpop.f32.mrb[128].mxu1 }
 0x56c   : > { %v8988_v8 = vpop.f32.mrb[156].mxu0  ;;  %v8883_v45 = vpop.f32.mrb[129].mxu1 }
 0x56d   : > { %v8884_v39 = vadd.f32 %v8883_v45, %v8882_v47  ;;  %v8989_v13 = vpop.f32.mrb[157].mxu0  ;;  %v8885_v38 = vpop.f32.mrb[130].mxu1 }
 0x56e   : > { %v8990_v17 = vadd.f32 %v8989_v13, %v8988_v8  ;;  %v8991_v51 = vpop.f32.mrb[158].mxu0  ;;  %v8886_v0 = vpop.f32.mrb[131].mxu1 }
 0x56f   : > { %v8887_v52 = vadd.f32 %v8886_v0, %v8885_v38  ;;  %v8992_v40 = vpop.f32.mrb[159].mxu0  ;;  %v6192_v56 = vadd.f32 %v8884_v39, %v11660_v30 }
 0x570   : > { %v11750_v21 = vadd.f32 %v8990_v17, %v6184_v10  ;;  %v8993_v54 = vadd.f32 %v8992_v40, %v8991_v51  ;;  %9311 = vmatmul.mubr.bf16.gmra.mrb[236].mxu1 %v5477_v60 }
 0x571   : > { %v6195_v1 = vadd.f32 %v8887_v52, %v11660_v30 }
 0x572   : > { %v11752_v57 = vadd.f32 %v8993_v54, %v6187_v24 }
 0x573   : > { %v8888_v19 = vpop.f32.mrb[132].mxu1 }
 0x574   : > { %v8994_v4 = vpop.f32.mrb[160].mxu0  ;;  %v8889_v16 = vpop.f32.mrb[133].mxu1 }
 0x575   : > { %v8890_v33 = vadd.f32 %v8889_v16, %v8888_v19  ;;  %v8995_v61 = vpop.f32.mrb[161].mxu0  ;;  %v8891_v28 = vpop.f32.mrb[134].mxu1 }
 0x576   : > { %v8996_v6 = vadd.f32 %v8995_v61, %v8994_v4  ;;  %v8997_v32 = vpop.f32.mrb[162].mxu0  ;;  %v8892_v22 = vpop.f32.mrb[135].mxu1 }
 0x577   : > { %v8893_v2 = vadd.f32 %v8892_v22, %v8891_v28  ;;  %v8998_v55 = vpop.f32.mrb[163].mxu0  ;;  %v6200_v44 = vadd.f32 %v8890_v33, %v11660_v30 }
 0x578   : > { %v11756_v26 = vadd.f32 %v8996_v6, %v6192_v56  ;;  %v8999_v43 = vadd.f32 %v8998_v55, %v8997_v32 }
 0x579   : > { %v6203_v39 = vadd.f32 %v8893_v2, %v11660_v30 }
 0x57a   : > { %v11758_v25 = vadd.f32 %v8999_v43, %v6195_v1 }
 0x57b   : > { %v8894_v42 = vpop.f32.mrb[136].mxu1 }
 0x57c   : > { %v9000_v49 = vpop.f32.mrb[164].mxu0  ;;  %v8895_v63 = vpop.f32.mrb[137].mxu1 }
 0x57d   : > { %v8896_v23 = vadd.f32 %v8895_v63, %v8894_v42  ;;  %v9001_v3 = vpop.f32.mrb[165].mxu0  ;;  %v8897_v11 = vpop.f32.mrb[138].mxu1 }
 0x57e   : > { %v9002_v15 = vadd.f32 %v9001_v3, %v9000_v49  ;;  %v9003_v47 = vpop.f32.mrb[166].mxu0  ;;  %v8898_v8 = vpop.f32.mrb[139].mxu1 }
 0x57f   : > { %v8899_v45 = vadd.f32 %v8898_v8, %v8897_v11  ;;  %v9004_v60 = vpop.f32.mrb[167].mxu0  ;;  %v6208_v54 = vadd.f32 %v8896_v23, %v11660_v30 }
 0x580   : > { %v11762_v13 = vadd.f32 %v9002_v15, %v6200_v44  ;;  %v9005_v38 = vadd.f32 %v9004_v60, %v9003_v47 }
 0x581   : > { %v6211_v28 = vadd.f32 %v8899_v45, %v11660_v30 }
 0x582   : > { %v11764_v10 = vadd.f32 %v9005_v38, %v6203_v39 }
 0x583   : > { %v8900_v17 = vpop.f32.mrb[140].mxu1 }
 0x584   : > { %v9006_v51 = vpop.f32.mrb[168].mxu0  ;;  %v8901_v0 = vpop.f32.mrb[141].mxu1 }
 0x585   : > { %v8902_v52 = vadd.f32 %v8901_v0, %v8900_v17  ;;  %v9007_v40 = vpop.f32.mrb[169].mxu0  ;;  %v8903_v24 = vpop.f32.mrb[142].mxu1 }
 0x586   : > { %v9008_v19 = vadd.f32 %v9007_v40, %v9006_v51  ;;  %v9009_v4 = vpop.f32.mrb[170].mxu0  ;;  %v8904_v16 = vpop.f32.mrb[143].mxu1 }
 0x587   : > { %v8905_v33 = vadd.f32 %v8904_v16, %v8903_v24  ;;  %v9010_v61 = vpop.f32.mrb[171].mxu0  ;;  %v6216_v49 = vadd.f32 %v8902_v52, %v11660_v30 }
 0x588   : > { %v11768_v56 = vadd.f32 %v9008_v19, %v6208_v54  ;;  %v9011_v6 = vadd.f32 %v9010_v61, %v9009_v4 }
 0x589   : > { %v6219_v47 = vadd.f32 %v8905_v33, %v11660_v30 }
 0x58a   : > { %v11770_v32 = vadd.f32 %v9011_v6, %v6211_v28 }
 0x58b   : > { %v9034_v22 = vpop.f32.mrb[144].mxu1 }
 0x58c   : > { %v9012_v2 = vpop.f32.mrb[172].mxu0  ;;  %v9035_v55 = vpop.f32.mrb[145].mxu1 }
 0x58d   : > { %v9013_v1 = vpop.f32.mrb[173].mxu0  ;;  %v9036_v43 = vadd.f32 %v9035_v55, %v9034_v22  ;;  %v9037_v42 = vpop.f32.mrb[146].mxu1 }
 0x58e   : > { %v9014_v63 = vadd.f32 %v9013_v1, %v9012_v2  ;;  %v9015_v23 = vpop.f32.mrb[174].mxu0  ;;  %v9038_v3 = vpop.f32.mrb[147].mxu1 }
 0x58f   : > { %v6418_v11 = vadd.f32 %v9036_v43, %v11666_v35  ;;  %v9016_v44 = vpop.f32.mrb[175].mxu0  ;;  %v9039_v15 = vadd.f32 %v9038_v3, %v9037_v42 }
 0x590   : > { %v11775_v8 = vadd.f32 %v9014_v63, %v6216_v49  ;;  %v9017_v45 = vadd.f32 %v9016_v44, %v9015_v23 }
 0x591   : > { %v6421_v60 = vadd.f32 %v9039_v15, %v11671_v37 }
 0x592   : > { %v11778_v39 = vadd.f32 %v9017_v45, %v6219_v47 }
 0x593   : > { %v9040_v38 = vpop.f32.mrb[148].mxu1 }
 0x594   : > { %v9146_v17 = vpop.f32.mrb[176].mxu0  ;;  %v9041_v51 = vpop.f32.mrb[149].mxu1 }
 0x595   : > { %v9042_v0 = vadd.f32 %v9041_v51, %v9040_v38  ;;  %v9147_v52 = vpop.f32.mrb[177].mxu0  ;;  %v9043_v40 = vpop.f32.mrb[150].mxu1 }
 0x596   : > { %v9148_v24 = vadd.f32 %v9147_v52, %v9146_v17  ;;  %v9149_v54 = vpop.f32.mrb[178].mxu0  ;;  %v9044_v35 = vpop.f32.mrb[151].mxu1 }
 0x597   : > { %v6426_v19 = vadd.f32 %v9042_v0, %v11676_v20  ;;  %v9045_v4 = vadd.f32 %v9044_v35, %v9043_v40  ;;  %v9150_v30 = vpop.f32.mrb[179].mxu0 }
 0x598   : > { %v9151_v16 = vadd.f32 %v9150_v30, %v9149_v54  ;;  %v11781_v33 = vadd.f32 %v9148_v24, %v6418_v11 }
 0x599   : > { %v6429_v37 = vadd.f32 %v9045_v4, %v11681_v14 }
 0x59a   : > { %v11784_v61 = vadd.f32 %v9151_v16, %v6421_v60 }
 0x59b   : > { %v9046_v28 = vpop.f32.mrb[152].mxu1 }
 0x59c   : > { %v9152_v6 = vpop.f32.mrb[180].mxu0  ;;  %v9047_v22 = vpop.f32.mrb[153].mxu1 }
 0x59d   : > { %v9048_v2 = vadd.f32 %v9047_v22, %v9046_v28  ;;  %v9153_v55 = vpop.f32.mrb[181].mxu0  ;;  %v9049_v1 = vpop.f32.mrb[154].mxu1 }
 0x59e   : > { %v9154_v43 = vadd.f32 %v9153_v55, %v9152_v6  ;;  %v9155_v42 = vpop.f32.mrb[182].mxu0  ;;  %v9050_v49 = vpop.f32.mrb[155].mxu1 }
 0x59f   : > { %v6434_v20 = vadd.f32 %v9048_v2, %v11688_v7  ;;  %v9051_v63 = vadd.f32 %v9050_v49, %v9049_v1  ;;  %v9156_v23 = vpop.f32.mrb[183].mxu0 }
 0x5a0   : > { %v9157_v3 = vadd.f32 %v9156_v23, %v9155_v42  ;;  %v11787_v11 = vadd.f32 %v9154_v43, %v6426_v19 }
 0x5a1   : > { %v6437_v14 = vadd.f32 %v9051_v63, %v11693_v46 }
 0x5a2   : > { %v11790_v44 = vadd.f32 %v9157_v3, %v6429_v37 }
 0x5a3   : > { %v9052_v15 = vpop.f32.mrb[156].mxu1 }
 0x5a4   : > { %v9158_v47 = vpop.f32.mrb[184].mxu0  ;;  %v9053_v45 = vpop.f32.mrb[157].mxu1 }
 0x5a5   : > { %v9054_v60 = vadd.f32 %v9053_v45, %v9052_v15  ;;  %v9159_v38 = vpop.f32.mrb[185].mxu0  ;;  %v9055_v17 = vpop.f32.mrb[158].mxu1 }
 0x5a6   : > { %v9160_v51 = vadd.f32 %v9159_v38, %v9158_v47  ;;  %v9161_v0 = vpop.f32.mrb[186].mxu0  ;;  %v9056_v52 = vpop.f32.mrb[159].mxu1 }
 0x5a7   : > { %v6442_v7 = vadd.f32 %v9054_v60, %v11698_v50  ;;  %v9057_v40 = vadd.f32 %v9056_v52, %v9055_v17  ;;  %v9162_v24 = vpop.f32.mrb[187].mxu0 }
 0x5a8   : > { %v9163_v54 = vadd.f32 %v9162_v24, %v9161_v0  ;;  %v11793_v35 = vadd.f32 %v9160_v51, %v6434_v20 }
 0x5a9   : > { %v6445_v46 = vadd.f32 %v9057_v40, %v11702_v48 }
 0x5aa   : > { %v11796_v19 = vadd.f32 %v9163_v54, %v6437_v14 }
 0x5ab   : > { %v9058_v4 = vpop.f32.mrb[160].mxu1 }
 0x5ac   : > { %v9164_v30 = vpop.f32.mrb[188].mxu0  ;;  %v9059_v16 = vpop.f32.mrb[161].mxu1 }
 0x5ad   : > { %v9060_v37 = vadd.f32 %v9059_v16, %v9058_v4  ;;  %v9165_v28 = vpop.f32.mrb[189].mxu0  ;;  %v9061_v6 = vpop.f32.mrb[162].mxu1 }
 0x5ae   : > { %v9166_v22 = vadd.f32 %v9165_v28, %v9164_v30  ;;  %v9167_v2 = vpop.f32.mrb[190].mxu0  ;;  %v9062_v55 = vpop.f32.mrb[163].mxu1 }
 0x5af   : > { %v6450_v50 = vadd.f32 %v9060_v37, %v11706_v62  ;;  %v9063_v1 = vadd.f32 %v9062_v55, %v9061_v6  ;;  %v9168_v43 = vpop.f32.mrb[191].mxu0 }
 0x5b0   : > { %v9169_v42 = vadd.f32 %v9168_v43, %v9167_v2  ;;  %v11799_v49 = vadd.f32 %v9166_v22, %v6442_v7 }
 0x5b1   : > { %v6453_v48 = vadd.f32 %v9063_v1, %v11709_v53 }
 0x5b2   : > { %v11802_v20 = vadd.f32 %v9169_v42, %v6445_v46 }
 0x5b3   : > { %v9064_v63 = vpop.f32.mrb[164].mxu1 }
 0x5b4   : > { %v9170_v23 = vpop.f32.mrb[192].mxu0  ;;  %v9065_v3 = vpop.f32.mrb[165].mxu1 }
 0x5b5   : > { %v9066_v14 = vadd.f32 %v9065_v3, %v9064_v63  ;;  %v9171_v15 = vpop.f32.mrb[193].mxu0  ;;  %v9067_v47 = vpop.f32.mrb[166].mxu1 }
 0x5b6   : > { %v9172_v45 = vadd.f32 %v9171_v15, %v9170_v23  ;;  %v9173_v60 = vpop.f32.mrb[194].mxu0  ;;  %v9068_v38 = vpop.f32.mrb[167].mxu1 }
 0x5b7   : > { %v6458_v62 = vadd.f32 %v9066_v14, %v11713_v36  ;;  %v9069_v17 = vadd.f32 %v9068_v38, %v9067_v47  ;;  %v9174_v51 = vpop.f32.mrb[195].mxu0 }
 0x5b8   : > { %v9175_v0 = vadd.f32 %v9174_v51, %v9173_v60  ;;  %v11805_v52 = vadd.f32 %v9172_v45, %v6450_v50 }
 0x5b9   : > { %v6461_v53 = vadd.f32 %v9069_v17, %v11715_v5 }
 0x5ba   : > { %v11808_v7 = vadd.f32 %v9175_v0, %v6453_v48 }
 0x5bb   : > { %v9070_v40 = vpop.f32.mrb[168].mxu1 }
 0x5bc   : > { %v9176_v24 = vpop.f32.mrb[196].mxu0  ;;  %v9071_v54 = vpop.f32.mrb[169].mxu1 }
 0x5bd   : > { %v9072_v46 = vadd.f32 %v9071_v54, %v9070_v40  ;;  %v9177_v4 = vpop.f32.mrb[197].mxu0  ;;  %v9073_v30 = vpop.f32.mrb[170].mxu1 }
 0x5be   : > { %v9178_v16 = vadd.f32 %v9177_v4, %v9176_v24  ;;  %v9179_v37 = vpop.f32.mrb[198].mxu0  ;;  %v9074_v28 = vpop.f32.mrb[171].mxu1 }
 0x5bf   : > { %v6466_v36 = vadd.f32 %v9072_v46, %v11719_v29  ;;  %v9075_v6 = vadd.f32 %v9074_v28, %v9073_v30  ;;  %v9180_v22 = vpop.f32.mrb[199].mxu0 }
 0x5c0   : > { %v9181_v2 = vadd.f32 %v9180_v22, %v9179_v37  ;;  %v11811_v55 = vadd.f32 %v9178_v16, %v6458_v62 }
 0x5c1   : > { %v6469_v5 = vadd.f32 %v9075_v6, %v11721_v31 }
 0x5c2   : > { %v11814_v50 = vadd.f32 %v9181_v2, %v6461_v53 }
 0x5c3   : > { %v9076_v1 = vpop.f32.mrb[172].mxu1 }
 0x5c4   : > { %v9182_v43 = vpop.f32.mrb[200].mxu0  ;;  %v9077_v42 = vpop.f32.mrb[173].mxu1 }
 0x5c5   : > { %v9078_v48 = vadd.f32 %v9077_v42, %v9076_v1  ;;  %v9183_v63 = vpop.f32.mrb[201].mxu0  ;;  %v9079_v23 = vpop.f32.mrb[174].mxu1 }
 0x5c6   : > { %v9184_v3 = vadd.f32 %v9183_v63, %v9182_v43  ;;  %v9185_v14 = vpop.f32.mrb[202].mxu0  ;;  %v9080_v15 = vpop.f32.mrb[175].mxu1 }
 0x5c7   : > { %v6474_v29 = vadd.f32 %v9078_v48, %v11725_v12  ;;  %v9081_v47 = vadd.f32 %v9080_v15, %v9079_v23  ;;  %v9186_v45 = vpop.f32.mrb[203].mxu0 }
 0x5c8   : > { %v9187_v60 = vadd.f32 %v9186_v45, %v9185_v14  ;;  %v11817_v38 = vadd.f32 %v9184_v3, %v6466_v36 }
 0x5c9   : > { %v6477_v31 = vadd.f32 %v9081_v47, %v11727_v18 }
 0x5ca   : > { %v11820_v62 = vadd.f32 %v9187_v60, %v6469_v5 }
 0x5cb   : > { %v9082_v17 = vpop.f32.mrb[176].mxu1 }
 0x5cc   : > { %v9188_v51 = vpop.f32.mrb[204].mxu0  ;;  %v9083_v0 = vpop.f32.mrb[177].mxu1 }
 0x5cd   : > { %v9084_v53 = vadd.f32 %v9083_v0, %v9082_v17  ;;  %v9189_v40 = vpop.f32.mrb[205].mxu0  ;;  %v9085_v24 = vpop.f32.mrb[178].mxu1 }
 0x5ce   : > { %v9190_v54 = vadd.f32 %v9189_v40, %v9188_v51  ;;  %v9191_v46 = vpop.f32.mrb[206].mxu0  ;;  %v9086_v4 = vpop.f32.mrb[179].mxu1 }
 0x5cf   : > { %v6482_v12 = vadd.f32 %v9084_v53, %v11731_v59  ;;  %v9087_v30 = vadd.f32 %v9086_v4, %v9085_v24  ;;  %v9192_v16 = vpop.f32.mrb[207].mxu0 }
 0x5d0   : > { %v9193_v37 = vadd.f32 %v9192_v16, %v9191_v46  ;;  %v11823_v28 = vadd.f32 %v9190_v54, %v6474_v29 }
 0x5d1   : > { %v6485_v18 = vadd.f32 %v9087_v30, %v11733_v27 }
 0x5d2   : > { %v11826_v36 = vadd.f32 %v9193_v37, %v6477_v31 }
 0x5d3   : > { %v9088_v6 = vpop.f32.mrb[180].mxu1 }
 0x5d4   : > { %v9194_v22 = vpop.f32.mrb[208].mxu0  ;;  %v9089_v2 = vpop.f32.mrb[181].mxu1 }
 0x5d5   : > { %v9090_v5 = vadd.f32 %v9089_v2, %v9088_v6  ;;  %v9195_v1 = vpop.f32.mrb[209].mxu0  ;;  %v9091_v43 = vpop.f32.mrb[182].mxu1 }
 0x5d6   : > { %v9196_v42 = vadd.f32 %v9195_v1, %v9194_v22  ;;  %v9197_v48 = vpop.f32.mrb[210].mxu0  ;;  %v9092_v63 = vpop.f32.mrb[183].mxu1 }
 0x5d7   : > { %v6490_v59 = vadd.f32 %v9090_v5, %v11737_v58  ;;  %v9093_v23 = vadd.f32 %v9092_v63, %v9091_v43  ;;  %v9198_v3 = vpop.f32.mrb[211].mxu0 }
 0x5d8   : > { %v9199_v14 = vadd.f32 %v9198_v3, %v9197_v48  ;;  %v11829_v15 = vadd.f32 %v9196_v42, %v6482_v12 }
 0x5d9   : > { %v6493_v27 = vadd.f32 %v9093_v23, %v11739_v34 }
 0x5da   : > { %v11832_v29 = vadd.f32 %v9199_v14, %v6485_v18 }
 0x5db   : > { %v9094_v47 = vpop.f32.mrb[184].mxu1 }
 0x5dc   : > { %v9200_v45 = vpop.f32.mrb[212].mxu0  ;;  %v9095_v60 = vpop.f32.mrb[185].mxu1 }
 0x5dd   : > { %v9096_v31 = vadd.f32 %v9095_v60, %v9094_v47  ;;  %v9201_v17 = vpop.f32.mrb[213].mxu0  ;;  %v9097_v51 = vpop.f32.mrb[186].mxu1 }
 0x5de   : > { %v9202_v0 = vadd.f32 %v9201_v17, %v9200_v45  ;;  %v9203_v53 = vpop.f32.mrb[214].mxu0  ;;  %v9098_v40 = vpop.f32.mrb[187].mxu1 }
 0x5df   : > { %v6498_v58 = vadd.f32 %v9096_v31, %v11743_v41  ;;  %v9099_v24 = vadd.f32 %v9098_v40, %v9097_v51  ;;  %v9204_v54 = vpop.f32.mrb[215].mxu0 }
 0x5e0   : > { %v9205_v46 = vadd.f32 %v9204_v54, %v9203_v53  ;;  %v11835_v4 = vadd.f32 %v9202_v0, %v6490_v59 }
 0x5e1   : > { %v6501_v34 = vadd.f32 %v9099_v24, %v11746_v9 }
 0x5e2   : > { %v11838_v12 = vadd.f32 %v9205_v46, %v6493_v27 }
 0x5e3   : > { %v9100_v30 = vpop.f32.mrb[188].mxu1 }
 0x5e4   : > { %v9206_v16 = vpop.f32.mrb[216].mxu0  ;;  %v9101_v37 = vpop.f32.mrb[189].mxu1 }
 0x5e5   : > { %v9102_v18 = vadd.f32 %v9101_v37, %v9100_v30  ;;  %v9207_v6 = vpop.f32.mrb[217].mxu0  ;;  %v9103_v22 = vpop.f32.mrb[190].mxu1 }
 0x5e6   : > { %v9208_v2 = vadd.f32 %v9207_v6, %v9206_v16  ;;  %v9209_v5 = vpop.f32.mrb[218].mxu0  ;;  %v9104_v1 = vpop.f32.mrb[191].mxu1 }
 0x5e7   : > { %v6506_v41 = vadd.f32 %v9102_v18, %v11750_v21  ;;  %v9105_v43 = vadd.f32 %v9104_v1, %v9103_v22  ;;  %v9210_v42 = vpop.f32.mrb[219].mxu0 }
 0x5e8   : > { %v9211_v48 = vadd.f32 %v9210_v42, %v9209_v5  ;;  %v11841_v63 = vadd.f32 %v9208_v2, %v6498_v58 }
 0x5e9   : > { %v6509_v9 = vadd.f32 %v9105_v43, %v11752_v57 }
 0x5ea   : > { %v11844_v59 = vadd.f32 %v9211_v48, %v6501_v34 }
 0x5eb   : > { %v9106_v23 = vpop.f32.mrb[192].mxu1 }
 0x5ec   : > { %v9212_v3 = vpop.f32.mrb[220].mxu0  ;;  %v9107_v14 = vpop.f32.mrb[193].mxu1 }
 0x5ed   : > { %v9108_v27 = vadd.f32 %v9107_v14, %v9106_v23  ;;  %v9213_v47 = vpop.f32.mrb[221].mxu0  ;;  %v9109_v45 = vpop.f32.mrb[194].mxu1 }
 0x5ee   : > { %v9214_v60 = vadd.f32 %v9213_v47, %v9212_v3  ;;  %v9215_v31 = vpop.f32.mrb[222].mxu0  ;;  %v9110_v17 = vpop.f32.mrb[195].mxu1 }
 0x5ef   : > { %v6514_v21 = vadd.f32 %v9108_v27, %v11756_v26  ;;  %v9111_v51 = vadd.f32 %v9110_v17, %v9109_v45  ;;  %v9216_v0 = vpop.f32.mrb[223].mxu0 }
 0x5f0   : > { %v9217_v53 = vadd.f32 %v9216_v0, %v9215_v31  ;;  %v11847_v40 = vadd.f32 %v9214_v60, %v6506_v41 }
 0x5f1   : > { %v6517_v57 = vadd.f32 %v9111_v51, %v11758_v25 }
 0x5f2   : > { %v11850_v58 = vadd.f32 %v9217_v53, %v6509_v9 }
 0x5f3   : > { %v9112_v24 = vpop.f32.mrb[196].mxu1 }
 0x5f4   : > { %v9218_v54 = vpop.f32.mrb[224].mxu0  ;;  %v9113_v46 = vpop.f32.mrb[197].mxu1 }
 0x5f5   : > { %v9114_v34 = vadd.f32 %v9113_v46, %v9112_v24  ;;  %v9219_v30 = vpop.f32.mrb[225].mxu0  ;;  %v9115_v16 = vpop.f32.mrb[198].mxu1 }
 0x5f6   : > { %v9220_v37 = vadd.f32 %v9219_v30, %v9218_v54  ;;  %v9221_v18 = vpop.f32.mrb[226].mxu0  ;;  %v9116_v6 = vpop.f32.mrb[199].mxu1 }
 0x5f7   : > { %v6522_v26 = vadd.f32 %v9114_v34, %v11762_v13  ;;  %v9117_v22 = vadd.f32 %v9116_v6, %v9115_v16  ;;  %v9222_v2 = vpop.f32.mrb[227].mxu0 }
 0x5f8   : > { %v9223_v5 = vadd.f32 %v9222_v2, %v9221_v18  ;;  %v11853_v1 = vadd.f32 %v9220_v37, %v6514_v21 }
 0x5f9   : > { %v6525_v25 = vadd.f32 %v9117_v22, %v11764_v10 }
 0x5fa   : > { %v11856_v41 = vadd.f32 %v9223_v5, %v6517_v57 }
 0x5fb   : > { %v9118_v43 = vpop.f32.mrb[200].mxu1 }
 0x5fc   : > { %v9224_v42 = vpop.f32.mrb[228].mxu0  ;;  %v9119_v48 = vpop.f32.mrb[201].mxu1 }
 0x5fd   : > { %v9120_v9 = vadd.f32 %v9119_v48, %v9118_v43  ;;  %v9225_v23 = vpop.f32.mrb[229].mxu0  ;;  %v9121_v3 = vpop.f32.mrb[202].mxu1 }
 0x5fe   : > { %v9226_v14 = vadd.f32 %v9225_v23, %v9224_v42  ;;  %v9227_v27 = vpop.f32.mrb[230].mxu0  ;;  %v9122_v47 = vpop.f32.mrb[203].mxu1 }
 0x5ff   : > { %v6530_v13 = vadd.f32 %v9120_v9, %v11768_v56  ;;  %v9123_v45 = vadd.f32 %v9122_v47, %v9121_v3  ;;  %v9228_v60 = vpop.f32.mrb[231].mxu0 }
 0x600   : > { %v9229_v31 = vadd.f32 %v9228_v60, %v9227_v27  ;;  %v11859_v17 = vadd.f32 %v9226_v14, %v6522_v26 }
 0x601   : > { %v6533_v10 = vadd.f32 %v9123_v45, %v11770_v32 }
 0x602   : > { %v11862_v21 = vadd.f32 %v9229_v31, %v6525_v25 }
 0x603   : > { %v9124_v51 = vpop.f32.mrb[204].mxu1 }
 0x604   : > { %v9230_v0 = vpop.f32.mrb[232].mxu0  ;;  %v9125_v53 = vpop.f32.mrb[205].mxu1 }
 0x605   : > { %v9126_v57 = vadd.f32 %v9125_v53, %v9124_v51  ;;  %v9231_v24 = vpop.f32.mrb[233].mxu0  ;;  %v9127_v54 = vpop.f32.mrb[206].mxu1 }
 0x606   : > { %v9232_v46 = vadd.f32 %v9231_v24, %v9230_v0  ;;  %v9233_v34 = vpop.f32.mrb[234].mxu0  ;;  %v9128_v30 = vpop.f32.mrb[207].mxu1 }
 0x607   : > { %v6538_v56 = vadd.f32 %v9126_v57, %v11775_v8  ;;  %v9129_v16 = vadd.f32 %v9128_v30, %v9127_v54  ;;  %v9234_v37 = vpop.f32.mrb[235].mxu0 }
 0x608   : > { %v9235_v18 = vadd.f32 %v9234_v37, %v9233_v34  ;;  %v11865_v6 = vadd.f32 %v9232_v46, %v6530_v13 }
 0x609   : > { %v6541_v32 = vadd.f32 %v9129_v16, %v11778_v39 }
 0x60a   : > { %v11869_v26 = vadd.f32 %v9235_v18, %v6533_v10 }
 0x60b   : > { %v9284_v22 = vpop.f32.mrb[208].mxu1 }
 0x60c   : > { %v9236_v2 = vpop.f32.mrb[236].mxu0  ;;  %v6748_v5 = vadd.f32 %v9284_v22, %v11787_v11  ;;  %v6739_v25 = vpop.f32.mrb[209].mxu1 }
 0x60d   : > { %v9237_v8 = vpop.f32.mrb[237].mxu0  ;;  %v6740_v43 = vadd.f32 %v6739_v25, %v11781_v33  ;;  %v9285_v39 = vpop.f32.mrb[210].mxu1 }
 0x60e   : > { %v6868_v42 = vmax.f32 %v6748_v5, 0.0  ;;  %v9238_v48 = vadd.f32 %v9237_v8, %v9236_v2  ;;  %v9239_v9 = vpop.f32.mrb[238].mxu0  ;;  %v6751_v23 = vadd.f32 %v9285_v39, %v11790_v44  ;;  %v6742_v11 = vpop.f32.mrb[211].mxu1 }
 0x60f   : > { %v6866_v3 = vmax.f32 %v6740_v43, 0.0  ;;  %v9240_v14 = vpop.f32.mrb[239].mxu0  ;;  %v6743_v27 = vadd.f32 %v6742_v11, %v11784_v61 }
 0x610   : > { %6900 = vst [vmem:[%s11875_s18 + $0x10] sm:$0xff] %v6868_v42  ;;  %v6869_v47 = vmax.f32 %v6751_v23, 0.0  ;;  %v9241_v13 = vadd.f32 %v9240_v14, %v9239_v9  ;;  %v11881_v45 = vadd.f32 %v9238_v48, %v6538_v56  ;;  %v6970_v61 = vmul.f32 %v6868_v42, %v6868_v42 }
 0x611   : > { %6898 = vst [vmem:[%s11875_s18] sm:$0xff] %v6866_v3  ;;  %v6867_v33 = vmax.f32 %v6743_v27, 0.0  ;;  %v6968_v31 = vmul.f32 %v6866_v3, %v6866_v3 }
 0x612   : > { %6901 = vst [vmem:[%s11875_s18 + $0x18] sm:$0xff] %v6869_v47  ;;  %v11885_v60 = vadd.f32 %v9241_v13, %v6541_v32  ;;  %v6971_v34 = vmul.f32 %v6869_v47, %v6869_v47 }
 0x613   : > { %6899 = vst [vmem:[%s11875_s18 + $0x8] sm:$0xff] %v6867_v33  ;;  %v6930_v10 = vadd.f32 %v6867_v33, %v6866_v3  ;;  %v6969_v51 = vmul.f32 %v6867_v33, %v6867_v33  ;;  %v9288_v44 = vpop.f32.mrb[212].mxu1 }
 0x614   : > { %v6764_v0 = vadd.f32 %v9288_v44, %v11799_v49  ;;  %v6755_v53 = vpop.f32.mrb[213].mxu1 }
 0x615   : > { %v6931_v57 = vadd.f32 %v6930_v10, %v6868_v42  ;;  %v7000_v24 = vadd.f32 %v6969_v51, %v6968_v31  ;;  %v6756_v54 = vadd.f32 %v6755_v53, %v11793_v35  ;;  %v9289_v46 = vpop.f32.mrb[214].mxu1 }
 0x616   : > { %v6872_v30 = vmax.f32 %v6764_v0, 0.0  ;;  %v6767_v56 = vadd.f32 %v9289_v46, %v11802_v20  ;;  %v6758_v16 = vpop.f32.mrb[215].mxu1 }
 0x617   : > { %v7001_v37 = vadd.f32 %v7000_v24, %v6970_v61  ;;  %v6870_v18 = vmax.f32 %v6756_v54, 0.0  ;;  %v6932_v32 = vadd.f32 %v6931_v57, %v6869_v47  ;;  %v6759_v49 = vadd.f32 %v6758_v16, %v11796_v19 }
 0x618   : > { %6904 = vst [vmem:[%s11875_s18 + $0x30] sm:$0xff] %v6872_v30  ;;  %v6873_v22 = vmax.f32 %v6767_v56, 0.0  ;;  %v6974_v9 = vmul.f32 %v6872_v30, %v6872_v30 }
 0x619   : > { %6902 = vst [vmem:[%s11875_s18 + $0x20] sm:$0xff] %v6870_v18  ;;  %v6933_v2 = vadd.f32 %v6932_v32, %v6870_v18  ;;  %v6972_v5 = vmul.f32 %v6870_v18, %v6870_v18  ;;  %v7002_v25 = vadd.f32 %v7001_v37, %v6971_v34  ;;  %v6871_v35 = vmax.f32 %v6759_v49, 0.0 }
 0x61a   : > { %6905 = vst [vmem:[%s11875_s18 + $0x38] sm:$0xff] %v6873_v22  ;;  %v6975_v14 = vmul.f32 %v6873_v22, %v6873_v22 }
 0x61b   : > { %v7003_v8 = vadd.f32 %v7002_v25, %v6972_v5  ;;  %6903 = vst [vmem:[%s11875_s18 + $0x28] sm:$0xff] %v6871_v35  ;;  %v6934_v43 = vadd.f32 %v6933_v2, %v6871_v35  ;;  %v6973_v39 = vmul.f32 %v6871_v35, %v6871_v35  ;;  %v9292_v42 = vpop.f32.mrb[216].mxu1 }
 0x61c   : > { %v6780_v20 = vadd.f32 %v9292_v42, %v11811_v55  ;;  %v6771_v48 = vpop.f32.mrb[217].mxu1 }
 0x61d   : > { %v6935_v19 = vadd.f32 %v6934_v43, %v6872_v30  ;;  %v7004_v23 = vadd.f32 %v7003_v8, %v6973_v39  ;;  %v6772_v11 = vadd.f32 %v6771_v48, %v11805_v52  ;;  %v9293_v3 = vpop.f32.mrb[218].mxu1 }
 0x61e   : > { %v6876_v27 = vmax.f32 %v6780_v20, 0.0  ;;  %v6783_v47 = vadd.f32 %v9293_v3, %v11814_v50  ;;  %v6774_v13 = vpop.f32.mrb[219].mxu1 }
 0x61f   : > { %v7005_v33 = vadd.f32 %v7004_v23, %v6974_v9  ;;  %v6874_v31 = vmax.f32 %v6772_v11, 0.0  ;;  %v6936_v10 = vadd.f32 %v6935_v19, %v6873_v22  ;;  %v6775_v55 = vadd.f32 %v6774_v13, %v11808_v7 }
 0x620   : > { %6908 = vst [vmem:[%s11875_s18 + $0x50] sm:$0xff] %v6876_v27  ;;  %v6877_v51 = vmax.f32 %v6783_v47, 0.0  ;;  %v6978_v34 = vmul.f32 %v6876_v27, %v6876_v27 }
 0x621   : > { %6906 = vst [vmem:[%s11875_s18 + $0x40] sm:$0xff] %v6874_v31  ;;  %v6937_v44 = vadd.f32 %v6936_v10, %v6874_v31  ;;  %v6976_v0 = vmul.f32 %v6874_v31, %v6874_v31  ;;  %v7006_v53 = vadd.f32 %v7005_v33, %v6975_v14  ;;  %v6875_v52 = vmax.f32 %v6775_v55, 0.0 }
 0x622   : > { %6909 = vst [vmem:[%s11875_s18 + $0x58] sm:$0xff] %v6877_v51  ;;  %v6979_v37 = vmul.f32 %v6877_v51, %v6877_v51 }
 0x623   : > { %v7007_v61 = vadd.f32 %v7006_v53, %v6976_v0  ;;  %6907 = vst [vmem:[%s11875_s18 + $0x48] sm:$0xff] %v6875_v52  ;;  %v6938_v57 = vadd.f32 %v6937_v44, %v6875_v52  ;;  %v6977_v24 = vmul.f32 %v6875_v52, %v6875_v52  ;;  %v9296_v54 = vpop.f32.mrb[220].mxu1 }
 0x624   : > { %v6796_v50 = vadd.f32 %v9296_v54, %v11823_v28  ;;  %v6787_v46 = vpop.f32.mrb[221].mxu1 }
 0x625   : > { %v6939_v7 = vadd.f32 %v6938_v57, %v6876_v27  ;;  %v7008_v30 = vadd.f32 %v7007_v61, %v6977_v24  ;;  %v6788_v56 = vadd.f32 %v6787_v46, %v11817_v38  ;;  %v9297_v16 = vpop.f32.mrb[222].mxu1 }
 0x626   : > { %v6880_v18 = vmax.f32 %v6796_v50, 0.0  ;;  %v6799_v32 = vadd.f32 %v9297_v16, %v11826_v36  ;;  %v6790_v49 = vpop.f32.mrb[223].mxu1 }
 0x627   : > { %v7009_v22 = vadd.f32 %v7008_v30, %v6978_v34  ;;  %v6878_v2 = vmax.f32 %v6788_v56, 0.0  ;;  %v6940_v5 = vadd.f32 %v6939_v7, %v6877_v51  ;;  %v6791_v28 = vadd.f32 %v6790_v49, %v11820_v62 }
 0x628   : > { %6912 = vst [vmem:[%s11875_s18 + $0x70] sm:$0xff] %v6880_v18  ;;  %v6881_v25 = vmax.f32 %v6799_v32, 0.0  ;;  %v6982_v19 = vmul.f32 %v6880_v18, %v6880_v18 }
 0x629   : > { %6910 = vst [vmem:[%s11875_s18 + $0x60] sm:$0xff] %v6878_v2  ;;  %v6941_v35 = vadd.f32 %v6940_v5, %v6878_v2  ;;  %v6980_v8 = vmul.f32 %v6878_v2, %v6878_v2  ;;  %v7010_v43 = vadd.f32 %v7009_v22, %v6979_v37  ;;  %v6879_v38 = vmax.f32 %v6791_v28, 0.0 }
 0x62a   : > { %6913 = vst [vmem:[%s11875_s18 + $0x78] sm:$0xff] %v6881_v25  ;;  %v6983_v14 = vmul.f32 %v6881_v25, %v6881_v25 }
 0x62b   : > { %v7011_v39 = vadd.f32 %v7010_v43, %v6980_v8  ;;  %6911 = vst [vmem:[%s11875_s18 + $0x68] sm:$0xff] %v6879_v38  ;;  %v6942_v42 = vadd.f32 %v6941_v35, %v6879_v38  ;;  %v6981_v20 = vmul.f32 %v6879_v38, %v6879_v38  ;;  %v9300_v48 = vpop.f32.mrb[224].mxu1 }
 0x62c   : > { %v6812_v36 = vadd.f32 %v9300_v48, %v11835_v4  ;;  %v6803_v9 = vpop.f32.mrb[225].mxu1 }
 0x62d   : > { %v6943_v62 = vadd.f32 %v6942_v42, %v6880_v18  ;;  %v7012_v23 = vadd.f32 %v7011_v39, %v6981_v20  ;;  %v6804_v11 = vadd.f32 %v6803_v9, %v11829_v15  ;;  %v9301_v3 = vpop.f32.mrb[226].mxu1 }
 0x62e   : > { %v6884_v27 = vmax.f32 %v6812_v36, 0.0  ;;  %v6815_v47 = vadd.f32 %v9301_v3, %v11838_v12  ;;  %v6806_v13 = vpop.f32.mrb[227].mxu1 }
 0x62f   : > { %v7013_v33 = vadd.f32 %v7012_v23, %v6982_v19  ;;  %v6882_v31 = vmax.f32 %v6804_v11, 0.0  ;;  %v6944_v10 = vadd.f32 %v6943_v62, %v6881_v25  ;;  %v6807_v4 = vadd.f32 %v6806_v13, %v11832_v29 }
 0x630   : > { %6916 = vst [vmem:[%s11875_s18 + $0x90] sm:$0xff] %v6884_v27  ;;  %v6885_v55 = vmax.f32 %v6815_v47, 0.0  ;;  %v6986_v54 = vmul.f32 %v6884_v27, %v6884_v27 }
 0x631   : > { %6914 = vst [vmem:[%s11875_s18 + $0x80] sm:$0xff] %v6882_v31  ;;  %v6945_v51 = vadd.f32 %v6944_v10, %v6882_v31  ;;  %v6984_v44 = vmul.f32 %v6882_v31, %v6882_v31  ;;  %v7014_v0 = vadd.f32 %v7013_v33, %v6983_v14  ;;  %v6883_v15 = vmax.f32 %v6807_v4, 0.0 }
 0x632   : > { %6917 = vst [vmem:[%s11875_s18 + $0x98] sm:$0xff] %v6885_v55  ;;  %v6987_v7 = vmul.f32 %v6885_v55, %v6885_v55 }
 0x633   : > { %v7015_v53 = vadd.f32 %v7014_v0, %v6984_v44  ;;  %6915 = vst [vmem:[%s11875_s18 + $0x88] sm:$0xff] %v6883_v15  ;;  %v6946_v52 = vadd.f32 %v6945_v51, %v6883_v15  ;;  %v6985_v61 = vmul.f32 %v6883_v15, %v6883_v15  ;;  %v9304_v57 = vpop.f32.mrb[228].mxu1 }
 0x634   : > { %v6828_v12 = vadd.f32 %v9304_v57, %v11847_v40  ;;  %v6819_v24 = vpop.f32.mrb[229].mxu1 }
 0x635   : > { %v6947_v29 = vadd.f32 %v6946_v52, %v6884_v27  ;;  %v7016_v50 = vadd.f32 %v7015_v53, %v6985_v61  ;;  %v6820_v46 = vadd.f32 %v6819_v24, %v11841_v63  ;;  %v9305_v34 = vpop.f32.mrb[230].mxu1 }
 0x636   : > { %v6888_v30 = vmax.f32 %v6828_v12, 0.0  ;;  %v6831_v56 = vadd.f32 %v9305_v34, %v11850_v58  ;;  %v6822_v16 = vpop.f32.mrb[231].mxu1 }
 0x637   : > { %v7017_v37 = vadd.f32 %v7016_v50, %v6986_v54  ;;  %v6886_v18 = vmax.f32 %v6820_v46, 0.0  ;;  %v6948_v32 = vadd.f32 %v6947_v29, %v6885_v55  ;;  %v6823_v40 = vadd.f32 %v6822_v16, %v11844_v59 }
 0x638   : > { %6920 = vst [vmem:[%s11875_s18 + $0xb0] sm:$0xff] %v6888_v30  ;;  %v6889_v49 = vmax.f32 %v6831_v56, 0.0  ;;  %v6990_v38 = vmul.f32 %v6888_v30, %v6888_v30 }
 0x639   : > { %6918 = vst [vmem:[%s11875_s18 + $0xa0] sm:$0xff] %v6886_v18  ;;  %v6949_v22 = vadd.f32 %v6948_v32, %v6886_v18  ;;  %v6988_v2 = vmul.f32 %v6886_v18, %v6886_v18  ;;  %v7018_v5 = vadd.f32 %v7017_v37, %v6987_v7  ;;  %v6887_v63 = vmax.f32 %v6823_v40, 0.0 }
 0x63a   : > { %6921 = vst [vmem:[%s11875_s18 + $0xb8] sm:$0xff] %v6889_v49  ;;  %v6991_v48 = vmul.f32 %v6889_v49, %v6889_v49 }
 0x63b   : > { %v7019_v28 = vadd.f32 %v7018_v5, %v6988_v2  ;;  %6919 = vst [vmem:[%s11875_s18 + $0xa8] sm:$0xff] %v6887_v63  ;;  %v6950_v25 = vadd.f32 %v6949_v22, %v6887_v63  ;;  %v6989_v35 = vmul.f32 %v6887_v63, %v6887_v63  ;;  %v9308_v8 = vpop.f32.mrb[232].mxu1 }
 0x63c   : > { %v6844_v58 = vadd.f32 %v9308_v8, %v11859_v17  ;;  %v6835_v43 = vpop.f32.mrb[233].mxu1 }
 0x63d   : > { %v6951_v59 = vadd.f32 %v6950_v25, %v6888_v30  ;;  %v7020_v39 = vadd.f32 %v7019_v28, %v6989_v35  ;;  %v6836_v42 = vadd.f32 %v6835_v43, %v11853_v1  ;;  %v9309_v20 = vpop.f32.mrb[234].mxu1 }
 0x63e   : > { %v6892_v36 = vmax.f32 %v6844_v58, 0.0  ;;  %v6847_v9 = vadd.f32 %v9309_v20, %v11862_v21  ;;  %v6838_v19 = vpop.f32.mrb[235].mxu1 }
 0x63f   : > { %v7021_v62 = vadd.f32 %v7020_v39, %v6990_v38  ;;  %v6890_v23 = vmax.f32 %v6836_v42, 0.0  ;;  %v6952_v11 = vadd.f32 %v6951_v59, %v6889_v49  ;;  %v6839_v17 = vadd.f32 %v6838_v19, %v11856_v41 }
 0x640   : > { %6924 = vst [vmem:[%s11875_s18 + $0xd0] sm:$0xff] %v6892_v36  ;;  %v6893_v3 = vmax.f32 %v6847_v9, 0.0  ;;  %v6994_v55 = vmul.f32 %v6892_v36, %v6892_v36 }
 0x641   : > { %6922 = vst [vmem:[%s11875_s18 + $0xc0] sm:$0xff] %v6890_v23  ;;  %v6953_v14 = vadd.f32 %v6952_v11, %v6890_v23  ;;  %v6992_v27 = vmul.f32 %v6890_v23, %v6890_v23  ;;  %v7022_v47 = vadd.f32 %v7021_v62, %v6991_v48  ;;  %v6891_v1 = vmax.f32 %v6839_v17, 0.0 }
 0x642   : > { %6925 = vst [vmem:[%s11875_s18 + $0xd8] sm:$0xff] %v6893_v3  ;;  %v6995_v15 = vmul.f32 %v6893_v3, %v6893_v3 }
 0x643   : > { %v7023_v13 = vadd.f32 %v7022_v47, %v6992_v27  ;;  %6923 = vst [vmem:[%s11875_s18 + $0xc8] sm:$0xff] %v6891_v1  ;;  %v6954_v33 = vadd.f32 %v6953_v14, %v6891_v1  ;;  %v6993_v31 = vmul.f32 %v6891_v1, %v6891_v1  ;;  %v9312_v10 = vpop.f32.mrb[236].mxu1 }
 0x644   : > { %v6860_v21 = vadd.f32 %v9312_v10, %v11881_v45  ;;  %v6851_v4 = vpop.f32.mrb[237].mxu1 }
 0x645   : > { %v6955_v41 = vadd.f32 %v6954_v33, %v6892_v36  ;;  %v7024_v51 = vadd.f32 %v7023_v13, %v6993_v31  ;;  %v6852_v44 = vadd.f32 %v6851_v4, %v11865_v6  ;;  %v9313_v0 = vpop.f32.mrb[238].mxu1 }
 0x646   : > { %v6896_v53 = vmax.f32 %v6860_v21, 0.0  ;;  %v6863_v52 = vadd.f32 %v9313_v0, %v11885_v60  ;;  %v6854_v61 = vpop.f32.mrb[239].mxu1 }
 0x647   : > { %v7025_v57 = vadd.f32 %v7024_v51, %v6994_v55  ;;  %v6894_v12 = vmax.f32 %v6852_v44, 0.0  ;;  %v6956_v24 = vadd.f32 %v6955_v41, %v6893_v3  ;;  %v6855_v45 = vadd.f32 %v6854_v61, %v11869_v26 }
 0x648   : > { %6928 = vst [vmem:[%s11875_s18 + $0xf0] sm:$0xff] %v6896_v53  ;;  %v6897_v54 = vmax.f32 %v6863_v52, 0.0  ;;  %v6998_v60 = vmul.f32 %v6896_v53, %v6896_v53 }
 0x649   : > { %6926 = vst [vmem:[%s11875_s18 + $0xe0] sm:$0xff] %v6894_v12  ;;  %v6957_v29 = vadd.f32 %v6956_v24, %v6894_v12  ;;  %v6996_v50 = vmul.f32 %v6894_v12, %v6894_v12  ;;  %v7026_v46 = vadd.f32 %v7025_v57, %v6995_v15  ;;  %v6895_v6 = vmax.f32 %v6855_v45, 0.0 }
 0x64a   : > { %6929 = vst [vmem:[%s11875_s18 + $0xf8] sm:$0xff] %v6897_v54  ;;  %v6999_v37 = vmul.f32 %v6897_v54, %v6897_v54 }
 0x64b   : > { %v7027_v34 = vadd.f32 %v7026_v46, %v6996_v50  ;;  %6927 = vst [vmem:[%s11875_s18 + $0xe8] sm:$0xff] %v6895_v6  ;;  %v6958_v7 = vadd.f32 %v6957_v29, %v6895_v6  ;;  %v6997_v30 = vmul.f32 %v6895_v6, %v6895_v6 }
 0x64d   : > { %v6959_v56 = vadd.f32 %v6958_v7, %v6896_v53  ;;  %v7028_v16 = vadd.f32 %v7027_v34, %v6997_v30 }
 0x64f   : > { %v6960_v18 = vadd.f32 %v6959_v56, %v6897_v54  ;;  %v7029_v32 = vadd.f32 %v7028_v16, %v6998_v60 }
 0x651   : > { %v6961_v26 = vrot.slane %v6960_v18, 4  ;;  %v7030_v40 = vadd.f32 %v7029_v32, %v6999_v37 }
 0x653   : > { %v6962_v49 = vadd.f32 %v6961_v26, %v6960_v18  ;;  %v7031_v22 = vrot.slane %v7030_v40, 4 }
 0x655   : > { %v6963_v2 = vrot.slane %v6962_v49, 2  ;;  %v7032_v5 = vadd.f32 %v7031_v22, %v7030_v40 }
 0x657   : > { %v6964_v63 = vadd.f32 %v6963_v2, %v6962_v49  ;;  %v7033_v28 = vrot.slane %v7032_v5, 2 }
 0x659   : > { %v6965_v25 = vrot.slane %v6964_v63, 1  ;;  %v7034_v35 = vadd.f32 %v7033_v28, %v7032_v5 }
 0x65b   : > { %v6966_v8 = vadd.f32 %v6965_v25, %v6964_v63  ;;  %v7035_v58 = vrot.slane %v7034_v35, 1 }
 0x65d   : > { %6967 = vst [vmem:[%s363_s22] sm:$0x1] %v6966_v8  ;;  %v7036_v43 = vadd.f32 %v7035_v58, %v7034_v35 }
 0x65f   : > { %7037 = vst [vmem:[%s363_s22 + $0x1] sm:$0x1] %v7036_v43 }
 0x660 PF: > { %s20_s30 = sadd.s32 1, %s9633_s30  }
 0x661   : > { %p17_p4 = scmp.ge.s32.totalorder %s20_s30, 4  }
 0x663   :  { %19 = sbr.rel (!%p17_p4) target bundleno = 1 (0x1), region = 108 }

</bundles_post_ra>
